<compile_context>
chip_gen: v7x
topology: tpu7x:2x2x1
jax: 0.10.0
libtpu: 0.0.40
codegen_flags: <defaults>
</compile_context>

<pallas_src>
import functools

import jax
import jax.numpy as jnp
import numpy as np
from jax import lax
from jax.experimental import pallas as pl
from jax.experimental.pallas import tpu as pltpu


# ----------------------------------------------------------------------------
# In-kernel building block
# ----------------------------------------------------------------------------
def _conv3x3_flat(groups, scale, bias, W, act="relu"):
    """Valid 3x3 conv on a row-major flattened feature map ("shifted slab").

    `groups` is a list of (x, tap_w) split-K groups: x is an (R, Cin) bf16
    slab whose row i*W + j holds pixel (i, j); tap_w(kh) returns the
    (3*Cin, Cout) bf16 weight with the 3 kw taps folded into the contraction
    dim.  Returns an (R - 2*W - 2, Cout) float32 slab in the same layout.
    Columns >= valid_width - 2 of each spatial row carry don't-care values
    that are never consumed as valid output, so each conv is only 3 wide-K
    MXU matmuls per group.
    """
    R = groups[0][0].shape[0]
    L = R - 2 * W - 2
    acc = None
    for x, tap_w in groups:
        # Fold the kw=0/1/2 shifted slabs into the contraction dim (K=3*Cin).
        xcat = jnp.concatenate([x[0:R - 2, :], x[1:R - 1, :], x[2:R, :]],
                               axis=-1)                       # (R-2, 3*Cin)
        for kh in range(3):
            d = jnp.dot(xcat[kh * W:kh * W + L, :], tap_w(kh),
                        preferred_element_type=jnp.float32)
            acc = d if acc is None else acc + d
    y = acc * scale + bias
    if act == "relu":
        y = jnp.maximum(y, 0.0)
    return y


# ----------------------------------------------------------------------------
# Fused kernel (one batch element per grid step)
# ----------------------------------------------------------------------------
def _fused_kernel(zc_ref, z2c_ref, xc_ref, m_ref,
                  int_ref, zkm_ref, xkm_ref,
                  dsw_ref, dss_ref, dsb_ref,
                  ds2w_ref, ds2s_ref, ds2b_ref,
                  mt1w_ref, mt1s_ref, mt1b_ref,
                  mt2w_ref, mt2s_ref, mt2b_ref,
                  ckw_ref, cks_ref, ckb_ref,
                  csw_ref, css_ref, csb_ref,
                  qw_ref, qs_ref, qb_ref,
                  supw_ref, sups_ref, supb_ref,
                  gw_ref, gs_ref, gb_ref,
                  fiw_ref, fis_ref, fib_ref,
                  h1w_ref, h1s_ref, h1b_ref,
                  h2wt_ref, h2s_ref, h2b_ref,
                  o_ref, *, P, Hx):
    # ---------------- template branch ---------------------------------------
    # ds 1x1 (single K=3*Cc matmul over the level-concatenated input) + BN.
    def ds1x1(x_ref):
        y = jnp.dot(x_ref[...], dsw_ref[...],
                    preferred_element_type=jnp.float32)
        return y * dss_ref[...] + dsb_ref[...]

    # Zero the pad ring so the following "same" 3x3 conv runs as a plain
    # valid conv on the padded (P x P) grid: the first template uses the
    # zero-padded mask, the second the interior indicator.
    kern = ds1x1(zc_ref) * m_ref[...]            # shape_kernel * mask
    kern2 = ds1x1(z2c_ref) * int_ref[...]        # shape_kernel2

    # mergeTemplete[0]: 3x3 "same" conv over concat(kern, kern2) -> 2 split-K
    # groups, each with the kw taps folded into K.
    cur = _conv3x3_flat(
        [(kern.astype(jnp.bfloat16), lambda kh: mt1w_ref[0, kh]),
         (kern2.astype(jnp.bfloat16), lambda kh: mt1w_ref[1, kh])],
        mt1s_ref[...], mt1b_ref[...], P)

    # mergeTemplete[1]: 1x1 conv + BN + ReLU.
    cur = jnp.dot(cur.astype(jnp.bfloat16), mt2w_ref[...],
                  preferred_element_type=jnp.float32)
    cur = jnp.maximum(cur * mt2s_ref[...] + mt2b_ref[...], 0.0)

    # conv_kernel2: three (valid 3x3 conv + BN + ReLU) blocks.
    for i in range(3):
        cur = _conv3x3_flat(
            [(cur.astype(jnp.bfloat16), lambda kh, i=i: ckw_ref[i, kh])],
            cks_ref[i], ckb_ref[i], P)
    zf = cur.astype(jnp.bfloat16)                # (Lz, Cc) slab, row stride P

    # ---------------- search branch ------------------------------------------
    cur = (jnp.dot(xc_ref[...], ds2w_ref[...],
                   preferred_element_type=jnp.float32)
           * ds2s_ref[...] + ds2b_ref[...])
    for i in range(3):
        cur = _conv3x3_flat(
            [(cur.astype(jnp.bfloat16), lambda kh, i=i: csw_ref[i, kh])],
            css_ref[i], csb_ref[i], Hx)
    xf = cur.astype(jnp.bfloat16)                # (Lx, Cc) slab, row stride Hx

    # ---------------- Graph_Attention_Union + head ---------------------------
    def proj(x, w_ref, s_ref, b_ref, act=None):
        y = jnp.dot(x, w_ref[...], preferred_element_type=jnp.float32)
        y = y * s_ref[...] + b_ref[...]
        if act == "relu":
            y = jnp.maximum(y, 0.0)
        return y.astype(jnp.bfloat16)

    xt = proj(xf, qw_ref, qs_ref, qb_ref)                 # query(xf)
    zt = proj(zf, supw_ref, sups_ref, supb_ref)           # support(zf)
    xg = proj(xf, gw_ref, gs_ref, gb_ref, act="relu")     # g(xf)
    zg = proj(zf, gw_ref, gs_ref, gb_ref, act="relu")     # g(zf)

    def attend(q, k, v, kmask):
        # softmax(q @ k^T, axis=-1) @ v ; don't-care slab key rows are masked
        # additively so the un-compacted slabs can be used directly.
        s = lax.dot_general(q, k, (((1,), (1,)), ((), ())),
                            preferred_element_type=jnp.float32)
        s = s + kmask
        s = s - jnp.max(s, axis=-1, keepdims=True)
        p = jnp.exp(s)
        p = p * pl.reciprocal(jnp.sum(p, axis=-1, keepdims=True), approx=True)
        return jnp.dot(p.astype(jnp.bfloat16), v,
                       preferred_element_type=jnp.float32)

    emb = attend(xt, zt, zg, zkm_ref[...])       # cross attention  (Lx, Cc)
    self_emb = attend(xt, xt, xg, xkm_ref[...])  # self attention   (Lx, Cc)

    # fi 1x1 over concat([embedding, self_embedding, xf_g]): one K=3*Cc matmul.
    cat = jnp.concatenate([emb.astype(jnp.bfloat16),
                           self_emb.astype(jnp.bfloat16), xg], axis=-1)
    y = jnp.dot(cat, fiw_ref[...], preferred_element_type=jnp.float32)
    y = jnp.maximum(y * fis_ref[...] + fib_ref[...], 0.0)

    # head: 1x1 conv + BN + ReLU, then 1x1 conv (+bias), emitted lane-dense
    # as (2, Lx) so the single output store is wide (no width-2 stores, no
    # post-kernel transpose).
    h = jnp.dot(y.astype(jnp.bfloat16), h1w_ref[...],
                preferred_element_type=jnp.float32)
    h = jnp.maximum(h * h1s_ref[...] + h1b_ref[...], 0.0)
    out = lax.dot_general(h2wt_ref[...], h.astype(jnp.bfloat16),
                          (((1,), (1,)), ((), ())),
                          preferred_element_type=jnp.float32)    # (2, Lx)
    out = out * h2s_ref[...] + h2b_ref[...]
    o_ref[...] = out.astype(o_ref.dtype)


# ----------------------------------------------------------------------------
# pallas_call wrapper
# ----------------------------------------------------------------------------
def _bspec_batched(a):
    nd = a.ndim
    return pl.BlockSpec((None,) + a.shape[1:],
                        lambda b, nd=nd: (b,) + (0,) * (nd - 1))


def _bspec_full(a):
    nd = a.ndim
    return pl.BlockSpec(a.shape, lambda b, nd=nd: (0,) * nd)


def fused_head(zc, z2c, xc, mflat, interior, zkmask, xkmask, p, *, P, Hx):
    B = zc.shape[0]
    Lx = Hx * Hx - 3 * (2 * Hx + 2)
    batched = [zc, z2c, xc, mflat]
    const = [interior, zkmask, xkmask,
             p["ds_w"], p["ds_s"], p["ds_b"],
             p["ds2_w"], p["ds2_s"], p["ds2_b"],
             p["mt1_w"], p["mt1_s"], p["mt1_b"],
             p["mt2_w"], p["mt2_s"], p["mt2_b"],
             p["ck_w"], p["ck_s"], p["ck_b"],
             p["cs_w"], p["cs_s"], p["cs_b"],
             p["q_w"], p["q_s"], p["q_b"],
             p["sup_w"], p["sup_s"], p["sup_b"],
             p["g_w"], p["g_s"], p["g_b"],
             p["fi_w"], p["fi_s"], p["fi_b"],
             p["h1_w"], p["h1_s"], p["h1_b"],
             p["h2_wt"], p["h2_s"], p["h2_b"]]
    return pl.pallas_call(
        functools.partial(_fused_kernel, P=P, Hx=Hx),
        out_shape=jax.ShapeDtypeStruct((B, 2, Lx), jnp.float32),
        grid=(B,),
        in_specs=[_bspec_batched(a) for a in batched]
                 + [_bspec_full(a) for a in const],
        out_specs=pl.BlockSpec((None, 2, Lx), lambda b: (b, 0, 0)),
        compiler_params=pltpu.CompilerParams(
            # Batch axis spread across v7x's two TensorCores; no-op on
            # single-TC v5e/v6e.
            dimension_semantics=("parallel",),
            # Explicit budget, safe on every generation (v7x: 64 MiB phys).
            # Re-budget if Cc scales from the toy 32 to production 256.
            vmem_limit_bytes=32 * 1024 * 1024),
    )(*batched, *const)


# ----------------------------------------------------------------------------
# Model forward (layout glue in XLA, hot path in the single fused kernel)
# ----------------------------------------------------------------------------
def head_forward(z_f, z_f2, x_f, mask, p):
    """Inputs NCHW (lists of 3 backbone levels); output NCHW (B, 2, Sx, Sx)."""
    B, Cc, Hz, _ = z_f[0].shape
    Hx = x_f[0].shape[2]
    P = Hz + 2
    Sz = Hz - 6
    Sx = Hx - 6
    Lz = P * P - 4 * (2 * P + 2)      # template slab length after conv tower
    Lx = Hx * Hx - 3 * (2 * Hx + 2)   # search slab length after conv tower

    def nhwc_cat(ts, pad):
        # Channel-concatenate the 3 backbone levels while doing the NHWC
        # transpose, so the in-kernel ds 1x1 becomes a single K=3*Cc matmul.
        t = jnp.concatenate([jnp.transpose(a, (0, 2, 3, 1)) for a in ts],
                            axis=-1).astype(jnp.bfloat16)
        if pad:
            t = jnp.pad(t, ((0, 0), (1, 1), (1, 1), (0, 0)))
        s = t.shape
        return t.reshape(s[0], s[1] * s[2], s[3])

    zc = nhwc_cat(z_f, True)          # (B, P*P, 3*Cc), zero border
    z2c = nhwc_cat(z_f2, True)
    xc = nhwc_cat(x_f, False)         # (B, Hx*Hx, 3*Cc)

    m = jnp.transpose(mask, (0, 2, 3, 1))
    m = jnp.pad(m, ((0, 0), (1, 1), (1, 1), (0, 0)))
    mflat = m.reshape(B, P * P, 1).astype(jnp.float32)

    # Static layout constants (host-side numpy -> resident VMEM blocks).
    interior = np.pad(np.ones((Hz, Hz, 1), np.float32),
                      ((1, 1), (1, 1), (0, 0))).reshape(P * P, 1)

    def key_mask(L, W, S):
        r = np.arange(L)
        return np.where((r % W) < S, 0.0, -1e30).astype(np.float32)\
                 .reshape(1, L)

    zkmask = key_mask(Lz, P, Sz)
    xkmask = key_mask(Lx, Hx, Sx)

    out = fused_head(zc, z2c, xc, mflat,
                     jnp.asarray(interior), jnp.asarray(zkmask),
                     jnp.asarray(xkmask), p, P=P, Hx=Hx)     # (B, 2, Lx)

    # Peel the don't-care slab columns off the lane-dense head output
    # (cheap XLA reshape/slice; already channel-major so no transpose).
    out = jnp.pad(out, ((0, 0), (0, 0), (0, Sx * Hx - Lx)))
    out = out.reshape(B, 2, Sx, Hx)[:, :, :, :Sx]
    return out                                               # (B, 2, Sx, Sx)


# ----------------------------------------------------------------------------
# Deterministic synthetic parameters
# ----------------------------------------------------------------------------
def init_params(key, cc):
    cin = 3 * cc
    keys = iter(jax.random.split(key, 128))
    nxt = lambda: next(keys)

    def w1(ci, co):
        return (jax.random.normal(nxt(), (ci, co), jnp.float32)
                / np.sqrt(ci)).astype(jnp.float32)

    def w3(ci, co):
        return (jax.random.normal(nxt(), (9, ci, co), jnp.float32)
                / np.sqrt(9 * ci)).astype(jnp.float32)

    def affine(co, conv_bias=False, bn=True):
        b = (0.05 * jax.random.normal(nxt(), (co,), jnp.float32)
             if conv_bias else jnp.zeros((co,), jnp.float32))
        if bn:
            gamma = 1.0 + 0.1 * jax.random.normal(nxt(), (co,), jnp.float32)
            beta = 0.05 * jax.random.normal(nxt(), (co,), jnp.float32)
            mean = 0.05 * jax.random.normal(nxt(), (co,), jnp.float32)
            var = 1.0 + 0.1 * jnp.abs(jax.random.normal(nxt(), (co,), jnp.float32))
            s = gamma / jnp.sqrt(var + 1e-5)
            return s, (b - mean) * s + beta
        return jnp.ones((co,), jnp.float32), b

    p = {}
    p["ds_w"] = w1(cin, cc); p["ds_s"], p["ds_b"] = affine(cc, False, True)
    p["ds2_w"] = w1(cin, cc); p["ds2_s"], p["ds2_b"] = affine(cc, False, True)
    p["mt1_w"] = w3(2 * cc, cc); p["mt1_s"], p["mt1_b"] = affine(cc, False, True)
    p["mt2_w"] = w1(cc, cc); p["mt2_s"], p["mt2_b"] = affine(cc, False, True)
    for i in range(3):
        p[f"ck{i}_w"] = w3(cc, cc)
        p[f"ck{i}_s"], p[f"ck{i}_b"] = affine(cc, False, True)
    for i in range(3):
        p[f"cs{i}_w"] = w3(cc, cc)
        p[f"cs{i}_s"], p[f"cs{i}_b"] = affine(cc, False, True)
    p["h1_w"] = w1(cc, cc); p["h1_s"], p["h1_b"] = affine(cc, False, True)
    p["h2_w"] = w1(cc, 2); p["h2_s"], p["h2_b"] = affine(2, True, False)
    # Graph_Attention_Union (scaled to cc channels)
    p["sup_w"] = w1(cc, cc); p["sup_s"], p["sup_b"] = affine(cc, True, False)
    p["q_w"] = w1(cc, cc); p["q_s"], p["q_b"] = affine(cc, True, False)
    p["g_w"] = w1(cc, cc); p["g_s"], p["g_b"] = affine(cc, True, True)
    p["fi_w"] = w1(3 * cc, cc); p["fi_s"], p["fi_b"] = affine(cc, True, True)
    return p


def prepare_params(p, cc):
    """Re-pack natural-layout params for the fused kernel: level-concat ds
    weights kept at (3*Cc, Cc), 3x3 conv weights packed as (3, 3*Cin, Cout)
    with the kw taps folded into K, head-2 weight transposed for the
    lane-dense (2, Lx) output, bf16 matmul weights, f32 scale/bias rows."""
    bf = lambda w: w.astype(jnp.bfloat16)
    row = lambda v: v.reshape(1, -1).astype(jnp.float32)
    col = lambda v: v.reshape(-1, 1).astype(jnp.float32)

    def pack3x3(w9):                 # (9, Cin, Cout) -> (3[kh], 3*Cin, Cout)
        _, ci, co = w9.shape
        return bf(w9.reshape(3, 3 * ci, co))

    q = {}
    q["ds_w"] = bf(p["ds_w"])                    # (3*Cc, Cc)
    q["ds_s"], q["ds_b"] = row(p["ds_s"]), row(p["ds_b"])
    q["ds2_w"] = bf(p["ds2_w"])
    q["ds2_s"], q["ds2_b"] = row(p["ds2_s"]), row(p["ds2_b"])
    # mergeTemplete[0]: (9, 2*Cc, Cc) -> per concat group (2, 3, 3*Cc, Cc)
    q["mt1_w"] = jnp.stack([pack3x3(p["mt1_w"][:, g * cc:(g + 1) * cc, :])
                            for g in range(2)])
    q["mt1_s"], q["mt1_b"] = row(p["mt1_s"]), row(p["mt1_b"])
    q["mt2_w"] = bf(p["mt2_w"])
    q["mt2_s"], q["mt2_b"] = row(p["mt2_s"]), row(p["mt2_b"])
    q["ck_w"] = jnp.stack([pack3x3(p[f"ck{i}_w"]) for i in range(3)])
    q["ck_s"] = jnp.stack([row(p[f"ck{i}_s"]) for i in range(3)])
    q["ck_b"] = jnp.stack([row(p[f"ck{i}_b"]) for i in range(3)])
    q["cs_w"] = jnp.stack([pack3x3(p[f"cs{i}_w"]) for i in range(3)])
    q["cs_s"] = jnp.stack([row(p[f"cs{i}_s"]) for i in range(3)])
    q["cs_b"] = jnp.stack([row(p[f"cs{i}_b"]) for i in range(3)])
    for name in ("q", "sup", "g", "h1"):
        q[f"{name}_w"] = bf(p[f"{name}_w"])
        q[f"{name}_s"] = row(p[f"{name}_s"])
        q[f"{name}_b"] = row(p[f"{name}_b"])
    q["fi_w"] = bf(p["fi_w"])                    # (3*Cc, Cc)
    q["fi_s"], q["fi_b"] = row(p["fi_s"]), row(p["fi_b"])
    q["h2_wt"] = bf(jnp.transpose(p["h2_w"]))    # (2, Cc), lane-dense output
    q["h2_s"], q["h2_b"] = col(p["h2_s"]), col(p["h2_b"])
    return q


# ----------------------------------------------------------------------------
if __name__ == "__main__":
    B, Cc, Hz, Hx = 2, 32, 8, 12   # scaled-down: out_channels=32, in_channels=96
    key = jax.random.PRNGKey(0)
    kp, kz, kz2, kx, km = jax.random.split(key, 5)

    params = prepare_params(init_params(kp, Cc), Cc)
    z_f = [jax.random.normal(k, (B, Cc, Hz, Hz), jnp.float32)
           for k in jax.random.split(kz, 3)]
    z_f2 = [jax.random.normal(k, (B, Cc, Hz, Hz), jnp.float32)
            for k in jax.random.split(kz2, 3)]
    x_f = [jax.random.normal(k, (B, Cc, Hx, Hx), jnp.float32)
           for k in jax.random.split(kx, 3)]
    mask = (jax.random.uniform(km, (B, 1, Hz, Hz)) > 0.5).astype(jnp.float32)

    fwd = jax.jit(head_forward)
    out = jax.block_until_ready(fwd(z_f, z_f2, x_f, mask, params))

    Sx = Hx - 6  # search spatial after 3 valid 3x3 convs
    assert out.shape == (B, 2, Sx, Sx), out.shape
    assert bool(jnp.all(jnp.isfinite(out)))
    print("KERNEL_OK")
</pallas_src>

<mosaic_0001>
module attributes {stable_mosaic.version = 11 : i64} {
  func.func @_fused_kernel(%arg0: i32, %arg1: memref<1x100x96xbf16, #tpu.memory_space<vmem>>, %arg2: memref<1x100x96xbf16, #tpu.memory_space<vmem>>, %arg3: memref<1x144x96xbf16, #tpu.memory_space<vmem>>, %arg4: memref<1x100x1xf32, #tpu.memory_space<vmem>>, %arg5: memref<100x1xf32, #tpu.memory_space<vmem>>, %arg6: memref<1x12xf32, #tpu.memory_space<vmem>>, %arg7: memref<1x66xf32, #tpu.memory_space<vmem>>, %arg8: memref<96x32xbf16, #tpu.memory_space<vmem>>, %arg9: memref<1x32xf32, #tpu.memory_space<vmem>>, %arg10: memref<1x32xf32, #tpu.memory_space<vmem>>, %arg11: memref<96x32xbf16, #tpu.memory_space<vmem>>, %arg12: memref<1x32xf32, #tpu.memory_space<vmem>>, %arg13: memref<1x32xf32, #tpu.memory_space<vmem>>, %arg14: memref<2x3x96x32xbf16, #tpu.memory_space<vmem>>, %arg15: memref<1x32xf32, #tpu.memory_space<vmem>>, %arg16: memref<1x32xf32, #tpu.memory_space<vmem>>, %arg17: memref<32x32xbf16, #tpu.memory_space<vmem>>, %arg18: memref<1x32xf32, #tpu.memory_space<vmem>>, %arg19: memref<1x32xf32, #tpu.memory_space<vmem>>, %arg20: memref<3x3x96x32xbf16, #tpu.memory_space<vmem>>, %arg21: memref<3x1x32xf32, #tpu.memory_space<vmem>>, %arg22: memref<3x1x32xf32, #tpu.memory_space<vmem>>, %arg23: memref<3x3x96x32xbf16, #tpu.memory_space<vmem>>, %arg24: memref<3x1x32xf32, #tpu.memory_space<vmem>>, %arg25: memref<3x1x32xf32, #tpu.memory_space<vmem>>, %arg26: memref<32x32xbf16, #tpu.memory_space<vmem>>, %arg27: memref<1x32xf32, #tpu.memory_space<vmem>>, %arg28: memref<1x32xf32, #tpu.memory_space<vmem>>, %arg29: memref<32x32xbf16, #tpu.memory_space<vmem>>, %arg30: memref<1x32xf32, #tpu.memory_space<vmem>>, %arg31: memref<1x32xf32, #tpu.memory_space<vmem>>, %arg32: memref<32x32xbf16, #tpu.memory_space<vmem>>, %arg33: memref<1x32xf32, #tpu.memory_space<vmem>>, %arg34: memref<1x32xf32, #tpu.memory_space<vmem>>, %arg35: memref<96x32xbf16, #tpu.memory_space<vmem>>, %arg36: memref<1x32xf32, #tpu.memory_space<vmem>>, %arg37: memref<1x32xf32, #tpu.memory_space<vmem>>, %arg38: memref<32x32xbf16, #tpu.memory_space<vmem>>, %arg39: memref<1x32xf32, #tpu.memory_space<vmem>>, %arg40: memref<1x32xf32, #tpu.memory_space<vmem>>, %arg41: memref<2x32xbf16, #tpu.memory_space<vmem>>, %arg42: memref<2x1xf32, #tpu.memory_space<vmem>>, %arg43: memref<2x1xf32, #tpu.memory_space<vmem>>, %arg44: memref<1x2x66xf32, #tpu.memory_space<vmem>>) attributes {dimension_semantics = [#tpu.dimension_semantics<parallel>], iteration_bounds = array<i64: 2>, scalar_prefetch = 0 : i64, scratch_operands = 0 : i64, tpu.core_type = #tpu.core_type<tc>, window_params = [{transform_indices = @transform_0, window_bounds = array<i64: 1, 100, 96>}, {transform_indices = @transform_1, window_bounds = array<i64: 1, 100, 96>}, {transform_indices = @transform_2, window_bounds = array<i64: 1, 144, 96>}, {transform_indices = @transform_3, window_bounds = array<i64: 1, 100, 1>}, {pipeline_mode = #tpu.pipeline_mode<synchronous>, transform_indices = @transform_4, window_bounds = array<i64: 100, 1>}, {pipeline_mode = #tpu.pipeline_mode<synchronous>, transform_indices = @transform_5, window_bounds = array<i64: 1, 12>}, {pipeline_mode = #tpu.pipeline_mode<synchronous>, transform_indices = @transform_6, window_bounds = array<i64: 1, 66>}, {pipeline_mode = #tpu.pipeline_mode<synchronous>, transform_indices = @transform_7, window_bounds = array<i64: 96, 32>}, {pipeline_mode = #tpu.pipeline_mode<synchronous>, transform_indices = @transform_8, window_bounds = array<i64: 1, 32>}, {pipeline_mode = #tpu.pipeline_mode<synchronous>, transform_indices = @transform_9, window_bounds = array<i64: 1, 32>}, {pipeline_mode = #tpu.pipeline_mode<synchronous>, transform_indices = @transform_10, window_bounds = array<i64: 96, 32>}, {pipeline_mode = #tpu.pipeline_mode<synchronous>, transform_indices = @transform_11, window_bounds = array<i64: 1, 32>}, {pipeline_mode = #tpu.pipeline_mode<synchronous>, transform_indices = @transform_12, window_bounds = array<i64: 1, 32>}, {pipeline_mode = #tpu.pipeline_mode<synchronous>, transform_indices = @transform_13, window_bounds = array<i64: 2, 3, 96, 32>}, {pipeline_mode = #tpu.pipeline_mode<synchronous>, transform_indices = @transform_14, window_bounds = array<i64: 1, 32>}, {pipeline_mode = #tpu.pipeline_mode<synchronous>, transform_indices = @transform_15, window_bounds = array<i64: 1, 32>}, {pipeline_mode = #tpu.pipeline_mode<synchronous>, transform_indices = @transform_16, window_bounds = array<i64: 32, 32>}, {pipeline_mode = #tpu.pipeline_mode<synchronous>, transform_indices = @transform_17, window_bounds = array<i64: 1, 32>}, {pipeline_mode = #tpu.pipeline_mode<synchronous>, transform_indices = @transform_18, window_bounds = array<i64: 1, 32>}, {pipeline_mode = #tpu.pipeline_mode<synchronous>, transform_indices = @transform_19, window_bounds = array<i64: 3, 3, 96, 32>}, {pipeline_mode = #tpu.pipeline_mode<synchronous>, transform_indices = @transform_20, window_bounds = array<i64: 3, 1, 32>}, {pipeline_mode = #tpu.pipeline_mode<synchronous>, transform_indices = @transform_21, window_bounds = array<i64: 3, 1, 32>}, {pipeline_mode = #tpu.pipeline_mode<synchronous>, transform_indices = @transform_22, window_bounds = array<i64: 3, 3, 96, 32>}, {pipeline_mode = #tpu.pipeline_mode<synchronous>, transform_indices = @transform_23, window_bounds = array<i64: 3, 1, 32>}, {pipeline_mode = #tpu.pipeline_mode<synchronous>, transform_indices = @transform_24, window_bounds = array<i64: 3, 1, 32>}, {pipeline_mode = #tpu.pipeline_mode<synchronous>, transform_indices = @transform_25, window_bounds = array<i64: 32, 32>}, {pipeline_mode = #tpu.pipeline_mode<synchronous>, transform_indices = @transform_26, window_bounds = array<i64: 1, 32>}, {pipeline_mode = #tpu.pipeline_mode<synchronous>, transform_indices = @transform_27, window_bounds = array<i64: 1, 32>}, {pipeline_mode = #tpu.pipeline_mode<synchronous>, transform_indices = @transform_28, window_bounds = array<i64: 32, 32>}, {pipeline_mode = #tpu.pipeline_mode<synchronous>, transform_indices = @transform_29, window_bounds = array<i64: 1, 32>}, {pipeline_mode = #tpu.pipeline_mode<synchronous>, transform_indices = @transform_30, window_bounds = array<i64: 1, 32>}, {pipeline_mode = #tpu.pipeline_mode<synchronous>, transform_indices = @transform_31, window_bounds = array<i64: 32, 32>}, {pipeline_mode = #tpu.pipeline_mode<synchronous>, transform_indices = @transform_32, window_bounds = array<i64: 1, 32>}, {pipeline_mode = #tpu.pipeline_mode<synchronous>, transform_indices = @transform_33, window_bounds = array<i64: 1, 32>}, {pipeline_mode = #tpu.pipeline_mode<synchronous>, transform_indices = @transform_34, window_bounds = array<i64: 96, 32>}, {pipeline_mode = #tpu.pipeline_mode<synchronous>, transform_indices = @transform_35, window_bounds = array<i64: 1, 32>}, {pipeline_mode = #tpu.pipeline_mode<synchronous>, transform_indices = @transform_36, window_bounds = array<i64: 1, 32>}, {pipeline_mode = #tpu.pipeline_mode<synchronous>, transform_indices = @transform_37, window_bounds = array<i64: 32, 32>}, {pipeline_mode = #tpu.pipeline_mode<synchronous>, transform_indices = @transform_38, window_bounds = array<i64: 1, 32>}, {pipeline_mode = #tpu.pipeline_mode<synchronous>, transform_indices = @transform_39, window_bounds = array<i64: 1, 32>}, {pipeline_mode = #tpu.pipeline_mode<synchronous>, transform_indices = @transform_40, window_bounds = array<i64: 2, 32>}, {pipeline_mode = #tpu.pipeline_mode<synchronous>, transform_indices = @transform_41, window_bounds = array<i64: 2, 1>}, {pipeline_mode = #tpu.pipeline_mode<synchronous>, transform_indices = @transform_42, window_bounds = array<i64: 2, 1>}, {transform_indices = @transform_43, window_bounds = array<i64: 1, 2, 66>}]} {
    %c0 = arith.constant 0 : index
    %c0_0 = arith.constant 0 : index
    %c0_1 = arith.constant 0 : index
    %0 = vector.load %arg1[%c0, %c0_0, %c0_1] : memref<1x100x96xbf16, #tpu.memory_space<vmem>>, vector<1x100x96xbf16>
    %1 = vector.shape_cast %0 : vector<1x100x96xbf16> to vector<100x96xbf16>
    %c0_2 = arith.constant 0 : index
    %c0_3 = arith.constant 0 : index
    %2 = vector.load %arg8[%c0_2, %c0_3] : memref<96x32xbf16, #tpu.memory_space<vmem>>, vector<96x32xbf16>
    %cst = arith.constant dense<0.000000e+00> : vector<100x32xf32>
    %3 = tpu.matmul %1, %2, %cst {dimension_numbers = #tpu.dot_dimension_numbers<[1], [0], [0], [1], [0, 0, 1, 1], [], []>} : vector<100x96xbf16>, vector<96x32xbf16>, vector<100x32xf32> -> vector<100x32xf32>
    %c0_4 = arith.constant 0 : index
    %c0_5 = arith.constant 0 : index
    %4 = vector.load %arg9[%c0_4, %c0_5] : memref<1x32xf32, #tpu.memory_space<vmem>>, vector<1x32xf32>
    %5 = vector.broadcast %4 : vector<1x32xf32> to vector<100x32xf32>
    %6 = arith.mulf %3, %5 : vector<100x32xf32>
    %c0_6 = arith.constant 0 : index
    %c0_7 = arith.constant 0 : index
    %7 = vector.load %arg10[%c0_6, %c0_7] : memref<1x32xf32, #tpu.memory_space<vmem>>, vector<1x32xf32>
    %8 = vector.broadcast %7 : vector<1x32xf32> to vector<100x32xf32>
    %9 = arith.addf %6, %8 : vector<100x32xf32>
    %c0_8 = arith.constant 0 : index
    %c0_9 = arith.constant 0 : index
    %c0_10 = arith.constant 0 : index
    %10 = vector.load %arg4[%c0_8, %c0_9, %c0_10] : memref<1x100x1xf32, #tpu.memory_space<vmem>>, vector<1x100x1xf32>
    %11 = vector.shape_cast %10 : vector<1x100x1xf32> to vector<100x1xf32>
    %12 = vector.broadcast %11 : vector<100x1xf32> to vector<100x32xf32>
    %13 = arith.mulf %9, %12 : vector<100x32xf32>
    %c0_11 = arith.constant 0 : index
    %c0_12 = arith.constant 0 : index
    %c0_13 = arith.constant 0 : index
    %14 = vector.load %arg2[%c0_11, %c0_12, %c0_13] : memref<1x100x96xbf16, #tpu.memory_space<vmem>>, vector<1x100x96xbf16>
    %15 = vector.shape_cast %14 : vector<1x100x96xbf16> to vector<100x96xbf16>
    %c0_14 = arith.constant 0 : index
    %c0_15 = arith.constant 0 : index
    %16 = vector.load %arg8[%c0_14, %c0_15] : memref<96x32xbf16, #tpu.memory_space<vmem>>, vector<96x32xbf16>
    %cst_16 = arith.constant dense<0.000000e+00> : vector<100x32xf32>
    %17 = tpu.matmul %15, %16, %cst_16 {dimension_numbers = #tpu.dot_dimension_numbers<[1], [0], [0], [1], [0, 0, 1, 1], [], []>} : vector<100x96xbf16>, vector<96x32xbf16>, vector<100x32xf32> -> vector<100x32xf32>
    %c0_17 = arith.constant 0 : index
    %c0_18 = arith.constant 0 : index
    %18 = vector.load %arg9[%c0_17, %c0_18] : memref<1x32xf32, #tpu.memory_space<vmem>>, vector<1x32xf32>
    %19 = vector.broadcast %18 : vector<1x32xf32> to vector<100x32xf32>
    %20 = arith.mulf %17, %19 : vector<100x32xf32>
    %c0_19 = arith.constant 0 : index
    %c0_20 = arith.constant 0 : index
    %21 = vector.load %arg10[%c0_19, %c0_20] : memref<1x32xf32, #tpu.memory_space<vmem>>, vector<1x32xf32>
    %22 = vector.broadcast %21 : vector<1x32xf32> to vector<100x32xf32>
    %23 = arith.addf %20, %22 : vector<100x32xf32>
    %c0_21 = arith.constant 0 : index
    %c0_22 = arith.constant 0 : index
    %24 = vector.load %arg5[%c0_21, %c0_22] : memref<100x1xf32, #tpu.memory_space<vmem>>, vector<100x1xf32>
    %25 = vector.broadcast %24 : vector<100x1xf32> to vector<100x32xf32>
    %26 = arith.mulf %23, %25 : vector<100x32xf32>
    %27 = arith.truncf %13 : vector<100x32xf32> to vector<100x32xbf16>
    %28 = arith.truncf %26 : vector<100x32xf32> to vector<100x32xbf16>
    %c0_23 = arith.constant 0 : index
    %c0_24 = arith.constant 0 : index
    %29 = vector.load %arg15[%c0_23, %c0_24] : memref<1x32xf32, #tpu.memory_space<vmem>>, vector<1x32xf32>
    %c0_25 = arith.constant 0 : index
    %c0_26 = arith.constant 0 : index
    %30 = vector.load %arg16[%c0_25, %c0_26] : memref<1x32xf32, #tpu.memory_space<vmem>>, vector<1x32xf32>
    %31 = vector.extract_strided_slice %27 {offsets = [0, 0], sizes = [98, 32], strides = [1, 1]} : vector<100x32xbf16> to vector<98x32xbf16>
    %32 = vector.extract_strided_slice %27 {offsets = [1, 0], sizes = [98, 32], strides = [1, 1]} : vector<100x32xbf16> to vector<98x32xbf16>
    %33 = vector.extract_strided_slice %27 {offsets = [2, 0], sizes = [98, 32], strides = [1, 1]} : vector<100x32xbf16> to vector<98x32xbf16>
    %34 = tpu.concatenate %31, %32, %33 in 1 : vector<98x32xbf16>, vector<98x32xbf16>, vector<98x32xbf16> -> vector<98x96xbf16>
    %35 = vector.extract_strided_slice %34 {offsets = [0, 0], sizes = [78, 96], strides = [1, 1]} : vector<98x96xbf16> to vector<78x96xbf16>
    %c0_27 = arith.constant 0 : index
    %c0_28 = arith.constant 0 : index
    %c0_29 = arith.constant 0 : index
    %c0_30 = arith.constant 0 : index
    %36 = vector.load %arg14[%c0_27, %c0_28, %c0_29, %c0_30] : memref<2x3x96x32xbf16, #tpu.memory_space<vmem>>, vector<1x1x96x32xbf16>
    %37 = vector.shape_cast %36 : vector<1x1x96x32xbf16> to vector<96x32xbf16>
    %cst_31 = arith.constant dense<0.000000e+00> : vector<78x32xf32>
    %38 = tpu.matmul %35, %37, %cst_31 {dimension_numbers = #tpu.dot_dimension_numbers<[1], [0], [0], [1], [0, 0, 1, 1], [], []>} : vector<78x96xbf16>, vector<96x32xbf16>, vector<78x32xf32> -> vector<78x32xf32>
    %39 = vector.extract_strided_slice %34 {offsets = [10, 0], sizes = [78, 96], strides = [1, 1]} : vector<98x96xbf16> to vector<78x96xbf16>
    %c0_32 = arith.constant 0 : index
    %c1 = arith.constant 1 : index
    %c0_33 = arith.constant 0 : index
    %c0_34 = arith.constant 0 : index
    %40 = vector.load %arg14[%c0_32, %c1, %c0_33, %c0_34] : memref<2x3x96x32xbf16, #tpu.memory_space<vmem>>, vector<1x1x96x32xbf16>
    %41 = vector.shape_cast %40 : vector<1x1x96x32xbf16> to vector<96x32xbf16>
    %cst_35 = arith.constant dense<0.000000e+00> : vector<78x32xf32>
    %42 = tpu.matmul %39, %41, %cst_35 {dimension_numbers = #tpu.dot_dimension_numbers<[1], [0], [0], [1], [0, 0, 1, 1], [], []>} : vector<78x96xbf16>, vector<96x32xbf16>, vector<78x32xf32> -> vector<78x32xf32>
    %43 = arith.addf %38, %42 : vector<78x32xf32>
    %44 = vector.extract_strided_slice %34 {offsets = [20, 0], sizes = [78, 96], strides = [1, 1]} : vector<98x96xbf16> to vector<78x96xbf16>
    %c0_36 = arith.constant 0 : index
    %c2 = arith.constant 2 : index
    %c0_37 = arith.constant 0 : index
    %c0_38 = arith.constant 0 : index
    %45 = vector.load %arg14[%c0_36, %c2, %c0_37, %c0_38] : memref<2x3x96x32xbf16, #tpu.memory_space<vmem>>, vector<1x1x96x32xbf16>
    %46 = vector.shape_cast %45 : vector<1x1x96x32xbf16> to vector<96x32xbf16>
    %cst_39 = arith.constant dense<0.000000e+00> : vector<78x32xf32>
    %47 = tpu.matmul %44, %46, %cst_39 {dimension_numbers = #tpu.dot_dimension_numbers<[1], [0], [0], [1], [0, 0, 1, 1], [], []>} : vector<78x96xbf16>, vector<96x32xbf16>, vector<78x32xf32> -> vector<78x32xf32>
    %48 = arith.addf %43, %47 : vector<78x32xf32>
    %49 = vector.extract_strided_slice %28 {offsets = [0, 0], sizes = [98, 32], strides = [1, 1]} : vector<100x32xbf16> to vector<98x32xbf16>
    %50 = vector.extract_strided_slice %28 {offsets = [1, 0], sizes = [98, 32], strides = [1, 1]} : vector<100x32xbf16> to vector<98x32xbf16>
    %51 = vector.extract_strided_slice %28 {offsets = [2, 0], sizes = [98, 32], strides = [1, 1]} : vector<100x32xbf16> to vector<98x32xbf16>
    %52 = tpu.concatenate %49, %50, %51 in 1 : vector<98x32xbf16>, vector<98x32xbf16>, vector<98x32xbf16> -> vector<98x96xbf16>
    %53 = vector.extract_strided_slice %52 {offsets = [0, 0], sizes = [78, 96], strides = [1, 1]} : vector<98x96xbf16> to vector<78x96xbf16>
    %c1_40 = arith.constant 1 : index
    %c0_41 = arith.constant 0 : index
    %c0_42 = arith.constant 0 : index
    %c0_43 = arith.constant 0 : index
    %54 = vector.load %arg14[%c1_40, %c0_41, %c0_42, %c0_43] : memref<2x3x96x32xbf16, #tpu.memory_space<vmem>>, vector<1x1x96x32xbf16>
    %55 = vector.shape_cast %54 : vector<1x1x96x32xbf16> to vector<96x32xbf16>
    %cst_44 = arith.constant dense<0.000000e+00> : vector<78x32xf32>
    %56 = tpu.matmul %53, %55, %cst_44 {dimension_numbers = #tpu.dot_dimension_numbers<[1], [0], [0], [1], [0, 0, 1, 1], [], []>} : vector<78x96xbf16>, vector<96x32xbf16>, vector<78x32xf32> -> vector<78x32xf32>
    %57 = arith.addf %48, %56 : vector<78x32xf32>
    %58 = vector.extract_strided_slice %52 {offsets = [10, 0], sizes = [78, 96], strides = [1, 1]} : vector<98x96xbf16> to vector<78x96xbf16>
    %c1_45 = arith.constant 1 : index
    %c1_46 = arith.constant 1 : index
    %c0_47 = arith.constant 0 : index
    %c0_48 = arith.constant 0 : index
    %59 = vector.load %arg14[%c1_45, %c1_46, %c0_47, %c0_48] : memref<2x3x96x32xbf16, #tpu.memory_space<vmem>>, vector<1x1x96x32xbf16>
    %60 = vector.shape_cast %59 : vector<1x1x96x32xbf16> to vector<96x32xbf16>
    %cst_49 = arith.constant dense<0.000000e+00> : vector<78x32xf32>
    %61 = tpu.matmul %58, %60, %cst_49 {dimension_numbers = #tpu.dot_dimension_numbers<[1], [0], [0], [1], [0, 0, 1, 1], [], []>} : vector<78x96xbf16>, vector<96x32xbf16>, vector<78x32xf32> -> vector<78x32xf32>
    %62 = arith.addf %57, %61 : vector<78x32xf32>
    %63 = vector.extract_strided_slice %52 {offsets = [20, 0], sizes = [78, 96], strides = [1, 1]} : vector<98x96xbf16> to vector<78x96xbf16>
    %c1_50 = arith.constant 1 : index
    %c2_51 = arith.constant 2 : index
    %c0_52 = arith.constant 0 : index
    %c0_53 = arith.constant 0 : index
    %64 = vector.load %arg14[%c1_50, %c2_51, %c0_52, %c0_53] : memref<2x3x96x32xbf16, #tpu.memory_space<vmem>>, vector<1x1x96x32xbf16>
    %65 = vector.shape_cast %64 : vector<1x1x96x32xbf16> to vector<96x32xbf16>
    %cst_54 = arith.constant dense<0.000000e+00> : vector<78x32xf32>
    %66 = tpu.matmul %63, %65, %cst_54 {dimension_numbers = #tpu.dot_dimension_numbers<[1], [0], [0], [1], [0, 0, 1, 1], [], []>} : vector<78x96xbf16>, vector<96x32xbf16>, vector<78x32xf32> -> vector<78x32xf32>
    %67 = arith.addf %62, %66 : vector<78x32xf32>
    %68 = vector.broadcast %29 : vector<1x32xf32> to vector<78x32xf32>
    %69 = arith.mulf %67, %68 : vector<78x32xf32>
    %70 = vector.broadcast %30 : vector<1x32xf32> to vector<78x32xf32>
    %71 = arith.addf %69, %70 : vector<78x32xf32>
    %cst_55 = arith.constant 0.000000e+00 : f32
    %72 = vector.broadcast %cst_55 : f32 to vector<78x32xf32>
    %73 = arith.maximumf %71, %72 : vector<78x32xf32>
    %74 = arith.truncf %73 : vector<78x32xf32> to vector<78x32xbf16>
    %c0_56 = arith.constant 0 : index
    %c0_57 = arith.constant 0 : index
    %75 = vector.load %arg17[%c0_56, %c0_57] : memref<32x32xbf16, #tpu.memory_space<vmem>>, vector<32x32xbf16>
    %cst_58 = arith.constant dense<0.000000e+00> : vector<78x32xf32>
    %76 = tpu.matmul %74, %75, %cst_58 {dimension_numbers = #tpu.dot_dimension_numbers<[1], [0], [0], [1], [0, 0, 1, 1], [], []>} : vector<78x32xbf16>, vector<32x32xbf16>, vector<78x32xf32> -> vector<78x32xf32>
    %c0_59 = arith.constant 0 : index
    %c0_60 = arith.constant 0 : index
    %77 = vector.load %arg18[%c0_59, %c0_60] : memref<1x32xf32, #tpu.memory_space<vmem>>, vector<1x32xf32>
    %78 = vector.broadcast %77 : vector<1x32xf32> to vector<78x32xf32>
    %79 = arith.mulf %76, %78 : vector<78x32xf32>
    %c0_61 = arith.constant 0 : index
    %c0_62 = arith.constant 0 : index
    %80 = vector.load %arg19[%c0_61, %c0_62] : memref<1x32xf32, #tpu.memory_space<vmem>>, vector<1x32xf32>
    %81 = vector.broadcast %80 : vector<1x32xf32> to vector<78x32xf32>
    %82 = arith.addf %79, %81 : vector<78x32xf32>
    %cst_63 = arith.constant 0.000000e+00 : f32
    %83 = vector.broadcast %cst_63 : f32 to vector<78x32xf32>
    %84 = arith.maximumf %82, %83 : vector<78x32xf32>
    %85 = arith.truncf %84 : vector<78x32xf32> to vector<78x32xbf16>
    %c0_64 = arith.constant 0 : index
    %c0_65 = arith.constant 0 : index
    %c0_66 = arith.constant 0 : index
    %86 = vector.load %arg21[%c0_64, %c0_65, %c0_66] : memref<3x1x32xf32, #tpu.memory_space<vmem>>, vector<1x1x32xf32>
    %87 = vector.shape_cast %86 : vector<1x1x32xf32> to vector<1x32xf32>
    %c0_67 = arith.constant 0 : index
    %c0_68 = arith.constant 0 : index
    %c0_69 = arith.constant 0 : index
    %88 = vector.load %arg22[%c0_67, %c0_68, %c0_69] : memref<3x1x32xf32, #tpu.memory_space<vmem>>, vector<1x1x32xf32>
    %89 = vector.shape_cast %88 : vector<1x1x32xf32> to vector<1x32xf32>
    %90 = vector.extract_strided_slice %85 {offsets = [0, 0], sizes = [76, 32], strides = [1, 1]} : vector<78x32xbf16> to vector<76x32xbf16>
    %91 = vector.extract_strided_slice %85 {offsets = [1, 0], sizes = [76, 32], strides = [1, 1]} : vector<78x32xbf16> to vector<76x32xbf16>
    %92 = vector.extract_strided_slice %85 {offsets = [2, 0], sizes = [76, 32], strides = [1, 1]} : vector<78x32xbf16> to vector<76x32xbf16>
    %93 = tpu.concatenate %90, %91, %92 in 1 : vector<76x32xbf16>, vector<76x32xbf16>, vector<76x32xbf16> -> vector<76x96xbf16>
    %94 = vector.extract_strided_slice %93 {offsets = [0, 0], sizes = [56, 96], strides = [1, 1]} : vector<76x96xbf16> to vector<56x96xbf16>
    %c0_70 = arith.constant 0 : index
    %c0_71 = arith.constant 0 : index
    %c0_72 = arith.constant 0 : index
    %c0_73 = arith.constant 0 : index
    %95 = vector.load %arg20[%c0_70, %c0_71, %c0_72, %c0_73] : memref<3x3x96x32xbf16, #tpu.memory_space<vmem>>, vector<1x1x96x32xbf16>
    %96 = vector.shape_cast %95 : vector<1x1x96x32xbf16> to vector<96x32xbf16>
    %cst_74 = arith.constant dense<0.000000e+00> : vector<56x32xf32>
    %97 = tpu.matmul %94, %96, %cst_74 {dimension_numbers = #tpu.dot_dimension_numbers<[1], [0], [0], [1], [0, 0, 1, 1], [], []>} : vector<56x96xbf16>, vector<96x32xbf16>, vector<56x32xf32> -> vector<56x32xf32>
    %98 = vector.extract_strided_slice %93 {offsets = [10, 0], sizes = [56, 96], strides = [1, 1]} : vector<76x96xbf16> to vector<56x96xbf16>
    %c0_75 = arith.constant 0 : index
    %c1_76 = arith.constant 1 : index
    %c0_77 = arith.constant 0 : index
    %c0_78 = arith.constant 0 : index
    %99 = vector.load %arg20[%c0_75, %c1_76, %c0_77, %c0_78] : memref<3x3x96x32xbf16, #tpu.memory_space<vmem>>, vector<1x1x96x32xbf16>
    %100 = vector.shape_cast %99 : vector<1x1x96x32xbf16> to vector<96x32xbf16>
    %cst_79 = arith.constant dense<0.000000e+00> : vector<56x32xf32>
    %101 = tpu.matmul %98, %100, %cst_79 {dimension_numbers = #tpu.dot_dimension_numbers<[1], [0], [0], [1], [0, 0, 1, 1], [], []>} : vector<56x96xbf16>, vector<96x32xbf16>, vector<56x32xf32> -> vector<56x32xf32>
    %102 = arith.addf %97, %101 : vector<56x32xf32>
    %103 = vector.extract_strided_slice %93 {offsets = [20, 0], sizes = [56, 96], strides = [1, 1]} : vector<76x96xbf16> to vector<56x96xbf16>
    %c0_80 = arith.constant 0 : index
    %c2_81 = arith.constant 2 : index
    %c0_82 = arith.constant 0 : index
    %c0_83 = arith.constant 0 : index
    %104 = vector.load %arg20[%c0_80, %c2_81, %c0_82, %c0_83] : memref<3x3x96x32xbf16, #tpu.memory_space<vmem>>, vector<1x1x96x32xbf16>
    %105 = vector.shape_cast %104 : vector<1x1x96x32xbf16> to vector<96x32xbf16>
    %cst_84 = arith.constant dense<0.000000e+00> : vector<56x32xf32>
    %106 = tpu.matmul %103, %105, %cst_84 {dimension_numbers = #tpu.dot_dimension_numbers<[1], [0], [0], [1], [0, 0, 1, 1], [], []>} : vector<56x96xbf16>, vector<96x32xbf16>, vector<56x32xf32> -> vector<56x32xf32>
    %107 = arith.addf %102, %106 : vector<56x32xf32>
    %108 = vector.broadcast %87 : vector<1x32xf32> to vector<56x32xf32>
    %109 = arith.mulf %107, %108 : vector<56x32xf32>
    %110 = vector.broadcast %89 : vector<1x32xf32> to vector<56x32xf32>
    %111 = arith.addf %109, %110 : vector<56x32xf32>
    %cst_85 = arith.constant 0.000000e+00 : f32
    %112 = vector.broadcast %cst_85 : f32 to vector<56x32xf32>
    %113 = arith.maximumf %111, %112 : vector<56x32xf32>
    %114 = arith.truncf %113 : vector<56x32xf32> to vector<56x32xbf16>
    %c1_86 = arith.constant 1 : index
    %c0_87 = arith.constant 0 : index
    %c0_88 = arith.constant 0 : index
    %115 = vector.load %arg21[%c1_86, %c0_87, %c0_88] : memref<3x1x32xf32, #tpu.memory_space<vmem>>, vector<1x1x32xf32>
    %116 = vector.shape_cast %115 : vector<1x1x32xf32> to vector<1x32xf32>
    %c1_89 = arith.constant 1 : index
    %c0_90 = arith.constant 0 : index
    %c0_91 = arith.constant 0 : index
    %117 = vector.load %arg22[%c1_89, %c0_90, %c0_91] : memref<3x1x32xf32, #tpu.memory_space<vmem>>, vector<1x1x32xf32>
    %118 = vector.shape_cast %117 : vector<1x1x32xf32> to vector<1x32xf32>
    %119 = vector.extract_strided_slice %114 {offsets = [0, 0], sizes = [54, 32], strides = [1, 1]} : vector<56x32xbf16> to vector<54x32xbf16>
    %120 = vector.extract_strided_slice %114 {offsets = [1, 0], sizes = [54, 32], strides = [1, 1]} : vector<56x32xbf16> to vector<54x32xbf16>
    %121 = vector.extract_strided_slice %114 {offsets = [2, 0], sizes = [54, 32], strides = [1, 1]} : vector<56x32xbf16> to vector<54x32xbf16>
    %122 = tpu.concatenate %119, %120, %121 in 1 : vector<54x32xbf16>, vector<54x32xbf16>, vector<54x32xbf16> -> vector<54x96xbf16>
    %123 = vector.extract_strided_slice %122 {offsets = [0, 0], sizes = [34, 96], strides = [1, 1]} : vector<54x96xbf16> to vector<34x96xbf16>
    %c1_92 = arith.constant 1 : index
    %c0_93 = arith.constant 0 : index
    %c0_94 = arith.constant 0 : index
    %c0_95 = arith.constant 0 : index
    %124 = vector.load %arg20[%c1_92, %c0_93, %c0_94, %c0_95] : memref<3x3x96x32xbf16, #tpu.memory_space<vmem>>, vector<1x1x96x32xbf16>
    %125 = vector.shape_cast %124 : vector<1x1x96x32xbf16> to vector<96x32xbf16>
    %cst_96 = arith.constant dense<0.000000e+00> : vector<34x32xf32>
    %126 = tpu.matmul %123, %125, %cst_96 {dimension_numbers = #tpu.dot_dimension_numbers<[1], [0], [0], [1], [0, 0, 1, 1], [], []>} : vector<34x96xbf16>, vector<96x32xbf16>, vector<34x32xf32> -> vector<34x32xf32>
    %127 = vector.extract_strided_slice %122 {offsets = [10, 0], sizes = [34, 96], strides = [1, 1]} : vector<54x96xbf16> to vector<34x96xbf16>
    %c1_97 = arith.constant 1 : index
    %c1_98 = arith.constant 1 : index
    %c0_99 = arith.constant 0 : index
    %c0_100 = arith.constant 0 : index
    %128 = vector.load %arg20[%c1_97, %c1_98, %c0_99, %c0_100] : memref<3x3x96x32xbf16, #tpu.memory_space<vmem>>, vector<1x1x96x32xbf16>
    %129 = vector.shape_cast %128 : vector<1x1x96x32xbf16> to vector<96x32xbf16>
    %cst_101 = arith.constant dense<0.000000e+00> : vector<34x32xf32>
    %130 = tpu.matmul %127, %129, %cst_101 {dimension_numbers = #tpu.dot_dimension_numbers<[1], [0], [0], [1], [0, 0, 1, 1], [], []>} : vector<34x96xbf16>, vector<96x32xbf16>, vector<34x32xf32> -> vector<34x32xf32>
    %131 = arith.addf %126, %130 : vector<34x32xf32>
    %132 = vector.extract_strided_slice %122 {offsets = [20, 0], sizes = [34, 96], strides = [1, 1]} : vector<54x96xbf16> to vector<34x96xbf16>
    %c1_102 = arith.constant 1 : index
    %c2_103 = arith.constant 2 : index
    %c0_104 = arith.constant 0 : index
    %c0_105 = arith.constant 0 : index
    %133 = vector.load %arg20[%c1_102, %c2_103, %c0_104, %c0_105] : memref<3x3x96x32xbf16, #tpu.memory_space<vmem>>, vector<1x1x96x32xbf16>
    %134 = vector.shape_cast %133 : vector<1x1x96x32xbf16> to vector<96x32xbf16>
    %cst_106 = arith.constant dense<0.000000e+00> : vector<34x32xf32>
    %135 = tpu.matmul %132, %134, %cst_106 {dimension_numbers = #tpu.dot_dimension_numbers<[1], [0], [0], [1], [0, 0, 1, 1], [], []>} : vector<34x96xbf16>, vector<96x32xbf16>, vector<34x32xf32> -> vector<34x32xf32>
    %136 = arith.addf %131, %135 : vector<34x32xf32>
    %137 = vector.broadcast %116 : vector<1x32xf32> to vector<34x32xf32>
    %138 = arith.mulf %136, %137 : vector<34x32xf32>
    %139 = vector.broadcast %118 : vector<1x32xf32> to vector<34x32xf32>
    %140 = arith.addf %138, %139 : vector<34x32xf32>
    %cst_107 = arith.constant 0.000000e+00 : f32
    %141 = vector.broadcast %cst_107 : f32 to vector<34x32xf32>
    %142 = arith.maximumf %140, %141 : vector<34x32xf32>
    %143 = arith.truncf %142 : vector<34x32xf32> to vector<34x32xbf16>
    %c2_108 = arith.constant 2 : index
    %c0_109 = arith.constant 0 : index
    %c0_110 = arith.constant 0 : index
    %144 = vector.load %arg21[%c2_108, %c0_109, %c0_110] : memref<3x1x32xf32, #tpu.memory_space<vmem>>, vector<1x1x32xf32>
    %145 = vector.shape_cast %144 : vector<1x1x32xf32> to vector<1x32xf32>
    %c2_111 = arith.constant 2 : index
    %c0_112 = arith.constant 0 : index
    %c0_113 = arith.constant 0 : index
    %146 = vector.load %arg22[%c2_111, %c0_112, %c0_113] : memref<3x1x32xf32, #tpu.memory_space<vmem>>, vector<1x1x32xf32>
    %147 = vector.shape_cast %146 : vector<1x1x32xf32> to vector<1x32xf32>
    %148 = vector.extract_strided_slice %143 {offsets = [0, 0], sizes = [32, 32], strides = [1, 1]} : vector<34x32xbf16> to vector<32x32xbf16>
    %149 = vector.extract_strided_slice %143 {offsets = [1, 0], sizes = [32, 32], strides = [1, 1]} : vector<34x32xbf16> to vector<32x32xbf16>
    %150 = vector.extract_strided_slice %143 {offsets = [2, 0], sizes = [32, 32], strides = [1, 1]} : vector<34x32xbf16> to vector<32x32xbf16>
    %151 = tpu.concatenate %148, %149, %150 in 1 : vector<32x32xbf16>, vector<32x32xbf16>, vector<32x32xbf16> -> vector<32x96xbf16>
    %152 = vector.extract_strided_slice %151 {offsets = [0, 0], sizes = [12, 96], strides = [1, 1]} : vector<32x96xbf16> to vector<12x96xbf16>
    %c2_114 = arith.constant 2 : index
    %c0_115 = arith.constant 0 : index
    %c0_116 = arith.constant 0 : index
    %c0_117 = arith.constant 0 : index
    %153 = vector.load %arg20[%c2_114, %c0_115, %c0_116, %c0_117] : memref<3x3x96x32xbf16, #tpu.memory_space<vmem>>, vector<1x1x96x32xbf16>
    %154 = vector.shape_cast %153 : vector<1x1x96x32xbf16> to vector<96x32xbf16>
    %cst_118 = arith.constant dense<0.000000e+00> : vector<12x32xf32>
    %155 = tpu.matmul %152, %154, %cst_118 {dimension_numbers = #tpu.dot_dimension_numbers<[1], [0], [0], [1], [0, 0, 1, 1], [], []>} : vector<12x96xbf16>, vector<96x32xbf16>, vector<12x32xf32> -> vector<12x32xf32>
    %156 = vector.extract_strided_slice %151 {offsets = [10, 0], sizes = [12, 96], strides = [1, 1]} : vector<32x96xbf16> to vector<12x96xbf16>
    %c2_119 = arith.constant 2 : index
    %c1_120 = arith.constant 1 : index
    %c0_121 = arith.constant 0 : index
    %c0_122 = arith.constant 0 : index
    %157 = vector.load %arg20[%c2_119, %c1_120, %c0_121, %c0_122] : memref<3x3x96x32xbf16, #tpu.memory_space<vmem>>, vector<1x1x96x32xbf16>
    %158 = vector.shape_cast %157 : vector<1x1x96x32xbf16> to vector<96x32xbf16>
    %cst_123 = arith.constant dense<0.000000e+00> : vector<12x32xf32>
    %159 = tpu.matmul %156, %158, %cst_123 {dimension_numbers = #tpu.dot_dimension_numbers<[1], [0], [0], [1], [0, 0, 1, 1], [], []>} : vector<12x96xbf16>, vector<96x32xbf16>, vector<12x32xf32> -> vector<12x32xf32>
    %160 = arith.addf %155, %159 : vector<12x32xf32>
    %161 = vector.extract_strided_slice %151 {offsets = [20, 0], sizes = [12, 96], strides = [1, 1]} : vector<32x96xbf16> to vector<12x96xbf16>
    %c2_124 = arith.constant 2 : index
    %c2_125 = arith.constant 2 : index
    %c0_126 = arith.constant 0 : index
    %c0_127 = arith.constant 0 : index
    %162 = vector.load %arg20[%c2_124, %c2_125, %c0_126, %c0_127] : memref<3x3x96x32xbf16, #tpu.memory_space<vmem>>, vector<1x1x96x32xbf16>
    %163 = vector.shape_cast %162 : vector<1x1x96x32xbf16> to vector<96x32xbf16>
    %cst_128 = arith.constant dense<0.000000e+00> : vector<12x32xf32>
    %164 = tpu.matmul %161, %163, %cst_128 {dimension_numbers = #tpu.dot_dimension_numbers<[1], [0], [0], [1], [0, 0, 1, 1], [], []>} : vector<12x96xbf16>, vector<96x32xbf16>, vector<12x32xf32> -> vector<12x32xf32>
    %165 = arith.addf %160, %164 : vector<12x32xf32>
    %166 = vector.broadcast %145 : vector<1x32xf32> to vector<12x32xf32>
    %167 = arith.mulf %165, %166 : vector<12x32xf32>
    %168 = vector.broadcast %147 : vector<1x32xf32> to vector<12x32xf32>
    %169 = arith.addf %167, %168 : vector<12x32xf32>
    %cst_129 = arith.constant 0.000000e+00 : f32
    %170 = vector.broadcast %cst_129 : f32 to vector<12x32xf32>
    %171 = arith.maximumf %169, %170 : vector<12x32xf32>
    %172 = arith.truncf %171 : vector<12x32xf32> to vector<12x32xbf16>
    %c0_130 = arith.constant 0 : index
    %c0_131 = arith.constant 0 : index
    %c0_132 = arith.constant 0 : index
    %173 = vector.load %arg3[%c0_130, %c0_131, %c0_132] : memref<1x144x96xbf16, #tpu.memory_space<vmem>>, vector<1x144x96xbf16>
    %174 = vector.shape_cast %173 : vector<1x144x96xbf16> to vector<144x96xbf16>
    %c0_133 = arith.constant 0 : index
    %c0_134 = arith.constant 0 : index
    %175 = vector.load %arg11[%c0_133, %c0_134] : memref<96x32xbf16, #tpu.memory_space<vmem>>, vector<96x32xbf16>
    %cst_135 = arith.constant dense<0.000000e+00> : vector<144x32xf32>
    %176 = tpu.matmul %174, %175, %cst_135 {dimension_numbers = #tpu.dot_dimension_numbers<[1], [0], [0], [1], [0, 0, 1, 1], [], []>} : vector<144x96xbf16>, vector<96x32xbf16>, vector<144x32xf32> -> vector<144x32xf32>
    %c0_136 = arith.constant 0 : index
    %c0_137 = arith.constant 0 : index
    %177 = vector.load %arg12[%c0_136, %c0_137] : memref<1x32xf32, #tpu.memory_space<vmem>>, vector<1x32xf32>
    %178 = vector.broadcast %177 : vector<1x32xf32> to vector<144x32xf32>
    %179 = arith.mulf %176, %178 : vector<144x32xf32>
    %c0_138 = arith.constant 0 : index
    %c0_139 = arith.constant 0 : index
    %180 = vector.load %arg13[%c0_138, %c0_139] : memref<1x32xf32, #tpu.memory_space<vmem>>, vector<1x32xf32>
    %181 = vector.broadcast %180 : vector<1x32xf32> to vector<144x32xf32>
    %182 = arith.addf %179, %181 : vector<144x32xf32>
    %183 = arith.truncf %182 : vector<144x32xf32> to vector<144x32xbf16>
    %c0_140 = arith.constant 0 : index
    %c0_141 = arith.constant 0 : index
    %c0_142 = arith.constant 0 : index
    %184 = vector.load %arg24[%c0_140, %c0_141, %c0_142] : memref<3x1x32xf32, #tpu.memory_space<vmem>>, vector<1x1x32xf32>
    %185 = vector.shape_cast %184 : vector<1x1x32xf32> to vector<1x32xf32>
    %c0_143 = arith.constant 0 : index
    %c0_144 = arith.constant 0 : index
    %c0_145 = arith.constant 0 : index
    %186 = vector.load %arg25[%c0_143, %c0_144, %c0_145] : memref<3x1x32xf32, #tpu.memory_space<vmem>>, vector<1x1x32xf32>
    %187 = vector.shape_cast %186 : vector<1x1x32xf32> to vector<1x32xf32>
    %188 = vector.extract_strided_slice %183 {offsets = [0, 0], sizes = [142, 32], strides = [1, 1]} : vector<144x32xbf16> to vector<142x32xbf16>
    %189 = vector.extract_strided_slice %183 {offsets = [1, 0], sizes = [142, 32], strides = [1, 1]} : vector<144x32xbf16> to vector<142x32xbf16>
    %190 = vector.extract_strided_slice %183 {offsets = [2, 0], sizes = [142, 32], strides = [1, 1]} : vector<144x32xbf16> to vector<142x32xbf16>
    %191 = tpu.concatenate %188, %189, %190 in 1 : vector<142x32xbf16>, vector<142x32xbf16>, vector<142x32xbf16> -> vector<142x96xbf16>
    %192 = vector.extract_strided_slice %191 {offsets = [0, 0], sizes = [118, 96], strides = [1, 1]} : vector<142x96xbf16> to vector<118x96xbf16>
    %c0_146 = arith.constant 0 : index
    %c0_147 = arith.constant 0 : index
    %c0_148 = arith.constant 0 : index
    %c0_149 = arith.constant 0 : index
    %193 = vector.load %arg23[%c0_146, %c0_147, %c0_148, %c0_149] : memref<3x3x96x32xbf16, #tpu.memory_space<vmem>>, vector<1x1x96x32xbf16>
    %194 = vector.shape_cast %193 : vector<1x1x96x32xbf16> to vector<96x32xbf16>
    %cst_150 = arith.constant dense<0.000000e+00> : vector<118x32xf32>
    %195 = tpu.matmul %192, %194, %cst_150 {dimension_numbers = #tpu.dot_dimension_numbers<[1], [0], [0], [1], [0, 0, 1, 1], [], []>} : vector<118x96xbf16>, vector<96x32xbf16>, vector<118x32xf32> -> vector<118x32xf32>
    %196 = vector.extract_strided_slice %191 {offsets = [12, 0], sizes = [118, 96], strides = [1, 1]} : vector<142x96xbf16> to vector<118x96xbf16>
    %c0_151 = arith.constant 0 : index
    %c1_152 = arith.constant 1 : index
    %c0_153 = arith.constant 0 : index
    %c0_154 = arith.constant 0 : index
    %197 = vector.load %arg23[%c0_151, %c1_152, %c0_153, %c0_154] : memref<3x3x96x32xbf16, #tpu.memory_space<vmem>>, vector<1x1x96x32xbf16>
    %198 = vector.shape_cast %197 : vector<1x1x96x32xbf16> to vector<96x32xbf16>
    %cst_155 = arith.constant dense<0.000000e+00> : vector<118x32xf32>
    %199 = tpu.matmul %196, %198, %cst_155 {dimension_numbers = #tpu.dot_dimension_numbers<[1], [0], [0], [1], [0, 0, 1, 1], [], []>} : vector<118x96xbf16>, vector<96x32xbf16>, vector<118x32xf32> -> vector<118x32xf32>
    %200 = arith.addf %195, %199 : vector<118x32xf32>
    %201 = vector.extract_strided_slice %191 {offsets = [24, 0], sizes = [118, 96], strides = [1, 1]} : vector<142x96xbf16> to vector<118x96xbf16>
    %c0_156 = arith.constant 0 : index
    %c2_157 = arith.constant 2 : index
    %c0_158 = arith.constant 0 : index
    %c0_159 = arith.constant 0 : index
    %202 = vector.load %arg23[%c0_156, %c2_157, %c0_158, %c0_159] : memref<3x3x96x32xbf16, #tpu.memory_space<vmem>>, vector<1x1x96x32xbf16>
    %203 = vector.shape_cast %202 : vector<1x1x96x32xbf16> to vector<96x32xbf16>
    %cst_160 = arith.constant dense<0.000000e+00> : vector<118x32xf32>
    %204 = tpu.matmul %201, %203, %cst_160 {dimension_numbers = #tpu.dot_dimension_numbers<[1], [0], [0], [1], [0, 0, 1, 1], [], []>} : vector<118x96xbf16>, vector<96x32xbf16>, vector<118x32xf32> -> vector<118x32xf32>
    %205 = arith.addf %200, %204 : vector<118x32xf32>
    %206 = vector.broadcast %185 : vector<1x32xf32> to vector<118x32xf32>
    %207 = arith.mulf %205, %206 : vector<118x32xf32>
    %208 = vector.broadcast %187 : vector<1x32xf32> to vector<118x32xf32>
    %209 = arith.addf %207, %208 : vector<118x32xf32>
    %cst_161 = arith.constant 0.000000e+00 : f32
    %210 = vector.broadcast %cst_161 : f32 to vector<118x32xf32>
    %211 = arith.maximumf %209, %210 : vector<118x32xf32>
    %212 = arith.truncf %211 : vector<118x32xf32> to vector<118x32xbf16>
    %c1_162 = arith.constant 1 : index
    %c0_163 = arith.constant 0 : index
    %c0_164 = arith.constant 0 : index
    %213 = vector.load %arg24[%c1_162, %c0_163, %c0_164] : memref<3x1x32xf32, #tpu.memory_space<vmem>>, vector<1x1x32xf32>
    %214 = vector.shape_cast %213 : vector<1x1x32xf32> to vector<1x32xf32>
    %c1_165 = arith.constant 1 : index
    %c0_166 = arith.constant 0 : index
    %c0_167 = arith.constant 0 : index
    %215 = vector.load %arg25[%c1_165, %c0_166, %c0_167] : memref<3x1x32xf32, #tpu.memory_space<vmem>>, vector<1x1x32xf32>
    %216 = vector.shape_cast %215 : vector<1x1x32xf32> to vector<1x32xf32>
    %217 = vector.extract_strided_slice %212 {offsets = [0, 0], sizes = [116, 32], strides = [1, 1]} : vector<118x32xbf16> to vector<116x32xbf16>
    %218 = vector.extract_strided_slice %212 {offsets = [1, 0], sizes = [116, 32], strides = [1, 1]} : vector<118x32xbf16> to vector<116x32xbf16>
    %219 = vector.extract_strided_slice %212 {offsets = [2, 0], sizes = [116, 32], strides = [1, 1]} : vector<118x32xbf16> to vector<116x32xbf16>
    %220 = tpu.concatenate %217, %218, %219 in 1 : vector<116x32xbf16>, vector<116x32xbf16>, vector<116x32xbf16> -> vector<116x96xbf16>
    %221 = vector.extract_strided_slice %220 {offsets = [0, 0], sizes = [92, 96], strides = [1, 1]} : vector<116x96xbf16> to vector<92x96xbf16>
    %c1_168 = arith.constant 1 : index
    %c0_169 = arith.constant 0 : index
    %c0_170 = arith.constant 0 : index
    %c0_171 = arith.constant 0 : index
    %222 = vector.load %arg23[%c1_168, %c0_169, %c0_170, %c0_171] : memref<3x3x96x32xbf16, #tpu.memory_space<vmem>>, vector<1x1x96x32xbf16>
    %223 = vector.shape_cast %222 : vector<1x1x96x32xbf16> to vector<96x32xbf16>
    %cst_172 = arith.constant dense<0.000000e+00> : vector<92x32xf32>
    %224 = tpu.matmul %221, %223, %cst_172 {dimension_numbers = #tpu.dot_dimension_numbers<[1], [0], [0], [1], [0, 0, 1, 1], [], []>} : vector<92x96xbf16>, vector<96x32xbf16>, vector<92x32xf32> -> vector<92x32xf32>
    %225 = vector.extract_strided_slice %220 {offsets = [12, 0], sizes = [92, 96], strides = [1, 1]} : vector<116x96xbf16> to vector<92x96xbf16>
    %c1_173 = arith.constant 1 : index
    %c1_174 = arith.constant 1 : index
    %c0_175 = arith.constant 0 : index
    %c0_176 = arith.constant 0 : index
    %226 = vector.load %arg23[%c1_173, %c1_174, %c0_175, %c0_176] : memref<3x3x96x32xbf16, #tpu.memory_space<vmem>>, vector<1x1x96x32xbf16>
    %227 = vector.shape_cast %226 : vector<1x1x96x32xbf16> to vector<96x32xbf16>
    %cst_177 = arith.constant dense<0.000000e+00> : vector<92x32xf32>
    %228 = tpu.matmul %225, %227, %cst_177 {dimension_numbers = #tpu.dot_dimension_numbers<[1], [0], [0], [1], [0, 0, 1, 1], [], []>} : vector<92x96xbf16>, vector<96x32xbf16>, vector<92x32xf32> -> vector<92x32xf32>
    %229 = arith.addf %224, %228 : vector<92x32xf32>
    %230 = vector.extract_strided_slice %220 {offsets = [24, 0], sizes = [92, 96], strides = [1, 1]} : vector<116x96xbf16> to vector<92x96xbf16>
    %c1_178 = arith.constant 1 : index
    %c2_179 = arith.constant 2 : index
    %c0_180 = arith.constant 0 : index
    %c0_181 = arith.constant 0 : index
    %231 = vector.load %arg23[%c1_178, %c2_179, %c0_180, %c0_181] : memref<3x3x96x32xbf16, #tpu.memory_space<vmem>>, vector<1x1x96x32xbf16>
    %232 = vector.shape_cast %231 : vector<1x1x96x32xbf16> to vector<96x32xbf16>
    %cst_182 = arith.constant dense<0.000000e+00> : vector<92x32xf32>
    %233 = tpu.matmul %230, %232, %cst_182 {dimension_numbers = #tpu.dot_dimension_numbers<[1], [0], [0], [1], [0, 0, 1, 1], [], []>} : vector<92x96xbf16>, vector<96x32xbf16>, vector<92x32xf32> -> vector<92x32xf32>
    %234 = arith.addf %229, %233 : vector<92x32xf32>
    %235 = vector.broadcast %214 : vector<1x32xf32> to vector<92x32xf32>
    %236 = arith.mulf %234, %235 : vector<92x32xf32>
    %237 = vector.broadcast %216 : vector<1x32xf32> to vector<92x32xf32>
    %238 = arith.addf %236, %237 : vector<92x32xf32>
    %cst_183 = arith.constant 0.000000e+00 : f32
    %239 = vector.broadcast %cst_183 : f32 to vector<92x32xf32>
    %240 = arith.maximumf %238, %239 : vector<92x32xf32>
    %241 = arith.truncf %240 : vector<92x32xf32> to vector<92x32xbf16>
    %c2_184 = arith.constant 2 : index
    %c0_185 = arith.constant 0 : index
    %c0_186 = arith.constant 0 : index
    %242 = vector.load %arg24[%c2_184, %c0_185, %c0_186] : memref<3x1x32xf32, #tpu.memory_space<vmem>>, vector<1x1x32xf32>
    %243 = vector.shape_cast %242 : vector<1x1x32xf32> to vector<1x32xf32>
    %c2_187 = arith.constant 2 : index
    %c0_188 = arith.constant 0 : index
    %c0_189 = arith.constant 0 : index
    %244 = vector.load %arg25[%c2_187, %c0_188, %c0_189] : memref<3x1x32xf32, #tpu.memory_space<vmem>>, vector<1x1x32xf32>
    %245 = vector.shape_cast %244 : vector<1x1x32xf32> to vector<1x32xf32>
    %246 = vector.extract_strided_slice %241 {offsets = [0, 0], sizes = [90, 32], strides = [1, 1]} : vector<92x32xbf16> to vector<90x32xbf16>
    %247 = vector.extract_strided_slice %241 {offsets = [1, 0], sizes = [90, 32], strides = [1, 1]} : vector<92x32xbf16> to vector<90x32xbf16>
    %248 = vector.extract_strided_slice %241 {offsets = [2, 0], sizes = [90, 32], strides = [1, 1]} : vector<92x32xbf16> to vector<90x32xbf16>
    %249 = tpu.concatenate %246, %247, %248 in 1 : vector<90x32xbf16>, vector<90x32xbf16>, vector<90x32xbf16> -> vector<90x96xbf16>
    %250 = vector.extract_strided_slice %249 {offsets = [0, 0], sizes = [66, 96], strides = [1, 1]} : vector<90x96xbf16> to vector<66x96xbf16>
    %c2_190 = arith.constant 2 : index
    %c0_191 = arith.constant 0 : index
    %c0_192 = arith.constant 0 : index
    %c0_193 = arith.constant 0 : index
    %251 = vector.load %arg23[%c2_190, %c0_191, %c0_192, %c0_193] : memref<3x3x96x32xbf16, #tpu.memory_space<vmem>>, vector<1x1x96x32xbf16>
    %252 = vector.shape_cast %251 : vector<1x1x96x32xbf16> to vector<96x32xbf16>
    %cst_194 = arith.constant dense<0.000000e+00> : vector<66x32xf32>
    %253 = tpu.matmul %250, %252, %cst_194 {dimension_numbers = #tpu.dot_dimension_numbers<[1], [0], [0], [1], [0, 0, 1, 1], [], []>} : vector<66x96xbf16>, vector<96x32xbf16>, vector<66x32xf32> -> vector<66x32xf32>
    %254 = vector.extract_strided_slice %249 {offsets = [12, 0], sizes = [66, 96], strides = [1, 1]} : vector<90x96xbf16> to vector<66x96xbf16>
    %c2_195 = arith.constant 2 : index
    %c1_196 = arith.constant 1 : index
    %c0_197 = arith.constant 0 : index
    %c0_198 = arith.constant 0 : index
    %255 = vector.load %arg23[%c2_195, %c1_196, %c0_197, %c0_198] : memref<3x3x96x32xbf16, #tpu.memory_space<vmem>>, vector<1x1x96x32xbf16>
    %256 = vector.shape_cast %255 : vector<1x1x96x32xbf16> to vector<96x32xbf16>
    %cst_199 = arith.constant dense<0.000000e+00> : vector<66x32xf32>
    %257 = tpu.matmul %254, %256, %cst_199 {dimension_numbers = #tpu.dot_dimension_numbers<[1], [0], [0], [1], [0, 0, 1, 1], [], []>} : vector<66x96xbf16>, vector<96x32xbf16>, vector<66x32xf32> -> vector<66x32xf32>
    %258 = arith.addf %253, %257 : vector<66x32xf32>
    %259 = vector.extract_strided_slice %249 {offsets = [24, 0], sizes = [66, 96], strides = [1, 1]} : vector<90x96xbf16> to vector<66x96xbf16>
    %c2_200 = arith.constant 2 : index
    %c2_201 = arith.constant 2 : index
    %c0_202 = arith.constant 0 : index
    %c0_203 = arith.constant 0 : index
    %260 = vector.load %arg23[%c2_200, %c2_201, %c0_202, %c0_203] : memref<3x3x96x32xbf16, #tpu.memory_space<vmem>>, vector<1x1x96x32xbf16>
    %261 = vector.shape_cast %260 : vector<1x1x96x32xbf16> to vector<96x32xbf16>
    %cst_204 = arith.constant dense<0.000000e+00> : vector<66x32xf32>
    %262 = tpu.matmul %259, %261, %cst_204 {dimension_numbers = #tpu.dot_dimension_numbers<[1], [0], [0], [1], [0, 0, 1, 1], [], []>} : vector<66x96xbf16>, vector<96x32xbf16>, vector<66x32xf32> -> vector<66x32xf32>
    %263 = arith.addf %258, %262 : vector<66x32xf32>
    %264 = vector.broadcast %243 : vector<1x32xf32> to vector<66x32xf32>
    %265 = arith.mulf %263, %264 : vector<66x32xf32>
    %266 = vector.broadcast %245 : vector<1x32xf32> to vector<66x32xf32>
    %267 = arith.addf %265, %266 : vector<66x32xf32>
    %cst_205 = arith.constant 0.000000e+00 : f32
    %268 = vector.broadcast %cst_205 : f32 to vector<66x32xf32>
    %269 = arith.maximumf %267, %268 : vector<66x32xf32>
    %270 = arith.truncf %269 : vector<66x32xf32> to vector<66x32xbf16>
    %c0_206 = arith.constant 0 : index
    %c0_207 = arith.constant 0 : index
    %271 = vector.load %arg26[%c0_206, %c0_207] : memref<32x32xbf16, #tpu.memory_space<vmem>>, vector<32x32xbf16>
    %cst_208 = arith.constant dense<0.000000e+00> : vector<66x32xf32>
    %272 = tpu.matmul %270, %271, %cst_208 {dimension_numbers = #tpu.dot_dimension_numbers<[1], [0], [0], [1], [0, 0, 1, 1], [], []>} : vector<66x32xbf16>, vector<32x32xbf16>, vector<66x32xf32> -> vector<66x32xf32>
    %c0_209 = arith.constant 0 : index
    %c0_210 = arith.constant 0 : index
    %273 = vector.load %arg27[%c0_209, %c0_210] : memref<1x32xf32, #tpu.memory_space<vmem>>, vector<1x32xf32>
    %274 = vector.broadcast %273 : vector<1x32xf32> to vector<66x32xf32>
    %275 = arith.mulf %272, %274 : vector<66x32xf32>
    %c0_211 = arith.constant 0 : index
    %c0_212 = arith.constant 0 : index
    %276 = vector.load %arg28[%c0_211, %c0_212] : memref<1x32xf32, #tpu.memory_space<vmem>>, vector<1x32xf32>
    %277 = vector.broadcast %276 : vector<1x32xf32> to vector<66x32xf32>
    %278 = arith.addf %275, %277 : vector<66x32xf32>
    %279 = arith.truncf %278 : vector<66x32xf32> to vector<66x32xbf16>
    %c0_213 = arith.constant 0 : index
    %c0_214 = arith.constant 0 : index
    %280 = vector.load %arg29[%c0_213, %c0_214] : memref<32x32xbf16, #tpu.memory_space<vmem>>, vector<32x32xbf16>
    %cst_215 = arith.constant dense<0.000000e+00> : vector<12x32xf32>
    %281 = tpu.matmul %172, %280, %cst_215 {dimension_numbers = #tpu.dot_dimension_numbers<[1], [0], [0], [1], [0, 0, 1, 1], [], []>} : vector<12x32xbf16>, vector<32x32xbf16>, vector<12x32xf32> -> vector<12x32xf32>
    %c0_216 = arith.constant 0 : index
    %c0_217 = arith.constant 0 : index
    %282 = vector.load %arg30[%c0_216, %c0_217] : memref<1x32xf32, #tpu.memory_space<vmem>>, vector<1x32xf32>
    %283 = vector.broadcast %282 : vector<1x32xf32> to vector<12x32xf32>
    %284 = arith.mulf %281, %283 : vector<12x32xf32>
    %c0_218 = arith.constant 0 : index
    %c0_219 = arith.constant 0 : index
    %285 = vector.load %arg31[%c0_218, %c0_219] : memref<1x32xf32, #tpu.memory_space<vmem>>, vector<1x32xf32>
    %286 = vector.broadcast %285 : vector<1x32xf32> to vector<12x32xf32>
    %287 = arith.addf %284, %286 : vector<12x32xf32>
    %288 = arith.truncf %287 : vector<12x32xf32> to vector<12x32xbf16>
    %c0_220 = arith.constant 0 : index
    %c0_221 = arith.constant 0 : index
    %289 = vector.load %arg32[%c0_220, %c0_221] : memref<32x32xbf16, #tpu.memory_space<vmem>>, vector<32x32xbf16>
    %cst_222 = arith.constant dense<0.000000e+00> : vector<66x32xf32>
    %290 = tpu.matmul %270, %289, %cst_222 {dimension_numbers = #tpu.dot_dimension_numbers<[1], [0], [0], [1], [0, 0, 1, 1], [], []>} : vector<66x32xbf16>, vector<32x32xbf16>, vector<66x32xf32> -> vector<66x32xf32>
    %c0_223 = arith.constant 0 : index
    %c0_224 = arith.constant 0 : index
    %291 = vector.load %arg33[%c0_223, %c0_224] : memref<1x32xf32, #tpu.memory_space<vmem>>, vector<1x32xf32>
    %292 = vector.broadcast %291 : vector<1x32xf32> to vector<66x32xf32>
    %293 = arith.mulf %290, %292 : vector<66x32xf32>
    %c0_225 = arith.constant 0 : index
    %c0_226 = arith.constant 0 : index
    %294 = vector.load %arg34[%c0_225, %c0_226] : memref<1x32xf32, #tpu.memory_space<vmem>>, vector<1x32xf32>
    %295 = vector.broadcast %294 : vector<1x32xf32> to vector<66x32xf32>
    %296 = arith.addf %293, %295 : vector<66x32xf32>
    %cst_227 = arith.constant 0.000000e+00 : f32
    %297 = vector.broadcast %cst_227 : f32 to vector<66x32xf32>
    %298 = arith.maximumf %296, %297 : vector<66x32xf32>
    %299 = arith.truncf %298 : vector<66x32xf32> to vector<66x32xbf16>
    %c0_228 = arith.constant 0 : index
    %c0_229 = arith.constant 0 : index
    %300 = vector.load %arg32[%c0_228, %c0_229] : memref<32x32xbf16, #tpu.memory_space<vmem>>, vector<32x32xbf16>
    %cst_230 = arith.constant dense<0.000000e+00> : vector<12x32xf32>
    %301 = tpu.matmul %172, %300, %cst_230 {dimension_numbers = #tpu.dot_dimension_numbers<[1], [0], [0], [1], [0, 0, 1, 1], [], []>} : vector<12x32xbf16>, vector<32x32xbf16>, vector<12x32xf32> -> vector<12x32xf32>
    %c0_231 = arith.constant 0 : index
    %c0_232 = arith.constant 0 : index
    %302 = vector.load %arg33[%c0_231, %c0_232] : memref<1x32xf32, #tpu.memory_space<vmem>>, vector<1x32xf32>
    %303 = vector.broadcast %302 : vector<1x32xf32> to vector<12x32xf32>
    %304 = arith.mulf %301, %303 : vector<12x32xf32>
    %c0_233 = arith.constant 0 : index
    %c0_234 = arith.constant 0 : index
    %305 = vector.load %arg34[%c0_233, %c0_234] : memref<1x32xf32, #tpu.memory_space<vmem>>, vector<1x32xf32>
    %306 = vector.broadcast %305 : vector<1x32xf32> to vector<12x32xf32>
    %307 = arith.addf %304, %306 : vector<12x32xf32>
    %cst_235 = arith.constant 0.000000e+00 : f32
    %308 = vector.broadcast %cst_235 : f32 to vector<12x32xf32>
    %309 = arith.maximumf %307, %308 : vector<12x32xf32>
    %310 = arith.truncf %309 : vector<12x32xf32> to vector<12x32xbf16>
    %c0_236 = arith.constant 0 : index
    %c0_237 = arith.constant 0 : index
    %311 = vector.load %arg6[%c0_236, %c0_237] : memref<1x12xf32, #tpu.memory_space<vmem>>, vector<1x12xf32>
    %cst_238 = arith.constant dense<0.000000e+00> : vector<66x12xf32>
    %312 = tpu.matmul %279, %288, %cst_238 {dimension_numbers = #tpu.dot_dimension_numbers<[1], [1], [0], [0], [0, 0, 1, 0], [], []>} : vector<66x32xbf16>, vector<12x32xbf16>, vector<66x12xf32> -> vector<66x12xf32>
    %313 = vector.broadcast %311 : vector<1x12xf32> to vector<66x12xf32>
    %314 = arith.addf %312, %313 : vector<66x12xf32>
    %cst_239 = arith.constant dense<0xFF800000> : vector<66xf32>
    %315 = vector.multi_reduction <maximumf>, %314, %cst_239 [1] : vector<66x12xf32> to vector<66xf32>
    %316 = vector.shape_cast %315 : vector<66xf32> to vector<66x1xf32>
    %317 = vector.broadcast %316 : vector<66x1xf32> to vector<66x12xf32>
    %318 = arith.subf %314, %317 : vector<66x12xf32>
    %319 = math.exp %318 : vector<66x12xf32>
    %cst_240 = arith.constant dense<0.000000e+00> : vector<66xf32>
    %320 = vector.multi_reduction <add>, %319, %cst_240 [1] : vector<66x12xf32> to vector<66xf32>
    %321 = vector.shape_cast %320 : vector<66xf32> to vector<66x1xf32>
    %322 = tpu.reciprocal %321 {approx = true} : vector<66x1xf32> -> vector<66x1xf32>
    %323 = vector.broadcast %322 : vector<66x1xf32> to vector<66x12xf32>
    %324 = arith.mulf %319, %323 : vector<66x12xf32>
    %325 = arith.truncf %324 : vector<66x12xf32> to vector<66x12xbf16>
    %cst_241 = arith.constant dense<0.000000e+00> : vector<66x32xf32>
    %326 = tpu.matmul %325, %310, %cst_241 {dimension_numbers = #tpu.dot_dimension_numbers<[1], [0], [0], [1], [0, 0, 1, 1], [], []>} : vector<66x12xbf16>, vector<12x32xbf16>, vector<66x32xf32> -> vector<66x32xf32>
    %c0_242 = arith.constant 0 : index
    %c0_243 = arith.constant 0 : index
    %327 = vector.load %arg7[%c0_242, %c0_243] : memref<1x66xf32, #tpu.memory_space<vmem>>, vector<1x66xf32>
    %cst_244 = arith.constant dense<0.000000e+00> : vector<66x66xf32>
    %328 = tpu.matmul %279, %279, %cst_244 {dimension_numbers = #tpu.dot_dimension_numbers<[1], [1], [0], [0], [0, 0, 1, 0], [], []>} : vector<66x32xbf16>, vector<66x32xbf16>, vector<66x66xf32> -> vector<66x66xf32>
    %329 = vector.broadcast %327 : vector<1x66xf32> to vector<66x66xf32>
    %330 = arith.addf %328, %329 : vector<66x66xf32>
    %cst_245 = arith.constant dense<0xFF800000> : vector<66xf32>
    %331 = vector.multi_reduction <maximumf>, %330, %cst_245 [1] : vector<66x66xf32> to vector<66xf32>
    %332 = vector.shape_cast %331 : vector<66xf32> to vector<66x1xf32>
    %333 = vector.broadcast %332 : vector<66x1xf32> to vector<66x66xf32>
    %334 = arith.subf %330, %333 : vector<66x66xf32>
    %335 = math.exp %334 : vector<66x66xf32>
    %cst_246 = arith.constant dense<0.000000e+00> : vector<66xf32>
    %336 = vector.multi_reduction <add>, %335, %cst_246 [1] : vector<66x66xf32> to vector<66xf32>
    %337 = vector.shape_cast %336 : vector<66xf32> to vector<66x1xf32>
    %338 = tpu.reciprocal %337 {approx = true} : vector<66x1xf32> -> vector<66x1xf32>
    %339 = vector.broadcast %338 : vector<66x1xf32> to vector<66x66xf32>
    %340 = arith.mulf %335, %339 : vector<66x66xf32>
    %341 = arith.truncf %340 : vector<66x66xf32> to vector<66x66xbf16>
    %cst_247 = arith.constant dense<0.000000e+00> : vector<66x32xf32>
    %342 = tpu.matmul %341, %299, %cst_247 {dimension_numbers = #tpu.dot_dimension_numbers<[1], [0], [0], [1], [0, 0, 1, 1], [], []>} : vector<66x66xbf16>, vector<66x32xbf16>, vector<66x32xf32> -> vector<66x32xf32>
    %343 = arith.truncf %326 : vector<66x32xf32> to vector<66x32xbf16>
    %344 = arith.truncf %342 : vector<66x32xf32> to vector<66x32xbf16>
    %345 = tpu.concatenate %343, %344, %299 in 1 : vector<66x32xbf16>, vector<66x32xbf16>, vector<66x32xbf16> -> vector<66x96xbf16>
    %c0_248 = arith.constant 0 : index
    %c0_249 = arith.constant 0 : index
    %346 = vector.load %arg35[%c0_248, %c0_249] : memref<96x32xbf16, #tpu.memory_space<vmem>>, vector<96x32xbf16>
    %cst_250 = arith.constant dense<0.000000e+00> : vector<66x32xf32>
    %347 = tpu.matmul %345, %346, %cst_250 {dimension_numbers = #tpu.dot_dimension_numbers<[1], [0], [0], [1], [0, 0, 1, 1], [], []>} : vector<66x96xbf16>, vector<96x32xbf16>, vector<66x32xf32> -> vector<66x32xf32>
    %c0_251 = arith.constant 0 : index
    %c0_252 = arith.constant 0 : index
    %348 = vector.load %arg36[%c0_251, %c0_252] : memref<1x32xf32, #tpu.memory_space<vmem>>, vector<1x32xf32>
    %349 = vector.broadcast %348 : vector<1x32xf32> to vector<66x32xf32>
    %350 = arith.mulf %347, %349 : vector<66x32xf32>
    %c0_253 = arith.constant 0 : index
    %c0_254 = arith.constant 0 : index
    %351 = vector.load %arg37[%c0_253, %c0_254] : memref<1x32xf32, #tpu.memory_space<vmem>>, vector<1x32xf32>
    %352 = vector.broadcast %351 : vector<1x32xf32> to vector<66x32xf32>
    %353 = arith.addf %350, %352 : vector<66x32xf32>
    %cst_255 = arith.constant 0.000000e+00 : f32
    %354 = vector.broadcast %cst_255 : f32 to vector<66x32xf32>
    %355 = arith.maximumf %353, %354 : vector<66x32xf32>
    %356 = arith.truncf %355 : vector<66x32xf32> to vector<66x32xbf16>
    %c0_256 = arith.constant 0 : index
    %c0_257 = arith.constant 0 : index
    %357 = vector.load %arg38[%c0_256, %c0_257] : memref<32x32xbf16, #tpu.memory_space<vmem>>, vector<32x32xbf16>
    %cst_258 = arith.constant dense<0.000000e+00> : vector<66x32xf32>
    %358 = tpu.matmul %356, %357, %cst_258 {dimension_numbers = #tpu.dot_dimension_numbers<[1], [0], [0], [1], [0, 0, 1, 1], [], []>} : vector<66x32xbf16>, vector<32x32xbf16>, vector<66x32xf32> -> vector<66x32xf32>
    %c0_259 = arith.constant 0 : index
    %c0_260 = arith.constant 0 : index
    %359 = vector.load %arg39[%c0_259, %c0_260] : memref<1x32xf32, #tpu.memory_space<vmem>>, vector<1x32xf32>
    %360 = vector.broadcast %359 : vector<1x32xf32> to vector<66x32xf32>
    %361 = arith.mulf %358, %360 : vector<66x32xf32>
    %c0_261 = arith.constant 0 : index
    %c0_262 = arith.constant 0 : index
    %362 = vector.load %arg40[%c0_261, %c0_262] : memref<1x32xf32, #tpu.memory_space<vmem>>, vector<1x32xf32>
    %363 = vector.broadcast %362 : vector<1x32xf32> to vector<66x32xf32>
    %364 = arith.addf %361, %363 : vector<66x32xf32>
    %cst_263 = arith.constant 0.000000e+00 : f32
    %365 = vector.broadcast %cst_263 : f32 to vector<66x32xf32>
    %366 = arith.maximumf %364, %365 : vector<66x32xf32>
    %c0_264 = arith.constant 0 : index
    %c0_265 = arith.constant 0 : index
    %367 = vector.load %arg41[%c0_264, %c0_265] : memref<2x32xbf16, #tpu.memory_space<vmem>>, vector<2x32xbf16>
    %368 = arith.truncf %366 : vector<66x32xf32> to vector<66x32xbf16>
    %cst_266 = arith.constant dense<0.000000e+00> : vector<2x66xf32>
    %369 = tpu.matmul %367, %368, %cst_266 {dimension_numbers = #tpu.dot_dimension_numbers<[1], [1], [0], [0], [0, 0, 1, 0], [], []>} : vector<2x32xbf16>, vector<66x32xbf16>, vector<2x66xf32> -> vector<2x66xf32>
    %c0_267 = arith.constant 0 : index
    %c0_268 = arith.constant 0 : index
    %370 = vector.load %arg42[%c0_267, %c0_268] : memref<2x1xf32, #tpu.memory_space<vmem>>, vector<2x1xf32>
    %371 = vector.broadcast %370 : vector<2x1xf32> to vector<2x66xf32>
    %372 = arith.mulf %369, %371 : vector<2x66xf32>
    %c0_269 = arith.constant 0 : index
    %c0_270 = arith.constant 0 : index
    %373 = vector.load %arg43[%c0_269, %c0_270] : memref<2x1xf32, #tpu.memory_space<vmem>>, vector<2x1xf32>
    %374 = vector.broadcast %373 : vector<2x1xf32> to vector<2x66xf32>
    %375 = arith.addf %372, %374 : vector<2x66xf32>
    %c0_271 = arith.constant 0 : index
    %c0_272 = arith.constant 0 : index
    %c0_273 = arith.constant 0 : index
    %376 = vector.load %arg44[%c0_271, %c0_272, %c0_273] : memref<1x2x66xf32, #tpu.memory_space<vmem>>, vector<1x2x66xf32>
    %377 = vector.shape_cast %376 : vector<1x2x66xf32> to vector<2x66xf32>
    %378 = vector.shape_cast %375 : vector<2x66xf32> to vector<1x2x66xf32>
    tpu.vector_store %arg44[%c0_271, %c0_272, %c0_273], %378 {strides = array<i32>} : memref<1x2x66xf32, #tpu.memory_space<vmem>>, vector<1x2x66xf32>,
    return
  }
  func.func @transform_0(%arg0: i32) -> (i32, i32, i32) {
    %c0_i32 = arith.constant 0 : i32
    %c0_i32_0 = arith.constant 0 : i32
    %c0_i32_1 = arith.constant 0 : i32
    return %arg0, %c0_i32, %c0_i32_0 : i32, i32, i32
  }
  func.func @transform_1(%arg0: i32) -> (i32, i32, i32) {
    %c0_i32 = arith.constant 0 : i32
    %c0_i32_0 = arith.constant 0 : i32
    %c0_i32_1 = arith.constant 0 : i32
    return %arg0, %c0_i32, %c0_i32_0 : i32, i32, i32
  }
  func.func @transform_2(%arg0: i32) -> (i32, i32, i32) {
    %c0_i32 = arith.constant 0 : i32
    %c0_i32_0 = arith.constant 0 : i32
    %c0_i32_1 = arith.constant 0 : i32
    return %arg0, %c0_i32, %c0_i32_0 : i32, i32, i32
  }
  func.func @transform_3(%arg0: i32) -> (i32, i32, i32) {
    %c0_i32 = arith.constant 0 : i32
    %c0_i32_0 = arith.constant 0 : i32
    %c0_i32_1 = arith.constant 0 : i32
    return %arg0, %c0_i32, %c0_i32_0 : i32, i32, i32
  }
  func.func @transform_4(%arg0: i32) -> (i32, i32) {
    %c0_i32 = arith.constant 0 : i32
    %c0_i32_0 = arith.constant 0 : i32
    %c0_i32_1 = arith.constant 0 : i32
    return %c0_i32, %c0_i32_0 : i32, i32
  }
  func.func @transform_5(%arg0: i32) -> (i32, i32) {
    %c0_i32 = arith.constant 0 : i32
    %c0_i32_0 = arith.constant 0 : i32
    %c0_i32_1 = arith.constant 0 : i32
    return %c0_i32, %c0_i32_0 : i32, i32
  }
  func.func @transform_6(%arg0: i32) -> (i32, i32) {
    %c0_i32 = arith.constant 0 : i32
    %c0_i32_0 = arith.constant 0 : i32
    %c0_i32_1 = arith.constant 0 : i32
    return %c0_i32, %c0_i32_0 : i32, i32
  }
  func.func @transform_7(%arg0: i32) -> (i32, i32) {
    %c0_i32 = arith.constant 0 : i32
    %c0_i32_0 = arith.constant 0 : i32
    %c0_i32_1 = arith.constant 0 : i32
    return %c0_i32, %c0_i32_0 : i32, i32
  }
  func.func @transform_8(%arg0: i32) -> (i32, i32) {
    %c0_i32 = arith.constant 0 : i32
    %c0_i32_0 = arith.constant 0 : i32
    %c0_i32_1 = arith.constant 0 : i32
    return %c0_i32, %c0_i32_0 : i32, i32
  }
  func.func @transform_9(%arg0: i32) -> (i32, i32) {
    %c0_i32 = arith.constant 0 : i32
    %c0_i32_0 = arith.constant 0 : i32
    %c0_i32_1 = arith.constant 0 : i32
    return %c0_i32, %c0_i32_0 : i32, i32
  }
  func.func @transform_10(%arg0: i32) -> (i32, i32) {
    %c0_i32 = arith.constant 0 : i32
    %c0_i32_0 = arith.constant 0 : i32
    %c0_i32_1 = arith.constant 0 : i32
    return %c0_i32, %c0_i32_0 : i32, i32
  }
  func.func @transform_11(%arg0: i32) -> (i32, i32) {
    %c0_i32 = arith.constant 0 : i32
    %c0_i32_0 = arith.constant 0 : i32
    %c0_i32_1 = arith.constant 0 : i32
    return %c0_i32, %c0_i32_0 : i32, i32
  }
  func.func @transform_12(%arg0: i32) -> (i32, i32) {
    %c0_i32 = arith.constant 0 : i32
    %c0_i32_0 = arith.constant 0 : i32
    %c0_i32_1 = arith.constant 0 : i32
    return %c0_i32, %c0_i32_0 : i32, i32
  }
  func.func @transform_13(%arg0: i32) -> (i32, i32, i32, i32) {
    %c0_i32 = arith.constant 0 : i32
    %c0_i32_0 = arith.constant 0 : i32
    %c0_i32_1 = arith.constant 0 : i32
    %c0_i32_2 = arith.constant 0 : i32
    %c0_i32_3 = arith.constant 0 : i32
    return %c0_i32, %c0_i32_0, %c0_i32_1, %c0_i32_2 : i32, i32, i32, i32
  }
  func.func @transform_14(%arg0: i32) -> (i32, i32) {
    %c0_i32 = arith.constant 0 : i32
    %c0_i32_0 = arith.constant 0 : i32
    %c0_i32_1 = arith.constant 0 : i32
    return %c0_i32, %c0_i32_0 : i32, i32
  }
  func.func @transform_15(%arg0: i32) -> (i32, i32) {
    %c0_i32 = arith.constant 0 : i32
    %c0_i32_0 = arith.constant 0 : i32
    %c0_i32_1 = arith.constant 0 : i32
    return %c0_i32, %c0_i32_0 : i32, i32
  }
  func.func @transform_16(%arg0: i32) -> (i32, i32) {
    %c0_i32 = arith.constant 0 : i32
    %c0_i32_0 = arith.constant 0 : i32
    %c0_i32_1 = arith.constant 0 : i32
    return %c0_i32, %c0_i32_0 : i32, i32
  }
  func.func @transform_17(%arg0: i32) -> (i32, i32) {
    %c0_i32 = arith.constant 0 : i32
    %c0_i32_0 = arith.constant 0 : i32
    %c0_i32_1 = arith.constant 0 : i32
    return %c0_i32, %c0_i32_0 : i32, i32
  }
  func.func @transform_18(%arg0: i32) -> (i32, i32) {
    %c0_i32 = arith.constant 0 : i32
    %c0_i32_0 = arith.constant 0 : i32
    %c0_i32_1 = arith.constant 0 : i32
    return %c0_i32, %c0_i32_0 : i32, i32
  }
  func.func @transform_19(%arg0: i32) -> (i32, i32, i32, i32) {
    %c0_i32 = arith.constant 0 : i32
    %c0_i32_0 = arith.constant 0 : i32
    %c0_i32_1 = arith.constant 0 : i32
    %c0_i32_2 = arith.constant 0 : i32
    %c0_i32_3 = arith.constant 0 : i32
    return %c0_i32, %c0_i32_0, %c0_i32_1, %c0_i32_2 : i32, i32, i32, i32
  }
  func.func @transform_20(%arg0: i32) -> (i32, i32, i32) {
    %c0_i32 = arith.constant 0 : i32
    %c0_i32_0 = arith.constant 0 : i32
    %c0_i32_1 = arith.constant 0 : i32
    %c0_i32_2 = arith.constant 0 : i32
    return %c0_i32, %c0_i32_0, %c0_i32_1 : i32, i32, i32
  }
  func.func @transform_21(%arg0: i32) -> (i32, i32, i32) {
    %c0_i32 = arith.constant 0 : i32
    %c0_i32_0 = arith.constant 0 : i32
    %c0_i32_1 = arith.constant 0 : i32
    %c0_i32_2 = arith.constant 0 : i32
    return %c0_i32, %c0_i32_0, %c0_i32_1 : i32, i32, i32
  }
  func.func @transform_22(%arg0: i32) -> (i32, i32, i32, i32) {
    %c0_i32 = arith.constant 0 : i32
    %c0_i32_0 = arith.constant 0 : i32
    %c0_i32_1 = arith.constant 0 : i32
    %c0_i32_2 = arith.constant 0 : i32
    %c0_i32_3 = arith.constant 0 : i32
    return %c0_i32, %c0_i32_0, %c0_i32_1, %c0_i32_2 : i32, i32, i32, i32
  }
  func.func @transform_23(%arg0: i32) -> (i32, i32, i32) {
    %c0_i32 = arith.constant 0 : i32
    %c0_i32_0 = arith.constant 0 : i32
    %c0_i32_1 = arith.constant 0 : i32
    %c0_i32_2 = arith.constant 0 : i32
    return %c0_i32, %c0_i32_0, %c0_i32_1 : i32, i32, i32
  }
  func.func @transform_24(%arg0: i32) -> (i32, i32, i32) {
    %c0_i32 = arith.constant 0 : i32
    %c0_i32_0 = arith.constant 0 : i32
    %c0_i32_1 = arith.constant 0 : i32
    %c0_i32_2 = arith.constant 0 : i32
    return %c0_i32, %c0_i32_0, %c0_i32_1 : i32, i32, i32
  }
  func.func @transform_25(%arg0: i32) -> (i32, i32) {
    %c0_i32 = arith.constant 0 : i32
    %c0_i32_0 = arith.constant 0 : i32
    %c0_i32_1 = arith.constant 0 : i32
    return %c0_i32, %c0_i32_0 : i32, i32
  }
  func.func @transform_26(%arg0: i32) -> (i32, i32) {
    %c0_i32 = arith.constant 0 : i32
    %c0_i32_0 = arith.constant 0 : i32
    %c0_i32_1 = arith.constant 0 : i32
    return %c0_i32, %c0_i32_0 : i32, i32
  }
  func.func @transform_27(%arg0: i32) -> (i32, i32) {
    %c0_i32 = arith.constant 0 : i32
    %c0_i32_0 = arith.constant 0 : i32
    %c0_i32_1 = arith.constant 0 : i32
    return %c0_i32, %c0_i32_0 : i32, i32
  }
  func.func @transform_28(%arg0: i32) -> (i32, i32) {
    %c0_i32 = arith.constant 0 : i32
    %c0_i32_0 = arith.constant 0 : i32
    %c0_i32_1 = arith.constant 0 : i32
    return %c0_i32, %c0_i32_0 : i32, i32
  }
  func.func @transform_29(%arg0: i32) -> (i32, i32) {
    %c0_i32 = arith.constant 0 : i32
    %c0_i32_0 = arith.constant 0 : i32
    %c0_i32_1 = arith.constant 0 : i32
    return %c0_i32, %c0_i32_0 : i32, i32
  }
  func.func @transform_30(%arg0: i32) -> (i32, i32) {
    %c0_i32 = arith.constant 0 : i32
    %c0_i32_0 = arith.constant 0 : i32
    %c0_i32_1 = arith.constant 0 : i32
    return %c0_i32, %c0_i32_0 : i32, i32
  }
  func.func @transform_31(%arg0: i32) -> (i32, i32) {
    %c0_i32 = arith.constant 0 : i32
    %c0_i32_0 = arith.constant 0 : i32
    %c0_i32_1 = arith.constant 0 : i32
    return %c0_i32, %c0_i32_0 : i32, i32
  }
  func.func @transform_32(%arg0: i32) -> (i32, i32) {
    %c0_i32 = arith.constant 0 : i32
    %c0_i32_0 = arith.constant 0 : i32
    %c0_i32_1 = arith.constant 0 : i32
    return %c0_i32, %c0_i32_0 : i32, i32
  }
  func.func @transform_33(%arg0: i32) -> (i32, i32) {
    %c0_i32 = arith.constant 0 : i32
    %c0_i32_0 = arith.constant 0 : i32
    %c0_i32_1 = arith.constant 0 : i32
    return %c0_i32, %c0_i32_0 : i32, i32
  }
  func.func @transform_34(%arg0: i32) -> (i32, i32) {
    %c0_i32 = arith.constant 0 : i32
    %c0_i32_0 = arith.constant 0 : i32
    %c0_i32_1 = arith.constant 0 : i32
    return %c0_i32, %c0_i32_0 : i32, i32
  }
  func.func @transform_35(%arg0: i32) -> (i32, i32) {
    %c0_i32 = arith.constant 0 : i32
    %c0_i32_0 = arith.constant 0 : i32
    %c0_i32_1 = arith.constant 0 : i32
    return %c0_i32, %c0_i32_0 : i32, i32
  }
  func.func @transform_36(%arg0: i32) -> (i32, i32) {
    %c0_i32 = arith.constant 0 : i32
    %c0_i32_0 = arith.constant 0 : i32
    %c0_i32_1 = arith.constant 0 : i32
    return %c0_i32, %c0_i32_0 : i32, i32
  }
  func.func @transform_37(%arg0: i32) -> (i32, i32) {
    %c0_i32 = arith.constant 0 : i32
    %c0_i32_0 = arith.constant 0 : i32
    %c0_i32_1 = arith.constant 0 : i32
    return %c0_i32, %c0_i32_0 : i32, i32
  }
  func.func @transform_38(%arg0: i32) -> (i32, i32) {
    %c0_i32 = arith.constant 0 : i32
    %c0_i32_0 = arith.constant 0 : i32
    %c0_i32_1 = arith.constant 0 : i32
    return %c0_i32, %c0_i32_0 : i32, i32
  }
  func.func @transform_39(%arg0: i32) -> (i32, i32) {
    %c0_i32 = arith.constant 0 : i32
    %c0_i32_0 = arith.constant 0 : i32
    %c0_i32_1 = arith.constant 0 : i32
    return %c0_i32, %c0_i32_0 : i32, i32
  }
  func.func @transform_40(%arg0: i32) -> (i32, i32) {
    %c0_i32 = arith.constant 0 : i32
    %c0_i32_0 = arith.constant 0 : i32
    %c0_i32_1 = arith.constant 0 : i32
    return %c0_i32, %c0_i32_0 : i32, i32
  }
  func.func @transform_41(%arg0: i32) -> (i32, i32) {
    %c0_i32 = arith.constant 0 : i32
    %c0_i32_0 = arith.constant 0 : i32
    %c0_i32_1 = arith.constant 0 : i32
    return %c0_i32, %c0_i32_0 : i32, i32
  }
  func.func @transform_42(%arg0: i32) -> (i32, i32) {
    %c0_i32 = arith.constant 0 : i32
    %c0_i32_0 = arith.constant 0 : i32
    %c0_i32_1 = arith.constant 0 : i32
    return %c0_i32, %c0_i32_0 : i32, i32
  }
  func.func @transform_43(%arg0: i32) -> (i32, i32, i32) {
    %c0_i32 = arith.constant 0 : i32
    %c0_i32_0 = arith.constant 0 : i32
    %c0_i32_1 = arith.constant 0 : i32
    return %arg0, %c0_i32, %c0_i32_0 : i32, i32, i32
  }
}

</mosaic_0001>

<bundles_post_ra>
// kernel: head_forward.1
= control target key start
LH: loop header
LB: loop body
LE: loop exit
PB: predicated region body
PF: predicated region fallthrough
CT: control target
= control target key end

     0   :  { %s11306_s6 = smov 1   ;;  %s11307_s10 = smov 2   ;;  %s13808_s0 = inlined_call_operand.smem [shape: u32[44], index: -1, kind: input, shape index: {}] }
   0x1   :  { %s11362_s5 = sld [smem:[%s13808_s0]]   ;;  %s11308_s14 = smov 3  }
   0x2   :  { %s11367_s9 = sld [smem:[%s13808_s0 + %s11306_s6]]   ;;  %s11309_s18 = smov 4  }
   0x3   :  { %s11372_s13 = sld [smem:[%s13808_s0 + %s11307_s10]]   ;;  %s11310_s22 = smov 5  }
   0x4   :  { %s11377_s17 = sld [smem:[%s13808_s0 + %s11308_s14]]   ;;  %s11311_s26 = smov 6  }
   0x5   :  { %s11382_s21 = sld [smem:[%s13808_s0 + %s11309_s18]]   ;;  %s11312_s30 = smov 7  }
   0x6   :  { %s11387_s25 = sld [smem:[%s13808_s0 + %s11310_s22]]   ;;  %s11313_s4 = smov 8  }
   0x7   :  { %s11392_s29 = sld [smem:[%s13808_s0 + %s11311_s26]]   ;;  %s11314_s10 = smov 9  }
   0x8   :  { %s11397_s3 = sld [smem:[%s13808_s0 + %s11312_s30]]   ;;  %s11315_s15 = smov 10  }
   0x9   :  { %s11402_s8 = sld [smem:[%s13808_s0 + %s11313_s4]]   ;;  %s11316_s20 = smov 11  }
   0xa   :  { %s11407_s14 = sld [smem:[%s13808_s0 + %s11314_s10]]   ;;  %s11317_s26 = smov 12  }
   0xb   :  { %s11412_s19 = sld [smem:[%s13808_s0 + %s11315_s15]]   ;;  %s11318_s1 = smov 13  }
   0xc   :  { %13828 = sst [smem:[#allocation2_spill]] %s11387_s25  ;;  %s11319_s7 = smov 14  }
   0xd   :  { %13829 = sst [smem:[#allocation3_spill]] %s11392_s29  ;;  %s11320_s15 = smov 15  }
   0xe   :  { %s11417_s24 = sld [smem:[%s13808_s0 + %s11316_s20]]   ;;  %s11321_s22 = smov 16  }
   0xf   :  { %s11422_s30 = sld [smem:[%s13808_s0 + %s11317_s26]]   ;;  %s11322_s28 = smov 17  }
  0x10   :  { %s11427_s6 = sld [smem:[%s13808_s0 + %s11318_s1]]  }
  0x11   :  { %13830 = sst [smem:[#allocation4_spill]] %s11412_s19 }
  0x12   :  { %s11432_s12 = sld [smem:[%s13808_s0 + %s11319_s7]]   ;;  %s11323_s7 = smov 18  }
  0x13   :  { %s11437_s20 = sld [smem:[%s13808_s0 + %s11320_s15]]   ;;  %s11324_s15 = smov 19  }
  0x14   :  { %13831 = sst [smem:[#allocation5_spill]] %s11417_s24 }
  0x15   :  { %13832 = sst [smem:[#allocation6_spill]] %s11422_s30 }
  0x16   :  { %s11442_s27 = sld [smem:[%s13808_s0 + %s11321_s22]]   ;;  %s11325_s22 = smov 20  }
  0x17   :  { %s11447_s4 = sld [smem:[%s13808_s0 + %s11322_s28]]   ;;  %s11326_s28 = smov 21  }
  0x18   :  { %s11452_s29 = sld [smem:[%s13808_s0 + %s11323_s7]]   ;;  %s11327_s7 = smov 22  }
  0x19   :  { %s11457_s25 = sld [smem:[%s13808_s0 + %s11324_s15]]   ;;  %s11328_s15 = smov 23  }
  0x1a   :  { %s11462_s30 = sld [smem:[%s13808_s0 + %s11325_s22]]   ;;  %s11329_s22 = smov 24  }
  0x1b   :  { %s11467_s24 = sld [smem:[%s13808_s0 + %s11326_s28]]   ;;  %s11330_s28 = smov 25  }
  0x1c   :  { %s11472_s19 = sld [smem:[%s13808_s0 + %s11327_s7]]   ;;  %s11331_s7 = smov 26  }
  0x1f   :  { %13833 = sst [smem:[#allocation7_spill]] %s11457_s25 }
  0x20   :  { %13834 = sst [smem:[#allocation8_spill]] %s11462_s30 }
  0x21   :  { %13835 = sst [smem:[#allocation9_spill]] %s11467_s24 }
  0x22   :  { %13836 = sst [smem:[#allocation10_spill]] %s11472_s19 }
  0x23   :  { %s11477_s25 = sld [smem:[%s13808_s0 + %s11328_s15]]   ;;  %s11332_s15 = smov 27  }
  0x24   :  { %s11482_s30 = sld [smem:[%s13808_s0 + %s11329_s22]]   ;;  %s11333_s22 = smov 28  }
  0x25   :  { %s11487_s24 = sld [smem:[%s13808_s0 + %s11330_s28]]   ;;  %s11334_s28 = smov 29  }
  0x26   :  { %s11492_s19 = sld [smem:[%s13808_s0 + %s11331_s7]]   ;;  %s11335_s7 = smov 30  }
  0x29   :  { %13837 = sst [smem:[#allocation11_spill]] %s11477_s25 }
  0x2a   :  { %13838 = sst [smem:[#allocation12_spill]] %s11482_s30 }
  0x2b   :  { %13839 = sst [smem:[#allocation13_spill]] %s11487_s24 }
  0x2c   :  { %13840 = sst [smem:[#allocation14_spill]] %s11492_s19 }
  0x2d   :  { %s11497_s25 = sld [smem:[%s13808_s0 + %s11332_s15]]   ;;  %s11336_s15 = smov 31  }
  0x2e   :  { %s11502_s30 = sld [smem:[%s13808_s0 + %s11333_s22]]   ;;  %s11337_s22 = smov 32  }
  0x2f   :  { %s11507_s24 = sld [smem:[%s13808_s0 + %s11334_s28]]   ;;  %s11338_s28 = smov 33  }
  0x30   :  { %s11512_s19 = sld [smem:[%s13808_s0 + %s11335_s7]]   ;;  %s11339_s7 = smov 34  }
  0x33   :  { %13841 = sst [smem:[#allocation15_spill]] %s11497_s25 }
  0x34   :  { %13842 = sst [smem:[#allocation16_spill]] %s11502_s30 }
  0x35   :  { %13843 = sst [smem:[#allocation17_spill]] %s11507_s24 }
  0x36   :  { %13844 = sst [smem:[#allocation18_spill]] %s11512_s19 }
  0x37   :  { %s11517_s25 = sld [smem:[%s13808_s0 + %s11336_s15]]   ;;  %s11340_s15 = smov 35  }
  0x38   :  { %s11522_s30 = sld [smem:[%s13808_s0 + %s11337_s22]]   ;;  %s11341_s22 = smov 36  }
  0x39   :  { %s11527_s24 = sld [smem:[%s13808_s0 + %s11338_s28]]   ;;  %s11342_s28 = smov 37  }
  0x3a   :  { %s11532_s19 = sld [smem:[%s13808_s0 + %s11339_s7]]   ;;  %s11343_s7 = smov 38  }
  0x3d   :  { %13845 = sst [smem:[#allocation19_spill]] %s11517_s25 }
  0x3e   :  { %13846 = sst [smem:[#allocation20_spill]] %s11522_s30 }
  0x3f   :  { %13847 = sst [smem:[#allocation21_spill]] %s11527_s24 }
  0x40   :  { %13848 = sst [smem:[#allocation22_spill]] %s11532_s19 }
  0x41   :  { %s11537_s25 = sld [smem:[%s13808_s0 + %s11340_s15]]   ;;  %s11344_s15 = smov 39  }
  0x42   :  { %s11542_s30 = sld [smem:[%s13808_s0 + %s11341_s22]]   ;;  %s11345_s22 = smov 40  }
  0x43   :  { %s11547_s24 = sld [smem:[%s13808_s0 + %s11342_s28]]   ;;  %s11346_s28 = smov 41  }
  0x44   :  { %s11552_s19 = sld [smem:[%s13808_s0 + %s11343_s7]]   ;;  %s11347_s7 = smov 42  }
  0x47   :  { %13849 = sst [smem:[#allocation23_spill]] %s11537_s25 }
  0x48   :  { %13850 = sst [smem:[#allocation24_spill]] %s11542_s30 }
  0x49   :  { %13851 = sst [smem:[#allocation25_spill]] %s11547_s24 }
  0x4a   :  { %13852 = sst [smem:[#allocation26_spill]] %s11552_s19 }
  0x4b   :  { %s11557_s25 = sld [smem:[%s13808_s0 + %s11344_s15]]   ;;  %s11348_s15 = smov 43  }
  0x4c   :  { %s11562_s30 = sld [smem:[%s13808_s0 + %s11345_s22]]   ;;  %s11579_s22 = smov 0  }
  0x4d   :  { %s11567_s24 = sld [smem:[%s13808_s0 + %s11346_s28]]  }
  0x4e   :  { %s11572_s19 = sld [smem:[%s13808_s0 + %s11347_s7]]  }
  0x51   :  { %13853 = sst [smem:[#allocation27_spill]] %s11557_s25 }
  0x52   :  { %s11577_s25 = sld [smem:[%s13808_s0 + %s11348_s15]]  }
  0x53 LB: > { %s8652_s23 = sadd.s32 4294967295, %s11304_s22   ;;  %p8656_p0 = scmp.ge.s32.totalorder %s11304_s22, 1  ;;  %s11304_s22 = sphi %s11579_s22, %s97_s22  }
  0x54   : > { %p1211_p1 = scmp.lt.s32.totalorder %s11304_s22, 3 }
  0x56   : > { %p1212_p2 = pnand %p8656_p0, %p1211_p1 }
  0x57   : > { %v11031_v0 = vld [vmem:[%s11397_s3] sm:$0xff] (!%p1212_p2)   ;;  %v11349_v1 = vmov (!%p1212_p2), 0.0   ;;  %v11032_v2 = vld [vmem:[%s11397_s3 + $0x8] sm:$0xff] (!%p1212_p2)   ;;  %vm11350_vm0 = vmmov (!%p1212_p2), 0   ;;  %p1329_p3 = scmp.lt.s32.totalorder (!%p1212_p2), %s8652_s23, 1  ;;  %v11033_v3 = vld [vmem:[%s11397_s3 + $0x10] sm:$0xff] (!%p1212_p2)  }
  0x58   : > { %1215 = sbr.rel (%p1212_p2) target bundleno = 5228 (0x146c), region = 192  ;;  %9712 = vmatprep.subr.bf16.mxu0 (!%p1212_p2), %v11349_v1  ;;  %9752 = vmatprep.subr.bf16.mxu1 (!%p1212_p2), %v11349_v1  ;;  %v11351_v4 = vmov (!%p1212_p2), 0   ;;  %v11034_v5 = vld [vmem:[%s11397_s3 + $0x18] sm:$0xff] (!%p1212_p2)   ;;  %v11035_v6 = vld [vmem:[%s11397_s3 + $0x20] sm:$0xff] (!%p1212_p2)   ;;  %v11036_v10 = vld [vmem:[%s11397_s3 + $0x28] sm:$0xff] (!%p1212_p2)   ;;  %vm1448_vm1 = vcmask (!%p1212_p2), 785408  }
  0x59   : > { %9713 = vmatpush3.bf16.msra.mxu0 (!%p1212_p2), %v11031_v0  ;;  %9724 = vmatprep.mubr.msk.bf16.mxu0 (!%p1212_p2), %vm11350_vm0, %v11349_v1  ;;  %v11051_v35 = vld [vmem:[%s11427_s6 + $0x30] sm:$0xff] (!%p1212_p2)   ;;  %v11052_v36 = vld [vmem:[%s11427_s6 + $0x38] sm:$0xff] (!%p1212_p2)   ;;  %v11708_v37 = vld [vmem:[%s11402_s8] ss:$0 sm:$0xff] (!%p1212_p2)  ;;  %vm1977_vm2 = vsmask.f32 (!%p1212_p2), 7424 }
  0x5a   : > { %9714 = vmatprep.subr.bf16.mxu0 (!%p1212_p2), %v11349_v1  ;;  %9753 = vmatpush3.bf16.msra.mxu1 (!%p1212_p2), %v11031_v0  ;;  %v11711_v40 = vld [vmem:[%s11407_s14] ss:$0 sm:$0xff] (!%p1212_p2)  ;;  %s13821_s11 = smov (!%p1212_p2), 32   ;;  %vm2054_vm3 = vcmask (!%p1212_p2), 1046528   ;;  %s13823_s15 = smov (!%p1212_p2), 64   ;;  %vm2082_vm4 = vcmask (!%p1212_p2), 261120  }
  0x5b   : > { %9754 = vmatprep.subr.bf16.mxu1 (!%p1212_p2), %v11349_v1  ;;  %9764 = vmatprep.mubr.msk.bf16.mxu1 (!%p1212_p2), %vm11350_vm0, %v11349_v1  ;;  %v11053_v60 = vld [vmem:[%s11427_s6 + $0x40] sm:$0xff] (!%p1212_p2)   ;;  %vm2097_vm5 = vcmask (!%p1212_p2), 523264   ;;  %vm2143_vm6 = vcmask (!%p1212_p2), 1042432   ;;  %vm2412_vm7 = vcmask (!%p1212_p2), 1045504   ;;  %s13854_s16 = sld [smem:[#allocation7_spill]] (!%p1212_p2)  ;;  %s13855_s18 = sld [smem:[#allocation8_spill]] (!%p1212_p2) }
  0x5c   : > { %11029 = vset.pattern.permute.xlu0 (!%p1212_p2), %v11351_v4  ;;  %11030 = vset.pattern.permute.xlu1 (!%p1212_p2), %v11351_v4  ;;  %vm5210_vm8 = vcmask (!%p1212_p2), 1041408   ;;  %vm5545_vm9 = vcmask (!%p1212_p2), 1043456   ;;  %vm7583_vm10 = vcmask (!%p1212_p2), 97280   ;;  %vm7608_vm11 = vcmask (!%p1212_p2), 91136  }
  0x5d   : > { %9715 = vmatpush3.bf16.msra.mxu0 (!%p1212_p2), %v11032_v2  ;;  %vm7859_vm12 = vcmask (!%p1212_p2), 539648   ;;  %vm7884_vm13 = vcmask (!%p1212_p2), 533504   ;;  %vm7980_vm14 = vcmask (!%p1212_p2), 1040384  }
  0x5e   : > { %9716 = vmatprep.subr.bf16.mxu0 (!%p1212_p2), %v11349_v1  ;;  %9755 = vmatpush3.bf16.msra.mxu1 (!%p1212_p2), %v11032_v2 }
  0x5f   : > { %s13883_s23 = smov (!%p1329_p3, %s8652_s23), 1  ;;  %9756 = vmatprep.subr.bf16.mxu1 %v11349_v1 }
  0x60   : > { %s10970_s0 = smul.u32 52, %s13883_s23 }
  0x61   : > { %s10972_s28 = smul.u32 104, %s13883_s23  ;;  %9717 = vmatpush3.bf16.msra.mxu0 %v11033_v3 }
  0x62   : > { %s11605_s26 = scalar_lea.vmem %s11362_s5, %s10970_s0  ;;  %9718 = vmatprep.subr.bf16.mxu0 %v11349_v1  ;;  %9757 = vmatpush3.bf16.msra.mxu1 %v11033_v3  ;;  %s11627_s2 = scalar_lea.vmem %s11367_s9, %s10970_s0  ;;  %v11054_v3 = vld [vmem:[%s11427_s6 + $0x48] sm:$0xff]  }
  0x63   : > { %s11612_s1 = scalar_lea.vmem %s11377_s17, %s10972_s28  ;;  %9758 = vmatprep.subr.bf16.mxu1 %v11349_v1  ;;  %v11037_v12 = vld [vmem:[%s11605_s26] sm:$0xff]   ;;  %s10971_s7 = smul.u32 72, %s13883_s23  ;;  %v11038_v18 = vld [vmem:[%s11605_s26 + $0x8] sm:$0xff]   ;;  %v11039_v24 = vld [vmem:[%s11605_s26 + $0x10] sm:$0xff]  }
  0x64   : > { %v1598_v7 = vld [vmem:[%s11612_s1] sm:$0xff]  ;;  %v1600_v8 = vld [vmem:[%s11612_s1 + $0x10] sm:$0xff]  ;;  %v1599_v9 = vld [vmem:[%s11612_s1 + $0x8] sm:$0xff]  ;;  %s13856_s0 = sld [smem:[#allocation9_spill]]  ;;  %s13858_s28 = sld [smem:[#allocation5_spill]] }
  0x65   : > { %9719 = vmatpush3.bf16.msra.mxu0 %v11034_v5  ;;  %1613 = vperm.xlu0 %11029, %v1598_v7   ;;  %v1601_v11 = vld [vmem:[%s11612_s1 + $0x18] sm:$0xff]  ;;  %v1602_v13 = vld [vmem:[%s11612_s1 + $0x20] sm:$0xff]  ;;  %v1603_v14 = vld [vmem:[%s11612_s1 + $0x28] sm:$0xff]  ;;  %s11695_s10 = scalar_lea.vmem %s11372_s13, %s10971_s7  ;;  %s13861_s7 = sld [smem:[#allocation11_spill]] }
  0x66   : > { %9720 = vmatprep.subr.bf16.mxu0 %v11349_v1  ;;  %9759 = vmatpush3.bf16.msra.mxu1 %v11034_v5  ;;  %v11044_v15 = vld [vmem:[%s11627_s2] sm:$0xff]   ;;  %v1604_v16 = vld [vmem:[%s11612_s1 + $0x30] sm:$0xff]  ;;  %v1605_v17 = vld [vmem:[%s11612_s1 + $0x38] sm:$0xff] }
  0x67   : > { %1623 = vperm.xlu1 %11030, %v1600_v8   ;;  %9760 = vmatprep.subr.bf16.mxu1 %v11349_v1  ;;  %v1606_v19 = vld [vmem:[%s11612_s1 + $0x40] sm:$0xff]  ;;  %v1607_v20 = vld [vmem:[%s11612_s1 + $0x48] sm:$0xff]  ;;  %v1608_v22 = vld [vmem:[%s11612_s1 + $0x50] sm:$0xff] }
  0x68   : > { %v11045_v21 = vld [vmem:[%s11627_s2 + $0x8] sm:$0xff]   ;;  %v1609_v23 = vld [vmem:[%s11612_s1 + $0x58] sm:$0xff]  ;;  %v1610_v25 = vld [vmem:[%s11612_s1 + $0x60] sm:$0xf]  ;;  %s13859_s1 = sld [smem:[#allocation6_spill]] }
  0x69   : > { %9721 = vmatpush3.bf16.msra.mxu0 %v11035_v6  ;;  %1618 = vperm.xlu0 %11029, %v1599_v9   ;;  %v11046_v26 = vld [vmem:[%s11627_s2 + $0x10] sm:$0xff]   ;;  %v11040_v27 = vld [vmem:[%s11605_s26 + $0x18] sm:$0xff]   ;;  %v11041_v29 = vld [vmem:[%s11605_s26 + $0x20] sm:$0xff]  }
  0x6a   : > { %9722 = vmatprep.subr.bf16.mxu0 %v11349_v1  ;;  %9761 = vmatpush3.bf16.msra.mxu1 %v11035_v6  ;;  %v11047_v28 = vld [vmem:[%s11627_s2 + $0x18] sm:$0xff]   ;;  %v11048_v30 = vld [vmem:[%s11627_s2 + $0x20] sm:$0xff]   ;;  %v11042_v31 = vld [vmem:[%s11605_s26 + $0x28] sm:$0xff]  }
  0x6b   : > { %1628 = vperm.xlu1 %11030, %v1601_v11   ;;  %9762 = vmatprep.subr.bf16.mxu1 %v11349_v1  ;;  %v11049_v32 = vld [vmem:[%s11627_s2 + $0x28] sm:$0xff]   ;;  %v11043_v33 = vld [vmem:[%s11605_s26 + $0x30] ss:$0 sps:$4 sm:$0x33]   ;;  %s13857_s26 = sld [smem:[#allocation4_spill]] }
  0x6c   : > { %v11050_v34 = vld [vmem:[%s11627_s2 + $0x30] ss:$0 sps:$4 sm:$0x33]   ;;  %s13860_s2 = sld [smem:[#allocation10_spill]] }
  0x6d   : > { %9723 = vmatpush3.bf16.msra.mxu0 %v11036_v10  ;;  %1633 = vperm.xlu0 %11029, %v1602_v13  }
  0x6e   : > { %9792 = vmatprep.subr.bf16.mxu0 %v11349_v1  ;;  %9763 = vmatpush3.bf16.msra.mxu1 %v11036_v10 }
  0x6f   : > { %1638 = vperm.xlu1 %11030, %v1603_v14   ;;  %9984 = vmatprep.subr.bf16.mxu1 %v11349_v1 }
  0x70   : > { %9725 = vmatmul.mubr.msk.bf16.vlgmr.msra.gmra.mrb[0].mxu0 %vm1448_vm1, %v11037_v12 }
  0x71   : > { %9728 = vmatprep.mubr.msk.bf16.mxu0 %vm11350_vm0, %v11349_v1  ;;  %9765 = vmatmul.mubr.msk.bf16.vlgmr.msra.gmra.mrb[0].mxu1 %vm1448_vm1, %v11044_v15  ;;  %v11055_v15 = vld [vmem:[%s11427_s6 + $0x50] sm:$0xff]  }
  0x72   : > { %1643 = vperm.xlu0 %11029, %v1604_v16   ;;  %9768 = vmatprep.mubr.msk.bf16.mxu1 %vm11350_vm0, %v11349_v1 }
  0x73   : > { %1648 = vperm.xlu1 %11030, %v1605_v17   ;;  %9793 = vmatpush3.bf16.msra.mxu0 %v11051_v35 }
  0x74   : > { %9794 = vmatprep.subr.bf16.mxu0 %v11349_v1 }
  0x76   : > { %1653 = vperm.xlu0 %11029, %v1606_v19  }
  0x77   : > { %1658 = vperm.xlu1 %11030, %v1607_v20   ;;  %9795 = vmatpush3.bf16.msra.mxu0 %v11052_v36 }
  0x78   : > { %9729 = vmatmul.mubr.msk.bf16.gmra.mrb[4].mxu0 %vm1448_vm1, %v11038_v18  ;;  %9796 = vmatprep.subr.bf16.mxu0 %v11349_v1 }
  0x79   : > { %9732 = vmatprep.mubr.msk.bf16.mxu0 %vm11350_vm0, %v11349_v1  ;;  %9769 = vmatmul.mubr.msk.bf16.gmra.mrb[4].mxu1 %vm1448_vm1, %v11045_v21 }
  0x7a   : > { %1663 = vperm.xlu0 %11029, %v1608_v22   ;;  %9772 = vmatprep.mubr.msk.bf16.mxu1 %vm11350_vm0, %v11349_v1 }
  0x7b   : > { %1668 = vperm.xlu1 %11030, %v1609_v23   ;;  %9797 = vmatpush3.bf16.msra.mxu0 %v11053_v60 }
  0x7c   : > { %9798 = vmatprep.subr.bf16.mxu0 %v11349_v1 }
  0x7e   : > { %1673 = vperm.xlu0 %11029, %v1610_v25   ;;  %v11056_v25 = vld [vmem:[%s11427_s6 + $0x58] sm:$0xff]  }
  0x7f   : > { %9799 = vmatpush3.bf16.msra.mxu0 %v11054_v3 }
  0x80   : > { %9733 = vmatmul.mubr.msk.bf16.gmra.mrb[8].mxu0 %vm1448_vm1, %v11039_v24  ;;  %9800 = vmatprep.subr.bf16.mxu0 %v11349_v1 }
  0x81   : > { %9736 = vmatprep.mubr.msk.bf16.mxu0 %vm11350_vm0, %v11349_v1  ;;  %9773 = vmatmul.mubr.msk.bf16.gmra.mrb[8].mxu1 %vm1448_vm1, %v11046_v26 }
  0x82   : > { %9776 = vmatprep.mubr.msk.bf16.mxu1 %vm11350_vm0, %v11349_v1 }
  0x83   : > { %9801 = vmatpush3.bf16.msra.mxu0 %v11055_v15 }
  0x84   : > { %9802 = vmatprep.subr.bf16.mxu0 %v11349_v1 }
  0x87   : > { %9803 = vmatpush3.bf16.msra.mxu0 %v11056_v25 }
  0x88   : > { %9737 = vmatmul.mubr.msk.bf16.gmra.mrb[12].mxu0 %vm1448_vm1, %v11040_v27  ;;  %9824 = vmatprep.subr.bf16.mxu0 %v11349_v1 }
  0x89   : > { %9740 = vmatprep.mubr.msk.bf16.mxu0 %vm11350_vm0, %v11349_v1  ;;  %9777 = vmatmul.mubr.msk.bf16.gmra.mrb[12].mxu1 %vm1448_vm1, %v11047_v28 }
  0x8a   : > { %9780 = vmatprep.mubr.msk.bf16.mxu1 %vm11350_vm0, %v11349_v1 }
  0x90   : > { %9741 = vmatmul.mubr.msk.bf16.gmra.mrb[16].mxu0 %vm1448_vm1, %v11041_v29 }
  0x91   : > { %9744 = vmatprep.mubr.msk.bf16.mxu0 %vm11350_vm0, %v11349_v1  ;;  %9781 = vmatmul.mubr.msk.bf16.gmra.mrb[16].mxu1 %vm1448_vm1, %v11048_v30 }
  0x92   : > { %9784 = vmatprep.mubr.msk.bf16.mxu1 %vm11350_vm0, %v11349_v1 }
  0x98   : > { %9745 = vmatmul.mubr.msk.bf16.gmra.mrb[20].mxu0 %vm1448_vm1, %v11042_v31 }
  0x99   : > { %9748 = vmatprep.mubr.msk.bf16.mxu0 %vm11350_vm0, %v11349_v1  ;;  %9785 = vmatmul.mubr.msk.bf16.gmra.mrb[20].mxu1 %vm1448_vm1, %v11049_v32 }
  0x9a   : > { %9788 = vmatprep.mubr.msk.bf16.mxu1 %vm11350_vm0, %v11349_v1 }
  0xa0   : > { %9749 = vmatmul.mubr.msk.bf16.gmra.mrb[24].mxu0 %vm1448_vm1, %v11043_v33 }
  0xa1   : > { %9804 = vmatprep.mubr.msk.bf16.mxu0 %vm11350_vm0, %v11349_v1  ;;  %9789 = vmatmul.mubr.msk.bf16.gmra.mrb[24].mxu1 %vm1448_vm1, %v11050_v34 }
  0xa2   : > { %9988 = vmatprep.mubr.msk.bf16.mxu1 %vm11350_vm0, %v11349_v1 }
  0xe4   : > { %v1614_v38 = vpop.permute.xlu0 %1613 }
  0xe6   : > { %v1624_v51 = vpop.permute.xlu1 %1623 }
  0xe8   : > { %v1619_v48 = vpop.permute.xlu0 %1618 }
  0xea   : > { %v1629_v63 = vpop.permute.xlu1 %1628 }
  0xec   : > { %v1634_v19 = vpop.permute.xlu0 %1633 }
  0xee   : > { %v1639_v20 = vpop.permute.xlu1 %1638 }
 0x143   : > { %v1504_v39 = vpop.f32.mrb[0].mxu0 }
 0x144   : > { %v1565_v41 = vmul.f32 %v11708_v37, %v1504_v39  ;;  %v9726_v42 = vpop.f32.mrb[1].mxu0 }
 0x145   : > { %v1507_v43 = vpop.f32.mrb[2].mxu0 }
 0x146   : > { %v1585_v44 = vadd.f32 %v11711_v40, %v1565_v41  ;;  %v1566_v45 = vmul.f32 %v11708_v37, %v1507_v43  ;;  %v9727_v46 = vpop.f32.mrb[3].mxu0  ;;  %v1644_v43 = vpop.permute.xlu0 %1643 }
 0x148   : > { %v1586_v47 = vadd.f32 %v11711_v40, %v1566_v45  ;;  %v1676_v49 = vmul.f32 %v1614_v38, %v1585_v44  ;;  %v1649_v44 = vpop.permute.xlu1 %1648 }
 0x14a   : > { %v1677_v50 = vmul.f32 %v1619_v48, %v1586_v47 }
 0x14b   : > { %v1512_v52 = vpop.f32.mrb[4].mxu0 }
 0x14c   : > { %v11717_v53 = vpack.c.bf16 %v1677_v50, %v1676_v49  ;;  %v1567_v54 = vmul.f32 %v11708_v37, %v1512_v52  ;;  %v9730_v55 = vpop.f32.mrb[5].mxu0  ;;  %v1659_v3 = vpop.permute.xlu1 %1658 }
 0x14d   : > { %v1515_v56 = vpop.f32.mrb[6].mxu0 }
 0x14e   : > { %v1587_v57 = vadd.f32 %v11711_v40, %v1567_v54  ;;  %v1568_v58 = vmul.f32 %v11708_v37, %v1515_v56  ;;  %v9731_v59 = vpop.f32.mrb[7].mxu0  ;;  %v1981_v62 = vshll.u32 %v11717_v53, 16  ;;  %v1979_v13 = vshrl.u32 %v11717_v53, 16 }
 0x14f   : > { %v2055_v30 = vrot.slane %v11717_v53, 1 }
 0x150   : > { %v1588_v61 = vadd.f32 %v11711_v40, %v1568_v58  ;;  %v1678_v0 = vmul.f32 %v1624_v51, %v1587_v57  ;;  %v1983_v8 = vrot.slane %v1981_v62, 1  ;;  %v1669_v25 = vpop.permute.xlu1 %1668 }
 0x152   : > { %v1679_v2 = vmul.f32 %v1629_v63, %v1588_v61  ;;  %v1984_v17 = vor.u32 %v1983_v8, %v1979_v13 }
 0x153   : > { %v1520_v4 = vpop.f32.mrb[8].mxu0 }
 0x154   : > { %v11727_v5 = vpack.c.bf16 %v1679_v2, %v1678_v0  ;;  %v1569_v6 = vmul.f32 %v11708_v37, %v1520_v4  ;;  %v9734_v7 = vpop.f32.mrb[9].mxu0  ;;  %v1654_v2 = vpop.permute.xlu0 %1653 }
 0x155   : > { %v1523_v9 = vpop.f32.mrb[10].mxu0 }
 0x156   : > { %v1589_v10 = vadd.f32 %v11711_v40, %v1569_v6  ;;  %v1570_v11 = vmul.f32 %v11708_v37, %v1523_v9  ;;  %v9735_v12 = vpop.f32.mrb[11].mxu0  ;;  %v1986_v14 = vshll.u32 %v11727_v5, 16  ;;  %v2056_v24 = vrot.slane %v11727_v5, 1 }
 0x157   : > { %v1990_v32 = vshrl.u32 %v11727_v5, 16 }
 0x158   : > { %v1590_v16 = vadd.f32 %v11711_v40, %v1570_v11  ;;  %v1988_v18 = vrot.slane %v1986_v14, 1  ;;  %v1680_v21 = vmul.f32 %v1634_v19, %v1589_v10  ;;  %v2057_v36 = vsel %vm2054_vm3, %v2055_v30, %v2056_v24 }
 0x15a   : > { %v1681_v22 = vmul.f32 %v1639_v20, %v1590_v16  ;;  %v1989_v23 = vsel %vm1977_vm2, %v1984_v17, %v1988_v18  ;;  %v1992_v41 = vor.u32 %v1990_v32, %v1988_v18 }
 0x15b   : > { %2033 = vrot.lane.b32.xlu1 %v1989_v23, %s13821_s11  ;;  %v1528_v26 = vpop.f32.mrb[12].mxu0 }
 0x15c   : > { %v11742_v27 = vpack.c.bf16 %v1681_v22, %v1680_v21  ;;  %v1571_v28 = vmul.f32 %v11708_v37, %v1528_v26  ;;  %v9738_v29 = vpop.f32.mrb[13].mxu0 }
 0x15d   : > { %v1531_v31 = vpop.f32.mrb[14].mxu0 }
 0x15e   : > { %v1591_v33 = vadd.f32 %v11711_v40, %v1571_v28  ;;  %v1572_v34 = vmul.f32 %v11708_v37, %v1531_v31  ;;  %v9739_v35 = vpop.f32.mrb[15].mxu0  ;;  %v1994_v38 = vshll.u32 %v11742_v27, 16  ;;  %v2058_v45 = vrot.slane %v11742_v27, 1 }
 0x15f   : > { %2068 = vrot.lane.b32.xlu1 %v2057_v36, %s13823_s15  ;;  %v1998_v56 = vshrl.u32 %v11742_v27, 16 }
 0x160   : > { %v1592_v39 = vadd.f32 %v11711_v40, %v1572_v34  ;;  %v1996_v42 = vrot.slane %v1994_v38, 1  ;;  %v1682_v46 = vmul.f32 %v1644_v43, %v1591_v33  ;;  %v2059_v55 = vsel %vm2054_vm3, %v2056_v24, %v2058_v45  ;;  %v1664_v24 = vpop.permute.xlu0 %1663 }
 0x162   : > { %v1683_v47 = vmul.f32 %v1649_v44, %v1592_v39  ;;  %v1997_v48 = vsel %vm1977_vm2, %v1992_v41, %v1996_v42  ;;  %v2000_v63 = vor.u32 %v1998_v56, %v1996_v42  ;;  %v11792_v42 = vpop.f32.mrb[0].mxu1 }
 0x163   : > { %2035 = vrot.lane.b32.xlu0 %v1997_v48, %s13821_s11  ;;  %v1536_v49 = vpop.f32.mrb[16].mxu0  ;;  %v9766_v44 = vpop.f32.mrb[1].mxu1 }
 0x164   : > { %v11757_v50 = vpack.c.bf16 %v1683_v47, %v1682_v46  ;;  %v1573_v51 = vmul.f32 %v11708_v37, %v1536_v49  ;;  %v9742_v52 = vpop.f32.mrb[17].mxu0  ;;  %v1674_v43 = vpop.permute.xlu0 %1673 }
 0x165   : > { %v1539_v54 = vpop.f32.mrb[18].mxu0  ;;  %v11795_v49 = vpop.f32.mrb[2].mxu1 }
 0x166   : > { %v1593_v57 = vadd.f32 %v11711_v40, %v1573_v51  ;;  %v1574_v58 = vmul.f32 %v11708_v37, %v1539_v54  ;;  %v9743_v59 = vpop.f32.mrb[19].mxu0  ;;  %v2060_v60 = vrot.slane %v11757_v50, 1  ;;  %v2002_v61 = vshll.u32 %v11757_v50, 16  ;;  %v9767_v51 = vpop.f32.mrb[3].mxu1 }
 0x167   : > { %2070 = vrot.lane.b32.xlu0 %v2059_v55, %s13823_s15  ;;  %v2006_v14 = vshrl.u32 %v11757_v50, 16 }
 0x168   : > { %v1594_v62 = vadd.f32 %v11711_v40, %v1574_v58  ;;  %v2004_v0 = vrot.slane %v2002_v61, 1  ;;  %v1684_v4 = vmul.f32 %v1654_v2, %v1593_v57  ;;  %v2061_v7 = vsel %vm2054_vm3, %v2058_v45, %v2060_v60  ;;  %v11806_v61 = vpop.f32.mrb[4].mxu1 }
 0x16a   : > { %v1685_v6 = vmul.f32 %v1659_v3, %v1594_v62  ;;  %v2005_v8 = vsel %vm1977_vm2, %v2000_v63, %v2004_v0  ;;  %v2008_v22 = vor.u32 %v2006_v14, %v2004_v0  ;;  %v9770_v62 = vpop.f32.mrb[5].mxu1  ;;  %v1871_v0 = vld [vmem:[%s11382_s21 + $0x8] sm:$0xff] }
 0x16b   : > { %2072 = vrot.lane.b32.xlu0 %v2061_v7, %s13823_s15  ;;  %2037 = vrot.lane.b32.xlu1 %v2005_v8, %s13821_s11  ;;  %v1544_v9 = vpop.f32.mrb[20].mxu0  ;;  %v11811_v2 = vpop.f32.mrb[6].mxu1  ;;  %v1873_v7 = vld [vmem:[%s11382_s21 + $0x18] sm:$0xff] }
 0x16c   : > { %v11772_v10 = vpack.c.bf16 %v1685_v6, %v1684_v4  ;;  %v1575_v11 = vmul.f32 %v11708_v37, %v1544_v9  ;;  %v9746_v12 = vpop.f32.mrb[21].mxu0  ;;  %v9771_v3 = vpop.f32.mrb[7].mxu1  ;;  %v1870_v4 = vld [vmem:[%s11382_s21] sm:$0xff]  ;;  %v1872_v9 = vld [vmem:[%s11382_s21 + $0x10] sm:$0xff] }
 0x16d   : > { %v1547_v13 = vpop.f32.mrb[22].mxu0  ;;  %v11815_v6 = vpop.f32.mrb[8].mxu1  ;;  %v1875_v12 = vld [vmem:[%s11382_s21 + $0x28] sm:$0xff] }
 0x16e   : > { %v1595_v15 = vadd.f32 %v11711_v40, %v1575_v11  ;;  %v1576_v16 = vmul.f32 %v11708_v37, %v1547_v13  ;;  %v9747_v17 = vpop.f32.mrb[23].mxu0  ;;  %v2062_v18 = vrot.slane %v11772_v10, 1  ;;  %v2010_v19 = vshll.u32 %v11772_v10, 16  ;;  %v9774_v8 = vpop.f32.mrb[9].mxu1 }
 0x16f   : > { %v2014_v39 = vshrl.u32 %v11772_v10, 16  ;;  %v11819_v11 = vpop.f32.mrb[10].mxu1  ;;  %v11059_v8 = vld [vmem:[%s11427_s6 + $0x10] sm:$0xff]  }
 0x170   : > { %v1596_v20 = vadd.f32 %v11711_v40, %v1576_v16  ;;  %v2063_v21 = vsel %vm2054_vm3, %v2060_v60, %v2062_v18  ;;  %v2012_v23 = vrot.slane %v2010_v19, 1  ;;  %v1686_v26 = vmul.f32 %v1664_v24, %v1595_v15  ;;  %v9775_v13 = vpop.f32.mrb[11].mxu1  ;;  %v1874_v15 = vld [vmem:[%s11382_s21 + $0x20] sm:$0xff]  ;;  %v1879_v24 = vld [vmem:[%s11382_s21 + $0x48] sm:$0xff] }
 0x171   : > { %2074 = vrot.lane.b32.xlu0 %v2063_v21, %s13823_s15  ;;  %v11822_v14 = vpop.f32.mrb[12].mxu1  ;;  %v1876_v21 = vld [vmem:[%s11382_s21 + $0x30] sm:$0xff] }
 0x172   : > { %v1687_v28 = vmul.f32 %v1669_v25, %v1596_v20  ;;  %v2013_v29 = vsel %vm1977_vm2, %v2008_v22, %v2012_v23  ;;  %v2016_v47 = vor.u32 %v2014_v39, %v2012_v23  ;;  %v9778_v16 = vpop.f32.mrb[13].mxu1 }
 0x173   : > { %2039 = vrot.lane.b32.xlu1 %v2013_v29, %s13821_s11  ;;  %v1552_v30 = vpop.f32.mrb[24].mxu0  ;;  %v11825_v17 = vpop.f32.mrb[14].mxu1 }
 0x174   : > { %v11785_v31 = vpack.c.bf16 %v1687_v28, %v1686_v26  ;;  %v1577_v32 = vmul.f32 %v11708_v37, %v1552_v30  ;;  %v9750_v33 = vpop.f32.mrb[25].mxu0  ;;  %v9779_v19 = vpop.f32.mrb[15].mxu1  ;;  %v1878_v28 = vld [vmem:[%s11382_s21 + $0x40] sm:$0xff] }
 0x175   : > { %v1555_v34 = vpop.f32.mrb[26].mxu0  ;;  %v11828_v20 = vpop.f32.mrb[16].mxu1 }
 0x176   : > { %v1597_v35 = vadd.f32 %v11711_v40, %v1577_v32  ;;  %v9751_v36 = vpop.f32.mrb[27].mxu0  ;;  %v2064_v38 = vrot.slane %v11785_v31, 1  ;;  %v2018_v41 = vshll.u32 %v11785_v31, 16  ;;  %v2022_v56 = vshrl.u32 %v11785_v31, 16  ;;  %v9782_v22 = vpop.f32.mrb[17].mxu1  ;;  %v1881_v32 = vld [vmem:[%s11382_s21 + $0x58] sm:$0xff] }
 0x177   : > { %v11831_v23 = vpop.f32.mrb[18].mxu1  ;;  %v1880_v34 = vld [vmem:[%s11382_s21 + $0x50] sm:$0xff] }
 0x178   : > { %v1688_v45 = vmul.f32 %v1674_v43, %v1597_v35  ;;  %v2065_v46 = vsel %vm2054_vm3, %v2062_v18, %v2064_v38  ;;  %v2020_v48 = vrot.slane %v2018_v41, 1  ;;  %v1877_v18 = vld [vmem:[%s11382_s21 + $0x38] sm:$0xff]  ;;  %v9783_v25 = vpop.f32.mrb[19].mxu1  ;;  %v1882_v41 = vld [vmem:[%s11382_s21 + $0x60] sm:$0xf] }
 0x179   : > { %2076 = vrot.lane.b32.xlu0 %v2065_v46, %s13823_s15  ;;  %v11834_v26 = vpop.f32.mrb[20].mxu1 }
 0x17a   : > { %v11798_v52 = vpack.c.bf16 %v1688_v45, %v1688_v45  ;;  %v2021_v54 = vsel %vm1977_vm2, %v2016_v47, %v2020_v48  ;;  %v2024_v59 = vor.u32 %v2022_v56, %v2020_v48  ;;  %v9786_v29 = vpop.f32.mrb[21].mxu1 }
 0x17b   : > { %2041 = vrot.lane.b32.xlu1 %v2021_v54, %s13821_s11  ;;  %v11837_v30 = vpop.f32.mrb[22].mxu1 }
 0x17c   : > { %v2066_v55 = vrot.slane %v11798_v52, 1  ;;  %v2026_v57 = vshll.u32 %v11798_v52, 16  ;;  %v9787_v33 = vpop.f32.mrb[23].mxu1  ;;  %v2030_v35 = vshrl.u32 %v11798_v52, 16 }
 0x17d   : > { %v11062_v33 = vld [vmem:[%s11427_s6 + $0x28] sm:$0xff]  }
 0x17e   : > { %v2067_v58 = vsel %vm2054_vm3, %v2064_v38, %v2066_v55  ;;  %v2028_v60 = vrot.slane %v2026_v57, 1  ;;  %v11843_v38 = vpop.f32.mrb[24].mxu1 }
 0x17f   : > { %2078 = vrot.lane.b32.xlu0 %v2067_v58, %s13823_s15  ;;  %v9790_v39 = vpop.f32.mrb[25].mxu1 }
 0x180   : > { %v2029_v63 = vsel %vm1977_vm2, %v2024_v59, %v2028_v60  ;;  %v2032_v36 = vor.u32 %v2030_v35, %v2028_v60  ;;  %v1841_v43 = vpop.f32.mrb[26].mxu1  ;;  %v11057_v59 = vld [vmem:[%s11427_s6] sm:$0xff]  }
 0x181   : > { %2043 = vrot.lane.b32.xlu1 %v2029_v63, %s13821_s11  ;;  %v9791_v44 = vpop.f32.mrb[27].mxu1 }
 0x183   : > { %1890 = vperm.xlu0 %11029, %v1871_v0   ;;  %v11058_v0 = vld [vmem:[%s11427_s6 + $0x8] sm:$0xff]  }
 0x185   : > { %1885 = vperm.xlu1 %11030, %v1870_v4  }
 0x187   : > { %1900 = vperm.xlu0 %11029, %v1873_v7  }
 0x189   : > { %1895 = vperm.xlu1 %11030, %v1872_v9  }
 0x18b   : > { %1910 = vperm.xlu0 %11029, %v1875_v12  }
 0x18d   : > { %1905 = vperm.xlu1 %11030, %v1874_v15  }
 0x18f   : > { %1920 = vperm.xlu0 %11029, %v1877_v18   ;;  %v11060_v18 = vld [vmem:[%s11427_s6 + $0x18] sm:$0xff]  }
 0x191   : > { %1915 = vperm.xlu1 %11030, %v1876_v21  }
 0x193   : > { %1930 = vperm.xlu0 %11029, %v1879_v24  }
 0x195   : > { %1925 = vperm.xlu1 %11030, %v1878_v28  }
 0x197   : > { %1940 = vperm.xlu0 %11029, %v1881_v32  }
 0x199   : > { %1935 = vperm.xlu1 %11030, %v1880_v34  }
 0x19b   : > { %2080 = vrot.lane.b32.xlu0 %v2066_v55, %s13823_s15 }
 0x19d   : > { %2045 = vrot.lane.b32.xlu1 %v2032_v36, %s13821_s11 }
 0x1a1   : > { %1945 = vperm.xlu1 %11030, %v1882_v41  }
 0x1cd   : > { %v2034_v45 = vpop.permute.xlu1 %2033 }
 0x1ce   : > { %v2084_v48 = vsel %vm2082_vm4, %v11717_v53, %v2034_v45 }
 0x1d1   : > { %v2069_v46 = vpop.permute.xlu1 %2068 }
 0x1d2   : > { %v11850_v51 = vsel %vm2097_vm5, %v2084_v48, %v2069_v46  ;;  %v1844_v48 = vmul.f32 %v11708_v37, %v11792_v42  ;;  %v1848_v42 = vmul.f32 %v11708_v37, %v11815_v6  ;;  %v1851_v6 = vmul.f32 %v11708_v37, %v11825_v17 }
 0x1d3   : > { %v2144_v57 = vrot.slane %v11850_v51, 5 }
 0x1d5   : > { %v2036_v47 = vpop.permute.xlu0 %2035 }
 0x1d6   : > { %v2086_v54 = vsel %vm2082_vm4, %v11727_v5, %v2036_v47 }
 0x1d9   : > { %v2071_v55 = vpop.permute.xlu0 %2070 }
 0x1da   : > { %v11855_v56 = vsel %vm2097_vm5, %v2086_v54, %v2071_v55  ;;  %v1845_v54 = vmul.f32 %v11708_v37, %v11795_v49  ;;  %v1847_v55 = vmul.f32 %v11708_v37, %v11811_v2  ;;  %v1849_v2 = vmul.f32 %v11708_v37, %v11819_v11  ;;  %v11064_v11 = vld [vmem:[%s11427_s6 + $0x68] sm:$0xff]  }
 0x1db   : > { %v2145_v58 = vrot.slane %v11855_v56, 5  ;;  %v2413_v3 = vrot.slane %v11855_v56, 2 }
 0x1dd   : > { %v2073_v60 = vpop.permute.xlu0 %2072  ;;  %v2038_v53 = vpop.permute.xlu1 %2037  ;;  %v2146_v62 = vsel %vm2143_vm6, %v2144_v57, %v2145_v58  ;;  %v1846_v57 = vmul.f32 %v11708_v37, %v11806_v61 }
 0x1de   : > { %v2088_v63 = vsel %vm2082_vm4, %v11742_v27, %v2038_v53  ;;  %9805 = vmatmul.mubr.msk.bf16.vlgmr.msra.gmra.mrb[28].mxu0 %vm1448_vm1, %v2146_v62  ;;  %v11063_v53 = vld [vmem:[%s11427_s6 + $0x60] sm:$0xff]   ;;  %v1860_v62 = vadd.f32 %v11711_v40, %v1847_v55 }
 0x1df   : > { %v11865_v5 = vsel %vm2097_vm5, %v2088_v63, %v2073_v60  ;;  %9808 = vmatprep.mubr.msk.bf16.mxu0 %vm11350_vm0, %v11349_v1  ;;  %9825 = vmatpush3.bf16.msra.mxu0 %v11057_v59  ;;  %v1857_v59 = vadd.f32 %v11711_v40, %v1844_v48  ;;  %v1858_v60 = vadd.f32 %v11711_v40, %v1845_v54  ;;  %v11066_v48 = vld [vmem:[%s11427_s6 + $0x78] sm:$0xff]  }
 0x1e0   : > { %v2414_v4 = vrot.slane %v11865_v5, 2  ;;  %9826 = vmatprep.subr.bf16.mxu0 %v11349_v1  ;;  %v2147_v27 = vrot.slane %v11865_v5, 5  ;;  %v1859_v61 = vadd.f32 %v11711_v40, %v1846_v57 }
 0x1e2   : > { %v11875_v7 = vsel %vm2412_vm7, %v2413_v3, %v2414_v4  ;;  %v2148_v12 = vsel %vm2143_vm6, %v2145_v58, %v2147_v27 }
 0x1e3   : > { %9827 = vmatpush3.bf16.msra.mxu0 %v11058_v0  ;;  %v2075_v13 = vpop.permute.xlu0 %2074 }
 0x1e4   : > { %9828 = vmatprep.subr.bf16.mxu0 %v11349_v1 }
 0x1e5   : > { %v2040_v9 = vpop.permute.xlu1 %2039 }
 0x1e6   : > { %v2090_v15 = vsel %vm2082_vm4, %v11757_v50, %v2040_v9  ;;  %9809 = vmatmul.mubr.msk.bf16.gmra.mrb[32].mxu0 %vm1448_vm1, %v2148_v12  ;;  %v11061_v50 = vld [vmem:[%s11427_s6 + $0x20] sm:$0xff]  }
 0x1e7   : > { %v11884_v16 = vsel %vm2097_vm5, %v2090_v15, %v2075_v13  ;;  %9812 = vmatprep.mubr.msk.bf16.mxu0 %vm11350_vm0, %v11349_v1  ;;  %9829 = vmatpush3.bf16.msra.mxu0 %v11059_v8  ;;  %v1861_v8 = vadd.f32 %v11711_v40, %v1848_v42 }
 0x1e8   : > { %v2416_v19 = vrot.slane %v11884_v16, 2  ;;  %9830 = vmatprep.subr.bf16.mxu0 %v11349_v1  ;;  %v2149_v21 = vrot.slane %v11884_v16, 5 }
 0x1ea   : > { %v11893_v22 = vsel %vm2412_vm7, %v2414_v4, %v2416_v19  ;;  %v2150_v25 = vsel %vm2143_vm6, %v2147_v27, %v2149_v21  ;;  %v1850_v27 = vmul.f32 %v11708_v37, %v11822_v14 }
 0x1eb   : > { %9831 = vmatpush3.bf16.msra.mxu0 %v11060_v18  ;;  %v2077_v28 = vpop.permute.xlu0 %2076 }
 0x1ec   : > { %9832 = vmatprep.subr.bf16.mxu0 %v11349_v1  ;;  %v1863_v17 = vadd.f32 %v11711_v40, %v1850_v27 }
 0x1ed   : > { %v2042_v24 = vpop.permute.xlu1 %2041 }
 0x1ee   : > { %v2092_v29 = vsel %vm2082_vm4, %v11772_v10, %v2042_v24  ;;  %9813 = vmatmul.mubr.msk.bf16.gmra.mrb[36].mxu0 %vm1448_vm1, %v2150_v25  ;;  %v1852_v24 = vmul.f32 %v11708_v37, %v11828_v20  ;;  %v1854_v20 = vmul.f32 %v11708_v37, %v11834_v26  ;;  %v1855_v26 = vmul.f32 %v11708_v37, %v11837_v30 }
 0x1ef   : > { %v11902_v32 = vsel %vm2097_vm5, %v2092_v29, %v2077_v28  ;;  %9816 = vmatprep.mubr.msk.bf16.mxu0 %vm11350_vm0, %v11349_v1  ;;  %9833 = vmatpush3.bf16.msra.mxu0 %v11061_v50  ;;  %v11065_v50 = vld [vmem:[%s11427_s6 + $0x70] sm:$0xff]   ;;  %v1853_v28 = vmul.f32 %v11708_v37, %v11831_v23 }
 0x1f0   : > { %v2418_v34 = vrot.slane %v11902_v32, 2  ;;  %9834 = vmatprep.subr.bf16.mxu0 %v11349_v1  ;;  %v2151_v35 = vrot.slane %v11902_v32, 5  ;;  %v1865_v54 = vadd.f32 %v11711_v40, %v1852_v24 }
 0x1f1   : > { %v2079_v39 = vpop.permute.xlu0 %2078  ;;  %v1866_v55 = vadd.f32 %v11711_v40, %v1853_v28 }
 0x1f2   : > { %v11911_v36 = vsel %vm2412_vm7, %v2416_v19, %v2418_v34  ;;  %v2152_v44 = vsel %vm2143_vm6, %v2149_v21, %v2151_v35  ;;  %v1864_v19 = vadd.f32 %v11711_v40, %v1851_v6  ;;  %v11067_v6 = vld [vmem:[%s11427_s6 + $0x80] sm:$0xff]  }
 0x1f3   : > { %v2044_v10 = vpop.permute.xlu1 %2043  ;;  %9835 = vmatpush3.bf16.msra.mxu0 %v11062_v33 }
 0x1f4   : > { %v2094_v41 = vsel %vm2082_vm4, %v11785_v31, %v2044_v10  ;;  %9856 = vmatprep.subr.bf16.mxu0 %v11349_v1 }
 0x1f5   : > { %v11917_v43 = vsel %vm2097_vm5, %v2094_v41, %v2079_v39 }
 0x1f6   : > { %v2420_v45 = vrot.slane %v11917_v43, 2  ;;  %9817 = vmatmul.mubr.msk.bf16.gmra.mrb[40].mxu0 %vm1448_vm1, %v2152_v44  ;;  %v2153_v31 = vrot.slane %v11917_v43, 5 }
 0x1f7   : > { %9820 = vmatprep.mubr.msk.bf16.mxu0 %vm11350_vm0, %v11349_v1 }
 0x1f8   : > { %v11927_v46 = vsel %vm2412_vm7, %v2418_v34, %v2420_v45  ;;  %v2154_v47 = vsel %vm2143_vm6, %v2151_v35, %v2153_v31 }
 0x1fe   : > { %9821 = vmatmul.mubr.msk.bf16.gmra.mrb[44].mxu0 %vm1448_vm1, %v2154_v47 }
 0x1ff   : > { %9836 = vmatprep.mubr.msk.bf16.mxu0 %vm11350_vm0, %v11349_v1 }
 0x202   : > { %v1891_v58 = vpop.permute.xlu0 %1890 }
 0x203   : > { %v1949_v63 = vmul.f32 %v1891_v58, %v1858_v60 }
 0x204   : > { %v1886_v49 = vpop.permute.xlu1 %1885 }
 0x205   : > { %v1948_v0 = vmul.f32 %v1886_v49, %v1857_v59 }
 0x206   : > { %v1901_v3 = vpop.permute.xlu0 %1900  ;;  %9837 = vmatmul.mubr.msk.bf16.vlgmr.msra.gmra.mrb[28].mxu0 %vm1448_vm1, %v11850_v51  ;;  %v1862_v51 = vadd.f32 %v11711_v40, %v1849_v2 }
 0x207   : > { %v11953_v4 = vpack.c.bf16 %v1949_v63, %v1948_v0  ;;  %9840 = vmatprep.mubr.msk.bf16.mxu0 %vm11350_vm0, %v11349_v1  ;;  %9857 = vmatpush3.bf16.msra.mxu0 %v11063_v53  ;;  %v1951_v12 = vmul.f32 %v1901_v3, %v1860_v62  ;;  %v1867_v62 = vadd.f32 %v11711_v40, %v1854_v20 }
 0x208   : > { %v1896_v9 = vpop.permute.xlu1 %1895  ;;  %9858 = vmatprep.subr.bf16.mxu0 %v11349_v1  ;;  %v1868_v0 = vadd.f32 %v11711_v40, %v1855_v26 }
 0x209   : > { %v1950_v13 = vmul.f32 %v1896_v9, %v1859_v61  ;;  %v2561_v14 = vshll.u32 %v11953_v4, 16  ;;  %v2634_v29 = vrot.slane %v11953_v4, 1  ;;  %v2559_v33 = vshrl.u32 %v11953_v4, 16 }
 0x20a   : > { %v1911_v15 = vpop.permute.xlu0 %1910 }
 0x20b   : > { %v11967_v18 = vpack.c.bf16 %v1951_v12, %v1950_v13  ;;  %v2563_v21 = vrot.slane %v2561_v14, 1  ;;  %9859 = vmatpush3.bf16.msra.mxu0 %v11064_v11  ;;  %v1953_v34 = vmul.f32 %v1911_v15, %v1862_v51 }
 0x20c   : > { %v1906_v25 = vpop.permute.xlu1 %1905  ;;  %9860 = vmatprep.subr.bf16.mxu0 %v11349_v1 }
 0x20d   : > { %v1952_v35 = vmul.f32 %v1906_v25, %v1861_v8  ;;  %v2635_v10 = vrot.slane %v11967_v18, 1  ;;  %v2566_v39 = vshll.u32 %v11967_v18, 16  ;;  %v2564_v31 = vor.u32 %v2563_v21, %v2559_v33 }
 0x20e   : > { %v1921_v41 = vpop.permute.xlu0 %1920  ;;  %9841 = vmatmul.mubr.msk.bf16.gmra.mrb[32].mxu0 %vm1448_vm1, %v11855_v56  ;;  %v2570_v42 = vshrl.u32 %v11967_v18, 16 }
 0x20f   : > { %v11984_v23 = vpack.c.bf16 %v1953_v34, %v1952_v35  ;;  %v2636_v44 = vsel %vm2054_vm3, %v2634_v29, %v2635_v10  ;;  %v2568_v47 = vrot.slane %v2566_v39, 1  ;;  %9844 = vmatprep.mubr.msk.bf16.mxu0 %vm11350_vm0, %v11349_v1  ;;  %9861 = vmatpush3.bf16.msra.mxu0 %v11065_v50  ;;  %v1955_v57 = vmul.f32 %v1921_v41, %v1864_v19 }
 0x210   : > { %2647 = vrot.lane.b32.xlu1 %v2636_v44, %s13823_s15  ;;  %v1916_v56 = vpop.permute.xlu1 %1915  ;;  %9862 = vmatprep.subr.bf16.mxu0 %v11349_v1  ;;  %v1856_v50 = vmul.f32 %v11708_v37, %v11843_v38 }
 0x211   : > { %v1954_v58 = vmul.f32 %v1916_v56, %v1863_v17  ;;  %v2569_v59 = vsel %vm1977_vm2, %v2564_v31, %v2568_v47  ;;  %v2637_v60 = vrot.slane %v11984_v23, 1  ;;  %v2574_v49 = vshll.u32 %v11984_v23, 16 }
 0x212   : > { %v1931_v53 = vpop.permute.xlu0 %1930  ;;  %2613 = vrot.lane.b32.xlu0 %v2569_v59, %s13821_s11  ;;  %v2572_v61 = vor.u32 %v2570_v42, %v2568_v47  ;;  %v2578_v27 = vshrl.u32 %v11984_v23, 16  ;;  %v1869_v41 = vadd.f32 %v11711_v40, %v1856_v50  ;;  %v11079_v50 = vld [vmem:[%s11427_s6 + $0xe0] sm:$0xff]  }
 0x213   : > { %v12002_v63 = vpack.c.bf16 %v1955_v57, %v1954_v58  ;;  %v2638_v30 = vsel %vm2054_vm3, %v2635_v10, %v2637_v60  ;;  %9863 = vmatpush3.bf16.msra.mxu0 %v11066_v48  ;;  %v2576_v3 = vrot.slane %v2574_v49, 1  ;;  %v1957_v11 = vmul.f32 %v1931_v53, %v1866_v55 }
 0x214   : > { %2649 = vrot.lane.b32.xlu1 %v2638_v30, %s13823_s15  ;;  %v1926_v2 = vpop.permute.xlu1 %1925  ;;  %9864 = vmatprep.subr.bf16.mxu0 %v11349_v1  ;;  %v11069_v30 = vld [vmem:[%s11427_s6 + $0x90] sm:$0xff]  }
 0x215   : > { %v1956_v8 = vmul.f32 %v1926_v2, %v1865_v54  ;;  %v2639_v9 = vrot.slane %v12002_v63, 1  ;;  %v2582_v51 = vshll.u32 %v12002_v63, 16  ;;  %v2577_v13 = vsel %vm1977_vm2, %v2572_v61, %v2576_v3  ;;  %v11071_v2 = vld [vmem:[%s11427_s6 + $0xa0] sm:$0xff]   ;;  %v11073_v61 = vld [vmem:[%s11427_s6 + $0xb0] sm:$0xff]  }
 0x216   : > { %v1941_v12 = vpop.permute.xlu0 %1940  ;;  %9845 = vmatmul.mubr.msk.bf16.gmra.mrb[36].mxu0 %vm1448_vm1, %v11865_v5  ;;  %2615 = vrot.lane.b32.xlu0 %v2577_v13, %s13821_s11  ;;  %v2580_v17 = vor.u32 %v2578_v27, %v2576_v3  ;;  %v11068_v5 = vld [vmem:[%s11427_s6 + $0x88] sm:$0xff]   ;;  %v2586_v33 = vshrl.u32 %v12002_v63, 16 }
 0x217   : > { %v12015_v14 = vpack.c.bf16 %v1957_v11, %v1956_v8  ;;  %v2640_v15 = vsel %vm2054_vm3, %v2637_v60, %v2639_v9  ;;  %v2584_v19 = vrot.slane %v2582_v51, 1  ;;  %9848 = vmatprep.mubr.msk.bf16.mxu0 %vm11350_vm0, %v11349_v1  ;;  %9865 = vmatpush3.bf16.msra.mxu0 %v11067_v6  ;;  %v1959_v24 = vmul.f32 %v1941_v12, %v1868_v0  ;;  %v11070_v0 = vld [vmem:[%s11427_s6 + $0x98] sm:$0xff]   ;;  %v11075_v8 = vld [vmem:[%s11427_s6 + $0xc0] sm:$0xff]  }
 0x218   : > { %2651 = vrot.lane.b32.xlu1 %v2640_v15, %s13823_s15  ;;  %v1936_v21 = vpop.permute.xlu1 %1935  ;;  %9866 = vmatprep.subr.bf16.mxu0 %v11349_v1  ;;  %v11077_v15 = vld [vmem:[%s11427_s6 + $0xd0] sm:$0xff]  }
 0x219   : > { %v1958_v25 = vmul.f32 %v1936_v21, %v1867_v62  ;;  %v2585_v28 = vsel %vm1977_vm2, %v2580_v17, %v2584_v19  ;;  %v2641_v29 = vrot.slane %v12015_v14, 1  ;;  %v2590_v34 = vshll.u32 %v12015_v14, 16  ;;  %v11078_v21 = vld [vmem:[%s11427_s6 + $0xd8] sm:$0xff]  }
 0x21a   : > { %2617 = vrot.lane.b32.xlu0 %v2585_v28, %s13821_s11  ;;  %v2588_v10 = vor.u32 %v2586_v33, %v2584_v19  ;;  %v2594_v44 = vshrl.u32 %v12015_v14, 16  ;;  %v2081_v27 = vpop.permute.xlu0 %2080  ;;  %v11080_v28 = vld [vmem:[%s11427_s6 + $0xe8] sm:$0xff]  }
 0x21b   : > { %v12030_v35 = vpack.c.bf16 %v1959_v24, %v1958_v25  ;;  %v2642_v37 = vsel %vm2054_vm3, %v2639_v9, %v2641_v29  ;;  %v2592_v39 = vrot.slane %v2590_v34, 1  ;;  %9867 = vmatpush3.bf16.msra.mxu0 %v11068_v5 }
 0x21c   : > { %2653 = vrot.lane.b32.xlu1 %v2642_v37, %s13823_s15  ;;  %v2046_v38 = vpop.permute.xlu1 %2045  ;;  %9888 = vmatprep.subr.bf16.mxu0 %v11349_v1 }
 0x21d   : > { %v2643_v20 = vrot.slane %v12030_v35, 1  ;;  %v2598_v31 = vshll.u32 %v12030_v35, 16  ;;  %v2593_v47 = vsel %vm1977_vm2, %v2588_v10, %v2592_v39  ;;  %v2596_v54 = vor.u32 %v2594_v44, %v2592_v39 }
 0x21e   : > { %9849 = vmatmul.mubr.msk.bf16.gmra.mrb[40].mxu0 %vm1448_vm1, %v11884_v16  ;;  %2619 = vrot.lane.b32.xlu0 %v2593_v47, %s13821_s11  ;;  %v2602_v58 = vshrl.u32 %v12030_v35, 16  ;;  %v2096_v3 = vsel %vm2082_vm4, %v11798_v52, %v2046_v38  ;;  %v11087_v52 = vld [vmem:[%s11442_s27] sm:$0xff]  }
 0x21f   : > { %v2644_v48 = vsel %vm2054_vm3, %v2641_v29, %v2643_v20  ;;  %v2600_v55 = vrot.slane %v2598_v31, 1  ;;  %9852 = vmatprep.mubr.msk.bf16.mxu0 %vm11350_vm0, %v11349_v1  ;;  %v2111_v6 = vsel %vm2097_vm5, %v2096_v3, %v2081_v27  ;;  %9985 = vmatpush3.bf16.msra.mxu1 %v11087_v52  ;;  %v11083_v31 = vld [vmem:[%s11427_s6 + $0x100] sm:$0xff]  }
 0x220   : > { %2655 = vrot.lane.b32.xlu1 %v2644_v48, %s13823_s15  ;;  %v1946_v40 = vpop.permute.xlu1 %1945  ;;  %9986 = vmatprep.subr.bf16.mxu1 %v11349_v1  ;;  %v11084_v48 = vld [vmem:[%s11427_s6 + $0x108] sm:$0xff]  }
 0x221   : > { %v1960_v56 = vmul.f32 %v1946_v40, %v1869_v41  ;;  %v2601_v26 = vsel %vm1977_vm2, %v2596_v54, %v2600_v55  ;;  %v2604_v53 = vor.u32 %v2602_v58, %v2600_v55  ;;  %v11081_v41 = vld [vmem:[%s11427_s6 + $0xf0] sm:$0xff]  }
 0x222   : > { %2621 = vrot.lane.b32.xlu0 %v2601_v26, %s13821_s11  ;;  %v11085_v55 = vld [vmem:[%s11427_s6 + $0x110] sm:$0xff]  }
 0x223   : > { %v12049_v57 = vpack.c.bf16 %v1960_v56, %v1960_v56  ;;  %v11086_v56 = vld [vmem:[%s11427_s6 + $0x118] sm:$0xff]  }
 0x225   : > { %v2645_v16 = vrot.slane %v12049_v57, 1  ;;  %v2606_v59 = vshll.u32 %v12049_v57, 16  ;;  %v2610_v62 = vshrl.u32 %v12049_v57, 16 }
 0x226   : > { %9853 = vmatmul.mubr.msk.bf16.gmra.mrb[44].mxu0 %vm1448_vm1, %v11902_v32 }
 0x227   : > { %v2646_v60 = vsel %vm2054_vm3, %v2643_v20, %v2645_v16  ;;  %v2608_v42 = vrot.slane %v2606_v59, 1  ;;  %9868 = vmatprep.mubr.msk.bf16.mxu0 %vm11350_vm0, %v11349_v1 }
 0x228   : > { %2657 = vrot.lane.b32.xlu1 %v2646_v60, %s13823_s15 }
 0x229   : > { %v2609_v49 = vsel %vm1977_vm2, %v2604_v53, %v2608_v42  ;;  %v2612_v32 = vor.u32 %v2610_v62, %v2608_v42 }
 0x22a   : > { %2623 = vrot.lane.b32.xlu0 %v2609_v49, %s13821_s11 }
 0x22c   : > { %2659 = vrot.lane.b32.xlu1 %v2645_v16, %s13823_s15 }
 0x22e   : > { %9869 = vmatmul.mubr.msk.bf16.vlgmr.msra.gmra.mrb[28].mxu0 %vm1448_vm1, %v11875_v7  ;;  %2625 = vrot.lane.b32.xlu0 %v2612_v32, %s13821_s11  ;;  %v11072_v7 = vld [vmem:[%s11427_s6 + $0xa8] sm:$0xff]  }
 0x22f   : > { %9872 = vmatprep.mubr.msk.bf16.mxu0 %vm11350_vm0, %v11349_v1  ;;  %9889 = vmatpush3.bf16.msra.mxu0 %v11069_v30 }
 0x230   : > { %9890 = vmatprep.subr.bf16.mxu0 %v11349_v1 }
 0x233   : > { %9891 = vmatpush3.bf16.msra.mxu0 %v11070_v0 }
 0x234   : > { %9892 = vmatprep.subr.bf16.mxu0 %v11349_v1 }
 0x236   : > { %9873 = vmatmul.mubr.msk.bf16.gmra.mrb[32].mxu0 %vm1448_vm1, %v11893_v22  ;;  %v11074_v22 = vld [vmem:[%s11427_s6 + $0xb8] sm:$0xff]  }
 0x237   : > { %9876 = vmatprep.mubr.msk.bf16.mxu0 %vm11350_vm0, %v11349_v1  ;;  %9893 = vmatpush3.bf16.msra.mxu0 %v11071_v2 }
 0x238   : > { %9894 = vmatprep.subr.bf16.mxu0 %v11349_v1 }
 0x23b   : > { %9895 = vmatpush3.bf16.msra.mxu0 %v11072_v7 }
 0x23c   : > { %9896 = vmatprep.subr.bf16.mxu0 %v11349_v1 }
 0x23e   : > { %9877 = vmatmul.mubr.msk.bf16.gmra.mrb[36].mxu0 %vm1448_vm1, %v11911_v36  ;;  %v2422_v36 = vrot.slane %v2111_v6, 2 }
 0x23f   : > { %9880 = vmatprep.mubr.msk.bf16.mxu0 %vm11350_vm0, %v11349_v1  ;;  %9897 = vmatpush3.bf16.msra.mxu0 %v11073_v61 }
 0x240   : > { %9898 = vmatprep.subr.bf16.mxu0 %v11349_v1  ;;  %v2423_v11 = vsel %vm2412_vm7, %v2420_v45, %v2422_v36  ;;  %v11076_v45 = vld [vmem:[%s11427_s6 + $0xc8] sm:$0xff]  }
 0x243   : > { %9899 = vmatpush3.bf16.msra.mxu0 %v11074_v22 }
 0x244   : > { %9920 = vmatprep.subr.bf16.mxu0 %v11349_v1 }
 0x246   : > { %9881 = vmatmul.mubr.msk.bf16.gmra.mrb[40].mxu0 %vm1448_vm1, %v11927_v46 }
 0x247   : > { %9884 = vmatprep.mubr.msk.bf16.mxu0 %vm11350_vm0, %v11349_v1 }
 0x24e   : > { %9885 = vmatmul.mubr.msk.bf16.gmra.mrb[44].mxu0 %vm1448_vm1, %v2423_v11 }
 0x24f   : > { %9900 = vmatprep.mubr.msk.bf16.mxu0 %vm11350_vm0, %v11349_v1 }
 0x282   : > { %v2648_v9 = vpop.permute.xlu1 %2647 }
 0x284   : > { %v2614_v46 = vpop.permute.xlu0 %2613 }
 0x285   : > { %v2662_v51 = vsel %vm2082_vm4, %v11953_v4, %v2614_v46  ;;  %v11088_v46 = vld [vmem:[%s11442_s27 + $0x8] sm:$0xff]  }
 0x286   : > { %v2676_v43 = vsel %vm2097_vm5, %v2662_v51, %v2648_v9  ;;  %v2650_v4 = vpop.permute.xlu1 %2649  ;;  %9987 = vmatpush3.bf16.msra.mxu1 %v11088_v46 }
 0x287   : > { %9901 = vmatmul.mubr.msk.bf16.vlgmr.msra.gmra.mrb[28].mxu0 %vm1448_vm1, %v2676_v43  ;;  %v2850_v39 = vrot.slane %v2676_v43, 5 }
 0x288   : > { %9904 = vmatprep.mubr.msk.bf16.mxu0 %vm11350_vm0, %v11349_v1  ;;  %9921 = vmatpush3.bf16.msra.mxu0 %v11075_v8  ;;  %v2616_v12 = vpop.permute.xlu0 %2615  ;;  %v8825_v8 = vld [vmem:[%s11437_s20] ss:$0 sm:$0xff] }
 0x289   : > { %9922 = vmatprep.subr.bf16.mxu0 %v11349_v1  ;;  %v2664_v13 = vsel %vm2082_vm4, %v11967_v18, %v2616_v12 }
 0x28a   : > { %v12119_v17 = vsel %vm2097_vm5, %v2664_v13, %v2650_v4  ;;  %v2652_v5 = vpop.permute.xlu1 %2651 }
 0x28b   : > { %v2851_v10 = vrot.slane %v12119_v17, 5  ;;  %v3009_v62 = vrot.slane %v12119_v17, 2 }
 0x28c   : > { %9923 = vmatpush3.bf16.msra.mxu0 %v11076_v45  ;;  %v2618_v19 = vpop.permute.xlu0 %2617 }
 0x28d   : > { %9924 = vmatprep.subr.bf16.mxu0 %v11349_v1  ;;  %v2666_v18 = vsel %vm2082_vm4, %v11984_v23, %v2618_v19  ;;  %v2852_v20 = vsel %vm2143_vm6, %v2850_v39, %v2851_v10 }
 0x28e   : > { %v12132_v24 = vsel %vm2097_vm5, %v2666_v18, %v2652_v5  ;;  %v2654_v29 = vpop.permute.xlu1 %2653 }
 0x28f   : > { %9905 = vmatmul.mubr.msk.bf16.gmra.mrb[32].mxu0 %vm1448_vm1, %v12119_v17  ;;  %v2853_v44 = vrot.slane %v12132_v24, 5 }
 0x290   : > { %9908 = vmatprep.mubr.msk.bf16.mxu0 %vm11350_vm0, %v11349_v1  ;;  %9925 = vmatpush3.bf16.msra.mxu0 %v11077_v15  ;;  %v2620_v25 = vpop.permute.xlu0 %2619 }
 0x291   : > { %9926 = vmatprep.subr.bf16.mxu0 %v11349_v1  ;;  %v2668_v23 = vsel %vm2082_vm4, %v12002_v63, %v2620_v25  ;;  %v2854_v47 = vsel %vm2143_vm6, %v2851_v10, %v2853_v44 }
 0x292   : > { %v12144_v33 = vsel %vm2097_vm5, %v2668_v23, %v2654_v29  ;;  %v2656_v63 = vpop.permute.xlu1 %2655 }
 0x293   : > { %v2855_v54 = vrot.slane %v12144_v33, 5  ;;  %v3012_v32 = vrot.slane %v12144_v33, 2 }
 0x294   : > { %9927 = vmatpush3.bf16.msra.mxu0 %v11078_v21  ;;  %v2622_v34 = vpop.permute.xlu0 %2621 }
 0x295   : > { %9928 = vmatprep.subr.bf16.mxu0 %v11349_v1  ;;  %v2670_v37 = vsel %vm2082_vm4, %v12015_v14, %v2622_v34  ;;  %v11082_v14 = vld [vmem:[%s11427_s6 + $0xf8] sm:$0xff]   ;;  %v2856_v40 = vsel %vm2143_vm6, %v2853_v44, %v2855_v54 }
 0x296   : > { %v12153_v38 = vsel %vm2097_vm5, %v2670_v37, %v2656_v63 }
 0x297   : > { %9909 = vmatmul.mubr.msk.bf16.gmra.mrb[36].mxu0 %vm1448_vm1, %v12132_v24  ;;  %v2857_v16 = vrot.slane %v12153_v38, 5  ;;  %v3014_v2 = vrot.slane %v12153_v38, 2 }
 0x298   : > { %9912 = vmatprep.mubr.msk.bf16.mxu0 %vm11350_vm0, %v11349_v1  ;;  %9929 = vmatpush3.bf16.msra.mxu0 %v11079_v50 }
 0x299   : > { %9930 = vmatprep.subr.bf16.mxu0 %v11349_v1  ;;  %v2858_v60 = vsel %vm2143_vm6, %v2855_v54, %v2857_v16  ;;  %v3015_v7 = vsel %vm2412_vm7, %v3012_v32, %v3014_v2 }
 0x29a   : > { %v2658_v59 = vpop.permute.xlu1 %2657 }
 0x29c   : > { %9931 = vmatpush3.bf16.msra.mxu0 %v11080_v28  ;;  %v2624_v26 = vpop.permute.xlu0 %2623 }
 0x29d   : > { %9952 = vmatprep.subr.bf16.mxu0 %v11349_v1  ;;  %v2672_v58 = vsel %vm2082_vm4, %v12030_v35, %v2624_v26  ;;  %v3010_v35 = vrot.slane %v12132_v24, 2 }
 0x29e   : > { %v2686_v53 = vsel %vm2097_vm5, %v2672_v58, %v2658_v59  ;;  %v2660_v27 = vpop.permute.xlu1 %2659 }
 0x29f   : > { %9913 = vmatmul.mubr.msk.bf16.gmra.mrb[40].mxu0 %vm1448_vm1, %v12144_v33  ;;  %v2859_v42 = vrot.slane %v2686_v53, 5  ;;  %v3011_v30 = vsel %vm2412_vm7, %v3009_v62, %v3010_v35  ;;  %v3013_v0 = vsel %vm2412_vm7, %v3010_v35, %v3012_v32  ;;  %v3016_v22 = vrot.slane %v2686_v53, 2 }
 0x2a0   : > { %9916 = vmatprep.mubr.msk.bf16.mxu0 %vm11350_vm0, %v11349_v1  ;;  %v2626_v61 = vpop.permute.xlu0 %2625 }
 0x2a1   : > { %v2860_v49 = vsel %vm2143_vm6, %v2857_v16, %v2859_v42  ;;  %v2674_v3 = vsel %vm2082_vm4, %v12049_v57, %v2626_v61  ;;  %v3017_v6 = vsel %vm2412_vm7, %v3014_v2, %v3016_v22  ;;  %v8824_v57 = vld [vmem:[%s11432_s12] ss:$0 sm:$0xff] }
 0x2a2   : > { %v2688_v36 = vsel %vm2097_vm5, %v2674_v3, %v2660_v27  ;;  %v12242_v27 = vld [vmem:[%s11447_s4] ss:$0 sm:$0xff] }
 0x2a3   : > { %v3018_v11 = vrot.slane %v2688_v36, 2  ;;  %v12245_v36 = vld [vmem:[%s11452_s29] ss:$0 sm:$0xff] }
 0x2a5   : > { %v3019_v52 = vsel %vm2412_vm7, %v3016_v22, %v3018_v11 }
 0x2a7   : > { %9917 = vmatmul.mubr.msk.bf16.gmra.mrb[44].mxu0 %vm1448_vm1, %v12153_v38 }
 0x2a8   : > { %9932 = vmatprep.mubr.msk.bf16.mxu0 %vm11350_vm0, %v11349_v1 }
 0x2af   : > { %9933 = vmatmul.mubr.msk.bf16.vlgmr.msra.gmra.mrb[28].mxu0 %vm1448_vm1, %v2852_v20 }
 0x2b0   : > { %9936 = vmatprep.mubr.msk.bf16.mxu0 %vm11350_vm0, %v11349_v1  ;;  %9953 = vmatpush3.bf16.msra.mxu0 %v11081_v41 }
 0x2b1   : > { %9954 = vmatprep.subr.bf16.mxu0 %v11349_v1 }
 0x2b4   : > { %9955 = vmatpush3.bf16.msra.mxu0 %v11082_v14 }
 0x2b5   : > { %9956 = vmatprep.subr.bf16.mxu0 %v11349_v1 }
 0x2b7   : > { %9937 = vmatmul.mubr.msk.bf16.gmra.mrb[32].mxu0 %vm1448_vm1, %v2854_v47 }
 0x2b8   : > { %9940 = vmatprep.mubr.msk.bf16.mxu0 %vm11350_vm0, %v11349_v1  ;;  %9957 = vmatpush3.bf16.msra.mxu0 %v11083_v31 }
 0x2b9   : > { %9958 = vmatprep.subr.bf16.mxu0 %v11349_v1 }
 0x2bc   : > { %9959 = vmatpush3.bf16.msra.mxu0 %v11084_v48 }
 0x2bd   : > { %9960 = vmatprep.subr.bf16.mxu0 %v11349_v1 }
 0x2bf   : > { %9941 = vmatmul.mubr.msk.bf16.gmra.mrb[36].mxu0 %vm1448_vm1, %v2856_v40 }
 0x2c0   : > { %9944 = vmatprep.mubr.msk.bf16.mxu0 %vm11350_vm0, %v11349_v1  ;;  %9961 = vmatpush3.bf16.msra.mxu0 %v11085_v55 }
 0x2c1   : > { %9962 = vmatprep.subr.bf16.mxu0 %v11349_v1 }
 0x2c4   : > { %9963 = vmatpush3.bf16.msra.mxu0 %v11086_v56 }
 0x2c5   : > { %10188 = vmatprep.subr.bf16.mxu0 %v11349_v1 }
 0x2c7   : > { %9945 = vmatmul.mubr.msk.bf16.gmra.mrb[40].mxu0 %vm1448_vm1, %v2858_v60 }
 0x2c8   : > { %9948 = vmatprep.mubr.msk.bf16.mxu0 %vm11350_vm0, %v11349_v1 }
 0x2cf   : > { %9949 = vmatmul.mubr.msk.bf16.gmra.mrb[44].mxu0 %vm1448_vm1, %v2860_v49 }
 0x2d0   : > { %9964 = vmatprep.mubr.msk.bf16.mxu0 %vm11350_vm0, %v11349_v1 }
 0x2d7   : > { %9965 = vmatmul.mubr.msk.bf16.vlgmr.msra.gmra.mrb[28].mxu0 %vm1448_vm1, %v3011_v30 }
 0x2d8   : > { %9968 = vmatprep.mubr.msk.bf16.mxu0 %vm11350_vm0, %v11349_v1 }
 0x2df   : > { %9969 = vmatmul.mubr.msk.bf16.gmra.mrb[32].mxu0 %vm1448_vm1, %v3013_v0 }
 0x2e0   : > { %9972 = vmatprep.mubr.msk.bf16.mxu0 %vm11350_vm0, %v11349_v1 }
 0x2e7   : > { %9973 = vmatmul.mubr.msk.bf16.gmra.mrb[36].mxu0 %vm1448_vm1, %v3015_v7 }
 0x2e8   : > { %9976 = vmatprep.mubr.msk.bf16.mxu0 %vm11350_vm0, %v11349_v1 }
 0x2ef   : > { %9977 = vmatmul.mubr.msk.bf16.gmra.mrb[40].mxu0 %vm1448_vm1, %v3017_v6 }
 0x2f0   : > { %9980 = vmatprep.mubr.msk.bf16.mxu0 %vm11350_vm0, %v11349_v1 }
 0x2f7   : > { %9981 = vmatmul.mubr.msk.bf16.gmra.mrb[44].mxu0 %vm1448_vm1, %v3019_v52 }
 0x2f8   : > { %10200 = vmatprep.mubr.msk.bf16.mxu0 %vm11350_vm0, %v11349_v1 }
 0x3aa   : > { %v3105_v9 = vpop.f32.mrb[28].mxu0 }
 0x3ab   : > { %v3160_v51 = vmul.f32 %v8824_v57, %v3105_v9  ;;  %v9966_v43 = vpop.f32.mrb[29].mxu0 }
 0x3ac   : > { %v3108_v45 = vpop.f32.mrb[30].mxu0 }
 0x3ad   : > { %v3176_v12 = vadd.f32 %v8825_v8, %v3160_v51  ;;  %v3161_v13 = vmul.f32 %v8824_v57, %v3108_v45  ;;  %v9967_v15 = vpop.f32.mrb[31].mxu0 }
 0x3af   : > { %v3177_v4 = vadd.f32 %v8825_v8, %v3161_v13  ;;  %v3186_v17 = vmax.f32 %v3176_v12, 0.0 }
 0x3b1   : > { %v3187_v19 = vmax.f32 %v3177_v4, 0.0 }
 0x3b2   : > { %v3113_v21 = vpop.f32.mrb[32].mxu0 }
 0x3b3   : > { %v3196_v18 = vpack.c.bf16 %v3187_v19, %v3186_v17  ;;  %v3162_v50 = vmul.f32 %v8824_v57, %v3113_v21  ;;  %v9970_v5 = vpop.f32.mrb[33].mxu0  ;;  %v11089_v19 = vld [vmem:[%s13854_s16 + $0x30] sm:$0xff]  }
 0x3b4   : > { %v3116_v24 = vpop.f32.mrb[34].mxu0  ;;  %10008 = vmatprep.subr.bf16.mxu1 %v11089_v19 }
 0x3b5   : > { %v3178_v25 = vadd.f32 %v8825_v8, %v3162_v50  ;;  %v3163_v28 = vmul.f32 %v8824_v57, %v3116_v24  ;;  %v9971_v23 = vpop.f32.mrb[35].mxu0  ;;  %9989 = vmatmul.mubr.msk.bf16.vlgmr.msra.gmra.mrb[28].mxu1 %vm2082_vm4, %v3196_v18 }
 0x3b6   : > { %9992 = vmatprep.mubr.msk.bf16.mxu1 %vm11350_vm0, %v11349_v1  ;;  %10009 = vmatpush3.bf16.msra.mxu1 %v11089_v19 }
 0x3b7   : > { %v3179_v29 = vadd.f32 %v8825_v8, %v3163_v28  ;;  %v3188_v33 = vmax.f32 %v3178_v25, 0.0  ;;  %v11090_v25 = vld [vmem:[%s13854_s16 + $0x38] sm:$0xff]  }
 0x3b8   : > { %10010 = vmatprep.subr.bf16.mxu1 %v11090_v25 }
 0x3b9   : > { %v3189_v34 = vmax.f32 %v3179_v29, 0.0 }
 0x3ba   : > { %v3121_v37 = vpop.f32.mrb[36].mxu0  ;;  %10011 = vmatpush3.bf16.msra.mxu1 %v11090_v25 }
 0x3bb   : > { %v3197_v63 = vpack.c.bf16 %v3189_v34, %v3188_v33  ;;  %v3164_v38 = vmul.f32 %v8824_v57, %v3121_v37  ;;  %v9974_v10 = vpop.f32.mrb[37].mxu0 }
 0x3bc   : > { %v3124_v39 = vpop.f32.mrb[38].mxu0 }
 0x3bd   : > { %v3180_v41 = vadd.f32 %v8825_v8, %v3164_v38  ;;  %v3165_v20 = vmul.f32 %v8824_v57, %v3124_v39  ;;  %v9975_v14 = vpop.f32.mrb[39].mxu0  ;;  %9993 = vmatmul.mubr.msk.bf16.gmra.mrb[32].mxu1 %vm2082_vm4, %v3197_v63 }
 0x3be   : > { %9996 = vmatprep.mubr.msk.bf16.mxu1 %vm11350_vm0, %v11349_v1 }
 0x3bf   : > { %v3181_v44 = vadd.f32 %v8825_v8, %v3165_v20  ;;  %v3190_v31 = vmax.f32 %v3180_v41, 0.0  ;;  %v11091_v41 = vld [vmem:[%s13854_s16 + $0x40] sm:$0xff]  }
 0x3c0   : > { %10012 = vmatprep.subr.bf16.mxu1 %v11091_v41 }
 0x3c1   : > { %v3191_v47 = vmax.f32 %v3181_v44, 0.0  ;;  %10013 = vmatpush3.bf16.msra.mxu1 %v11091_v41 }
 0x3c2   : > { %v3129_v48 = vpop.f32.mrb[40].mxu0 }
 0x3c3   : > { %v3198_v54 = vpack.c.bf16 %v3191_v47, %v3190_v31  ;;  %v3166_v55 = vmul.f32 %v8824_v57, %v3129_v48  ;;  %v9978_v40 = vpop.f32.mrb[41].mxu0  ;;  %v11092_v48 = vld [vmem:[%s13854_s16 + $0x48] sm:$0xff]  }
 0x3c4   : > { %v3132_v56 = vpop.f32.mrb[42].mxu0  ;;  %10014 = vmatprep.subr.bf16.mxu1 %v11092_v48 }
 0x3c5   : > { %v3182_v26 = vadd.f32 %v8825_v8, %v3166_v55  ;;  %v3167_v16 = vmul.f32 %v8824_v57, %v3132_v56  ;;  %v9979_v58 = vpop.f32.mrb[43].mxu0  ;;  %9997 = vmatmul.mubr.msk.bf16.gmra.mrb[36].mxu1 %vm2082_vm4, %v3198_v54 }
 0x3c6   : > { %10000 = vmatprep.mubr.msk.bf16.mxu1 %vm11350_vm0, %v11349_v1  ;;  %10015 = vmatpush3.bf16.msra.mxu1 %v11092_v48 }
 0x3c7   : > { %v3183_v59 = vadd.f32 %v8825_v8, %v3167_v16  ;;  %v3192_v60 = vmax.f32 %v3182_v26, 0.0 }
 0x3c9   : > { %v3193_v53 = vmax.f32 %v3183_v59, 0.0 }
 0x3ca   : > { %v3137_v42 = vpop.f32.mrb[44].mxu0 }
 0x3cb   : > { %v3199_v49 = vpack.c.bf16 %v3193_v53, %v3192_v60  ;;  %v3168_v35 = vmul.f32 %v8824_v57, %v3137_v42  ;;  %v9982_v62 = vpop.f32.mrb[45].mxu0 }
 0x3cc   : > { %v3140_v30 = vpop.f32.mrb[46].mxu0 }
 0x3cd   : > { %v3184_v32 = vadd.f32 %v8825_v8, %v3168_v35  ;;  %v3169_v0 = vmul.f32 %v8824_v57, %v3140_v30  ;;  %v9983_v2 = vpop.f32.mrb[47].mxu0  ;;  %10001 = vmatmul.mubr.msk.bf16.gmra.mrb[40].mxu1 %vm2082_vm4, %v3199_v49  ;;  %v11093_v35 = vld [vmem:[%s13854_s16 + $0x50] sm:$0xff]  }
 0x3ce   : > { %10004 = vmatprep.mubr.msk.bf16.mxu1 %vm11350_vm0, %v11349_v1  ;;  %10016 = vmatprep.subr.bf16.mxu1 %v11093_v35 }
 0x3cf   : > { %v3185_v7 = vadd.f32 %v8825_v8, %v3169_v0  ;;  %v3194_v61 = vmax.f32 %v3184_v32, 0.0  ;;  %10017 = vmatpush3.bf16.msra.mxu1 %v11093_v35  ;;  %v11096_v35 = vld [vmem:[%s13854_s16 + $0x8] sm:$0xff]  }
 0x3d1   : > { %v3195_v22 = vmax.f32 %v3185_v7, 0.0 }
 0x3d3   : > { %v3200_v3 = vpack.c.bf16 %v3195_v22, %v3194_v61 }
 0x3d5   : > { %10005 = vmatmul.mubr.msk.bf16.gmra.mrb[44].mxu1 %vm2082_vm4, %v3200_v3  ;;  %v11094_v3 = vld [vmem:[%s13854_s16 + $0x58] sm:$0xff]  }
 0x3d6   : > { %10018 = vmatprep.subr.bf16.mxu1 %v11094_v3 }
 0x3d7   : > { %10019 = vmatpush3.bf16.msra.mxu1 %v11094_v3 }
 0x488   : > { %v3266_v6 = vpop.f32.mrb[28].mxu1 }
 0x489   : > { %v3312_v11 = vmul.f32 %v12242_v27, %v3266_v6  ;;  %v9990_v52 = vpop.f32.mrb[29].mxu1 }
 0x48a   : > { %v3269_v46 = vpop.f32.mrb[30].mxu1 }
 0x48b   : > { %v3329_v57 = vadd.f32 %v12245_v36, %v3312_v11  ;;  %v3313_v9 = vmul.f32 %v12242_v27, %v3269_v46  ;;  %v9991_v8 = vpop.f32.mrb[31].mxu1 }
 0x48d   : > { %v3330_v51 = vadd.f32 %v12245_v36, %v3313_v9  ;;  %v3339_v43 = vmax.f32 %v3329_v57, 0.0 }
 0x48f   : > { %v3340_v45 = vmax.f32 %v3330_v51, 0.0 }
 0x490   : > { %v3274_v12 = vpop.f32.mrb[32].mxu1 }
 0x491   : > { %v12251_v13 = vpack.c.bf16 %v3340_v45, %v3339_v43  ;;  %v3314_v15 = vmul.f32 %v12242_v27, %v3274_v12  ;;  %v9994_v4 = vpop.f32.mrb[33].mxu1  ;;  %v11095_v12 = vld [vmem:[%s13854_s16] sm:$0xff]  }
 0x492   : > { %v3277_v17 = vpop.f32.mrb[34].mxu1  ;;  %10028 = vmatprep.subr.bf16.mxu1 %v11095_v12 }
 0x493   : > { %v3331_v21 = vadd.f32 %v12245_v36, %v3314_v15  ;;  %v3315_v18 = vmul.f32 %v12242_v27, %v3277_v17  ;;  %v9995_v50 = vpop.f32.mrb[35].mxu1  ;;  %v3359_v24 = vshll.u32 %v12251_v13, 16  ;;  %v3410_v10 = vrot.slane %v12251_v13, 1 }
 0x494   : > { %v3357_v39 = vshrl.u32 %v12251_v13, 16 }
 0x495   : > { %v3332_v5 = vadd.f32 %v12245_v36, %v3315_v18  ;;  %v3341_v28 = vmax.f32 %v3331_v21, 0.0  ;;  %v3361_v63 = vrot.slane %v3359_v24, 1 }
 0x497   : > { %v3342_v23 = vmax.f32 %v3332_v5, 0.0  ;;  %v3362_v40 = vor.u32 %v3361_v63, %v3357_v39 }
 0x498   : > { %v3282_v29 = vpop.f32.mrb[36].mxu1 }
 0x499   : > { %v12260_v33 = vpack.c.bf16 %v3342_v23, %v3341_v28  ;;  %v3316_v34 = vmul.f32 %v12242_v27, %v3282_v29  ;;  %v9998_v37 = vpop.f32.mrb[37].mxu1 }
 0x49a   : > { %v3285_v38 = vpop.f32.mrb[38].mxu1 }
 0x49b   : > { %v3333_v20 = vadd.f32 %v12245_v36, %v3316_v34  ;;  %v3317_v14 = vmul.f32 %v12242_v27, %v3285_v38  ;;  %v9999_v44 = vpop.f32.mrb[39].mxu1  ;;  %v3411_v31 = vrot.slane %v12260_v33, 1  ;;  %v3364_v47 = vshll.u32 %v12260_v33, 16 }
 0x49c   : > { %v3368_v0 = vshrl.u32 %v12260_v33, 16 }
 0x49d   : > { %v3334_v54 = vadd.f32 %v12245_v36, %v3317_v14  ;;  %v3412_v55 = vsel %vm2054_vm3, %v3410_v10, %v3411_v31  ;;  %v3366_v56 = vrot.slane %v3364_v47, 1  ;;  %v3343_v26 = vmax.f32 %v3333_v20, 0.0 }
 0x49e   : > { %3419 = vrot.lane.b32.xlu1 %v3412_v55, %s13823_s15 }
 0x49f   : > { %v3344_v16 = vmax.f32 %v3334_v54, 0.0  ;;  %v3367_v58 = vsel %vm1977_vm2, %v3362_v40, %v3366_v56  ;;  %v3370_v61 = vor.u32 %v3368_v0, %v3366_v56 }
 0x4a0   : > { %3395 = vrot.lane.b32.xlu0 %v3367_v58, %s13821_s11  ;;  %v3290_v59 = vpop.f32.mrb[40].mxu1 }
 0x4a1   : > { %v12278_v60 = vpack.c.bf16 %v3344_v16, %v3343_v26  ;;  %v3318_v53 = vmul.f32 %v12242_v27, %v3290_v59  ;;  %v10002_v42 = vpop.f32.mrb[41].mxu1 }
 0x4a2   : > { %v3293_v49 = vpop.f32.mrb[42].mxu1 }
 0x4a3   : > { %v3335_v62 = vadd.f32 %v12245_v36, %v3318_v53  ;;  %v3319_v30 = vmul.f32 %v12242_v27, %v3293_v49  ;;  %v10003_v32 = vpop.f32.mrb[43].mxu1  ;;  %v3372_v2 = vshll.u32 %v12278_v60, 16  ;;  %v3413_v43 = vrot.slane %v12278_v60, 1 }
 0x4a4   : > { %v3376_v45 = vshrl.u32 %v12278_v60, 16  ;;  %v11097_v32 = vld [vmem:[%s13854_s16 + $0x10] sm:$0xff]  }
 0x4a5   : > { %v3336_v7 = vadd.f32 %v12245_v36, %v3319_v30  ;;  %v3374_v22 = vrot.slane %v3372_v2, 1  ;;  %v3345_v6 = vmax.f32 %v3335_v62, 0.0  ;;  %v3414_v29 = vsel %vm2054_vm3, %v3411_v31, %v3413_v43 }
 0x4a7   : > { %v3346_v11 = vmax.f32 %v3336_v7, 0.0  ;;  %v3375_v52 = vsel %vm1977_vm2, %v3370_v61, %v3374_v22  ;;  %v3378_v5 = vor.u32 %v3376_v45, %v3374_v22 }
 0x4a8   : > { %3397 = vrot.lane.b32.xlu1 %v3375_v52, %s13821_s11  ;;  %v3298_v46 = vpop.f32.mrb[44].mxu1 }
 0x4a9   : > { %v12290_v57 = vpack.c.bf16 %v3346_v11, %v3345_v6  ;;  %v3320_v9 = vmul.f32 %v12242_v27, %v3298_v46  ;;  %v10006_v8 = vpop.f32.mrb[45].mxu1  ;;  %v11098_v11 = vld [vmem:[%s13854_s16 + $0x18] sm:$0xff]   ;;  %v11099_v46 = vld [vmem:[%s13854_s16 + $0x20] sm:$0xff]  }
 0x4aa   : > { %v3301_v51 = vpop.f32.mrb[46].mxu1  ;;  %v11102_v8 = vld [vmem:[%s13854_s16 + $0x68] sm:$0xff]  }
 0x4ab   : > { %v3337_v15 = vadd.f32 %v12245_v36, %v3320_v9  ;;  %v3321_v4 = vmul.f32 %v12242_v27, %v3301_v51  ;;  %v10007_v17 = vpop.f32.mrb[47].mxu1  ;;  %v3415_v19 = vrot.slane %v12290_v57, 1  ;;  %v3380_v21 = vshll.u32 %v12290_v57, 16  ;;  %v11101_v9 = vld [vmem:[%s13854_s16 + $0x60] sm:$0xff]   ;;  %v11103_v51 = vld [vmem:[%s13854_s16 + $0x70] sm:$0xff]  }
 0x4ac   : > { %v3384_v34 = vshrl.u32 %v12290_v57, 16  ;;  %v11106_v17 = vld [vmem:[%s13854_s16 + $0x88] sm:$0xff]  }
 0x4ad   : > { %v3338_v18 = vadd.f32 %v12245_v36, %v3321_v4  ;;  %v3416_v50 = vsel %vm2054_vm3, %v3413_v43, %v3415_v19  ;;  %v3382_v24 = vrot.slane %v3380_v21, 1  ;;  %v3347_v25 = vmax.f32 %v3337_v15, 0.0  ;;  %v11105_v4 = vld [vmem:[%s13854_s16 + $0x80] sm:$0xff]  }
 0x4ae   : > { %3423 = vrot.lane.b32.xlu1 %v3416_v50, %s13823_s15 }
 0x4af   : > { %v3348_v28 = vmax.f32 %v3338_v18, 0.0  ;;  %v3383_v23 = vsel %vm1977_vm2, %v3378_v5, %v3382_v24  ;;  %v3386_v37 = vor.u32 %v3384_v34, %v3382_v24  ;;  %v11107_v5 = vld [vmem:[%s13854_s16 + $0xc0] sm:$0xff]   ;;  %v11108_v24 = vld [vmem:[%s13854_s16 + $0xc8] sm:$0xff]  }
 0x4b0   : > { %3399 = vrot.lane.b32.xlu0 %v3383_v23, %s13821_s11  ;;  %v8890_v23 = vld [vmem:[%s13856_s0] ss:$0 sm:$0xff] }
 0x4b1   : > { %v3353_v27 = vpack.c.bf16 %v3348_v28, %v3347_v25  ;;  %v11109_v25 = vld [vmem:[%s13854_s16 + $0xd0] sm:$0xff]   ;;  %v8889_v28 = vld [vmem:[%s13855_s18] ss:$0 sm:$0xff] }
 0x4b3   : > { %v3388_v36 = vshll.u32 %v3353_v27, 16  ;;  %v3392_v38 = vshrl.u32 %v3353_v27, 16  ;;  %v3417_v41 = vrot.slane %v3353_v27, 1 }
 0x4b4   : > { %3421 = vrot.lane.b32.xlu0 %v3414_v29, %s13823_s15 }
 0x4b5   : > { %v3390_v63 = vrot.slane %v3388_v36, 1  ;;  %v3418_v20 = vsel %vm2054_vm3, %v3415_v19, %v3417_v41 }
 0x4b7   : > { %v3391_v10 = vsel %vm1977_vm2, %v3386_v37, %v3390_v63  ;;  %v3394_v39 = vor.u32 %v3392_v38, %v3390_v63 }
 0x4b8   : > { %3401 = vrot.lane.b32.xlu0 %v3391_v10, %s13821_s11 }
 0x4b9   : > { %3403 = vrot.lane.b32.xlu1 %v3394_v39, %s13821_s11 }
 0x4bc   : > { %3425 = vrot.lane.b32.xlu0 %v3418_v20, %s13823_s15 }
 0x4bd   : > { %3427 = vrot.lane.b32.xlu1 %v3417_v41, %s13823_s15 }
 0x510   : > { %v3420_v14 = vpop.permute.xlu1 %3419 }
 0x512   : > { %v3396_v44 = vpop.permute.xlu0 %3395 }
 0x513   : > { %v3430_v47 = vsel %vm2082_vm4, %v12251_v13, %v3396_v44  ;;  %v11110_v44 = vld [vmem:[%s13854_s16 + $0xd8] sm:$0xff]  }
 0x514   : > { %v3440_v40 = vsel %vm2097_vm5, %v3430_v47, %v3420_v14 }
 0x515   : > { %v3479_v59 = vrot.slane %v3440_v40, 5 }
 0x51a   : > { %v3398_v31 = vpop.permute.xlu1 %3397 }
 0x51b   : > { %v3432_v26 = vsel %vm2082_vm4, %v12260_v33, %v3398_v31 }
 0x520   : > { %v3424_v55 = vpop.permute.xlu1 %3423 }
 0x522   : > { %v3400_v48 = vpop.permute.xlu0 %3399 }
 0x523   : > { %v3434_v54 = vsel %vm2082_vm4, %v12278_v60, %v3400_v48 }
 0x524   : > { %v12322_v56 = vsel %vm2097_vm5, %v3434_v54, %v3424_v55 }
 0x525   : > { %v3482_v13 = vrot.slane %v12322_v56, 5  ;;  %v3722_v45 = vrot.slane %v12322_v56, 2 }
 0x526   : > { %v3422_v16 = vpop.permute.xlu0 %3421 }
 0x527   : > { %v3442_v58 = vsel %vm2097_vm5, %v3432_v26, %v3422_v16 }
 0x528   : > { %v3480_v53 = vrot.slane %v3442_v58, 5  ;;  %v3721_v43 = vrot.slane %v3442_v58, 2 }
 0x52a   : > { %v3402_v42 = vpop.permute.xlu0 %3401  ;;  %v3481_v60 = vsel %vm2143_vm6, %v3479_v59, %v3480_v53  ;;  %v3483_v49 = vsel %vm2143_vm6, %v3480_v53, %v3482_v13  ;;  %v3723_v15 = vsel %vm2412_vm7, %v3721_v43, %v3722_v45 }
 0x52b   : > { %10020 = vmatprep.mubr.msk.bf16.mxu1 %vm1448_vm1, %v3481_v60  ;;  %v3404_v62 = vpop.permute.xlu1 %3403  ;;  %v3436_v33 = vsel %vm2082_vm4, %v12290_v57, %v3402_v42  ;;  %v11100_v57 = vld [vmem:[%s13854_s16 + $0x28] sm:$0xff]  }
 0x52c   : > { %10021 = vmatmul.mubr.msk.bf16.vlgmr.msra.gmra.mrb[48].mxu1 %vm1448_vm1, %v3483_v49  ;;  %v3438_v0 = vsel %vm2082_vm4, %v3353_v27, %v3404_v62  ;;  %v11111_v62 = vld [vmem:[%s13854_s16 + $0xe0] sm:$0xff]  }
 0x52d   : > { %10029 = vmatpush3.bf16.msra.mxu1 %v11095_v12  ;;  %v11104_v12 = vld [vmem:[%s13854_s16 + $0x78] sm:$0xff]  }
 0x52e   : > { %v3426_v30 = vpop.permute.xlu0 %3425  ;;  %10030 = vmatprep.subr.bf16.mxu1 %v11096_v35 }
 0x52f   : > { %v3446_v2 = vsel %vm2097_vm5, %v3436_v33, %v3426_v30  ;;  %v3428_v7 = vpop.permute.xlu1 %3427 }
 0x530   : > { %v3484_v61 = vrot.slane %v3446_v2, 5  ;;  %v3448_v22 = vsel %vm2097_vm5, %v3438_v0, %v3428_v7  ;;  %v3724_v19 = vrot.slane %v3446_v2, 2 }
 0x531   : > { %v3486_v3 = vrot.slane %v3448_v22, 5  ;;  %10031 = vmatpush3.bf16.msra.mxu1 %v11096_v35  ;;  %v3726_v21 = vrot.slane %v3448_v22, 2 }
 0x532   : > { %v3485_v6 = vsel %vm2143_vm6, %v3482_v13, %v3484_v61  ;;  %10032 = vmatprep.subr.bf16.mxu1 %v11097_v32  ;;  %v3725_v18 = vsel %vm2412_vm7, %v3722_v45, %v3724_v19 }
 0x533   : > { %10024 = vmatprep.mubr.msk.bf16.mxu1 %vm1448_vm1, %v3485_v6  ;;  %v3487_v52 = vsel %vm2143_vm6, %v3484_v61, %v3486_v3  ;;  %v3727_v50 = vsel %vm2412_vm7, %v3724_v19, %v3726_v21  ;;  %v11112_v6 = vld [vmem:[%s13854_s16 + $0xe8] sm:$0xff]  }
 0x534   : > { %10025 = vmatmul.mubr.msk.bf16.gmra.mrb[52].mxu1 %vm1448_vm1, %v3487_v52 }
 0x535   : > { %10033 = vmatpush3.bf16.msra.mxu1 %v11097_v32  ;;  %10040 = vmatprep.mubr.msk.bf16.mxu1 %vm1448_vm1, %v3440_v40 }
 0x536   : > { %10034 = vmatprep.subr.bf16.mxu1 %v11098_v11 }
 0x539   : > { %10035 = vmatpush3.bf16.msra.mxu1 %v11098_v11 }
 0x53a   : > { %10036 = vmatprep.subr.bf16.mxu1 %v11099_v46 }
 0x53d   : > { %10037 = vmatpush3.bf16.msra.mxu1 %v11099_v46 }
 0x53e   : > { %10038 = vmatprep.subr.bf16.mxu1 %v11100_v57 }
 0x541   : > { %10039 = vmatpush3.bf16.msra.mxu1 %v11100_v57 }
 0x542   : > { %10048 = vmatprep.subr.bf16.mxu1 %v11101_v9 }
 0x544   : > { %10041 = vmatmul.mubr.msk.bf16.vlgmr.msra.gmra.mrb[48].mxu1 %vm1448_vm1, %v3442_v58 }
 0x545   : > { %10044 = vmatprep.mubr.msk.bf16.mxu1 %vm1448_vm1, %v12322_v56  ;;  %10049 = vmatpush3.bf16.msra.mxu1 %v11101_v9 }
 0x546   : > { %10050 = vmatprep.subr.bf16.mxu1 %v11102_v8 }
 0x549   : > { %10051 = vmatpush3.bf16.msra.mxu1 %v11102_v8 }
 0x54a   : > { %10052 = vmatprep.subr.bf16.mxu1 %v11103_v51 }
 0x54c   : > { %10045 = vmatmul.mubr.msk.bf16.gmra.mrb[52].mxu1 %vm1448_vm1, %v3446_v2 }
 0x54d   : > { %10053 = vmatpush3.bf16.msra.mxu1 %v11103_v51  ;;  %10060 = vmatprep.mubr.msk.bf16.mxu1 %vm1448_vm1, %v3723_v15 }
 0x54e   : > { %10054 = vmatprep.subr.bf16.mxu1 %v11104_v12 }
 0x551   : > { %10055 = vmatpush3.bf16.msra.mxu1 %v11104_v12 }
 0x552   : > { %10056 = vmatprep.subr.bf16.mxu1 %v11105_v4 }
 0x555   : > { %10057 = vmatpush3.bf16.msra.mxu1 %v11105_v4 }
 0x556   : > { %10058 = vmatprep.subr.bf16.mxu1 %v11106_v17 }
 0x559   : > { %10059 = vmatpush3.bf16.msra.mxu1 %v11106_v17 }
 0x55a   : > { %10068 = vmatprep.subr.bf16.mxu1 %v11349_v1 }
 0x55c   : > { %10061 = vmatmul.mubr.msk.bf16.vlgmr.msra.gmra.mrb[48].mxu1 %vm1448_vm1, %v3725_v18  ;;  %v11115_v18 = vld [vmem:[%s13857_s26] sm:$0xff]  }
 0x55d   : > { %10064 = vmatprep.mubr.msk.bf16.mxu1 %vm1448_vm1, %v3727_v50  ;;  %10069 = vmatpush3.bf16.msra.mxu1 %v11107_v5 }
 0x55e   : > { %10070 = vmatprep.subr.bf16.mxu1 %v11349_v1  ;;  %10189 = vmatpush3.bf16.msra.mxu0 %v11115_v18 }
 0x55f   : > { %10190 = vmatprep.subr.bf16.mxu0 %v11349_v1 }
 0x561   : > { %10071 = vmatpush3.bf16.msra.mxu1 %v11108_v24 }
 0x562   : > { %10072 = vmatprep.subr.bf16.mxu1 %v11349_v1 }
 0x564   : > { %10065 = vmatmul.mubr.msk.bf16.gmra.mrb[52].mxu1 %vm1448_vm1, %v3726_v21 }
 0x565   : > { %10080 = vmatprep.mubr.msk.bf16.mxu1 %vm11350_vm0, %v11349_v1  ;;  %10073 = vmatpush3.bf16.msra.mxu1 %v11109_v25 }
 0x566   : > { %10074 = vmatprep.subr.bf16.mxu1 %v11349_v1 }
 0x569   : > { %10075 = vmatpush3.bf16.msra.mxu1 %v11110_v44  ;;  %v11138_v44 = vld [vmem:[%s11695_s10 + $0x38] sm:$0xff]  }
 0x56a   : > { %10076 = vmatprep.subr.bf16.mxu1 %v11349_v1 }
 0x56d   : > { %10077 = vmatpush3.bf16.msra.mxu1 %v11111_v62 }
 0x56e   : > { %10078 = vmatprep.subr.bf16.mxu1 %v11349_v1 }
 0x571   : > { %10079 = vmatpush3.bf16.msra.mxu1 %v11112_v6  ;;  %v11128_v6 = vld [vmem:[%s13854_s16 + $0x100] sm:$0xff]  }
 0x572   : > { %10092 = vmatprep.subr.bf16.mxu1 %v11349_v1 }
 0x62f   : > { %v10062_v27 = vpop.f32.mrb[48].mxu1 }
 0x630   : > { %v3855_v29 = vmul.f32 %v10062_v27, %v8889_v28  ;;  %v3810_v34 = vpop.f32.mrb[49].mxu1 }
 0x631   : > { %v3853_v36 = vmul.f32 %v8889_v28, %v3810_v34  ;;  %v10063_v37 = vpop.f32.mrb[50].mxu1  ;;  %v11121_v34 = vld [vmem:[%s13857_s26 + $0x18] sm:$0xff]  }
 0x632   : > { %v3868_v63 = vadd.f32 %v8890_v23, %v3855_v29  ;;  %v3856_v38 = vmul.f32 %v10063_v37, %v8889_v28  ;;  %v3813_v10 = vpop.f32.mrb[51].mxu1  ;;  %v11119_v29 = vld [vmem:[%s13857_s26 + $0x10] sm:$0xff]   ;;  %v11125_v37 = vld [vmem:[%s13857_s26 + $0x28] sm:$0xff]  }
 0x633   : > { %v3866_v39 = vadd.f32 %v8890_v23, %v3853_v36  ;;  %v3854_v41 = vmul.f32 %v8889_v28, %v3813_v10  ;;  %v11123_v36 = vld [vmem:[%s13857_s26 + $0x20] sm:$0xff]   ;;  %v11133_v10 = vld [vmem:[%s11695_s10 + $0x10] sm:$0xff]  }
 0x634   : > { %v3869_v20 = vadd.f32 %v8890_v23, %v3856_v38  ;;  %v3875_v31 = vmax.f32 %v3868_v63, 0.0  ;;  %v11127_v63 = vld [vmem:[%s11695_s10] sm:$0xff]   ;;  %v11130_v38 = vld [vmem:[%s11695_s10 + $0x8] sm:$0xff]  }
 0x635   : > { %v3867_v14 = vadd.f32 %v8890_v23, %v3854_v41  ;;  %v3873_v48 = vmax.f32 %v3866_v39, 0.0  ;;  %v11134_v39 = vld [vmem:[%s11695_s10 + $0x18] sm:$0xff]   ;;  %v11135_v41 = vld [vmem:[%s11695_s10 + $0x20] sm:$0xff]  }
 0x636   : > { %v3876_v47 = vmax.f32 %v3869_v20, 0.0  ;;  %v11136_v20 = vld [vmem:[%s11695_s10 + $0x28] sm:$0xff]  }
 0x637   : > { %v3874_v54 = vmax.f32 %v3867_v14, 0.0  ;;  %v10066_v55 = vpop.f32.mrb[52].mxu1  ;;  %v11137_v14 = vld [vmem:[%s11695_s10 + $0x30] sm:$0xff]  }
 0x638   : > { %v12377_v40 = vpack.c.bf16 %v3876_v47, %v3875_v31  ;;  %v3859_v56 = vmul.f32 %v10066_v55, %v8889_v28  ;;  %v3826_v26 = vpop.f32.mrb[53].mxu1  ;;  %v11139_v31 = vld [vmem:[%s11695_s10 + $0x40] sm:$0xff]   ;;  %s13862_s10 = sld [smem:[#allocation12_spill]] }
 0x639   : > { %v12380_v16 = vpack.c.bf16 %v3874_v54, %v3873_v48  ;;  %v3857_v58 = vmul.f32 %v8889_v28, %v3826_v26  ;;  %v10067_v59 = vpop.f32.mrb[54].mxu1 }
 0x63a   : > { %v3872_v13 = vadd.f32 %v8890_v23, %v3859_v56  ;;  %v3829_v53 = vpop.f32.mrb[55].mxu1  ;;  %v3896_v42 = vshll.u32 %v12377_v40, 16  ;;  %v3932_v57 = vrot.slane %v12377_v40, 1  ;;  %v3900_v9 = vshrl.u32 %v12377_v40, 16 }
 0x63b   : > { %v3870_v60 = vadd.f32 %v8890_v23, %v3857_v58  ;;  %v3858_v49 = vmul.f32 %v8889_v28, %v3829_v53  ;;  %v3891_v35 = vshll.u32 %v12380_v16, 16  ;;  %v3889_v32 = vshrl.u32 %v12380_v16, 16  ;;  %v11117_v28 = vld [vmem:[%s13857_s26 + $0x8] sm:$0xff]  }
 0x63c   : > { %v3879_v33 = vmax.f32 %v3872_v13, 0.0  ;;  %v3898_v2 = vrot.slane %v3896_v42, 1  ;;  %v3931_v46 = vrot.slane %v12380_v16, 1  ;;  %10191 = vmatpush3.bf16.msra.mxu0 %v11117_v28 }
 0x63d   : > { %v3871_v30 = vadd.f32 %v8890_v23, %v3858_v49  ;;  %v3893_v0 = vrot.slane %v3891_v35, 1  ;;  %v3877_v61 = vmax.f32 %v3870_v60, 0.0  ;;  %10192 = vmatprep.subr.bf16.mxu0 %v11349_v1  ;;  %v11113_v60 = vld [vmem:[%s13854_s16 + $0x90] sm:$0xff]  }
 0x63e   : > { %v12387_v7 = vpack.c.bf16 %v3879_v33, %v3879_v33  ;;  %v3933_v43 = vsel %vm2054_vm3, %v3931_v46, %v3932_v57  ;;  %v3902_v45 = vor.u32 %v3900_v9, %v3898_v2  ;;  %v11132_v46 = vld [vmem:[%s13854_s16 + $0x118] sm:$0xff]  }
 0x63f   : > { %v3878_v22 = vmax.f32 %v3871_v30, 0.0  ;;  %v3894_v3 = vor.u32 %v3893_v0, %v3889_v32  ;;  %v11116_v30 = vld [vmem:[%s13854_s16 + $0xa0] sm:$0xff]   ;;  %v11118_v0 = vld [vmem:[%s13854_s16 + $0xa8] sm:$0xff]  }
 0x640   : > { %v3912_v51 = vshll.u32 %v12387_v7, 16  ;;  %v3916_v5 = vshrl.u32 %v12387_v7, 16  ;;  %v3936_v23 = vrot.slane %v12387_v7, 1  ;;  %10193 = vmatpush3.bf16.msra.mxu0 %v11119_v29 }
 0x641   : > { %v12390_v11 = vpack.c.bf16 %v3878_v22, %v3877_v61  ;;  %v3899_v52 = vsel %vm1977_vm2, %v3894_v3, %v3898_v2  ;;  %10194 = vmatprep.subr.bf16.mxu0 %v11349_v1  ;;  %v11120_v2 = vld [vmem:[%s13854_s16 + $0xb0] sm:$0xff]   ;;  %v11122_v61 = vld [vmem:[%s13854_s16 + $0xb8] sm:$0xff]  }
 0x642   : > { %3919 = vrot.lane.b32.xlu0 %v3899_v52, %s13821_s11  ;;  %v3914_v19 = vrot.slane %v3912_v51, 1  ;;  %v11124_v22 = vld [vmem:[%s13854_s16 + $0xf0] sm:$0xff]   ;;  %v11126_v3 = vld [vmem:[%s13854_s16 + $0xf8] sm:$0xff]  }
 0x643   : > { %v3904_v8 = vshll.u32 %v12390_v11, 16  ;;  %v3908_v15 = vshrl.u32 %v12390_v11, 16  ;;  %v3934_v21 = vrot.slane %v12390_v11, 1  ;;  %v11131_v52 = vld [vmem:[%s13854_s16 + $0x110] sm:$0xff]  }
 0x644   : > { %v3918_v25 = vor.u32 %v3916_v5, %v3914_v19  ;;  %10195 = vmatpush3.bf16.msra.mxu0 %v11121_v34  ;;  %v12534_v5 = vld [vmem:[%s13858_s28] ss:$0 sm:$0xff]  ;;  %s13863_s28 = sld [smem:[#allocation13_spill]] }
 0x645   : > { %v3906_v12 = vrot.slane %v3904_v8, 1  ;;  %v3935_v24 = vsel %vm2054_vm3, %v3932_v57, %v3934_v21  ;;  %v3937_v27 = vsel %vm2054_vm3, %v3934_v21, %v3936_v23  ;;  %10196 = vmatprep.subr.bf16.mxu0 %v11349_v1 }
 0x646   : > { %3938 = vrot.lane.b32.xlu0 %v3933_v43, %s13823_s15 }
 0x647   : > { %v3907_v4 = vsel %vm1977_vm2, %v3902_v45, %v3906_v12  ;;  %v3910_v17 = vor.u32 %v3908_v15, %v3906_v12 }
 0x648   : > { %3921 = vrot.lane.b32.xlu1 %v3907_v4, %s13821_s11  ;;  %10197 = vmatpush3.bf16.msra.mxu0 %v11123_v36 }
 0x649   : > { %v3915_v50 = vsel %vm1977_vm2, %v3910_v17, %v3914_v19  ;;  %10198 = vmatprep.subr.bf16.mxu0 %v11349_v1 }
 0x64a   : > { %3923 = vrot.lane.b32.xlu0 %v3915_v50, %s13821_s11 }
 0x64c   : > { %3940 = vrot.lane.b32.xlu1 %v3935_v24, %s13823_s15  ;;  %10199 = vmatpush3.bf16.msra.mxu0 %v11125_v37  ;;  %v12537_v24 = vld [vmem:[%s13859_s1] ss:$0 sm:$0xff]  ;;  %s13864_s1 = sld [smem:[#allocation16_spill]] }
 0x64e   : > { %3925 = vrot.lane.b32.xlu0 %v3918_v25, %s13821_s11 }
 0x64f   : > { %10201 = vmatmul.mubr.msk.bf16.vlgmr.msra.gmra.mrb[48].mxu0 %vm1448_vm1, %v11127_v63 }
 0x650   : > { %3942 = vrot.lane.b32.xlu1 %v3937_v27, %s13823_s15  ;;  %10204 = vmatprep.mubr.msk.bf16.mxu0 %vm11350_vm0, %v11349_v1 }
 0x654   : > { %3944 = vrot.lane.b32.xlu1 %v3936_v23, %s13823_s15 }
 0x657   : > { %10205 = vmatmul.mubr.msk.bf16.gmra.mrb[52].mxu0 %vm1448_vm1, %v11130_v38 }
 0x658   : > { %10208 = vmatprep.mubr.msk.bf16.mxu0 %vm11350_vm0, %v11349_v1 }
 0x65f   : > { %10209 = vmatmul.mubr.msk.bf16.gmra.mrb[56].mxu0 %vm1448_vm1, %v11133_v10 }
 0x660   : > { %10212 = vmatprep.mubr.msk.bf16.mxu0 %vm11350_vm0, %v11349_v1 }
 0x667   : > { %10213 = vmatmul.mubr.msk.bf16.gmra.mrb[60].mxu0 %vm1448_vm1, %v11134_v39 }
 0x668   : > { %10216 = vmatprep.mubr.msk.bf16.mxu0 %vm11350_vm0, %v11349_v1 }
 0x66f   : > { %10217 = vmatmul.mubr.msk.bf16.gmra.mrb[64].mxu0 %vm1448_vm1, %v11135_v41 }
 0x670   : > { %10220 = vmatprep.mubr.msk.bf16.mxu0 %vm11350_vm0, %v11349_v1 }
 0x677   : > { %10221 = vmatmul.mubr.msk.bf16.gmra.mrb[68].mxu0 %vm1448_vm1, %v11136_v20 }
 0x678   : > { %10224 = vmatprep.mubr.msk.bf16.mxu0 %vm11350_vm0, %v11349_v1 }
 0x67f   : > { %10225 = vmatmul.mubr.msk.bf16.gmra.mrb[72].mxu0 %vm1448_vm1, %v11137_v14 }
 0x680   : > { %10228 = vmatprep.mubr.msk.bf16.mxu0 %vm11350_vm0, %v11349_v1 }
 0x687   : > { %10229 = vmatmul.mubr.msk.bf16.gmra.mrb[76].mxu0 %vm1448_vm1, %v11138_v44 }
 0x688   : > { %10232 = vmatprep.mubr.msk.bf16.mxu0 %vm11350_vm0, %v11349_v1 }
 0x68f   : > { %10233 = vmatmul.mubr.msk.bf16.gmra.mrb[80].mxu0 %vm1448_vm1, %v11139_v31 }
 0x6b4   : > { %v3920_v47 = vpop.permute.xlu0 %3919 }
 0x6b5   : > { %v3947_v55 = vsel %vm2082_vm4, %v12380_v16, %v3920_v47 }
 0x6b8   : > { %v3939_v48 = vpop.permute.xlu0 %3938 }
 0x6b9   : > { %v3955_v56 = vsel %vm2097_vm5, %v3947_v55, %v3939_v48 }
 0x6ba   : > { %v3922_v54 = vpop.permute.xlu1 %3921  ;;  %v3991_v53 = vrot.slane %v3955_v56, 5 }
 0x6bb   : > { %v3949_v26 = vsel %vm2082_vm4, %v12377_v40, %v3922_v54  ;;  %v11114_v40 = vld [vmem:[%s13854_s16 + $0x98] sm:$0xff]  }
 0x6bc   : > { %v3924_v59 = vpop.permute.xlu0 %3923 }
 0x6bd   : > { %v3951_v49 = vsel %vm2082_vm4, %v12390_v11, %v3924_v59  ;;  %v11129_v11 = vld [vmem:[%s13854_s16 + $0x108] sm:$0xff]  }
 0x6be   : > { %v3941_v58 = vpop.permute.xlu1 %3940 }
 0x6bf   : > { %v12467_v13 = vsel %vm2097_vm5, %v3949_v26, %v3941_v58 }
 0x6c0   : > { %v3992_v42 = vrot.slane %v12467_v13, 5  ;;  %v3926_v9 = vpop.permute.xlu0 %3925  ;;  %v4209_v8 = vrot.slane %v12467_v13, 2 }
 0x6c1   : > { %v3953_v43 = vsel %vm2082_vm4, %v12387_v7, %v3926_v9 }
 0x6c2   : > { %v3943_v16 = vpop.permute.xlu1 %3942  ;;  %v3993_v35 = vsel %vm2143_vm6, %v3991_v53, %v3992_v42 }
 0x6c3   : > { %v3959_v62 = vsel %vm2097_vm5, %v3951_v49, %v3943_v16  ;;  %10081 = vmatmul.mubr.msk.bf16.vlgmr.msra.gmra.mrb[56].mxu1 %vm1448_vm1, %v3993_v35 }
 0x6c4   : > { %10093 = vmatpush3.bf16.msra.mxu1 %v11113_v60  ;;  %10084 = vmatprep.mubr.msk.bf16.mxu1 %vm11350_vm0, %v11349_v1  ;;  %v3994_v33 = vrot.slane %v3959_v62, 5  ;;  %v4210_v57 = vrot.slane %v3959_v62, 2 }
 0x6c5   : > { %10094 = vmatprep.subr.bf16.mxu1 %v11349_v1 }
 0x6c6   : > { %v3995_v32 = vsel %vm2143_vm6, %v3992_v42, %v3994_v33  ;;  %v3945_v51 = vpop.permute.xlu1 %3944  ;;  %v4211_v45 = vsel %vm2412_vm7, %v4209_v8, %v4210_v57 }
 0x6c7   : > { %v3961_v12 = vsel %vm2097_vm5, %v3953_v43, %v3945_v51 }
 0x6c8   : > { %10095 = vmatpush3.bf16.msra.mxu1 %v11114_v40  ;;  %v4212_v15 = vrot.slane %v3961_v12, 2 }
 0x6c9   : > { %10096 = vmatprep.subr.bf16.mxu1 %v11349_v1 }
 0x6ca   : > { %v4213_v4 = vsel %vm2412_vm7, %v4210_v57, %v4212_v15 }
 0x6cb   : > { %10085 = vmatmul.mubr.msk.bf16.gmra.mrb[60].mxu1 %vm1448_vm1, %v3995_v32 }
 0x6cc   : > { %10097 = vmatpush3.bf16.msra.mxu1 %v11116_v30  ;;  %10088 = vmatprep.mubr.msk.bf16.mxu1 %vm11350_vm0, %v11349_v1 }
 0x6cd   : > { %10098 = vmatprep.subr.bf16.mxu1 %v11349_v1 }
 0x6d0   : > { %10099 = vmatpush3.bf16.msra.mxu1 %v11118_v0 }
 0x6d1   : > { %10100 = vmatprep.subr.bf16.mxu1 %v11349_v1 }
 0x6d3   : > { %10089 = vmatmul.mubr.msk.bf16.gmra.mrb[64].mxu1 %vm1448_vm1, %v3994_v33 }
 0x6d4   : > { %10101 = vmatpush3.bf16.msra.mxu1 %v11120_v2  ;;  %10104 = vmatprep.mubr.msk.bf16.mxu1 %vm11350_vm0, %v11349_v1 }
 0x6d5   : > { %10102 = vmatprep.subr.bf16.mxu1 %v11349_v1 }
 0x6d8   : > { %10103 = vmatpush3.bf16.msra.mxu1 %v11122_v61 }
 0x6d9   : > { %10116 = vmatprep.subr.bf16.mxu1 %v11349_v1 }
 0x6db   : > { %10105 = vmatmul.mubr.msk.bf16.vlgmr.msra.gmra.mrb[56].mxu1 %vm1448_vm1, %v3955_v56 }
 0x6dc   : > { %10117 = vmatpush3.bf16.msra.mxu1 %v11124_v22  ;;  %10108 = vmatprep.mubr.msk.bf16.mxu1 %vm11350_vm0, %v11349_v1 }
 0x6dd   : > { %10118 = vmatprep.subr.bf16.mxu1 %v11349_v1 }
 0x6e0   : > { %10119 = vmatpush3.bf16.msra.mxu1 %v11126_v3 }
 0x6e1   : > { %10120 = vmatprep.subr.bf16.mxu1 %v11349_v1 }
 0x6e3   : > { %10109 = vmatmul.mubr.msk.bf16.gmra.mrb[60].mxu1 %vm1448_vm1, %v12467_v13 }
 0x6e4   : > { %10121 = vmatpush3.bf16.msra.mxu1 %v11128_v6  ;;  %10112 = vmatprep.mubr.msk.bf16.mxu1 %vm11350_vm0, %v11349_v1 }
 0x6e5   : > { %10122 = vmatprep.subr.bf16.mxu1 %v11349_v1 }
 0x6e8   : > { %10123 = vmatpush3.bf16.msra.mxu1 %v11129_v11 }
 0x6e9   : > { %10124 = vmatprep.subr.bf16.mxu1 %v11349_v1 }
 0x6eb   : > { %10113 = vmatmul.mubr.msk.bf16.gmra.mrb[64].mxu1 %vm1448_vm1, %v3959_v62 }
 0x6ec   : > { %10125 = vmatpush3.bf16.msra.mxu1 %v11131_v52  ;;  %10128 = vmatprep.mubr.msk.bf16.mxu1 %vm11350_vm0, %v11349_v1 }
 0x6ed   : > { %10126 = vmatprep.subr.bf16.mxu1 %v11349_v1 }
 0x6f0   : > { %10127 = vmatpush3.bf16.msra.mxu1 %v11132_v46 }
 0x6f1   : > { %10140 = vmatprep.subr.bf16.mxu1 %v11349_v1 }
 0x6f3   : > { %10129 = vmatmul.mubr.msk.bf16.vlgmr.msra.gmra.mrb[56].mxu1 %vm1448_vm1, %v4211_v45 }
 0x6f4   : > { %10132 = vmatprep.mubr.msk.bf16.mxu1 %vm11350_vm0, %v11349_v1 }
 0x6fb   : > { %10133 = vmatmul.mubr.msk.bf16.gmra.mrb[60].mxu1 %vm1448_vm1, %v4213_v4 }
 0x6fc   : > { %10136 = vmatprep.mubr.msk.bf16.mxu1 %vm11350_vm0, %v11349_v1 }
 0x703   : > { %10137 = vmatmul.mubr.msk.bf16.gmra.mrb[64].mxu1 %vm1448_vm1, %v4212_v15 }
 0x704   : > { %10152 = vmatprep.mubr.msk.bf16.mxu1 %vm11350_vm0, %v11349_v1 }
 0x722   : > { %v4875_v7 = vpop.f32.mrb[48].mxu0 }
 0x723   : > { %v10202_v17 = vpop.f32.mrb[49].mxu0  ;;  %v4953_v28 = vmul.f32 %v12534_v5, %v4875_v7 }
 0x724   : > { %v4878_v19 = vpop.f32.mrb[50].mxu0 }
 0x725   : > { %v10203_v21 = vpop.f32.mrb[51].mxu0  ;;  %v4954_v23 = vmul.f32 %v12534_v5, %v4878_v19  ;;  %v4978_v36 = vadd.f32 %v12537_v24, %v4953_v28 }
 0x727   : > { %v4979_v37 = vadd.f32 %v12537_v24, %v4954_v23 }
 0x729   : > { %v12544_v10 = vpack.c.bf16 %v4979_v37, %v4978_v36 }
 0x72a   : > { %v4883_v18 = vpop.f32.mrb[52].mxu0 }
 0x72b   : > { %v10206_v50 = vpop.f32.mrb[53].mxu0  ;;  %v4955_v27 = vmul.f32 %v12534_v5, %v4883_v18 }
 0x72c   : > { %v4886_v25 = vpop.f32.mrb[54].mxu0 }
 0x72d   : > { %v10207_v29 = vpop.f32.mrb[55].mxu0  ;;  %v4980_v39 = vadd.f32 %v12537_v24, %v4955_v27  ;;  %v4956_v41 = vmul.f32 %v12534_v5, %v4886_v25 }
 0x72f   : > { %v4981_v44 = vadd.f32 %v12537_v24, %v4956_v41 }
 0x731   : > { %v12551_v55 = vpack.c.bf16 %v4981_v44, %v4980_v39  ;;  %v11140_v44 = vld [vmem:[%s13854_s16 + $0x150] sm:$0xff]  }
 0x732   : > { %v4891_v34 = vpop.f32.mrb[56].mxu0  ;;  %10141 = vmatpush3.bf16.msra.mxu1 %v11140_v44 }
 0x733   : > { %v10210_v63 = vpop.f32.mrb[57].mxu0  ;;  %v4957_v31 = vmul.f32 %v12534_v5, %v4891_v34  ;;  %10142 = vmatprep.subr.bf16.mxu1 %v11349_v1 }
 0x734   : > { %v4894_v38 = vpop.f32.mrb[58].mxu0 }
 0x735   : > { %v10211_v20 = vpop.f32.mrb[59].mxu0  ;;  %v4958_v47 = vmul.f32 %v12534_v5, %v4894_v38  ;;  %v4982_v56 = vadd.f32 %v12537_v24, %v4957_v31  ;;  %v11141_v31 = vld [vmem:[%s13854_s16 + $0x158] sm:$0xff]  }
 0x736   : > { %10143 = vmatpush3.bf16.msra.mxu1 %v11141_v31 }
 0x737   : > { %v4983_v26 = vadd.f32 %v12537_v24, %v4958_v47  ;;  %v11142_v47 = vld [vmem:[%s13854_s16 + $0x160] sm:$0xff]   ;;  %10144 = vmatprep.subr.bf16.mxu1 %v11349_v1 }
 0x739   : > { %v12557_v53 = vpack.c.bf16 %v4983_v26, %v4982_v56 }
 0x73a   : > { %v4899_v14 = vpop.f32.mrb[60].mxu0  ;;  %10145 = vmatpush3.bf16.msra.mxu1 %v11142_v47 }
 0x73b   : > { %v10214_v48 = vpop.f32.mrb[61].mxu0  ;;  %v4959_v58 = vmul.f32 %v12534_v5, %v4899_v14  ;;  %10146 = vmatprep.subr.bf16.mxu1 %v11349_v1 }
 0x73c   : > { %v4902_v54 = vpop.f32.mrb[62].mxu0  ;;  %v8956_v48 = vld [vmem:[%s13855_s18 + $0x1] ss:$0 sm:$0xff] }
 0x73d   : > { %v10215_v59 = vpop.f32.mrb[63].mxu0  ;;  %v4960_v13 = vmul.f32 %v12534_v5, %v4902_v54  ;;  %v4984_v42 = vadd.f32 %v12537_v24, %v4959_v58  ;;  %v8957_v54 = vld [vmem:[%s13856_s0 + $0x1] ss:$0 sm:$0xff] }
 0x73f   : > { %v4985_v60 = vadd.f32 %v12537_v24, %v4960_v13 }
 0x741   : > { %v12561_v16 = vpack.c.bf16 %v4985_v60, %v4984_v42 }
 0x742   : > { %v4907_v49 = vpop.f32.mrb[64].mxu0 }
 0x743   : > { %v4961_v35 = vmul.f32 %v12534_v5, %v4907_v49  ;;  %v10218_v62 = vpop.f32.mrb[65].mxu0  ;;  %v5031_v44 = vshll.u32 %v12561_v16, 16 }
 0x744   : > { %v4910_v40 = vpop.f32.mrb[66].mxu0 }
 0x745   : > { %v4986_v33 = vadd.f32 %v12537_v24, %v4961_v35  ;;  %v4962_v30 = vmul.f32 %v12534_v5, %v4910_v40  ;;  %v10219_v32 = vpop.f32.mrb[67].mxu0 }
 0x747   : > { %v4987_v2 = vadd.f32 %v12537_v24, %v4962_v30 }
 0x749   : > { %v12568_v6 = vpack.c.bf16 %v4987_v2, %v4986_v33 }
 0x74a   : > { %v4915_v0 = vpop.f32.mrb[68].mxu0 }
 0x74b   : > { %v4963_v61 = vmul.f32 %v12534_v5, %v4915_v0  ;;  %v10222_v22 = vpop.f32.mrb[69].mxu0 }
 0x74c   : > { %v4918_v3 = vpop.f32.mrb[70].mxu0 }
 0x74d   : > { %v4988_v11 = vadd.f32 %v12537_v24, %v4963_v61  ;;  %v4964_v52 = vmul.f32 %v12534_v5, %v4918_v3  ;;  %v10223_v46 = vpop.f32.mrb[71].mxu0  ;;  %v11143_v61 = vld [vmem:[%s13854_s16 + $0x168] sm:$0xff]  }
 0x74e   : > { %10147 = vmatpush3.bf16.msra.mxu1 %v11143_v61  ;;  %v5105_v61 = vrot.slane %v12544_v10, 1 }
 0x74f   : > { %v4989_v9 = vadd.f32 %v12537_v24, %v4964_v52  ;;  %10148 = vmatprep.subr.bf16.mxu1 %v11349_v1 }
 0x751   : > { %v12574_v45 = vpack.c.bf16 %v4989_v9, %v4988_v11 }
 0x752   : > { %v4923_v57 = vpop.f32.mrb[72].mxu0 }
 0x753   : > { %v4965_v8 = vmul.f32 %v12534_v5, %v4923_v57  ;;  %v10226_v51 = vpop.f32.mrb[73].mxu0  ;;  %v11144_v57 = vld [vmem:[%s13854_s16 + $0x170] sm:$0xff]  }
 0x754   : > { %v4926_v43 = vpop.f32.mrb[74].mxu0  ;;  %10149 = vmatpush3.bf16.msra.mxu1 %v11144_v57  ;;  %v5110_v57 = vrot.slane %v12561_v16, 1 }
 0x755   : > { %v4990_v12 = vadd.f32 %v12537_v24, %v4965_v8  ;;  %v4966_v15 = vmul.f32 %v12534_v5, %v4926_v43  ;;  %v10227_v4 = vpop.f32.mrb[75].mxu0  ;;  %10150 = vmatprep.subr.bf16.mxu1 %v11349_v1 }
 0x757   : > { %v4991_v17 = vadd.f32 %v12537_v24, %v4966_v15 }
 0x759   : > { %v12580_v50 = vpack.c.bf16 %v4991_v17, %v4990_v12  ;;  %v5010_v12 = vshll.u32 %v12544_v10, 16 }
 0x75a   : > { %v4931_v7 = vpop.f32.mrb[76].mxu0 }
 0x75b   : > { %v4967_v19 = vmul.f32 %v12534_v5, %v4931_v7  ;;  %v10230_v21 = vpop.f32.mrb[77].mxu0 }
 0x75c   : > { %v4934_v18 = vpop.f32.mrb[78].mxu0  ;;  %v5008_v21 = vshrl.u32 %v12544_v10, 16 }
 0x75d   : > { %v4992_v25 = vadd.f32 %v12537_v24, %v4967_v19  ;;  %v4968_v28 = vmul.f32 %v12534_v5, %v4934_v18  ;;  %v10231_v23 = vpop.f32.mrb[79].mxu0  ;;  %v5015_v18 = vshll.u32 %v12551_v55, 16 }
 0x75f   : > { %v4993_v27 = vadd.f32 %v12537_v24, %v4968_v28  ;;  %v11145_v28 = vld [vmem:[%s13854_s16 + $0x178] sm:$0xff]  }
 0x760   : > { %10151 = vmatpush3.bf16.msra.mxu1 %v11145_v28 }
 0x761   : > { %v12586_v37 = vpack.c.bf16 %v4993_v27, %v4992_v25  ;;  %v5023_v25 = vshll.u32 %v12557_v53, 16  ;;  %10156 = vmatprep.subr.bf16.mxu1 %v11349_v1 }
 0x762   : > { %v4939_v29 = vpop.f32.mrb[80].mxu0 }
 0x763   : > { %v4969_v34 = vmul.f32 %v12534_v5, %v4939_v29  ;;  %v10234_v36 = vpop.f32.mrb[81].mxu0 }
 0x764   : > { %v4942_v63 = vpop.f32.mrb[82].mxu0 }
 0x765   : > { %v4994_v38 = vadd.f32 %v12537_v24, %v4969_v34  ;;  %v4970_v39 = vmul.f32 %v12534_v5, %v4942_v63  ;;  %v10235_v41 = vpop.f32.mrb[83].mxu0  ;;  %v5012_v34 = vrot.slane %v5010_v12, 1  ;;  %v5055_v12 = vshll.u32 %v12580_v50, 16 }
 0x766   : > { %v5025_v41 = vrot.slane %v5023_v25, 1  ;;  %v5063_v25 = vshll.u32 %v12586_v37, 16 }
 0x767   : > { %v4995_v20 = vadd.f32 %v12537_v24, %v4970_v39  ;;  %v5017_v39 = vrot.slane %v5015_v18, 1 }
 0x769   : > { %v12591_v14 = vpack.c.bf16 %v4995_v20, %v4994_v38  ;;  %v5027_v20 = vshrl.u32 %v12557_v53, 16 }
 0x7c6   : > { %v4293_v5 = vpop.f32.mrb[56].mxu1 }
 0x7c7   : > { %v4326_v56 = vmul.f32 %v8956_v48, %v4293_v5  ;;  %v10130_v26 = vpop.f32.mrb[57].mxu1 }
 0x7c8   : > { %v4296_v24 = vpop.f32.mrb[58].mxu1 }
 0x7c9   : > { %v4337_v58 = vadd.f32 %v8957_v54, %v4326_v56  ;;  %v4327_v59 = vmul.f32 %v8956_v48, %v4296_v24  ;;  %v10131_v13 = vpop.f32.mrb[59].mxu1  ;;  %v5019_v24 = vshrl.u32 %v12551_v55, 16 }
 0x7cb   : > { %v4338_v42 = vadd.f32 %v8957_v54, %v4327_v59  ;;  %v4342_v60 = vmax.f32 %v4337_v58, 0.0  ;;  %v5029_v58 = vor.u32 %v5027_v20, %v5025_v41  ;;  %v5033_v59 = vrot.slane %v5031_v44, 1 }
 0x7cd   : > { %v4343_v49 = vmax.f32 %v4338_v42, 0.0 }
 0x7ce   : > { %v4301_v35 = vpop.f32.mrb[60].mxu1 }
 0x7cf   : > { %v12601_v62 = vpack.c.bf16 %v4343_v49, %v4342_v60  ;;  %v4328_v40 = vmul.f32 %v8956_v48, %v4301_v35  ;;  %v10134_v33 = vpop.f32.mrb[61].mxu1  ;;  %v5021_v49 = vor.u32 %v5019_v24, %v5017_v39  ;;  %v5034_v35 = vsel %vm1977_vm2, %v5029_v58, %v5033_v59 }
 0x7d0   : > { %v4304_v30 = vpop.f32.mrb[62].mxu1 }
 0x7d1   : > { %v4339_v32 = vadd.f32 %v8957_v54, %v4328_v40  ;;  %v4329_v0 = vmul.f32 %v8956_v48, %v4304_v30  ;;  %v10135_v2 = vpop.f32.mrb[63].mxu1  ;;  %v4357_v3 = vshll.u32 %v12601_v62, 16  ;;  %v4355_v17 = vshrl.u32 %v12601_v62, 16 }
 0x7d2   : > { %v4381_v47 = vrot.slane %v12601_v62, 1  ;;  %v5106_v40 = vrot.slane %v12551_v55, 1  ;;  %v5108_v30 = vrot.slane %v12557_v53, 1  ;;  %v5026_v2 = vsel %vm1977_vm2, %v5021_v49, %v5025_v41 }
 0x7d3   : > { %v4340_v22 = vadd.f32 %v8957_v54, %v4329_v0  ;;  %v4344_v11 = vmax.f32 %v4339_v32, 0.0  ;;  %v4359_v43 = vrot.slane %v4357_v3, 1  ;;  %v5035_v32 = vshrl.u32 %v12561_v16, 16 }
 0x7d4   : > { %v5039_v0 = vshll.u32 %v12568_v6, 16  ;;  %v5109_v3 = vsel %vm2054_vm3, %v5106_v40, %v5108_v30 }
 0x7d5   : > { %v4345_v52 = vmax.f32 %v4340_v22, 0.0  ;;  %v4360_v27 = vor.u32 %v4359_v43, %v4355_v17  ;;  %v5047_v22 = vshll.u32 %v12574_v45, 16  ;;  %v5051_v43 = vshrl.u32 %v12574_v45, 16 }
 0x7d6   : > { %v4309_v46 = vpop.f32.mrb[64].mxu1 }
 0x7d7   : > { %v12607_v9 = vpack.c.bf16 %v4345_v52, %v4344_v11  ;;  %v4330_v8 = vmul.f32 %v8956_v48, %v4309_v46  ;;  %v10138_v51 = vpop.f32.mrb[65].mxu1  ;;  %v5037_v11 = vor.u32 %v5035_v32, %v5033_v59  ;;  %v5041_v52 = vrot.slane %v5039_v0, 1  ;;  %v11146_v0 = vld [vmem:[%s13854_s16 + $0x120] sm:$0xff]  }
 0x7d8   : > { %v4312_v15 = vpop.f32.mrb[66].mxu1  ;;  %v5107_v46 = vsel %vm2054_vm3, %v5105_v61, %v5106_v40  ;;  %v5049_v51 = vrot.slane %v5047_v22, 1  ;;  %v11149_v61 = vld [vmem:[%s13854_s16 + $0x138] sm:$0xff]   ;;  %v11150_v22 = vld [vmem:[%s13854_s16 + $0x140] sm:$0xff]  }
 0x7d9   : > { %v4341_v4 = vadd.f32 %v8957_v54, %v4330_v8  ;;  %v10139_v7 = vpop.f32.mrb[67].mxu1  ;;  %v4362_v19 = vshll.u32 %v12607_v9, 16  ;;  %v4382_v38 = vrot.slane %v12607_v9, 1  ;;  %v4366_v48 = vshrl.u32 %v12607_v9, 16 }
 0x7da   : > { %v5013_v54 = vor.u32 %v5012_v34, %v5008_v21  ;;  %v5043_v8 = vshrl.u32 %v12568_v6, 16  ;;  %v5042_v15 = vsel %vm1977_vm2, %v5037_v11, %v5041_v52  ;;  %v5111_v7 = vsel %vm2054_vm3, %v5108_v30, %v5110_v57  ;;  %v11152_v11 = vld [vmem:[%s13854_s16 + $0x180] sm:$0xff]  }
 0x7db   : > { %v4346_v23 = vmax.f32 %v4341_v4, 0.0  ;;  %v4364_v29 = vrot.slane %v4362_v19, 1  ;;  %v4383_v56 = vsel %vm2054_vm3, %v4381_v47, %v4382_v38  ;;  %v5112_v4 = vrot.slane %v12568_v6, 1 }
 0x7dc   : > { %v5018_v60 = vsel %vm1977_vm2, %v5013_v54, %v5017_v39  ;;  %v5045_v17 = vor.u32 %v5043_v8, %v5041_v52  ;;  %v5053_v19 = vor.u32 %v5051_v43, %v5049_v51  ;;  %v5057_v21 = vrot.slane %v5055_v12, 1  ;;  %v11153_v52 = vld [vmem:[%s13854_s16 + $0x188] sm:$0xff]   ;;  %v11156_v12 = vld [vmem:[%s13854_s16 + $0x1a0] sm:$0xff]  }
 0x7dd   : > { %v4349_v36 = vpack.c.bf16 %v4346_v23, %v4346_v23  ;;  %v4365_v63 = vsel %vm1977_vm2, %v4360_v27, %v4364_v29  ;;  %v4368_v26 = vor.u32 %v4366_v48, %v4364_v29  ;;  %v5113_v18 = vsel %vm2054_vm3, %v5110_v57, %v5112_v4  ;;  %v11154_v57 = vld [vmem:[%s13854_s16 + $0x190] sm:$0xff]  }
 0x7de   : > { %4374 = vrot.lane.b32.xlu0 %v4365_v63, %s13821_s11  ;;  %v5050_v28 = vsel %vm1977_vm2, %v5045_v17, %v5049_v51  ;;  %v5114_v23 = vrot.slane %v12574_v45, 1  ;;  %v5059_v27 = vshrl.u32 %v12580_v50, 16  ;;  %v5058_v29 = vsel %vm1977_vm2, %v5053_v19, %v5057_v21  ;;  %v11155_v51 = vld [vmem:[%s13854_s16 + $0x198] sm:$0xff]  }
 0x7df   : > { %v4370_v31 = vshll.u32 %v4349_v36, 16  ;;  %v4384_v13 = vrot.slane %v4349_v36, 1  ;;  %v5116_v34 = vrot.slane %v12580_v50, 1  ;;  %v5065_v36 = vrot.slane %v5063_v25, 1 }
 0x7e0   : > { %v5067_v63 = vshrl.u32 %v12586_v37, 16  ;;  %v5115_v39 = vsel %vm2054_vm3, %v5112_v4, %v5114_v23  ;;  %v5061_v41 = vor.u32 %v5059_v27, %v5057_v21  ;;  %v5118_v48 = vrot.slane %v12586_v37, 1  ;;  %v11157_v21 = vld [vmem:[%s13854_s16 + $0x1a8] sm:$0xff]  }
 0x7e1   : > { %v4372_v5 = vrot.slane %v4370_v31, 1  ;;  %v4385_v33 = vsel %vm2054_vm3, %v4382_v38, %v4384_v13  ;;  %v5071_v38 = vshll.u32 %v12591_v14, 16  ;;  %v5117_v20 = vsel %vm2054_vm3, %v5114_v23, %v5116_v34  ;;  %v11159_v23 = vld [vmem:[%s13860_s2 + $0x38] sm:$0xff]  }
 0x7e2   : > { %4386 = vrot.lane.b32.xlu0 %v4383_v56, %s13823_s15  ;;  %v5069_v44 = vor.u32 %v5067_v63, %v5065_v36  ;;  %v5066_v47 = vsel %vm1977_vm2, %v5061_v41, %v5065_v36  ;;  %v5075_v56 = vshrl.u32 %v12591_v14, 16  ;;  %v11160_v36 = vld [vmem:[%s13860_s2 + $0x40] sm:$0xff]   ;;  %v11162_v41 = vld [vmem:[%s13860_s2 + $0x50] sm:$0xff]  }
 0x7e3   : > { %v4373_v42 = vsel %vm1977_vm2, %v4368_v26, %v4372_v5  ;;  %v5073_v31 = vrot.slane %v5071_v38, 1  ;;  %v5120_v5 = vrot.slane %v12591_v14, 1  ;;  %v5119_v26 = vsel %vm2054_vm3, %v5116_v34, %v5118_v48  ;;  %v11161_v38 = vld [vmem:[%s13860_s2 + $0x48] sm:$0xff]  }
 0x7e4   : > { %4376 = vrot.lane.b32.xlu1 %v4373_v42, %s13821_s11 }
 0x7e5   : > { %v5074_v54 = vsel %vm1977_vm2, %v5069_v44, %v5073_v31  ;;  %v5121_v24 = vsel %vm2054_vm3, %v5118_v48, %v5120_v5  ;;  %v5077_v58 = vor.u32 %v5075_v56, %v5073_v31  ;;  %v11163_v31 = vld [vmem:[%s13860_s2 + $0x58] sm:$0xff]  }
 0x7e6   : > { %5078 = vrot.lane.b32.xlu0 %v5018_v60, %s13821_s11 }
 0x7e8   : > { %4388 = vrot.lane.b32.xlu1 %v4385_v33, %s13823_s15 }
 0x7ea   : > { %5082 = vrot.lane.b32.xlu0 %v5034_v35, %s13821_s11 }
 0x7ec   : > { %5080 = vrot.lane.b32.xlu1 %v5026_v2, %s13821_s11 }
 0x7ee   : > { %5124 = vrot.lane.b32.xlu0 %v5109_v3, %s13823_s15  ;;  %v11151_v3 = vld [vmem:[%s13854_s16 + $0x148] sm:$0xff]  }
 0x7f0   : > { %5122 = vrot.lane.b32.xlu1 %v5107_v46, %s13823_s15 }
 0x7f2   : > { %5084 = vrot.lane.b32.xlu0 %v5042_v15, %s13821_s11 }
 0x7f4   : > { %5126 = vrot.lane.b32.xlu1 %v5111_v7, %s13823_s15 }
 0x7f6   : > { %5128 = vrot.lane.b32.xlu0 %v5113_v18, %s13823_s15  ;;  %v11158_v18 = vld [vmem:[%s13860_s2 + $0x30] sm:$0xff]  }
 0x7f8   : > { %5086 = vrot.lane.b32.xlu1 %v5050_v28, %s13821_s11 }
 0x7fa   : > { %5088 = vrot.lane.b32.xlu0 %v5058_v29, %s13821_s11 }
 0x7fc   : > { %5130 = vrot.lane.b32.xlu1 %v5115_v39, %s13823_s15 }
 0x7fe   : > { %5132 = vrot.lane.b32.xlu0 %v5117_v20, %s13823_s15 }
 0x800   : > { %5090 = vrot.lane.b32.xlu1 %v5066_v47, %s13821_s11 }
 0x802   : > { %5092 = vrot.lane.b32.xlu0 %v5074_v54, %s13821_s11 }
 0x804   : > { %5134 = vrot.lane.b32.xlu1 %v5119_v26, %s13823_s15  ;;  %v11164_v26 = vld [vmem:[%s13860_s2] sm:$0xff]  }
 0x806   : > { %5136 = vrot.lane.b32.xlu0 %v5121_v24, %s13823_s15 }
 0x808   : > { %5094 = vrot.lane.b32.xlu1 %v5077_v58, %s13821_s11 }
 0x80c   : > { %5138 = vrot.lane.b32.xlu1 %v5120_v5, %s13823_s15 }
 0x850   : > { %v4375_v59 = vpop.permute.xlu0 %4374 }
 0x851   : > { %v4391_v60 = vsel %vm2082_vm4, %v12601_v62, %v4375_v59  ;;  %v11147_v62 = vld [vmem:[%s13854_s16 + $0x128] sm:$0xff]  }
 0x854   : > { %v4387_v13 = vpop.permute.xlu0 %4386 }
 0x855   : > { %v4395_v49 = vsel %vm2097_vm5, %v4391_v60, %v4387_v13 }
 0x856   : > { %v4377_v42 = vpop.permute.xlu1 %4376  ;;  %v4426_v30 = vrot.slane %v4395_v49, 5 }
 0x857   : > { %v4393_v35 = vsel %vm2082_vm4, %v12607_v9, %v4377_v42  ;;  %v11148_v9 = vld [vmem:[%s13854_s16 + $0x130] sm:$0xff]  }
 0x858   : > { %v5079_v46 = vpop.permute.xlu0 %5078 }
 0x859   : > { %v5141_v4 = vsel %vm2082_vm4, %v12544_v10, %v5079_v46 }
 0x85a   : > { %v4389_v40 = vpop.permute.xlu1 %4388 }
 0x85b   : > { %v4397_v33 = vsel %vm2097_vm5, %v4393_v35, %v4389_v40 }
 0x85c   : > { %v4427_v32 = vrot.slane %v4397_v33, 5  ;;  %v5083_v43 = vpop.permute.xlu0 %5082  ;;  %v4601_v10 = vrot.slane %v4397_v33, 2 }
 0x85d   : > { %v5145_v47 = vsel %vm2082_vm4, %v12557_v53, %v5083_v43  ;;  %v11165_v53 = vld [vmem:[%s13860_s2 + $0x8] sm:$0xff]  }
 0x85e   : > { %v4428_v2 = vsel %vm2143_vm6, %v4426_v30, %v4427_v32  ;;  %v5081_v8 = vpop.permute.xlu1 %5080 }
 0x85f   : > { %10153 = vmatmul.mubr.msk.bf16.vlgmr.msra.gmra.mrb[68].mxu1 %vm1448_vm1, %v4428_v2  ;;  %v5143_v7 = vsel %vm2082_vm4, %v12551_v55, %v5081_v8 }
 0x860   : > { %10157 = vmatpush3.bf16.msra.mxu1 %v11146_v0  ;;  %10168 = vmatprep.mubr.msk.bf16.mxu1 %vm11350_vm0, %v11349_v1  ;;  %v5125_v17 = vpop.permute.xlu0 %5124  ;;  %v11167_v0 = vld [vmem:[%s13860_s2 + $0x18] sm:$0xff]  }
 0x861   : > { %10158 = vmatprep.subr.bf16.mxu1 %v11349_v1  ;;  %v12731_v25 = vsel %vm2097_vm5, %v5143_v7, %v5125_v17  ;;  %v11171_v7 = vld [vmem:[%s13860_s2 + $0x68] sm:$0xff]   ;;  %v11172_v17 = vld [vmem:[%s13860_s2 + $0x70] sm:$0xff]  }
 0x862   : > { %v5123_v15 = vpop.permute.xlu1 %5122  ;;  %v5212_v55 = vrot.slane %v12731_v25, 6 }
 0x863   : > { %v12725_v19 = vsel %vm2097_vm5, %v5141_v4, %v5123_v15  ;;  %v11170_v15 = vld [vmem:[%s13860_s2 + $0x60] sm:$0xff]  }
 0x864   : > { %10159 = vmatpush3.bf16.msra.mxu1 %v11147_v62  ;;  %v5211_v28 = vrot.slane %v12725_v19, 6  ;;  %v5085_v27 = vpop.permute.xlu0 %5084 }
 0x865   : > { %10160 = vmatprep.subr.bf16.mxu1 %v11349_v1  ;;  %v5147_v48 = vsel %vm2082_vm4, %v12561_v16, %v5085_v27 }
 0x866   : > { %v5213_v29 = vsel %vm5210_vm8, %v5211_v28, %v5212_v55  ;;  %v5127_v34 = vpop.permute.xlu1 %5126 }
 0x867   : > { %v12748_v54 = vsel %vm2097_vm5, %v5145_v47, %v5127_v34  ;;  %v9018_v47 = vld [vmem:[%s13856_s0 + $0x2] ss:$0 sm:$0xff]  ;;  %s13867_s0 = sld [smem:[#allocation15_spill]] }
 0x868   : > { %10161 = vmatpush3.bf16.msra.mxu1 %v11148_v9  ;;  %v5129_v63 = vpop.permute.xlu0 %5128  ;;  %v5214_v24 = vrot.slane %v12748_v54, 6  ;;  %v5547_v28 = vrot.slane %v12748_v54, 4 }
 0x869   : > { %10162 = vmatprep.subr.bf16.mxu1 %v11349_v1  ;;  %v12751_v5 = vsel %vm2097_vm5, %v5147_v48, %v5129_v63 }
 0x86a   : > { %v5087_v39 = vpop.permute.xlu1 %5086  ;;  %v5216_v59 = vrot.slane %v12751_v5, 6  ;;  %v5215_v13 = vsel %vm5210_vm8, %v5212_v55, %v5214_v24 }
 0x86b   : > { %v5149_v16 = vsel %vm2082_vm4, %v12568_v6, %v5087_v39  ;;  %v11166_v6 = vld [vmem:[%s13860_s2 + $0x10] sm:$0xff]  }
 0x86c   : > { %10163 = vmatpush3.bf16.msra.mxu1 %v11149_v61  ;;  %v5089_v20 = vpop.permute.xlu0 %5088  ;;  %v5217_v35 = vsel %vm5210_vm8, %v5214_v24, %v5216_v59 }
 0x86d   : > { %10164 = vmatprep.subr.bf16.mxu1 %v11349_v1  ;;  %v5151_v42 = vsel %vm2082_vm4, %v12574_v45, %v5089_v20 }
 0x86e   : > { %v5131_v44 = vpop.permute.xlu1 %5130 }
 0x86f   : > { %v12763_v60 = vsel %vm2097_vm5, %v5149_v16, %v5131_v44 }
 0x870   : > { %10165 = vmatpush3.bf16.msra.mxu1 %v11150_v22  ;;  %v5133_v56 = vpop.permute.xlu0 %5132  ;;  %v5218_v45 = vrot.slane %v12763_v60, 6  ;;  %v5551_v27 = vrot.slane %v12763_v60, 4 }
 0x871   : > { %10166 = vmatprep.subr.bf16.mxu1 %v11349_v1  ;;  %v12768_v40 = vsel %vm2097_vm5, %v5151_v42, %v5133_v56  ;;  %v11176_v42 = vld [vmem:[%s13860_s2 + $0xc0] sm:$0xff]  }
 0x872   : > { %v5091_v58 = vpop.permute.xlu1 %5090  ;;  %v5220_v30 = vrot.slane %v12768_v40, 6  ;;  %v5219_v9 = vsel %vm5210_vm8, %v5216_v59, %v5218_v45  ;;  %10320 = vmatprep.subr.bf16.mxu0 %v11176_v42 }
 0x873   : > { %v5153_v2 = vsel %vm2082_vm4, %v12580_v50, %v5091_v58  ;;  %v11168_v50 = vld [vmem:[%s13860_s2 + $0x20] sm:$0xff]   ;;  %10321 = vmatpush3.bf16.msra.mxu0 %v11176_v42 }
 0x874   : > { %10167 = vmatpush3.bf16.msra.mxu1 %v11151_v3  ;;  %v5221_v3 = vsel %vm5210_vm8, %v5218_v45, %v5220_v30  ;;  %v11178_v45 = vld [vmem:[%s13860_s2 + $0xd0] sm:$0xff]  }
 0x875   : > { %10172 = vmatprep.subr.bf16.mxu1 %v11349_v1 }
 0x876   : > { %v5135_v33 = vpop.permute.xlu1 %5134 }
 0x877   : > { %10169 = vmatmul.mubr.msk.bf16.vlgmr.msra.gmra.mrb[68].mxu1 %vm1448_vm1, %v4395_v49  ;;  %v5093_v49 = vpop.permute.xlu0 %5092  ;;  %v12781_v22 = vsel %vm2097_vm5, %v5153_v2, %v5135_v33 }
 0x878   : > { %10173 = vmatpush3.bf16.msra.mxu1 %v11152_v11  ;;  %10184 = vmatprep.mubr.msk.bf16.mxu1 %vm11350_vm0, %v11349_v1  ;;  %v5155_v61 = vsel %vm2082_vm4, %v12586_v37, %v5093_v49  ;;  %v12856_v49 = vld [vmem:[%s13861_s7] ss:$0 sm:$0xff] }
 0x879   : > { %10174 = vmatprep.subr.bf16.mxu1 %v11349_v1 }
 0x87a   : > { %v5095_v62 = vpop.permute.xlu1 %5094 }
 0x87b   : > { %v5137_v32 = vpop.permute.xlu0 %5136  ;;  %v5157_v8 = vsel %vm2082_vm4, %v12591_v14, %v5095_v62 }
 0x87c   : > { %10175 = vmatpush3.bf16.msra.mxu1 %v11153_v52  ;;  %v12786_v11 = vsel %vm2097_vm5, %v5155_v61, %v5137_v32  ;;  %v5222_v52 = vrot.slane %v12781_v22, 6 }
 0x87d   : > { %10176 = vmatprep.subr.bf16.mxu1 %v11349_v1  ;;  %v5224_v37 = vrot.slane %v12786_v11, 6  ;;  %v5557_v39 = vrot.slane %v12786_v11, 4 }
 0x87e   : > { %v5139_v46 = vpop.permute.xlu1 %5138 }
 0x87f   : > { %v5175_v43 = vsel %vm2097_vm5, %v5157_v8, %v5139_v46 }
 0x880   : > { %10177 = vmatpush3.bf16.msra.mxu1 %v11154_v57  ;;  %v11169_v57 = vld [vmem:[%s13860_s2 + $0x28] sm:$0xff]   ;;  %v5226_v4 = vrot.slane %v5175_v43, 6 }
 0x881   : > { %10178 = vmatprep.subr.bf16.mxu1 %v11349_v1 }
 0x882   : > { %v5227_v14 = vsel %vm5210_vm8, %v5224_v37, %v5226_v4 }
 0x884   : > { %10179 = vmatpush3.bf16.msra.mxu1 %v11155_v51  ;;  %v5223_v51 = vsel %vm5210_vm8, %v5220_v30, %v5222_v52 }
 0x885   : > { %10180 = vmatprep.subr.bf16.mxu1 %v11349_v1 }
 0x888   : > { %10181 = vmatpush3.bf16.msra.mxu1 %v11156_v12  ;;  %v5225_v12 = vsel %vm5210_vm8, %v5222_v52, %v5224_v37 }
 0x889   : > { %10182 = vmatprep.subr.bf16.mxu1 %v11349_v1 }
 0x88c   : > { %10183 = vmatpush3.bf16.msra.mxu1 %v11157_v21  ;;  %v11173_v21 = vld [vmem:[%s13860_s2 + $0x78] sm:$0xff]  }
 0x88d   : > { %10236 = vmatprep.subr.bf16.mxu1 %v11158_v18 }
 0x88f   : > { %10185 = vmatmul.mubr.msk.bf16.vlgmr.msra.gmra.mrb[68].mxu1 %vm1448_vm1, %v4601_v10  ;;  %v5546_v10 = vrot.slane %v12731_v25, 4 }
 0x890   : > { %10237 = vmatpush3.bf16.msra.mxu1 %v11158_v18  ;;  %10248 = vmatprep.mubr.msk.bf16.mxu1 %vm1448_vm1, %v5213_v29  ;;  %v11175_v18 = vld [vmem:[%s13860_s2 + $0x88] sm:$0xff]  }
 0x891   : > { %10238 = vmatprep.subr.bf16.mxu1 %v11159_v23  ;;  %v5548_v55 = vsel %vm5545_vm9, %v5546_v10, %v5547_v28 }
 0x894   : > { %10239 = vmatpush3.bf16.msra.mxu1 %v11159_v23  ;;  %v5549_v23 = vrot.slane %v12751_v5, 4 }
 0x895   : > { %10240 = vmatprep.subr.bf16.mxu1 %v11160_v36 }
 0x896   : > { %v5550_v29 = vsel %vm5545_vm9, %v5547_v28, %v5549_v23  ;;  %v5552_v34 = vsel %vm5545_vm9, %v5549_v23, %v5551_v27 }
 0x898   : > { %10241 = vmatpush3.bf16.msra.mxu1 %v11160_v36  ;;  %v5555_v36 = vrot.slane %v12781_v22, 4 }
 0x899   : > { %10242 = vmatprep.subr.bf16.mxu1 %v11161_v38 }
 0x89a   : > { %v5558_v20 = vsel %vm5545_vm9, %v5555_v36, %v5557_v39 }
 0x89c   : > { %10243 = vmatpush3.bf16.msra.mxu1 %v11161_v38 }
 0x89d   : > { %10244 = vmatprep.subr.bf16.mxu1 %v11162_v41 }
 0x8a0   : > { %10245 = vmatpush3.bf16.msra.mxu1 %v11162_v41  ;;  %v5559_v41 = vrot.slane %v5175_v43, 4  ;;  %v11179_v43 = vld [vmem:[%s13860_s2 + $0xd8] sm:$0xff]  }
 0x8a1   : > { %10246 = vmatprep.subr.bf16.mxu1 %v11163_v31 }
 0x8a2   : > { %v5560_v44 = vsel %vm5545_vm9, %v5557_v39, %v5559_v41 }
 0x8a4   : > { %10247 = vmatpush3.bf16.msra.mxu1 %v11163_v31  ;;  %v9017_v31 = vld [vmem:[%s13855_s18 + $0x2] ss:$0 sm:$0xff] }
 0x8a5   : > { %10264 = vmatprep.subr.bf16.mxu1 %v11164_v26 }
 0x8a7   : > { %10249 = vmatmul.mubr.msk.bf16.vlgmr.msra.gmra.mrb[72].mxu1 %vm1448_vm1, %v5215_v13 }
 0x8a8   : > { %10252 = vmatprep.mubr.msk.bf16.mxu1 %vm1448_vm1, %v5217_v35  ;;  %10265 = vmatpush3.bf16.msra.mxu1 %v11164_v26  ;;  %v12859_v35 = vld [vmem:[%s13862_s10] ss:$0 sm:$0xff] }
 0x8a9   : > { %10266 = vmatprep.subr.bf16.mxu1 %v11165_v53 }
 0x8ac   : > { %10267 = vmatpush3.bf16.msra.mxu1 %v11165_v53 }
 0x8ad   : > { %10268 = vmatprep.subr.bf16.mxu1 %v11166_v6 }
 0x8af   : > { %10253 = vmatmul.mubr.msk.bf16.gmra.mrb[76].mxu1 %vm1448_vm1, %v5219_v9 }
 0x8b0   : > { %10256 = vmatprep.mubr.msk.bf16.mxu1 %vm1448_vm1, %v5221_v3  ;;  %10269 = vmatpush3.bf16.msra.mxu1 %v11166_v6 }
 0x8b1   : > { %10270 = vmatprep.subr.bf16.mxu1 %v11167_v0 }
 0x8b4   : > { %10271 = vmatpush3.bf16.msra.mxu1 %v11167_v0 }
 0x8b5   : > { %10272 = vmatprep.subr.bf16.mxu1 %v11168_v50 }
 0x8b7   : > { %10257 = vmatmul.mubr.msk.bf16.gmra.mrb[80].mxu1 %vm1448_vm1, %v5223_v51 }
 0x8b8   : > { %10260 = vmatprep.mubr.msk.bf16.mxu1 %vm1448_vm1, %v5225_v12  ;;  %10273 = vmatpush3.bf16.msra.mxu1 %v11168_v50 }
 0x8b9   : > { %10274 = vmatprep.subr.bf16.mxu1 %v11169_v57 }
 0x8bc   : > { %10275 = vmatpush3.bf16.msra.mxu1 %v11169_v57 }
 0x8bd   : > { %10292 = vmatprep.subr.bf16.mxu1 %v11170_v15 }
 0x8bf   : > { %10261 = vmatmul.mubr.msk.bf16.gmra.mrb[84].mxu1 %vm1448_vm1, %v5227_v14 }
 0x8c0   : > { %10276 = vmatprep.mubr.msk.bf16.mxu1 %vm1448_vm1, %v12725_v19  ;;  %v11174_v19 = vld [vmem:[%s13860_s2 + $0x80] sm:$0xff]  }
 0x8c7   : > { %10277 = vmatmul.mubr.msk.bf16.vlgmr.msra.gmra.mrb[72].mxu1 %vm1448_vm1, %v12731_v25  ;;  %v5553_v25 = vrot.slane %v12768_v40, 4 }
 0x8c8   : > { %10280 = vmatprep.mubr.msk.bf16.mxu1 %vm1448_vm1, %v12748_v54  ;;  %10293 = vmatpush3.bf16.msra.mxu1 %v11170_v15 }
 0x8c9   : > { %10294 = vmatprep.subr.bf16.mxu1 %v11171_v7  ;;  %v5554_v63 = vsel %vm5545_vm9, %v5551_v27, %v5553_v25  ;;  %v5556_v38 = vsel %vm5545_vm9, %v5553_v25, %v5555_v36 }
 0x8cc   : > { %10295 = vmatpush3.bf16.msra.mxu1 %v11171_v7 }
 0x8cd   : > { %10296 = vmatprep.subr.bf16.mxu1 %v11172_v17 }
 0x8cf   : > { %10281 = vmatmul.mubr.msk.bf16.gmra.mrb[76].mxu1 %vm1448_vm1, %v12751_v5 }
 0x8d0   : > { %10284 = vmatprep.mubr.msk.bf16.mxu1 %vm1448_vm1, %v12763_v60  ;;  %10297 = vmatpush3.bf16.msra.mxu1 %v11172_v17  ;;  %v11177_v60 = vld [vmem:[%s13860_s2 + $0xc8] sm:$0xff]  }
 0x8d1   : > { %10298 = vmatprep.subr.bf16.mxu1 %v11173_v21  ;;  %10322 = vmatprep.subr.bf16.mxu0 %v11177_v60 }
 0x8d2   : > { %10323 = vmatpush3.bf16.msra.mxu0 %v11177_v60 }
 0x8d3   : > { %10324 = vmatprep.subr.bf16.mxu0 %v11178_v45 }
 0x8d4   : > { %10299 = vmatpush3.bf16.msra.mxu1 %v11173_v21 }
 0x8d5   : > { %10300 = vmatprep.subr.bf16.mxu1 %v11174_v19 }
 0x8d6   : > { %10325 = vmatpush3.bf16.msra.mxu0 %v11178_v45 }
 0x8d7   : > { %10285 = vmatmul.mubr.msk.bf16.gmra.mrb[80].mxu1 %vm1448_vm1, %v12768_v40  ;;  %10326 = vmatprep.subr.bf16.mxu0 %v11179_v43 }
 0x8d8   : > { %10288 = vmatprep.mubr.msk.bf16.mxu1 %vm1448_vm1, %v12781_v22  ;;  %10301 = vmatpush3.bf16.msra.mxu1 %v11174_v19 }
 0x8d9   : > { %10302 = vmatprep.subr.bf16.mxu1 %v11175_v18 }
 0x8da   : > { %10327 = vmatpush3.bf16.msra.mxu0 %v11179_v43 }
 0x8dc   : > { %10303 = vmatpush3.bf16.msra.mxu1 %v11175_v18 }
 0x8dd   : > { %10392 = vmatprep.subr.bf16.mxu1 %v11349_v1 }
 0x8df   : > { %10289 = vmatmul.mubr.msk.bf16.gmra.mrb[84].mxu1 %vm1448_vm1, %v12786_v11 }
 0x8e0   : > { %10304 = vmatprep.mubr.msk.bf16.mxu1 %vm1448_vm1, %v5548_v55 }
 0x8e7   : > { %10305 = vmatmul.mubr.msk.bf16.vlgmr.msra.gmra.mrb[72].mxu1 %vm1448_vm1, %v5550_v29 }
 0x8e8   : > { %10308 = vmatprep.mubr.msk.bf16.mxu1 %vm1448_vm1, %v5552_v34  ;;  %v11180_v34 = vld [vmem:[%s13860_s2 + $0xe0] sm:$0xff]  }
 0x8e9   : > { %10328 = vmatprep.subr.bf16.mxu0 %v11180_v34 }
 0x8ea   : > { %10329 = vmatpush3.bf16.msra.mxu0 %v11180_v34 }
 0x8ef   : > { %10309 = vmatmul.mubr.msk.bf16.gmra.mrb[76].mxu1 %vm1448_vm1, %v5554_v63 }
 0x8f0   : > { %10312 = vmatprep.mubr.msk.bf16.mxu1 %vm1448_vm1, %v5556_v38 }
 0x8f7   : > { %10313 = vmatmul.mubr.msk.bf16.gmra.mrb[80].mxu1 %vm1448_vm1, %v5558_v20 }
 0x8f8   : > { %10316 = vmatprep.mubr.msk.bf16.mxu1 %vm1448_vm1, %v5560_v44 }
 0x8ff   : > { %10317 = vmatmul.mubr.msk.bf16.gmra.mrb[84].mxu1 %vm1448_vm1, %v5559_v41 }
 0x900   : > { %10404 = vmatprep.mubr.msk.bf16.mxu1 %vm11350_vm0, %v11349_v1 }
 0x962   : > { %v4675_v48 = vpop.f32.mrb[68].mxu1 }
 0x963   : > { %v4690_v54 = vmul.f32 %v9017_v31, %v4675_v48  ;;  %v10186_v5 = vpop.f32.mrb[69].mxu1 }
 0x964   : > { %v4678_v56 = vpop.f32.mrb[70].mxu1  ;;  %v11181_v5 = vld [vmem:[%s13860_s2 + $0xe8] sm:$0xff]  }
 0x965   : > { %v4698_v26 = vadd.f32 %v9018_v47, %v4690_v54  ;;  %v4691_v24 = vmul.f32 %v9017_v31, %v4678_v56  ;;  %v10187_v58 = vpop.f32.mrb[71].mxu1  ;;  %10330 = vmatprep.subr.bf16.mxu0 %v11181_v5 }
 0x966   : > { %10331 = vmatpush3.bf16.msra.mxu0 %v11181_v5 }
 0x967   : > { %v4699_v59 = vadd.f32 %v9018_v47, %v4691_v24  ;;  %v4700_v53 = vmax.f32 %v4698_v26, 0.0 }
 0x969   : > { %v4701_v16 = vmax.f32 %v4699_v59, 0.0 }
 0x96b   : > { %v12851_v13 = vpack.c.bf16 %v4701_v16, %v4700_v53 }
 0x9ba   : > { %v10306_v40 = vpop.f32.mrb[72].mxu1 }
 0x9bb   : > { %v5740_v33 = vmul.f32 %v10306_v40, %v12856_v49  ;;  %v5655_v6 = vpop.f32.mrb[73].mxu1 }
 0x9bc   : > { %v5738_v30 = vmul.f32 %v12856_v49, %v5655_v6  ;;  %v10307_v32 = vpop.f32.mrb[74].mxu1 }
 0x9bd   : > { %v5761_v0 = vadd.f32 %v12859_v35, %v5740_v33  ;;  %v5741_v2 = vmul.f32 %v10307_v32, %v12856_v49  ;;  %v5658_v62 = vpop.f32.mrb[75].mxu1 }
 0x9be   : > { %v5759_v9 = vadd.f32 %v12859_v35, %v5738_v30  ;;  %v5739_v61 = vmul.f32 %v12856_v49, %v5658_v62 }
 0x9bf   : > { %v5762_v22 = vadd.f32 %v12859_v35, %v5741_v2  ;;  %v5776_v11 = vmax.f32 %v5761_v0, 0.0 }
 0x9c0   : > { %v5760_v3 = vadd.f32 %v12859_v35, %v5739_v61  ;;  %v5774_v52 = vmax.f32 %v5759_v9, 0.0  ;;  %v12913_v61 = vld [vmem:[%s13860_s2 + $0x90] sm:$0xff]  }
 0x9c1   : > { %v5777_v50 = vmax.f32 %v5762_v22, 0.0  ;;  %10344 = vmatprep.subr.bf16.mxu0 %v12913_v61 }
 0x9c2   : > { %v5775_v37 = vmax.f32 %v5760_v3, 0.0  ;;  %v10310_v46 = vpop.f32.mrb[76].mxu1 }
 0x9c3   : > { %v12870_v57 = vpack.c.bf16 %v5777_v50, %v5776_v11  ;;  %v5744_v8 = vmul.f32 %v10310_v46, %v12856_v49  ;;  %v5671_v51 = vpop.f32.mrb[77].mxu1 }
 0x9c4   : > { %v12874_v12 = vpack.c.bf16 %v5775_v37, %v5774_v52  ;;  %v5742_v15 = vmul.f32 %v12856_v49, %v5671_v51  ;;  %v10311_v4 = vpop.f32.mrb[78].mxu1 }
 0x9c5   : > { %v5765_v14 = vadd.f32 %v12859_v35, %v5744_v8  ;;  %v5745_v7 = vmul.f32 %v10311_v4, %v12856_v49  ;;  %v5674_v17 = vpop.f32.mrb[79].mxu1  ;;  %v5889_v21 = vrot.slane %v12870_v57, 1  ;;  %v5809_v23 = vshll.u32 %v12870_v57, 16 }
 0x9c6   : > { %v5763_v19 = vadd.f32 %v12859_v35, %v5742_v15  ;;  %v5743_v18 = vmul.f32 %v12856_v49, %v5674_v17  ;;  %v5888_v28 = vrot.slane %v12874_v12, 1  ;;  %v5804_v55 = vshll.u32 %v12874_v12, 16 }
 0x9c7   : > { %v5766_v10 = vadd.f32 %v12859_v35, %v5745_v7  ;;  %v5780_v25 = vmax.f32 %v5765_v14, 0.0  ;;  %v5802_v63 = vshrl.u32 %v12874_v12, 16  ;;  %v5811_v54 = vrot.slane %v5809_v23, 1 }
 0x9c8   : > { %v5764_v27 = vadd.f32 %v12859_v35, %v5743_v18  ;;  %v5890_v29 = vsel %vm2054_vm3, %v5888_v28, %v5889_v21  ;;  %v5806_v38 = vrot.slane %v5804_v55, 1  ;;  %v5778_v39 = vmax.f32 %v5763_v19, 0.0 }
 0x9c9   : > { %v5781_v36 = vmax.f32 %v5766_v10, 0.0  ;;  %5903 = vrot.lane.b32.xlu1 %v5890_v29, %s13823_s15  ;;  %v5813_v58 = vshrl.u32 %v12870_v57, 16 }
 0x9ca   : > { %v5779_v41 = vmax.f32 %v5764_v27, 0.0  ;;  %v10314_v20 = vpop.f32.mrb[80].mxu1  ;;  %v5807_v48 = vor.u32 %v5806_v38, %v5802_v63 }
 0x9cb   : > { %v12891_v44 = vpack.c.bf16 %v5781_v36, %v5780_v25  ;;  %v5748_v31 = vmul.f32 %v10314_v20, %v12856_v49  ;;  %v5687_v47 = vpop.f32.mrb[81].mxu1  ;;  %v5815_v32 = vor.u32 %v5813_v58, %v5811_v54 }
 0x9cc   : > { %v12895_v56 = vpack.c.bf16 %v5779_v41, %v5778_v39  ;;  %v5746_v26 = vmul.f32 %v12856_v49, %v5687_v47  ;;  %v10315_v24 = vpop.f32.mrb[82].mxu1  ;;  %v5812_v16 = vsel %vm1977_vm2, %v5807_v48, %v5811_v54 }
 0x9cd   : > { %v5769_v59 = vadd.f32 %v12859_v35, %v5748_v31  ;;  %v5749_v53 = vmul.f32 %v10315_v24, %v12856_v49  ;;  %v5690_v42 = vpop.f32.mrb[83].mxu1  ;;  %v5825_v60 = vshll.u32 %v12891_v44, 16  ;;  %5864 = vrot.lane.b32.xlu0 %v5812_v16, %s13821_s11  ;;  %v5893_v51 = vrot.slane %v12891_v44, 1 }
 0x9ce   : > { %v5767_v40 = vadd.f32 %v12859_v35, %v5746_v26  ;;  %v5747_v33 = vmul.f32 %v12856_v49, %v5690_v42  ;;  %v5891_v6 = vrot.slane %v12895_v56, 1  ;;  %v5817_v45 = vshll.u32 %v12895_v56, 16 }
 0x9cf   : > { %v5770_v30 = vadd.f32 %v12859_v35, %v5749_v53  ;;  %v5821_v9 = vshrl.u32 %v12895_v56, 16  ;;  %v5784_v22 = vmax.f32 %v5769_v59, 0.0  ;;  %v5827_v50 = vrot.slane %v5825_v60, 1 }
 0x9d0   : > { %v5768_v0 = vadd.f32 %v12859_v35, %v5747_v33  ;;  %v5892_v2 = vsel %vm2054_vm3, %v5889_v21, %v5891_v6  ;;  %v5819_v62 = vrot.slane %v5817_v45, 1  ;;  %v5782_v3 = vmax.f32 %v5767_v40, 0.0 }
 0x9d1   : > { %v5785_v11 = vmax.f32 %v5770_v30, 0.0  ;;  %5905 = vrot.lane.b32.xlu0 %v5892_v2, %s13823_s15  ;;  %v5829_v28 = vshrl.u32 %v12891_v44, 16  ;;  %v5894_v27 = vsel %vm2054_vm3, %v5891_v6, %v5893_v51 }
 0x9d2   : > { %v5783_v52 = vmax.f32 %v5768_v0, 0.0  ;;  %v10318_v37 = vpop.f32.mrb[84].mxu1  ;;  %v5820_v46 = vsel %vm1977_vm2, %v5815_v32, %v5819_v62  ;;  %v5823_v8 = vor.u32 %v5821_v9, %v5819_v62 }
 0x9d3   : > { %v12919_v43 = vpack.c.bf16 %v5785_v11, %v5784_v22  ;;  %v5752_v15 = vmul.f32 %v10318_v37, %v12856_v49  ;;  %5866 = vrot.lane.b32.xlu1 %v5820_v46, %s13821_s11  ;;  %v5703_v4 = vpop.f32.mrb[85].mxu1  ;;  %v5831_v36 = vor.u32 %v5829_v28, %v5827_v50 }
 0x9d4   : > { %v12923_v14 = vpack.c.bf16 %v5783_v52, %v5782_v3  ;;  %v5750_v7 = vmul.f32 %v12856_v49, %v5703_v4  ;;  %v10319_v17 = vpop.f32.mrb[86].mxu1  ;;  %v5828_v21 = vsel %vm1977_vm2, %v5823_v8, %v5827_v50 }
 0x9d5   : > { %v5773_v19 = vadd.f32 %v12859_v35, %v5752_v15  ;;  %v5706_v18 = vpop.f32.mrb[87].mxu1  ;;  %v5841_v10 = vshll.u32 %v12919_v43, 16  ;;  %5868 = vrot.lane.b32.xlu0 %v5828_v21, %s13821_s11  ;;  %v5897_v5 = vrot.slane %v12919_v43, 1  ;;  %v5845_v24 = vshrl.u32 %v12919_v43, 16 }
 0x9d6   : > { %v5771_v55 = vadd.f32 %v12859_v35, %v5750_v7  ;;  %v5751_v23 = vmul.f32 %v12856_v49, %v5706_v18  ;;  %v5833_v29 = vshll.u32 %v12923_v14, 16  ;;  %v5837_v38 = vshrl.u32 %v12923_v14, 16 }
 0x9d7   : > { %v5788_v34 = vmax.f32 %v5773_v19, 0.0  ;;  %5907 = vrot.lane.b32.xlu1 %v5894_v27, %s13823_s15  ;;  %v5843_v41 = vrot.slane %v5841_v10, 1  ;;  %v5895_v20 = vrot.slane %v12923_v14, 1 }
 0x9d8   : > { %v5772_v25 = vadd.f32 %v12859_v35, %v5751_v23  ;;  %v5835_v63 = vrot.slane %v5833_v29, 1  ;;  %v5786_v39 = vmax.f32 %v5771_v55, 0.0 }
 0x9d9   : > { %v12939_v31 = vpack.c.bf16 %v5788_v34, %v5788_v34  ;;  %v5896_v26 = vsel %vm2054_vm3, %v5893_v51, %v5895_v20  ;;  %v5898_v53 = vsel %vm2054_vm3, %v5895_v20, %v5897_v5  ;;  %v5847_v16 = vor.u32 %v5845_v24, %v5843_v41  ;;  %v11187_v24 = vld [vmem:[%s13860_s2 + $0xb8] sm:$0xff]  }
 0x9da   : > { %v5787_v49 = vmax.f32 %v5772_v25, 0.0  ;;  %v5836_v47 = vsel %vm1977_vm2, %v5831_v36, %v5835_v63  ;;  %v5839_v48 = vor.u32 %v5837_v38, %v5835_v63 }
 0x9db   : > { %5870 = vrot.lane.b32.xlu0 %v5836_v47, %s13821_s11  ;;  %v5857_v59 = vshll.u32 %v12939_v31, 16  ;;  %v5901_v0 = vrot.slane %v12939_v31, 1  ;;  %v5861_v2 = vshrl.u32 %v12939_v31, 16 }
 0x9dc   : > { %v12943_v54 = vpack.c.bf16 %v5787_v49, %v5786_v39  ;;  %v5844_v35 = vsel %vm1977_vm2, %v5839_v48, %v5843_v41  ;;  %v11186_v41 = vld [vmem:[%s13860_s2 + $0xb0] sm:$0xff]  }
 0x9dd   : > { %5872 = vrot.lane.b32.xlu1 %v5844_v35, %s13821_s11  ;;  %v5859_v6 = vrot.slane %v5857_v59, 1 }
 0x9de   : > { %v5849_v58 = vshll.u32 %v12943_v54, 16  ;;  %v5853_v60 = vshrl.u32 %v12943_v54, 16  ;;  %v5899_v45 = vrot.slane %v12943_v54, 1 }
 0x9df   : > { %5909 = vrot.lane.b32.xlu0 %v5896_v26, %s13823_s15  ;;  %v5863_v9 = vor.u32 %v5861_v2, %v5859_v6 }
 0x9e0   : > { %v5851_v42 = vrot.slane %v5849_v58, 1  ;;  %v5900_v32 = vsel %vm2054_vm3, %v5897_v5, %v5899_v45  ;;  %v5902_v62 = vsel %vm2054_vm3, %v5899_v45, %v5901_v0 }
 0x9e1   : > { %5911 = vrot.lane.b32.xlu1 %v5898_v53, %s13823_s15  ;;  %v11189_v53 = vld [vmem:[%s13860_s2 + $0xf8] sm:$0xff]  }
 0x9e2   : > { %v5852_v40 = vsel %vm1977_vm2, %v5847_v16, %v5851_v42  ;;  %v5855_v33 = vor.u32 %v5853_v60, %v5851_v42  ;;  %v11190_v16 = vld [vmem:[%s13860_s2 + $0x100] sm:$0xff]   ;;  %v11191_v42 = vld [vmem:[%s13860_s2 + $0x108] sm:$0xff]   ;;  %v11192_v60 = vld [vmem:[%s13860_s2 + $0x110] sm:$0xff]  }
 0x9e3   : > { %5874 = vrot.lane.b32.xlu0 %v5852_v40, %s13821_s11 }
 0x9e4   : > { %v5860_v30 = vsel %vm1977_vm2, %v5855_v33, %v5859_v6  ;;  %v11193_v6 = vld [vmem:[%s13860_s2 + $0x118] sm:$0xff]  }
 0x9e5   : > { %5876 = vrot.lane.b32.xlu1 %v5860_v30, %s13821_s11 }
 0x9e7   : > { %5913 = vrot.lane.b32.xlu0 %v5900_v32, %s13823_s15 }
 0x9e9   : > { %5915 = vrot.lane.b32.xlu1 %v5902_v62, %s13823_s15 }
 0x9eb   : > { %5878 = vrot.lane.b32.xlu0 %v5863_v9, %s13821_s11 }
 0x9ed   : > { %5917 = vrot.lane.b32.xlu1 %v5901_v0, %s13823_s15 }
 0xa3b   : > { %v5904_v3 = vpop.permute.xlu1 %5903 }
 0xa3f   : > { %v5865_v22 = vpop.permute.xlu0 %5864 }
 0xa40   : > { %v5920_v11 = vsel %vm2082_vm4, %v12874_v12, %v5865_v22 }
 0xa41   : > { %v5936_v52 = vsel %vm2097_vm5, %v5920_v11, %v5904_v3 }
 0xa42   : > { %v5984_v51 = vrot.slane %v5936_v52, 6 }
 0xa43   : > { %v5906_v50 = vpop.permute.xlu0 %5905 }
 0xa45   : > { %v5867_v37 = vpop.permute.xlu1 %5866 }
 0xa46   : > { %v5922_v46 = vsel %vm2082_vm4, %v12870_v57, %v5867_v37  ;;  %v11183_v57 = vld [vmem:[%s13860_s2 + $0x98] sm:$0xff]  }
 0xa47   : > { %v12975_v8 = vsel %vm2097_vm5, %v5922_v46, %v5906_v50  ;;  %v5869_v4 = vpop.permute.xlu0 %5868 }
 0xa48   : > { %v5985_v15 = vrot.slane %v12975_v8, 6  ;;  %v5924_v7 = vsel %vm2082_vm4, %v12895_v56, %v5869_v4  ;;  %v11184_v56 = vld [vmem:[%s13860_s2 + $0xa0] sm:$0xff]   ;;  %v6275_v33 = vrot.slane %v12975_v8, 4 }
 0xa49   : > { %v5908_v17 = vpop.permute.xlu1 %5907  ;;  %v13065_v4 = vld [vmem:[%s13861_s7 + $0x1] ss:$0 sm:$0xff] }
 0xa4a   : > { %v12981_v12 = vsel %vm2097_vm5, %v5924_v7, %v5908_v17  ;;  %v5986_v21 = vsel %vm5210_vm8, %v5984_v51, %v5985_v15  ;;  %v11195_v51 = vld [vmem:[%s13860_s2 + $0x158] sm:$0xff]   ;;  %v13068_v7 = vld [vmem:[%s13862_s10 + $0x1] ss:$0 sm:$0xff] }
 0xa4b   : > { %v5987_v19 = vrot.slane %v12981_v12, 6  ;;  %10332 = vmatprep.mubr.msk.bf16.mxu0 %vm1448_vm1, %v5986_v21  ;;  %v6276_v40 = vrot.slane %v12981_v12, 4 }
 0xa4d   : > { %v5871_v18 = vpop.permute.xlu0 %5870  ;;  %v5988_v28 = vsel %vm5210_vm8, %v5985_v15, %v5987_v19  ;;  %v6277_v45 = vsel %vm5545_vm9, %v6275_v33, %v6276_v40  ;;  %v11196_v15 = vld [vmem:[%s13860_s2 + $0x160] sm:$0xff]  }
 0xa4e   : > { %10333 = vmatmul.mubr.msk.bf16.vlgmr.msra.gmra.mrb[84].mxu0 %vm1448_vm1, %v5988_v28  ;;  %v5926_v55 = vsel %vm2082_vm4, %v12891_v44, %v5871_v18 }
 0xa4f   : > { %v5873_v10 = vpop.permute.xlu1 %5872  ;;  %10345 = vmatpush3.bf16.msra.mxu0 %v12913_v61  ;;  %v11185_v61 = vld [vmem:[%s13860_s2 + $0xa8] sm:$0xff]  }
 0xa50   : > { %10346 = vmatprep.subr.bf16.mxu0 %v11183_v57  ;;  %v5928_v29 = vsel %vm2082_vm4, %v12923_v14, %v5873_v10 }
 0xa51   : > { %v5910_v23 = vpop.permute.xlu0 %5909 }
 0xa52   : > { %v12994_v27 = vsel %vm2097_vm5, %v5926_v55, %v5910_v23 }
 0xa53   : > { %v5989_v34 = vrot.slane %v12994_v27, 6  ;;  %v5912_v25 = vpop.permute.xlu1 %5911  ;;  %10347 = vmatpush3.bf16.msra.mxu0 %v11183_v57  ;;  %v6278_v30 = vrot.slane %v12994_v27, 4 }
 0xa54   : > { %v13000_v36 = vsel %vm2097_vm5, %v5928_v29, %v5912_v25  ;;  %10348 = vmatprep.subr.bf16.mxu0 %v11184_v56  ;;  %v11197_v29 = vld [vmem:[%s13860_s2 + $0x168] sm:$0xff]  }
 0xa55   : > { %v5991_v63 = vrot.slane %v13000_v36, 6  ;;  %v5875_v44 = vpop.permute.xlu0 %5874  ;;  %v5990_v38 = vsel %vm5210_vm8, %v5987_v19, %v5989_v34  ;;  %v6280_v32 = vrot.slane %v13000_v36, 4  ;;  %v6279_v0 = vsel %vm5545_vm9, %v6276_v40, %v6278_v30 }
 0xa56   : > { %10336 = vmatprep.mubr.msk.bf16.mxu0 %vm1448_vm1, %v5990_v38  ;;  %v5930_v20 = vsel %vm2082_vm4, %v12919_v43, %v5875_v44 }
 0xa57   : > { %v5877_v39 = vpop.permute.xlu1 %5876  ;;  %v5992_v14 = vsel %vm5210_vm8, %v5989_v34, %v5991_v63  ;;  %10349 = vmatpush3.bf16.msra.mxu0 %v11184_v56  ;;  %v6281_v2 = vsel %vm5545_vm9, %v6278_v30, %v6280_v32 }
 0xa58   : > { %10337 = vmatmul.mubr.msk.bf16.gmra.mrb[88].mxu0 %vm1448_vm1, %v5992_v14  ;;  %10350 = vmatprep.subr.bf16.mxu0 %v11185_v61  ;;  %v5932_v48 = vsel %vm2082_vm4, %v12943_v54, %v5877_v39  ;;  %v11188_v54 = vld [vmem:[%s13860_s2 + $0xf0] sm:$0xff]  }
 0xa59   : > { %v5914_v49 = vpop.permute.xlu0 %5913 }
 0xa5a   : > { %v5946_v47 = vsel %vm2097_vm5, %v5930_v20, %v5914_v49 }
 0xa5b   : > { %v5993_v35 = vrot.slane %v5946_v47, 6  ;;  %v5916_v5 = vpop.permute.xlu1 %5915  ;;  %10351 = vmatpush3.bf16.msra.mxu0 %v11185_v61  ;;  %v6282_v9 = vrot.slane %v5946_v47, 4 }
 0xa5c   : > { %v5948_v26 = vsel %vm2097_vm5, %v5932_v48, %v5916_v5  ;;  %10352 = vmatprep.subr.bf16.mxu0 %v11186_v41 }
 0xa5d   : > { %v5995_v58 = vrot.slane %v5948_v26, 6  ;;  %v5994_v59 = vsel %vm5210_vm8, %v5991_v63, %v5993_v35  ;;  %v5879_v62 = vpop.permute.xlu0 %5878  ;;  %v6284_v22 = vrot.slane %v5948_v26, 4  ;;  %v6283_v50 = vsel %vm5545_vm9, %v6280_v32, %v6282_v9 }
 0xa5e   : > { %10340 = vmatprep.mubr.msk.bf16.mxu0 %vm1448_vm1, %v5994_v59  ;;  %v5934_v3 = vsel %vm2082_vm4, %v12939_v31, %v5879_v62  ;;  %v11194_v31 = vld [vmem:[%s13860_s2 + $0x150] sm:$0xff]  }
 0xa5f   : > { %v5996_v43 = vsel %vm5210_vm8, %v5993_v35, %v5995_v58  ;;  %10353 = vmatpush3.bf16.msra.mxu0 %v11186_v41  ;;  %v5918_v11 = vpop.permute.xlu1 %5917  ;;  %v6285_v37 = vsel %vm5545_vm9, %v6282_v9, %v6284_v22  ;;  %10393 = vmatpush3.bf16.msra.mxu1 %v11194_v31  ;;  %v11198_v58 = vld [vmem:[%s13860_s2 + $0x170] sm:$0xff]   ;;  %v11199_v9 = vld [vmem:[%s13860_s2 + $0x178] sm:$0xff]  }
 0xa60   : > { %10341 = vmatmul.mubr.msk.bf16.gmra.mrb[92].mxu0 %vm1448_vm1, %v5996_v43  ;;  %10354 = vmatprep.subr.bf16.mxu0 %v11187_v24 }
 0xa61   : > { %10356 = vmatprep.mubr.msk.bf16.mxu0 %vm1448_vm1, %v5936_v52  ;;  %v5950_v52 = vsel %vm2097_vm5, %v5934_v3, %v5918_v11  ;;  %10394 = vmatprep.subr.bf16.mxu1 %v11349_v1 }
 0xa62   : > { %v6286_v46 = vrot.slane %v5950_v52, 4 }
 0xa63   : > { %10355 = vmatpush3.bf16.msra.mxu0 %v11187_v24  ;;  %10395 = vmatpush3.bf16.msra.mxu1 %v11195_v51 }
 0xa64   : > { %10368 = vmatprep.subr.bf16.mxu0 %v11188_v54  ;;  %10396 = vmatprep.subr.bf16.mxu1 %v11349_v1 }
 0xa67   : > { %10397 = vmatpush3.bf16.msra.mxu1 %v11196_v15 }
 0xa68   : > { %10357 = vmatmul.mubr.msk.bf16.vlgmr.msra.gmra.mrb[84].mxu0 %vm1448_vm1, %v12975_v8  ;;  %v6287_v8 = vsel %vm5545_vm9, %v6284_v22, %v6286_v46  ;;  %10398 = vmatprep.subr.bf16.mxu1 %v11349_v1 }
 0xa69   : > { %10360 = vmatprep.mubr.msk.bf16.mxu0 %vm1448_vm1, %v12981_v12  ;;  %10369 = vmatpush3.bf16.msra.mxu0 %v11188_v54 }
 0xa6a   : > { %10370 = vmatprep.subr.bf16.mxu0 %v11189_v53 }
 0xa6b   : > { %10399 = vmatpush3.bf16.msra.mxu1 %v11197_v29 }
 0xa6c   : > { %10400 = vmatprep.subr.bf16.mxu1 %v11349_v1 }
 0xa6d   : > { %10371 = vmatpush3.bf16.msra.mxu0 %v11189_v53 }
 0xa6e   : > { %10372 = vmatprep.subr.bf16.mxu0 %v11190_v16 }
 0xa6f   : > { %10401 = vmatpush3.bf16.msra.mxu1 %v11198_v58 }
 0xa70   : > { %10361 = vmatmul.mubr.msk.bf16.gmra.mrb[88].mxu0 %vm1448_vm1, %v12994_v27  ;;  %10402 = vmatprep.subr.bf16.mxu1 %v11349_v1 }
 0xa71   : > { %10364 = vmatprep.mubr.msk.bf16.mxu0 %vm1448_vm1, %v13000_v36  ;;  %10373 = vmatpush3.bf16.msra.mxu0 %v11190_v16 }
 0xa72   : > { %10374 = vmatprep.subr.bf16.mxu0 %v11191_v42 }
 0xa73   : > { %10403 = vmatpush3.bf16.msra.mxu1 %v11199_v9 }
 0xa74   : > { %10424 = vmatprep.subr.bf16.mxu1 %v11349_v1 }
 0xa75   : > { %10375 = vmatpush3.bf16.msra.mxu0 %v11191_v42 }
 0xa76   : > { %10376 = vmatprep.subr.bf16.mxu0 %v11192_v60 }
 0xa78   : > { %10365 = vmatmul.mubr.msk.bf16.gmra.mrb[92].mxu0 %vm1448_vm1, %v5946_v47 }
 0xa79   : > { %10377 = vmatpush3.bf16.msra.mxu0 %v11192_v60  ;;  %10380 = vmatprep.mubr.msk.bf16.mxu0 %vm1448_vm1, %v6277_v45 }
 0xa7a   : > { %10378 = vmatprep.subr.bf16.mxu0 %v11193_v6 }
 0xa7d   : > { %10379 = vmatpush3.bf16.msra.mxu0 %v11193_v6 }
 0xa7e   : > { %10488 = vmatprep.subr.bf16.mxu0 %v11349_v1 }
 0xa80   : > { %10381 = vmatmul.mubr.msk.bf16.vlgmr.msra.gmra.mrb[84].mxu0 %vm1448_vm1, %v6279_v0 }
 0xa81   : > { %10384 = vmatprep.mubr.msk.bf16.mxu0 %vm1448_vm1, %v6281_v2 }
 0xa88   : > { %10385 = vmatmul.mubr.msk.bf16.gmra.mrb[88].mxu0 %vm1448_vm1, %v6283_v50 }
 0xa89   : > { %10388 = vmatprep.mubr.msk.bf16.mxu0 %vm1448_vm1, %v6285_v37 }
 0xa90   : > { %10389 = vmatmul.mubr.msk.bf16.gmra.mrb[92].mxu0 %vm1448_vm1, %v6287_v8 }
 0xa91   : > { %10492 = vmatprep.mubr.msk.bf16.mxu0 %vm11350_vm0, %v11349_v1 }
 0xb53   : > { %v10382_v17 = vpop.f32.mrb[84].mxu0 }
 0xb54   : > { %v6443_v12 = vmul.f32 %v10382_v17, %v13065_v4  ;;  %v6376_v21 = vpop.f32.mrb[85].mxu0 }
 0xb55   : > { %v6441_v19 = vmul.f32 %v13065_v4, %v6376_v21  ;;  %v10383_v57 = vpop.f32.mrb[86].mxu0 }
 0xb56   : > { %v6461_v18 = vadd.f32 %v13068_v7, %v6443_v12  ;;  %v6444_v28 = vmul.f32 %v10383_v57, %v13065_v4  ;;  %v6379_v10 = vpop.f32.mrb[87].mxu0 }
 0xb57   : > { %v6459_v56 = vadd.f32 %v13068_v7, %v6441_v19  ;;  %v6442_v55 = vmul.f32 %v13065_v4, %v6379_v10 }
 0xb58   : > { %v6462_v23 = vadd.f32 %v13068_v7, %v6444_v28  ;;  %v6473_v34 = vmax.f32 %v6461_v18, 0.0 }
 0xb59   : > { %v6460_v27 = vadd.f32 %v13068_v7, %v6442_v55  ;;  %v6471_v36 = vmax.f32 %v6459_v56, 0.0 }
 0xb5a   : > { %v6474_v25 = vmax.f32 %v6462_v23, 0.0 }
 0xb5b   : > { %v6472_v61 = vmax.f32 %v6460_v27, 0.0  ;;  %v10386_v63 = vpop.f32.mrb[88].mxu0 }
 0xb5c   : > { %v13079_v44 = vpack.c.bf16 %v6474_v25, %v6473_v34  ;;  %v6447_v38 = vmul.f32 %v10386_v63, %v13065_v4  ;;  %v6392_v39 = vpop.f32.mrb[89].mxu0 }
 0xb5d   : > { %v13083_v14 = vpack.c.bf16 %v6472_v61, %v6471_v36  ;;  %v6445_v41 = vmul.f32 %v13065_v4, %v6392_v39  ;;  %v10387_v20 = vpop.f32.mrb[90].mxu0 }
 0xb5e   : > { %v6465_v49 = vadd.f32 %v13068_v7, %v6447_v38  ;;  %v6448_v47 = vmul.f32 %v10387_v20, %v13065_v4  ;;  %v6395_v48 = vpop.f32.mrb[91].mxu0  ;;  %v6501_v24 = vshll.u32 %v13079_v44, 16  ;;  %v6559_v62 = vrot.slane %v13079_v44, 1 }
 0xb5f   : > { %v6463_v35 = vadd.f32 %v13068_v7, %v6445_v41  ;;  %v6446_v5 = vmul.f32 %v13065_v4, %v6395_v48  ;;  %v6496_v26 = vshll.u32 %v13083_v14, 16  ;;  %v6494_v54 = vshrl.u32 %v13083_v14, 16 }
 0xb60   : > { %v6466_v59 = vadd.f32 %v13068_v7, %v6448_v47  ;;  %v6477_v16 = vmax.f32 %v6465_v49, 0.0  ;;  %v6503_v45 = vrot.slane %v6501_v24, 1  ;;  %v6558_v2 = vrot.slane %v13083_v14, 1 }
 0xb61   : > { %v6464_v43 = vadd.f32 %v13068_v7, %v6446_v5  ;;  %v6498_v53 = vrot.slane %v6496_v26, 1  ;;  %v6475_v60 = vmax.f32 %v6463_v35, 0.0  ;;  %v6505_v15 = vshrl.u32 %v13079_v44, 16 }
 0xb62   : > { %v6478_v42 = vmax.f32 %v6466_v59, 0.0  ;;  %v6560_v21 = vsel %vm2054_vm3, %v6558_v2, %v6559_v62 }
 0xb63   : > { %v6476_v40 = vmax.f32 %v6464_v43, 0.0  ;;  %v10390_v33 = vpop.f32.mrb[92].mxu0  ;;  %v6499_v6 = vor.u32 %v6498_v53, %v6494_v54  ;;  %v6507_v57 = vor.u32 %v6505_v15, %v6503_v45 }
 0xb64   : > { %v13097_v30 = vpack.c.bf16 %v6478_v42, %v6477_v16  ;;  %v6451_v32 = vmul.f32 %v10390_v33, %v13065_v4  ;;  %v6408_v0 = vpop.f32.mrb[93].mxu0 }
 0xb65   : > { %v13103_v22 = vpack.c.bf16 %v6476_v40, %v6475_v60  ;;  %v6449_v3 = vmul.f32 %v13065_v4, %v6408_v0  ;;  %v10391_v11 = vpop.f32.mrb[94].mxu0  ;;  %v6504_v50 = vsel %vm1977_vm2, %v6499_v6, %v6503_v45 }
 0xb66   : > { %v6469_v52 = vadd.f32 %v13068_v7, %v6451_v32  ;;  %v6452_v37 = vmul.f32 %v10391_v11, %v13065_v4  ;;  %6540 = vrot.lane.b32.xlu0 %v6504_v50, %s13821_s11  ;;  %v6411_v46 = vpop.f32.mrb[95].mxu0  ;;  %v6517_v8 = vshll.u32 %v13097_v30, 16  ;;  %v6563_v63 = vrot.slane %v13097_v30, 1 }
 0xb67   : > { %v6467_v31 = vadd.f32 %v13068_v7, %v6449_v3  ;;  %v6450_v51 = vmul.f32 %v13065_v4, %v6411_v46  ;;  %v6509_v17 = vshll.u32 %v13103_v22, 16  ;;  %v6513_v28 = vshrl.u32 %v13103_v22, 16  ;;  %v11200_v3 = vld [vmem:[%s13860_s2 + $0x120] sm:$0xff]  }
 0xb68   : > { %v6470_v12 = vadd.f32 %v13068_v7, %v6452_v37  ;;  %v6481_v10 = vmax.f32 %v6469_v52, 0.0  ;;  %v6519_v4 = vrot.slane %v6517_v8, 1  ;;  %v6561_v55 = vrot.slane %v13103_v22, 1  ;;  %v11201_v8 = vld [vmem:[%s13860_s2 + $0x128] sm:$0xff]  }
 0xb69   : > { %v6468_v19 = vadd.f32 %v13068_v7, %v6450_v51  ;;  %v6511_v18 = vrot.slane %v6509_v17, 1  ;;  %v6479_v23 = vmax.f32 %v6467_v31, 0.0  ;;  %v6521_v38 = vshrl.u32 %v13097_v30, 16 }
 0xb6a   : > { %v6482_v56 = vmax.f32 %v6470_v12, 0.0  ;;  %6569 = vrot.lane.b32.xlu0 %v6560_v21, %s13823_s15  ;;  %v6562_v61 = vsel %vm2054_vm3, %v6559_v62, %v6561_v55  ;;  %v6564_v48 = vsel %vm2054_vm3, %v6561_v55, %v6563_v63 }
 0xb6b   : > { %v6480_v27 = vmax.f32 %v6468_v19, 0.0  ;;  %v6512_v29 = vsel %vm1977_vm2, %v6507_v57, %v6511_v18  ;;  %v6515_v34 = vor.u32 %v6513_v28, %v6511_v18  ;;  %v6523_v41 = vor.u32 %v6521_v38, %v6519_v4  ;;  %v11202_v19 = vld [vmem:[%s13860_s2 + $0x130] sm:$0xff]  }
 0xb6c   : > { %v13123_v25 = vpack.c.bf16 %v6482_v56, %v6481_v10  ;;  %6542 = vrot.lane.b32.xlu1 %v6512_v29, %s13821_s11  ;;  %v11208_v38 = vld [vmem:[%s13860_s2 + $0x190] sm:$0xff]  }
 0xb6d   : > { %v13126_v7 = vpack.c.bf16 %v6480_v27, %v6479_v23  ;;  %v6520_v36 = vsel %vm1977_vm2, %v6515_v34, %v6519_v4  ;;  %v11203_v4 = vld [vmem:[%s13860_s2 + $0x138] sm:$0xff]   ;;  %v11204_v27 = vld [vmem:[%s13860_s2 + $0x140] sm:$0xff]   ;;  %v11205_v34 = vld [vmem:[%s13860_s2 + $0x148] sm:$0xff]  }
 0xb6e   : > { %6544 = vrot.lane.b32.xlu0 %v6520_v36, %s13821_s11  ;;  %v6533_v47 = vshll.u32 %v13123_v25, 16  ;;  %v6567_v43 = vrot.slane %v13123_v25, 1  ;;  %v6537_v54 = vshrl.u32 %v13123_v25, 16 }
 0xb6f   : > { %v6525_v39 = vshll.u32 %v13126_v7, 16  ;;  %v6529_v49 = vshrl.u32 %v13126_v7, 16  ;;  %v6565_v5 = vrot.slane %v13126_v7, 1 }
 0xb70   : > { %6571 = vrot.lane.b32.xlu1 %v6562_v61, %s13823_s15  ;;  %v6535_v24 = vrot.slane %v6533_v47, 1  ;;  %v11206_v61 = vld [vmem:[%s13860_s2 + $0x180] sm:$0xff]  }
 0xb71   : > { %v6527_v20 = vrot.slane %v6525_v39, 1  ;;  %v6566_v58 = vsel %vm2054_vm3, %v6563_v63, %v6565_v5  ;;  %v6568_v16 = vsel %vm2054_vm3, %v6565_v5, %v6567_v43  ;;  %v11207_v63 = vld [vmem:[%s13860_s2 + $0x188] sm:$0xff]   ;;  %v11209_v39 = vld [vmem:[%s13860_s2 + $0x198] sm:$0xff]  }
 0xb72   : > { %v6539_v53 = vor.u32 %v6537_v54, %v6535_v24 }
 0xb73   : > { %v6528_v35 = vsel %vm1977_vm2, %v6523_v41, %v6527_v20  ;;  %v6531_v26 = vor.u32 %v6529_v49, %v6527_v20  ;;  %v11210_v41 = vld [vmem:[%s13860_s2 + $0x1a0] sm:$0xff]   ;;  %v11211_v20 = vld [vmem:[%s13860_s2 + $0x1a8] sm:$0xff]   ;;  %s13871_s2 = sld [smem:[#allocation21_spill]] }
 0xb74   : > { %6573 = vrot.lane.b32.xlu1 %v6564_v48, %s13823_s15  ;;  %6546 = vrot.lane.b32.xlu0 %v6528_v35, %s13821_s11 }
 0xb75   : > { %v6536_v59 = vsel %vm1977_vm2, %v6531_v26, %v6535_v24  ;;  %v11213_v24 = vld [vmem:[%s13863_s28 + $0x8] sm:$0xff]  }
 0xb78   : > { %6575 = vrot.lane.b32.xlu1 %v6566_v58, %s13823_s15  ;;  %6548 = vrot.lane.b32.xlu0 %v6536_v59, %s13821_s11  ;;  %v9260_v58 = vld [vmem:[%s13861_s7 + $0x2] ss:$0 sm:$0xff] }
 0xb79   : > { %v9261_v59 = vld [vmem:[%s13862_s10 + $0x2] ss:$0 sm:$0xff] }
 0xb7c   : > { %6577 = vrot.lane.b32.xlu1 %v6568_v16, %s13823_s15  ;;  %6550 = vrot.lane.b32.xlu0 %v6539_v53, %s13821_s11  ;;  %s13865_s11 = sld [smem:[#allocation19_spill]] }
 0xb80   : > { %6579 = vrot.lane.b32.xlu1 %v6567_v43, %s13823_s15  ;;  %s13866_s15 = sld [smem:[#allocation14_spill]] }
 0xbd8   : > { %v6541_v42 = vpop.permute.xlu0 %6540 }
 0xbd9   : > { %v6582_v33 = vsel %vm2082_vm4, %v13083_v14, %v6541_v42 }
 0xbdc   : > { %v6570_v60 = vpop.permute.xlu0 %6569 }
 0xbdd   : > { %v6594_v6 = vsel %vm2097_vm5, %v6582_v33, %v6570_v60 }
 0xbde   : > { %v6543_v40 = vpop.permute.xlu1 %6542  ;;  %v6636_v62 = vrot.slane %v6594_v6, 6 }
 0xbdf   : > { %v6584_v45 = vsel %vm2082_vm4, %v13079_v44, %v6543_v40 }
 0xbe0   : > { %v6545_v32 = vpop.permute.xlu0 %6544 }
 0xbe1   : > { %v6586_v11 = vsel %vm2082_vm4, %v13103_v22, %v6545_v32 }
 0xbe2   : > { %v6572_v0 = vpop.permute.xlu1 %6571 }
 0xbe3   : > { %v13158_v2 = vsel %vm2097_vm5, %v6584_v45, %v6572_v0  ;;  %v11214_v0 = vld [vmem:[%s13864_s1] sm:$0xff]  }
 0xbe4   : > { %v6637_v9 = vrot.slane %v13158_v2, 6  ;;  %v6900_v44 = vrot.slane %v13158_v2, 4 }
 0xbe6   : > { %v6574_v50 = vpop.permute.xlu1 %6573  ;;  %v6547_v14 = vpop.permute.xlu0 %6546  ;;  %v6638_v52 = vsel %vm5210_vm8, %v6636_v62, %v6637_v9 }
 0xbe7   : > { %v13166_v37 = vsel %vm2097_vm5, %v6586_v11, %v6574_v50  ;;  %10405 = vmatmul.mubr.msk.bf16.vlgmr.msra.gmra.mrb[88].mxu1 %vm1448_vm1, %v6638_v52  ;;  %v6588_v31 = vsel %vm2082_vm4, %v13097_v30, %v6547_v14  ;;  %v11215_v52 = vld [vmem:[%s13864_s1 + $0x8] sm:$0xff]   ;;  %s13870_s1 = sld [smem:[#allocation20_spill]] }
 0xbe8   : > { %v6901_v46 = vrot.slane %v13166_v37, 4  ;;  %10408 = vmatprep.mubr.msk.bf16.mxu1 %vm11350_vm0, %v11349_v1  ;;  %10425 = vmatpush3.bf16.msra.mxu1 %v11200_v3  ;;  %v6639_v22 = vrot.slane %v13166_v37, 6 }
 0xbe9   : > { %10426 = vmatprep.subr.bf16.mxu1 %v11349_v1 }
 0xbea   : > { %v6576_v51 = vpop.permute.xlu1 %6575  ;;  %v13179_v15 = vsel %vm5545_vm9, %v6900_v44, %v6901_v46  ;;  %v6549_v12 = vpop.permute.xlu0 %6548  ;;  %v6640_v30 = vsel %vm5210_vm8, %v6637_v9, %v6639_v22 }
 0xbeb   : > { %v6600_v17 = vsel %vm2097_vm5, %v6588_v31, %v6576_v51  ;;  %v6590_v57 = vsel %vm2082_vm4, %v13126_v7, %v6549_v12 }
 0xbec   : > { %v6903_v21 = vrot.slane %v6600_v17, 4  ;;  %10427 = vmatpush3.bf16.msra.mxu1 %v11201_v8  ;;  %v6641_v55 = vrot.slane %v6600_v17, 6 }
 0xbed   : > { %10428 = vmatprep.subr.bf16.mxu1 %v11349_v1 }
 0xbee   : > { %v6578_v18 = vpop.permute.xlu1 %6577  ;;  %v6904_v28 = vsel %vm5545_vm9, %v6901_v46, %v6903_v21  ;;  %v6642_v29 = vsel %vm5210_vm8, %v6639_v22, %v6641_v55  ;;  %v6551_v49 = vpop.permute.xlu0 %6550 }
 0xbef   : > { %v13189_v10 = vsel %vm2097_vm5, %v6590_v57, %v6578_v18  ;;  %10409 = vmatmul.mubr.msk.bf16.gmra.mrb[92].mxu1 %vm1448_vm1, %v6640_v30  ;;  %v6592_v48 = vsel %vm2082_vm4, %v13123_v25, %v6551_v49  ;;  %v11212_v25 = vld [vmem:[%s13863_s28] sm:$0xff]  }
 0xbf0   : > { %v6905_v56 = vrot.slane %v13189_v10, 4  ;;  %10412 = vmatprep.mubr.msk.bf16.mxu1 %vm11350_vm0, %v11349_v1  ;;  %10429 = vmatpush3.bf16.msra.mxu1 %v11202_v19  ;;  %v6643_v7 = vrot.slane %v13189_v10, 6 }
 0xbf1   : > { %10430 = vmatprep.subr.bf16.mxu1 %v11349_v1  ;;  %10489 = vmatpush3.bf16.msra.mxu0 %v11212_v25 }
 0xbf2   : > { %v6906_v23 = vsel %vm5545_vm9, %v6903_v21, %v6905_v56  ;;  %v6644_v36 = vsel %vm5210_vm8, %v6641_v55, %v6643_v7  ;;  %v6580_v47 = vpop.permute.xlu1 %6579  ;;  %10490 = vmatprep.subr.bf16.mxu0 %v11349_v1 }
 0xbf3   : > { %v6604_v35 = vsel %vm2097_vm5, %v6592_v48, %v6580_v47  ;;  %v11216_v48 = vld [vmem:[%s13865_s11] sm:$0xff]  }
 0xbf4   : > { %10431 = vmatpush3.bf16.msra.mxu1 %v11203_v4  ;;  %v6907_v5 = vrot.slane %v6604_v35, 4  ;;  %v11217_v35 = vld [vmem:[%s13865_s11 + $0x8] sm:$0xff]  }
 0xbf5   : > { %10432 = vmatprep.subr.bf16.mxu1 %v11349_v1  ;;  %10491 = vmatpush3.bf16.msra.mxu0 %v11213_v24 }
 0xbf6   : > { %v6908_v26 = vsel %vm5545_vm9, %v6905_v56, %v6907_v5  ;;  %10512 = vmatprep.subr.bf16.mxu0 %v11349_v1 }
 0xbf7   : > { %10413 = vmatmul.mubr.msk.bf16.gmra.mrb[96].mxu1 %vm1448_vm1, %v6642_v29 }
 0xbf8   : > { %10416 = vmatprep.mubr.msk.bf16.mxu1 %vm11350_vm0, %v11349_v1  ;;  %10433 = vmatpush3.bf16.msra.mxu1 %v11204_v27 }
 0xbf9   : > { %10434 = vmatprep.subr.bf16.mxu1 %v11349_v1 }
 0xbfc   : > { %10435 = vmatpush3.bf16.msra.mxu1 %v11205_v34 }
 0xbfd   : > { %10456 = vmatprep.subr.bf16.mxu1 %v11349_v1 }
 0xbff   : > { %10417 = vmatmul.mubr.msk.bf16.gmra.mrb[100].mxu1 %vm1448_vm1, %v6644_v36 }
 0xc00   : > { %10420 = vmatprep.mubr.msk.bf16.mxu1 %vm11350_vm0, %v11349_v1 }
 0xc07   : > { %10421 = vmatmul.mubr.msk.bf16.gmra.mrb[104].mxu1 %vm1448_vm1, %v6643_v7 }
 0xc08   : > { %10436 = vmatprep.mubr.msk.bf16.mxu1 %vm11350_vm0, %v11349_v1 }
 0xc0f   : > { %10437 = vmatmul.mubr.msk.bf16.vlgmr.msra.gmra.mrb[88].mxu1 %vm1448_vm1, %v6594_v6 }
 0xc10   : > { %10440 = vmatprep.mubr.msk.bf16.mxu1 %vm11350_vm0, %v11349_v1  ;;  %10457 = vmatpush3.bf16.msra.mxu1 %v11206_v61 }
 0xc11   : > { %10458 = vmatprep.subr.bf16.mxu1 %v11349_v1 }
 0xc14   : > { %10459 = vmatpush3.bf16.msra.mxu1 %v11207_v63 }
 0xc15   : > { %10460 = vmatprep.subr.bf16.mxu1 %v11349_v1 }
 0xc17   : > { %10441 = vmatmul.mubr.msk.bf16.gmra.mrb[92].mxu1 %vm1448_vm1, %v13158_v2 }
 0xc18   : > { %10444 = vmatprep.mubr.msk.bf16.mxu1 %vm11350_vm0, %v11349_v1  ;;  %10461 = vmatpush3.bf16.msra.mxu1 %v11208_v38 }
 0xc19   : > { %10462 = vmatprep.subr.bf16.mxu1 %v11349_v1 }
 0xc1c   : > { %10463 = vmatpush3.bf16.msra.mxu1 %v11209_v39 }
 0xc1d   : > { %10464 = vmatprep.subr.bf16.mxu1 %v11349_v1 }
 0xc1f   : > { %10445 = vmatmul.mubr.msk.bf16.gmra.mrb[96].mxu1 %vm1448_vm1, %v13166_v37 }
 0xc20   : > { %10448 = vmatprep.mubr.msk.bf16.mxu1 %vm11350_vm0, %v11349_v1  ;;  %10465 = vmatpush3.bf16.msra.mxu1 %v11210_v41 }
 0xc21   : > { %10466 = vmatprep.subr.bf16.mxu1 %v11349_v1 }
 0xc24   : > { %10467 = vmatpush3.bf16.msra.mxu1 %v11211_v20 }
 0xc25   : > { %10552 = vmatprep.subr.bf16.mxu1 %v11349_v1 }
 0xc27   : > { %10449 = vmatmul.mubr.msk.bf16.gmra.mrb[100].mxu1 %vm1448_vm1, %v6600_v17 }
 0xc28   : > { %10452 = vmatprep.mubr.msk.bf16.mxu1 %vm11350_vm0, %v11349_v1 }
 0xc2f   : > { %10453 = vmatmul.mubr.msk.bf16.gmra.mrb[104].mxu1 %vm1448_vm1, %v13189_v10 }
 0xc30   : > { %10468 = vmatprep.mubr.msk.bf16.mxu1 %vm11350_vm0, %v11349_v1 }
 0xc37   : > { %10469 = vmatmul.mubr.msk.bf16.vlgmr.msra.gmra.mrb[88].mxu1 %vm1448_vm1, %v13179_v15 }
 0xc38   : > { %10472 = vmatprep.mubr.msk.bf16.mxu1 %vm11350_vm0, %v11349_v1 }
 0xc3f   : > { %10473 = vmatmul.mubr.msk.bf16.gmra.mrb[92].mxu1 %vm1448_vm1, %v6904_v28 }
 0xc40   : > { %10476 = vmatprep.mubr.msk.bf16.mxu1 %vm11350_vm0, %v11349_v1 }
 0xc47   : > { %10477 = vmatmul.mubr.msk.bf16.gmra.mrb[96].mxu1 %vm1448_vm1, %v6906_v23 }
 0xc48   : > { %10480 = vmatprep.mubr.msk.bf16.mxu1 %vm11350_vm0, %v11349_v1 }
 0xc4f   : > { %10481 = vmatmul.mubr.msk.bf16.gmra.mrb[100].mxu1 %vm1448_vm1, %v6908_v26 }
 0xc50   : > { %10484 = vmatprep.mubr.msk.bf16.mxu1 %vm11350_vm0, %v11349_v1 }
 0xc57   : > { %10485 = vmatmul.mubr.msk.bf16.gmra.mrb[104].mxu1 %vm1448_vm1, %v6907_v5  ;;  %v13328_v5 = vld [vmem:[%s13866_s15] ss:$0 sm:$0xff]  ;;  %s13868_s15 = sld [smem:[#allocation17_spill]] }
 0xc58   : > { %10554 = vmatprep.mubr.msk.bf16.mxu1 %vm11350_vm0, %v11349_v1 }
 0xd0a   : > { %v6994_v43 = vpop.f32.mrb[88].mxu1 }
 0xd0b   : > { %v7047_v54 = vmul.f32 %v9260_v58, %v6994_v43  ;;  %v10470_v53 = vpop.f32.mrb[89].mxu1 }
 0xd0c   : > { %v6997_v16 = vpop.f32.mrb[90].mxu1 }
 0xd0d   : > { %v7062_v42 = vadd.f32 %v9261_v59, %v7047_v54  ;;  %v7048_v60 = vmul.f32 %v9260_v58, %v6997_v16  ;;  %v10471_v40 = vpop.f32.mrb[91].mxu1 }
 0xd0f   : > { %v7063_v33 = vadd.f32 %v9261_v59, %v7048_v60  ;;  %v7071_v6 = vmax.f32 %v7062_v42, 0.0 }
 0xd11   : > { %v7072_v45 = vmax.f32 %v7063_v33, 0.0 }
 0xd12   : > { %v7002_v32 = vpop.f32.mrb[92].mxu1 }
 0xd13   : > { %v13276_v2 = vpack.c.bf16 %v7072_v45, %v7071_v6  ;;  %v7049_v62 = vmul.f32 %v9260_v58, %v7002_v32  ;;  %v10474_v9 = vpop.f32.mrb[93].mxu1 }
 0xd14   : > { %v7005_v3 = vpop.f32.mrb[94].mxu1 }
 0xd15   : > { %v7064_v11 = vadd.f32 %v9261_v59, %v7049_v62  ;;  %v7050_v50 = vmul.f32 %v9260_v58, %v7005_v3  ;;  %v10475_v14 = vpop.f32.mrb[95].mxu1  ;;  %10493 = vmatmul.mubr.msk.bf16.vlgmr.msra.gmra.mrb[96].mxu0 %vm2082_vm4, %v13276_v2 }
 0xd16   : > { %10496 = vmatprep.mubr.msk.bf16.mxu0 %vm11350_vm0, %v11349_v1  ;;  %10513 = vmatpush3.bf16.msra.mxu0 %v11214_v0 }
 0xd17   : > { %v7065_v37 = vadd.f32 %v9261_v59, %v7050_v50  ;;  %10514 = vmatprep.subr.bf16.mxu0 %v11349_v1  ;;  %v7073_v44 = vmax.f32 %v7064_v11, 0.0 }
 0xd19   : > { %v7074_v46 = vmax.f32 %v7065_v37, 0.0 }
 0xd1a   : > { %v7010_v8 = vpop.f32.mrb[96].mxu1  ;;  %10515 = vmatpush3.bf16.msra.mxu0 %v11215_v52 }
 0xd1b   : > { %v7081_v22 = vpack.c.bf16 %v7074_v46, %v7073_v44  ;;  %v7051_v31 = vmul.f32 %v9260_v58, %v7010_v8  ;;  %v10478_v51 = vpop.f32.mrb[97].mxu1  ;;  %10520 = vmatprep.subr.bf16.mxu0 %v11349_v1 }
 0xd1c   : > { %v7013_v15 = vpop.f32.mrb[98].mxu1 }
 0xd1d   : > { %v7066_v17 = vadd.f32 %v9261_v59, %v7051_v31  ;;  %v7052_v12 = vmul.f32 %v9260_v58, %v7013_v15  ;;  %v10479_v21 = vpop.f32.mrb[99].mxu1  ;;  %10497 = vmatmul.mubr.msk.bf16.gmra.mrb[100].mxu0 %vm2082_vm4, %v7081_v22 }
 0xd1e   : > { %10500 = vmatprep.mubr.msk.bf16.mxu0 %vm11350_vm0, %v11349_v1 }
 0xd1f   : > { %v7067_v19 = vadd.f32 %v9261_v59, %v7052_v12  ;;  %v7075_v57 = vmax.f32 %v7066_v17, 0.0 }
 0xd21   : > { %v7076_v18 = vmax.f32 %v7067_v19, 0.0 }
 0xd22   : > { %v7018_v30 = vpop.f32.mrb[100].mxu1 }
 0xd23   : > { %v7082_v28 = vpack.c.bf16 %v7076_v18, %v7075_v57  ;;  %v7053_v10 = vmul.f32 %v9260_v58, %v7018_v30  ;;  %v10482_v56 = vpop.f32.mrb[101].mxu1 }
 0xd24   : > { %v7021_v4 = vpop.f32.mrb[102].mxu1 }
 0xd25   : > { %v7068_v55 = vadd.f32 %v9261_v59, %v7053_v10  ;;  %v7054_v23 = vmul.f32 %v9260_v58, %v7021_v4  ;;  %v10483_v27 = vpop.f32.mrb[103].mxu1  ;;  %10501 = vmatmul.mubr.msk.bf16.gmra.mrb[104].mxu0 %vm2082_vm4, %v7082_v28 }
 0xd26   : > { %10504 = vmatprep.mubr.msk.bf16.mxu0 %vm11350_vm0, %v11349_v1 }
 0xd27   : > { %v7069_v29 = vadd.f32 %v9261_v59, %v7054_v23  ;;  %v7077_v34 = vmax.f32 %v7068_v55, 0.0 }
 0xd29   : > { %v7078_v7 = vmax.f32 %v7069_v29, 0.0 }
 0xd2a   : > { %v7026_v36 = vpop.f32.mrb[104].mxu1 }
 0xd2b   : > { %v7083_v61 = vpack.c.bf16 %v7078_v7, %v7077_v34  ;;  %v7055_v63 = vmul.f32 %v9260_v58, %v7026_v36  ;;  %v10486_v38 = vpop.f32.mrb[105].mxu1  ;;  %v13332_v58 = vld [vmem:[%s13867_s0] ss:$0 sm:$0xff]  ;;  %s13869_s0 = sld [smem:[#allocation18_spill]] }
 0xd2c   : > { %v7029_v39 = vpop.f32.mrb[106].mxu1  ;;  %v13362_v36 = vld [vmem:[%s13870_s1] ss:$0 sm:$0xff]  ;;  %s13873_s1 = sld [smem:[#allocation3_spill]] }
 0xd2d   : > { %v7070_v41 = vadd.f32 %v9261_v59, %v7055_v63  ;;  %v10487_v20 = vpop.f32.mrb[107].mxu1  ;;  %10505 = vmatmul.mubr.msk.bf16.gmra.mrb[108].mxu0 %vm2082_vm4, %v7083_v61  ;;  %v13365_v38 = vld [vmem:[%s13871_s2] ss:$0 sm:$0xff]  ;;  %s13872_s2 = sld [smem:[#allocation2_spill]] }
 0xd2e   : > { %10508 = vmatprep.mubr.msk.bf16.mxu0 %vm11350_vm0, %v11349_v1 }
 0xd2f   : > { %v7079_v49 = vmax.f32 %v7070_v41, 0.0 }
 0xd31   : > { %v7084_v47 = vpack.c.bf16 %v7079_v49, %v7079_v49  ;;  %v9275_v55 = vld [vmem:[%s13869_s0] ss:$0 sm:$0xff]  ;;  %s13875_s0 = sld [smem:[#allocation22_spill]] }
 0xd35   : > { %10509 = vmatmul.mubr.msk.bf16.gmra.mrb[112].mxu0 %vm2082_vm4, %v7084_v47 }
 0xd36   : > { %10516 = vmatprep.mubr.msk.bf16.mxu0 %vm11350_vm0, %v11349_v1 }
 0xd3d   : > { %10517 = vmatmul.mubr.msk.bf16.vlgmr.msra.gmra.mrb[116].mxu0 %vm2082_vm4, %v12851_v13 }
 0xd3e   : > { %10521 = vmatpush3.bf16.msra.mxu0 %v11216_v48  ;;  %10524 = vmatprep.mubr.msk.bf16.mxu0 %vm11350_vm0, %v11349_v1 }
 0xd3f   : > { %10522 = vmatprep.subr.bf16.mxu0 %v11349_v1 }
 0xd42   : > { %10523 = vmatpush3.bf16.msra.mxu0 %v11217_v35 }
 0xd43   : > { %10544 = vmatprep.subr.bf16.mxu0 %v11349_v1 }
 0xd45   : > { %10525 = vmatmul.mubr.msk.bf16.vlgmr.msra.gmra.mrb[120].mxu0 %vm2082_vm4, %v13276_v2 }
 0xd46   : > { %10528 = vmatprep.mubr.msk.bf16.mxu0 %vm11350_vm0, %v11349_v1  ;;  %10545 = vmatpush3.bf16.msra.mxu0 %v11216_v48 }
 0xd47   : > { %10546 = vmatprep.subr.bf16.mxu0 %v11349_v1 }
 0xd4a   : > { %10547 = vmatpush3.bf16.msra.mxu0 %v11217_v35 }
 0xd4b   : > { %10574 = vmatprep.subr.bf16.mxu0 %v11349_v1 }
 0xd4d   : > { %10529 = vmatmul.mubr.msk.bf16.gmra.mrb[124].mxu0 %vm2082_vm4, %v7081_v22 }
 0xd4e   : > { %10532 = vmatprep.mubr.msk.bf16.mxu0 %vm11350_vm0, %v11349_v1 }
 0xd55   : > { %10533 = vmatmul.mubr.msk.bf16.gmra.mrb[128].mxu0 %vm2082_vm4, %v7082_v28  ;;  %v9274_v28 = vld [vmem:[%s13868_s15] ss:$0 sm:$0xff]  ;;  %s13874_s15 = smov 64  }
 0xd56   : > { %10536 = vmatprep.mubr.msk.bf16.mxu0 %vm11350_vm0, %v11349_v1 }
 0xd5d   : > { %10537 = vmatmul.mubr.msk.bf16.gmra.mrb[132].mxu0 %vm2082_vm4, %v7083_v61 }
 0xd5e   : > { %10540 = vmatprep.mubr.msk.bf16.mxu0 %vm11350_vm0, %v11349_v1 }
 0xd65   : > { %10541 = vmatmul.mubr.msk.bf16.gmra.mrb[136].mxu0 %vm2082_vm4, %v7084_v47 }
 0xd66   : > { %10548 = vmatprep.mubr.msk.bf16.mxu0 %vm11350_vm0, %v11349_v1 }
 0xd6d   : > { %10549 = vmatmul.mubr.msk.bf16.vlgmr.msra.gmra.mrb[140].mxu0 %vm2082_vm4, %v12851_v13 }
 0xd6e   : > { %10576 = vmatprep.mubr.msk.bf16.mxu0 %vm11350_vm0, %v11349_v1 }
 0xde8   : > { %v7150_v26 = vpop.f32.mrb[96].mxu0 }
 0xde9   : > { %v7195_v25 = vmul.f32 %v13328_v5, %v7150_v26  ;;  %v10494_v24 = vpop.f32.mrb[97].mxu0 }
 0xdea   : > { %v7153_v59 = vpop.f32.mrb[98].mxu0 }
 0xdeb   : > { %v7196_v43 = vmul.f32 %v13328_v5, %v7153_v59  ;;  %v10495_v54 = vpop.f32.mrb[99].mxu0  ;;  %v7211_v53 = vadd.f32 %v13332_v58, %v7195_v25 }
 0xded   : > { %v7212_v16 = vadd.f32 %v13332_v58, %v7196_v43 }
 0xdef   : > { %v13337_v13 = vpack.c.bf16 %v7212_v16, %v7211_v53 }
 0xdf0   : > { %v7158_v42 = vpop.f32.mrb[100].mxu0 }
 0xdf1   : > { %v7197_v60 = vmul.f32 %v13328_v5, %v7158_v42  ;;  %v10498_v40 = vpop.f32.mrb[101].mxu0  ;;  %v7494_v16 = vsel %vm2082_vm4, %v13337_v13, 0 }
 0xdf2   : > { %v7161_v33 = vpop.f32.mrb[102].mxu0 }
 0xdf3   : > { %v7198_v6 = vmul.f32 %v13328_v5, %v7161_v33  ;;  %v10499_v45 = vpop.f32.mrb[103].mxu0  ;;  %v7213_v32 = vadd.f32 %v13332_v58, %v7197_v60 }
 0xdf5   : > { %v7214_v0 = vadd.f32 %v13332_v58, %v7198_v6 }
 0xdf7   : > { %v13343_v2 = vpack.c.bf16 %v7214_v0, %v7213_v32 }
 0xdf8   : > { %v7166_v62 = vpop.f32.mrb[104].mxu0 }
 0xdf9   : > { %v7199_v9 = vmul.f32 %v13328_v5, %v7166_v62  ;;  %v10502_v3 = vpop.f32.mrb[105].mxu0 }
 0xdfa   : > { %v7169_v11 = vpop.f32.mrb[106].mxu0 }
 0xdfb   : > { %v7200_v50 = vmul.f32 %v13328_v5, %v7169_v11  ;;  %v10503_v14 = vpop.f32.mrb[107].mxu0  ;;  %v7215_v52 = vadd.f32 %v13332_v58, %v7199_v9  ;;  %v7497_v11 = vsel %vm2082_vm4, %v13343_v2, 0 }
 0xdfd   : > { %v7216_v37 = vadd.f32 %v13332_v58, %v7200_v50 }
 0xdff   : > { %v13349_v44 = vpack.c.bf16 %v7216_v37, %v7215_v52 }
 0xe00   : > { %v7174_v46 = vpop.f32.mrb[108].mxu0 }
 0xe01   : > { %v7201_v8 = vmul.f32 %v13328_v5, %v7174_v46  ;;  %v10506_v22 = vpop.f32.mrb[109].mxu0 }
 0xe02   : > { %v7177_v31 = vpop.f32.mrb[110].mxu0 }
 0xe03   : > { %v7202_v51 = vmul.f32 %v13328_v5, %v7177_v31  ;;  %v10507_v15 = vpop.f32.mrb[111].mxu0  ;;  %v7217_v17 = vadd.f32 %v13332_v58, %v7201_v8 }
 0xe05   : > { %v7218_v12 = vadd.f32 %v13332_v58, %v7202_v51 }
 0xe07   : > { %v13355_v21 = vpack.c.bf16 %v7218_v12, %v7217_v17  ;;  %v7500_v12 = vsel %vm2082_vm4, %v13349_v44, 0 }
 0xe08   : > { %v13357_v19 = vpop.f32.mrb[112].mxu0 }
 0xe09   : > { %v10510_v57 = vpop.f32.mrb[113].mxu0 }
 0xe0a   : > { %v7185_v18 = vpop.f32.mrb[114].mxu0 }
 0xe0b   : > { %v10511_v30 = vpop.f32.mrb[115].mxu0 }
 0xe10   : > { %v7278_v10 = vpop.f32.mrb[116].mxu0 }
 0xe11   : > { %v7292_v56 = vmul.f32 %v9274_v28, %v7278_v10  ;;  %v10518_v4 = vpop.f32.mrb[117].mxu0  ;;  %v7203_v10 = vmul.f32 %v13328_v5, %v13357_v19 }
 0xe12   : > { %v7281_v23 = vpop.f32.mrb[118].mxu0 }
 0xe13   : > { %v7293_v27 = vmul.f32 %v9274_v28, %v7281_v23  ;;  %v10519_v29 = vpop.f32.mrb[119].mxu0  ;;  %v7301_v34 = vadd.f32 %v9275_v55, %v7292_v56 }
 0xe15   : > { %v7302_v7 = vadd.f32 %v9275_v55, %v7293_v27  ;;  %v7219_v27 = vadd.f32 %v13332_v58, %v7203_v10 }
 0xe17   : > { %v7303_v61 = vpack.c.bf16 %v7302_v7, %v7301_v34  ;;  %v7224_v19 = vpack.c.bf16 %v7219_v27, %v7219_v27 }
 0xe18   : > { %v7354_v63 = vpop.f32.mrb[120].mxu0 }
 0xe19   : > { %v7399_v39 = vmul.f32 %v13362_v36, %v7354_v63  ;;  %v10526_v41 = vpop.f32.mrb[121].mxu0  ;;  %v7509_v20 = vsel %vm2082_vm4, %v7303_v61, 0  ;;  %v7503_v61 = vsel %vm2082_vm4, %v13355_v21, 0 }
 0xe1a   : > { %v7357_v49 = vpop.f32.mrb[122].mxu0  ;;  %10553 = vmatpush3.bf16.xpose.msra.mxu1 %v7509_v20 }
 0xe1b   : > { %v7415_v47 = vadd.f32 %v13365_v38, %v7399_v39  ;;  %v7400_v48 = vmul.f32 %v13362_v36, %v7357_v49  ;;  %v10527_v35 = vpop.f32.mrb[123].mxu0  ;;  %10596 = vmatprep.subr.bf16.mxu1 %v11349_v1  ;;  %v7506_v49 = vsel %vm2082_vm4, %v7224_v19, 0 }
 0xe1d   : > { %v7416_v26 = vadd.f32 %v13365_v38, %v7400_v48  ;;  %v7424_v25 = vmax.f32 %v7415_v47, 0.0 }
 0xe1f   : > { %v7425_v24 = vmax.f32 %v7416_v26, 0.0 }
 0xe20   : > { %v7362_v59 = vpop.f32.mrb[124].mxu0 }
 0xe21   : > { %v13373_v43 = vpack.c.bf16 %v7425_v24, %v7424_v25  ;;  %v7401_v54 = vmul.f32 %v13362_v36, %v7362_v59  ;;  %v10530_v53 = vpop.f32.mrb[125].mxu0  ;;  %10555 = vmatmul.mubr.msk.bf16.vlgmr.msra.gmra.mrb[108].mxu1 %vm2082_vm4, %v13337_v13 }
 0xe22   : > { %v7365_v42 = vpop.f32.mrb[126].mxu0  ;;  %10597 = vmatpush3.bf16.xpose.msra.mxu1 %v7494_v16  ;;  %10558 = vmatprep.mubr.msk.bf16.mxu1 %vm11350_vm0, %v11349_v1 }
 0xe23   : > { %v7417_v60 = vadd.f32 %v13365_v38, %v7401_v54  ;;  %v7402_v40 = vmul.f32 %v13362_v36, %v7365_v42  ;;  %v10531_v33 = vpop.f32.mrb[127].mxu0  ;;  %10598 = vmatprep.subr.bf16.mxu1 %v11349_v1 }
 0xe25   : > { %v7418_v6 = vadd.f32 %v13365_v38, %v7402_v40  ;;  %v7426_v45 = vmax.f32 %v7417_v60, 0.0 }
 0xe27   : > { %v7427_v32 = vmax.f32 %v7418_v6, 0.0 }
 0xe28   : > { %v7370_v0 = vpop.f32.mrb[128].mxu0 }
 0xe29   : > { %v13386_v62 = vpack.c.bf16 %v7427_v32, %v7426_v45  ;;  %v7403_v9 = vmul.f32 %v13362_v36, %v7370_v0  ;;  %v10534_v3 = vpop.f32.mrb[129].mxu0  ;;  %10559 = vmatmul.mubr.msk.bf16.gmra.mrb[112].mxu1 %vm2082_vm4, %v13343_v2 }
 0xe2a   : > { %v7373_v50 = vpop.f32.mrb[130].mxu0  ;;  %10599 = vmatpush3.bf16.xpose.msra.mxu1 %v7497_v11  ;;  %10562 = vmatprep.mubr.msk.bf16.mxu1 %vm11350_vm0, %v11349_v1 }
 0xe2b   : > { %v7419_v14 = vadd.f32 %v13365_v38, %v7403_v9  ;;  %v7404_v52 = vmul.f32 %v13362_v36, %v7373_v50  ;;  %v10535_v37 = vpop.f32.mrb[131].mxu0  ;;  %10600 = vmatprep.subr.bf16.mxu1 %v11349_v1 }
 0xe2d   : > { %v7420_v46 = vadd.f32 %v13365_v38, %v7404_v52  ;;  %v7428_v8 = vmax.f32 %v7419_v14, 0.0 }
 0xe2f   : > { %v7429_v22 = vmax.f32 %v7420_v46, 0.0 }
 0xe30   : > { %v7378_v31 = vpop.f32.mrb[132].mxu0 }
 0xe31   : > { %v13399_v51 = vpack.c.bf16 %v7429_v22, %v7428_v8  ;;  %v7405_v15 = vmul.f32 %v13362_v36, %v7378_v31  ;;  %v10538_v17 = vpop.f32.mrb[133].mxu0  ;;  %10563 = vmatmul.mubr.msk.bf16.gmra.mrb[116].mxu1 %vm2082_vm4, %v13349_v44 }
 0xe32   : > { %v7381_v57 = vpop.f32.mrb[134].mxu0  ;;  %10601 = vmatpush3.bf16.xpose.msra.mxu1 %v7500_v12  ;;  %10566 = vmatprep.mubr.msk.bf16.mxu1 %vm11350_vm0, %v11349_v1 }
 0xe33   : > { %v7421_v18 = vadd.f32 %v13365_v38, %v7405_v15  ;;  %v7406_v30 = vmul.f32 %v13362_v36, %v7381_v57  ;;  %v10539_v28 = vpop.f32.mrb[135].mxu0  ;;  %10602 = vmatprep.subr.bf16.mxu1 %v11349_v1 }
 0xe35   : > { %v7422_v56 = vadd.f32 %v13365_v38, %v7406_v30  ;;  %v7430_v4 = vmax.f32 %v7421_v18, 0.0 }
 0xe37   : > { %v7431_v55 = vmax.f32 %v7422_v56, 0.0 }
 0xe38   : > { %v7386_v23 = vpop.f32.mrb[136].mxu0 }
 0xe39   : > { %v13415_v29 = vpack.c.bf16 %v7431_v55, %v7430_v4  ;;  %v7407_v34 = vmul.f32 %v13362_v36, %v7386_v23  ;;  %v10542_v7 = vpop.f32.mrb[137].mxu0  ;;  %10567 = vmatmul.mubr.msk.bf16.gmra.mrb[120].mxu1 %vm2082_vm4, %v13355_v21 }
 0xe3a   : > { %v7389_v63 = vpop.f32.mrb[138].mxu0  ;;  %10603 = vmatpush3.bf16.xpose.msra.mxu1 %v7503_v61  ;;  %10570 = vmatprep.mubr.msk.bf16.mxu1 %vm11350_vm0, %v11349_v1 }
 0xe3b   : > { %v13425_v5 = vadd.f32 %v13365_v38, %v7407_v34  ;;  %v10543_v58 = vpop.f32.mrb[139].mxu0  ;;  %10604 = vmatprep.subr.bf16.mxu1 %v11349_v1  ;;  %v9297_v34 = vld [vmem:[%s13873_s1] ss:$0 sm:$0xff]  ;;  %s13877_s1 = sld [smem:[#allocation25_spill]] }
 0xe40   : > { %v7472_v39 = vpop.f32.mrb[140].mxu0 }
 0xe41   : > { %v7479_v41 = vmul.f32 %v13362_v36, %v7472_v39  ;;  %v10550_v20 = vpop.f32.mrb[141].mxu0  ;;  %10571 = vmatmul.mubr.msk.bf16.gmra.mrb[124].mxu1 %vm2082_vm4, %v7224_v19 }
 0xe42   : > { %v7475_v47 = vpop.f32.mrb[142].mxu0  ;;  %10605 = vmatpush3.bf16.xpose.msra.mxu1 %v7506_v49  ;;  %10606 = vmatprep.mubr.msk.bf16.mxu1 %vm11350_vm0, %v11349_v1 }
 0xe43   : > { %v7481_v48 = vadd.f32 %v13365_v38, %v7479_v41  ;;  %v7480_v35 = vmul.f32 %v13362_v36, %v7475_v47  ;;  %v10551_v26 = vpop.f32.mrb[143].mxu0  ;;  %10656 = vmatprep.subr.bf16.mxu1 %v11349_v1 }
 0xe45   : > { %v7482_v25 = vadd.f32 %v13365_v38, %v7480_v35  ;;  %v7483_v24 = vmax.f32 %v7481_v48, 0.0 }
 0xe47   : > { %v7484_v59 = vmax.f32 %v7482_v25, 0.0 }
 0xe49   : > { %v7485_v54 = vpack.c.bf16 %v7484_v59, %v7483_v24  ;;  %10607 = vmatmul.mubr.msk.bf16.vlgmr.msra.gmra.mrb[128].mxu1 %vm2082_vm4, %v13337_v13  ;;  %v9286_v13 = vld [vmem:[%s13872_s2] ss:$0 sm:$0xff]  ;;  %s13876_s2 = smov 32  }
 0xe4a   : > { %10610 = vmatprep.mubr.msk.bf16.mxu1 %vm11350_vm0, %v11349_v1 }
 0xe4b   : > { %v7706_v53 = vsel %vm2412_vm7, %v7485_v54, 0 }
 0xe4c   : > { %10575 = vmatpush3.bf16.msra.mxu0 %v7706_v53 }
 0xe4d   : > { %10626 = vmatprep.subr.bf16.mxu0 %v11349_v1 }
 0xe51   : > { %10611 = vmatmul.mubr.msk.bf16.gmra.mrb[132].mxu1 %vm2082_vm4, %v13343_v2 }
 0xe52   : > { %10614 = vmatprep.mubr.msk.bf16.mxu1 %vm11350_vm0, %v11349_v1 }
 0xe59   : > { %10615 = vmatmul.mubr.msk.bf16.gmra.mrb[136].mxu1 %vm2082_vm4, %v13349_v44 }
 0xe5a   : > { %10618 = vmatprep.mubr.msk.bf16.mxu1 %vm11350_vm0, %v11349_v1 }
 0xe61   : > { %10619 = vmatmul.mubr.msk.bf16.gmra.mrb[140].mxu1 %vm2082_vm4, %v13355_v21 }
 0xe62   : > { %10622 = vmatprep.mubr.msk.bf16.mxu1 %vm11350_vm0, %v11349_v1 }
 0xe69   : > { %10623 = vmatmul.mubr.msk.bf16.gmra.mrb[144].mxu1 %vm2082_vm4, %v7224_v19 }
 0xe6a   : > { %10668 = vmatprep.mubr.msk.bf16.mxu1 %vm11350_vm0, %v11349_v1 }
 0xef4   : > { %v7545_v2 = vpop.f32.mrb[108].mxu1 }
 0xef5   : > { %v13459_v36 = vadd.f32 %v9286_v13, %v7545_v2  ;;  %v10556_v44 = vpop.f32.mrb[109].mxu1 }
 0xef6   : > { %v7548_v38 = vpop.f32.mrb[110].mxu1 }
 0xef7   : > { %v13461_v16 = vadd.f32 %v9286_v13, %v7548_v38  ;;  %v10557_v42 = vpop.f32.mrb[111].mxu1  ;;  %v7584_v21 = vsel %vm7583_vm10, %v13459_v36, -inf }
 0xef8   : > { %7585 = vmax.xlane.f32.xlu0 %v7584_v21 }
 0xef9   : > { %v7587_v60 = vsel %vm7583_vm10, %v13461_v16, -inf }
 0xefa   : > { %7588 = vmax.xlane.f32.xlu1 %v7587_v60 }
 0xefc   : > { %v7553_v40 = vpop.f32.mrb[112].mxu1 }
 0xefd   : > { %v13467_v33 = vadd.f32 %v9286_v13, %v7553_v40  ;;  %v10560_v6 = vpop.f32.mrb[113].mxu1 }
 0xefe   : > { %v7556_v45 = vpop.f32.mrb[114].mxu1 }
 0xeff   : > { %v13469_v32 = vadd.f32 %v9286_v13, %v7556_v45  ;;  %v10561_v0 = vpop.f32.mrb[115].mxu1  ;;  %v7590_v9 = vsel %vm7583_vm10, %v13467_v33, -inf }
 0xf00   : > { %7591 = vmax.xlane.f32.xlu0 %v7590_v9 }
 0xf01   : > { %v7593_v3 = vsel %vm7583_vm10, %v13469_v32, -inf }
 0xf04   : > { %7594 = vmax.xlane.f32.xlu0 %v7593_v3  ;;  %v7561_v11 = vpop.f32.mrb[116].mxu1 }
 0xf05   : > { %v13475_v50 = vadd.f32 %v9286_v13, %v7561_v11  ;;  %v10564_v14 = vpop.f32.mrb[117].mxu1 }
 0xf06   : > { %v7564_v52 = vpop.f32.mrb[118].mxu1 }
 0xf07   : > { %v13477_v37 = vadd.f32 %v9286_v13, %v7564_v52  ;;  %v10565_v46 = vpop.f32.mrb[119].mxu1  ;;  %v7596_v8 = vsel %vm7583_vm10, %v13475_v50, -inf }
 0xf08   : > { %7597 = vmax.xlane.f32.xlu1 %v7596_v8 }
 0xf09   : > { %v7599_v22 = vsel %vm7583_vm10, %v13477_v37, -inf }
 0xf0a   : > { %7600 = vmax.xlane.f32.xlu0 %v7599_v22 }
 0xf0c   : > { %v7569_v31 = vpop.f32.mrb[120].mxu1 }
 0xf0d   : > { %v13483_v15 = vadd.f32 %v9286_v13, %v7569_v31  ;;  %v10568_v17 = vpop.f32.mrb[121].mxu1 }
 0xf0e   : > { %v7572_v12 = vpop.f32.mrb[122].mxu1 }
 0xf0f   : > { %v13485_v57 = vadd.f32 %v9286_v13, %v7572_v12  ;;  %v10569_v18 = vpop.f32.mrb[123].mxu1  ;;  %v7602_v30 = vsel %vm7583_vm10, %v13483_v15, -inf }
 0xf10   : > { %7603 = vmax.xlane.f32.xlu1 %v7602_v30 }
 0xf11   : > { %v7605_v28 = vsel %vm7583_vm10, %v13485_v57, -inf }
 0xf12   : > { %7606 = vmax.xlane.f32.xlu0 %v7605_v28 }
 0xf14   : > { %v7577_v10 = vpop.f32.mrb[124].mxu1 }
 0xf15   : > { %v13491_v56 = vadd.f32 %v9286_v13, %v7577_v10  ;;  %v10572_v4 = vpop.f32.mrb[125].mxu1 }
 0xf16   : > { %v7580_v55 = vpop.f32.mrb[126].mxu1 }
 0xf17   : > { %v10573_v23 = vpop.f32.mrb[127].mxu1  ;;  %v7609_v27 = vsel %vm7608_vm11, %v13491_v56, -inf }
 0xf18   : > { %7610 = vmax.xlane.f32.xlu1 %v7609_v27 }
 0xf1c   : > { %v7821_v7 = vpop.f32.mrb[128].mxu1 }
 0xf1d   : > { %v13496_v61 = vadd.f32 %v9297_v34, %v7821_v7  ;;  %v10608_v63 = vpop.f32.mrb[129].mxu1 }
 0xf1e   : > { %v7824_v58 = vpop.f32.mrb[130].mxu1 }
 0xf1f   : > { %v13498_v19 = vadd.f32 %v9297_v34, %v7824_v58  ;;  %v10609_v39 = vpop.f32.mrb[131].mxu1  ;;  %v7860_v41 = vsel %vm7859_vm12, %v13496_v61, -inf }
 0xf20   : > { %7861 = vmax.xlane.f32.xlu0 %v7860_v41 }
 0xf21   : > { %v7863_v20 = vsel %vm7859_vm12, %v13498_v19, -inf }
 0xf22   : > { %7864 = vmax.xlane.f32.xlu1 %v7863_v20 }
 0xf24   : > { %v7829_v49 = vpop.f32.mrb[132].mxu1 }
 0xf25   : > { %v13504_v47 = vadd.f32 %v9297_v34, %v7829_v49  ;;  %v10612_v48 = vpop.f32.mrb[133].mxu1 }
 0xf26   : > { %v7832_v35 = vpop.f32.mrb[134].mxu1 }
 0xf27   : > { %v13506_v26 = vadd.f32 %v9297_v34, %v7832_v35  ;;  %v10613_v25 = vpop.f32.mrb[135].mxu1  ;;  %v7866_v24 = vsel %vm7859_vm12, %v13504_v47, -inf }
 0xf28   : > { %7867 = vmax.xlane.f32.xlu0 %v7866_v24 }
 0xf29   : > { %v7869_v59 = vsel %vm7859_vm12, %v13506_v26, -inf }
 0xf2a   : > { %7870 = vmax.xlane.f32.xlu1 %v7869_v59 }
 0xf2c   : > { %v7837_v54 = vpop.f32.mrb[136].mxu1 }
 0xf2d   : > { %v13512_v53 = vadd.f32 %v9297_v34, %v7837_v54  ;;  %v10616_v13 = vpop.f32.mrb[137].mxu1 }
 0xf2e   : > { %v7840_v2 = vpop.f32.mrb[138].mxu1 }
 0xf2f   : > { %v13514_v44 = vadd.f32 %v9297_v34, %v7840_v2  ;;  %v10617_v38 = vpop.f32.mrb[139].mxu1  ;;  %v7872_v42 = vsel %vm7859_vm12, %v13512_v53, -inf }
 0xf30   : > { %7873 = vmax.xlane.f32.xlu0 %v7872_v42 }
 0xf31   : > { %v7875_v21 = vsel %vm7859_vm12, %v13514_v44, -inf }
 0xf32   : > { %7876 = vmax.xlane.f32.xlu1 %v7875_v21 }
 0xf34   : > { %v7845_v60 = vpop.f32.mrb[140].mxu1 }
 0xf35   : > { %v13520_v40 = vadd.f32 %v9297_v34, %v7845_v60  ;;  %v10620_v6 = vpop.f32.mrb[141].mxu1 }
 0xf36   : > { %v7848_v45 = vpop.f32.mrb[142].mxu1 }
 0xf37   : > { %v13522_v0 = vadd.f32 %v9297_v34, %v7848_v45  ;;  %v10621_v9 = vpop.f32.mrb[143].mxu1  ;;  %v7878_v3 = vsel %vm7859_vm12, %v13520_v40, -inf }
 0xf38   : > { %7879 = vmax.xlane.f32.xlu0 %v7878_v3 }
 0xf39   : > { %v7881_v11 = vsel %vm7859_vm12, %v13522_v0, -inf }
 0xf3a   : > { %7882 = vmax.xlane.f32.xlu1 %v7881_v11 }
 0xf3c   : > { %v7853_v14 = vpop.f32.mrb[144].mxu1 }
 0xf3d   : > { %v13528_v52 = vadd.f32 %v9297_v34, %v7853_v14  ;;  %v10624_v46 = vpop.f32.mrb[145].mxu1 }
 0xf3e   : > { %v7856_v8 = vpop.f32.mrb[146].mxu1 }
 0xf3f   : > { %v10625_v22 = vpop.f32.mrb[147].mxu1  ;;  %v7885_v31 = vsel %vm7884_vm13, %v13528_v52, -inf }
 0xf40   : > { %7886 = vmax.xlane.f32.xlu0 %v7885_v31 }
 0xf85   : > { %v7586_v17 = vpop.xlane.xlu0 %7585 }
 0xf86   : > { %v7612_v12 = vsub.f32 %v13459_v36, %v7586_v17 }
 0xf87   : > { %v7589_v18 = vpop.xlane.xlu1 %7588 }
 0xf88   : > { %v7621_v30 = vmul.f32 1.442695, %v7612_v12  ;;  %v7613_v28 = vsub.f32 %v13461_v16, %v7589_v18 }
 0xf8a   : > { %11226 = vpow2.f32 %v7621_v30  ;;  %v7623_v10 = vmul.f32 1.442695, %v7613_v28 }
 0xf8c   : > { %11228 = vpow2.f32 %v7623_v10 }
 0xf8d   : > { %v7592_v4 = vpop.xlane.xlu0 %7591 }
 0xf8e   : > { %v7614_v55 = vsub.f32 %v13467_v33, %v7592_v4 }
 0xf90   : > { %v7625_v23 = vmul.f32 1.442695, %v7614_v55 }
 0xf91   : > { %v7595_v27 = vpop.xlane.xlu0 %7594 }
 0xf92   : > { %11230 = vpow2.f32 %v7625_v23  ;;  %v7615_v34 = vsub.f32 %v13469_v32, %v7595_v27 }
 0xf94   : > { %v13536_v7 = vpop.eup %11226  ;;  %v7627_v63 = vmul.f32 1.442695, %v7615_v34 }
 0xf95   : > { %v7598_v58 = vpop.xlane.xlu1 %7597  ;;  %v7639_v36 = vsel %vm7583_vm10, %v13536_v7, 0.0 }
 0xf96   : > { %v13540_v39 = vpop.eup %11228  ;;  %11232 = vpow2.f32 %v7627_v63  ;;  %v7616_v16 = vsub.f32 %v13475_v50, %v7598_v58  ;;  %7640 = vadd.xlane.f32.xlu1 %v7639_v36 }
 0xf97   : > { %v7601_v41 = vpop.xlane.xlu0 %7600  ;;  %v7642_v33 = vsel %vm7583_vm10, %v13540_v39, 0.0 }
 0xf98   : > { %v7629_v20 = vmul.f32 1.442695, %v7616_v16  ;;  %v7617_v32 = vsub.f32 %v13477_v37, %v7601_v41  ;;  %7643 = vadd.xlane.f32.xlu0 %v7642_v33 }
 0xf9a   : > { %11234 = vpow2.f32 %v7629_v20  ;;  %v7631_v49 = vmul.f32 1.442695, %v7617_v32 }
 0xf9c   : > { %v13546_v48 = vpop.eup %11230  ;;  %11236 = vpow2.f32 %v7631_v49 }
 0xf9d   : > { %v7604_v35 = vpop.xlane.xlu1 %7603  ;;  %v7645_v25 = vsel %vm7583_vm10, %v13546_v48, 0.0 }
 0xf9e   : > { %v7618_v50 = vsub.f32 %v13483_v15, %v7604_v35  ;;  %7646 = vadd.xlane.f32.xlu1 %v7645_v25 }
 0xf9f   : > { %v7607_v24 = vpop.xlane.xlu0 %7606 }
 0xfa0   : > { %v13551_v59 = vpop.eup %11232  ;;  %v7633_v54 = vmul.f32 1.442695, %v7618_v50  ;;  %v7619_v13 = vsub.f32 %v13485_v57, %v7607_v24 }
 0xfa1   : > { %v7648_v37 = vsel %vm7583_vm10, %v13551_v59, 0.0 }
 0xfa2   : > { %11238 = vpow2.f32 %v7633_v54  ;;  %v7635_v2 = vmul.f32 1.442695, %v7619_v13  ;;  %7649 = vadd.xlane.f32.xlu0 %v7648_v37 }
 0xfa4   : > { %v13556_v38 = vpop.eup %11234  ;;  %11240 = vpow2.f32 %v7635_v2 }
 0xfa5   : > { %v7611_v42 = vpop.xlane.xlu1 %7610  ;;  %v7651_v15 = vsel %vm7583_vm10, %v13556_v38, 0.0 }
 0xfa6   : > { %v13560_v21 = vpop.eup %11236  ;;  %v7620_v60 = vsub.f32 %v13491_v56, %v7611_v42  ;;  %7652 = vadd.xlane.f32.xlu1 %v7651_v15 }
 0xfa7   : > { %v7654_v57 = vsel %vm7583_vm10, %v13560_v21, 0.0 }
 0xfa8   : > { %v7637_v6 = vmul.f32 1.442695, %v7620_v60  ;;  %7655 = vadd.xlane.f32.xlu0 %v7654_v57 }
 0xfaa   : > { %11242 = vpow2.f32 %v7637_v6 }
 0xfac   : > { %v13565_v45 = vpop.eup %11238 }
 0xfad   : > { %v7862_v9 = vpop.xlane.xlu0 %7861  ;;  %v7657_v3 = vsel %vm7583_vm10, %v13565_v45, 0.0 }
 0xfae   : > { %v13569_v11 = vpop.eup %11240  ;;  %v7888_v14 = vsub.f32 %v13496_v61, %v7862_v9  ;;  %7658 = vadd.xlane.f32.xlu1 %v7657_v3 }
 0xfaf   : > { %v7865_v46 = vpop.xlane.xlu1 %7864  ;;  %v7660_v56 = vsel %vm7583_vm10, %v13569_v11, 0.0 }
 0xfb0   : > { %v7897_v8 = vmul.f32 1.442695, %v7888_v14  ;;  %v7889_v22 = vsub.f32 %v13498_v19, %v7865_v46  ;;  %7661 = vadd.xlane.f32.xlu0 %v7660_v56 }
 0xfb2   : > { %11244 = vpow2.f32 %v7897_v8  ;;  %v7899_v31 = vmul.f32 1.442695, %v7889_v22 }
 0xfb4   : > { %v13575_v17 = vpop.eup %11242  ;;  %11246 = vpow2.f32 %v7899_v31 }
 0xfb5   : > { %v7868_v12 = vpop.xlane.xlu0 %7867  ;;  %v7663_v18 = vsel %vm7608_vm11, %v13575_v17, 0.0 }
 0xfb6   : > { %v7890_v61 = vsub.f32 %v13504_v47, %v7868_v12  ;;  %7664 = vadd.xlane.f32.xlu1 %v7663_v18 }
 0xfb7   : > { %v7871_v30 = vpop.xlane.xlu1 %7870 }
 0xfb8   : > { %v7901_v28 = vmul.f32 1.442695, %v7890_v61  ;;  %v7891_v10 = vsub.f32 %v13506_v26, %v7871_v30 }
 0xfba   : > { %11248 = vpow2.f32 %v7901_v28  ;;  %v7903_v4 = vmul.f32 1.442695, %v7891_v10  ;;  %v7432_v10 = vmax.f32 %v13425_v5, 0.0 }
 0xfbc   : > { %v13581_v19 = vpop.eup %11244  ;;  %11250 = vpow2.f32 %v7903_v4 }
 0xfbd   : > { %v7874_v55 = vpop.xlane.xlu0 %7873  ;;  %v7915_v23 = vsel %vm7859_vm12, %v13581_v19, 0.0 }
 0xfbe   : > { %v13585_v27 = vpop.eup %11246  ;;  %v7892_v34 = vsub.f32 %v13512_v53, %v7874_v55  ;;  %7916 = vadd.xlane.f32.xlu0 %v7915_v23 }
 0xfbf   : > { %v7877_v47 = vpop.xlane.xlu1 %7876  ;;  %v7918_v63 = vsel %vm7859_vm12, %v13585_v27, 0.0 }
 0xfc0   : > { %v7905_v58 = vmul.f32 1.442695, %v7892_v34  ;;  %v7893_v26 = vsub.f32 %v13514_v44, %v7877_v47  ;;  %7919 = vadd.xlane.f32.xlu1 %v7918_v63 }
 0xfc2   : > { %11252 = vpow2.f32 %v7905_v58  ;;  %v7907_v36 = vmul.f32 1.442695, %v7893_v26 }
 0xfc4   : > { %v13591_v16 = vpop.eup %11248  ;;  %11254 = vpow2.f32 %v7907_v36 }
 0xfc5   : > { %v7880_v41 = vpop.xlane.xlu0 %7879  ;;  %v7921_v33 = vsel %vm7859_vm12, %v13591_v16, 0.0 }
 0xfc6   : > { %v13595_v20 = vpop.eup %11250  ;;  %v7894_v53 = vsub.f32 %v13520_v40, %v7880_v41  ;;  %7922 = vadd.xlane.f32.xlu0 %v7921_v33 }
 0xfc7   : > { %v7883_v32 = vpop.xlane.xlu1 %7882  ;;  %v7924_v49 = vsel %vm7859_vm12, %v13595_v20, 0.0 }
 0xfc8   : > { %v7909_v44 = vmul.f32 1.442695, %v7894_v53  ;;  %v7895_v35 = vsub.f32 %v13522_v0, %v7883_v32  ;;  %7925 = vadd.xlane.f32.xlu1 %v7924_v49 }
 0xfca   : > { %11256 = vpow2.f32 %v7909_v44  ;;  %v7911_v25 = vmul.f32 1.442695, %v7895_v35 }
 0xfcc   : > { %v13601_v50 = vpop.eup %11252  ;;  %11258 = vpow2.f32 %v7911_v25 }
 0xfcd   : > { %v7887_v24 = vpop.xlane.xlu0 %7886  ;;  %v7927_v54 = vsel %vm7859_vm12, %v13601_v50, 0.0 }
 0xfce   : > { %v13605_v13 = vpop.eup %11254  ;;  %v7896_v40 = vsub.f32 %v13528_v52, %v7887_v24  ;;  %7928 = vadd.xlane.f32.xlu0 %v7927_v54 }
 0xfcf   : > { %v7930_v37 = vsel %vm7859_vm12, %v13605_v13, 0.0 }
 0xfd0   : > { %v7913_v2 = vmul.f32 1.442695, %v7896_v40  ;;  %7931 = vadd.xlane.f32.xlu1 %v7930_v37 }
 0xfd2   : > { %11260 = vpow2.f32 %v7913_v2 }
 0xfd4   : > { %v13610_v0 = vpop.eup %11256 }
 0xfd5   : > { %v7933_v42 = vsel %vm7859_vm12, %v13610_v0, 0.0 }
 0xfd6   : > { %v13614_v15 = vpop.eup %11258  ;;  %7934 = vadd.xlane.f32.xlu0 %v7933_v42 }
 0xfd7   : > { %v7936_v60 = vsel %vm7859_vm12, %v13614_v15, 0.0 }
 0xfd8   : > { %7937 = vadd.xlane.f32.xlu1 %v7936_v60 }
 0xfdc   : > { %v13618_v52 = vpop.eup %11260 }
 0xfdd   : > { %v7939_v57 = vsel %vm7884_vm13, %v13618_v52, 0.0 }
 0xfde   : > { %7940 = vadd.xlane.f32.xlu0 %v7939_v57 }
 0xff4   : > { %8086 = vrot.lane.b32.xlu0 %v13373_v43, %s13874_s15 }
0x1023   : > { %v7641_v6 = vpop.xlane.xlu1 %7640 }
0x1024   : > { %11262 = vrcp.f32 %v7641_v6 }
0x1025   : > { %v7644_v9 = vpop.xlane.xlu0 %7643 }
0x1026   : > { %11264 = vrcp.f32 %v7644_v9 }
0x102b   : > { %v7647_v3 = vpop.xlane.xlu1 %7646 }
0x102c   : > { %11266 = vrcp.f32 %v7647_v3 }
0x102e   : > { %v11263_v14 = vpop.eup %11262 }
0x102f   : > { %v7650_v46 = vpop.xlane.xlu0 %7649  ;;  %v7675_v8 = vmul.f32 %v11263_v14, %v13536_v7 }
0x1030   : > { %v11265_v56 = vpop.eup %11264  ;;  %11268 = vrcp.f32 %v7650_v46 }
0x1031   : > { %v7676_v22 = vmul.f32 %v11265_v56, %v13540_v39 }
0x1033   : > { %v7653_v31 = vpop.xlane.xlu1 %7652  ;;  %v7684_v12 = vpack.c.bf16 %v7676_v22, %v7675_v8 }
0x1034   : > { %11270 = vrcp.f32 %v7653_v31 }
0x1035   : > { %10577 = vmatmul.mubr.msk.bf16.vlgmr.msra.gmra.mrb[144].mxu0 %vm7583_vm10, %v7684_v12  ;;  %v7656_v18 = vpop.xlane.xlu0 %7655 }
0x1036   : > { %10627 = vmatpush3.bf16.msra.mxu0 %v13373_v43  ;;  %11272 = vrcp.f32 %v7656_v18  ;;  %10580 = vmatprep.mubr.msk.bf16.mxu0 %vm11350_vm0, %v11349_v1  ;;  %v11267_v61 = vpop.eup %11266  ;;  %v11220_v18 = vld [vmem:[%s13875_s0 + $0x10] sm:$0xff]  }
0x1037   : > { %10628 = vmatprep.subr.bf16.mxu0 %v11349_v1  ;;  %v7677_v39 = vmul.f32 %v11267_v61, %v13546_v48  ;;  %v13641_v48 = vpack.c.bf16 %v7432_v10, %v7432_v10  ;;  %v11221_v61 = vld [vmem:[%s13875_s0 + $0x18] sm:$0xff]  }
0x1039   : > { %v7982_v47 = vsel %vm7980_vm14, %v13641_v48, 0 }
0x103a   : > { %v11269_v30 = vpop.eup %11268  ;;  %10629 = vmatpush3.bf16.msra.mxu0 %v13386_v62 }
0x103b   : > { %v7659_v7 = vpop.xlane.xlu1 %7658  ;;  %10630 = vmatprep.subr.bf16.mxu0 %v11349_v1  ;;  %v7678_v28 = vmul.f32 %v11269_v30, %v13551_v59  ;;  %v11223_v30 = vld [vmem:[%s13875_s0 + $0x28] sm:$0xff]  }
0x103c   : > { %11274 = vrcp.f32 %v7659_v7 }
0x103d   : > { %v7662_v43 = vpop.xlane.xlu0 %7661  ;;  %v7685_v4 = vpack.c.bf16 %v7678_v28, %v7677_v39 }
0x103e   : > { %10631 = vmatpush3.bf16.msra.mxu0 %v13399_v51  ;;  %11276 = vrcp.f32 %v7662_v43  ;;  %v11271_v55 = vpop.eup %11270 }
0x103f   : > { %10581 = vmatmul.mubr.msk.bf16.gmra.mrb[148].mxu0 %vm7583_vm10, %v7685_v4  ;;  %10632 = vmatprep.subr.bf16.mxu0 %v11349_v1  ;;  %v7679_v34 = vmul.f32 %v11271_v55, %v13556_v38 }
0x1040   : > { %v11273_v23 = vpop.eup %11272  ;;  %10584 = vmatprep.mubr.msk.bf16.mxu0 %vm11350_vm0, %v11349_v1 }
0x1041   : > { %v7680_v59 = vmul.f32 %v11273_v23, %v13560_v21 }
0x1042   : > { %10633 = vmatpush3.bf16.msra.mxu0 %v13415_v29 }
0x1043   : > { %v7665_v5 = vpop.xlane.xlu1 %7664  ;;  %10634 = vmatprep.subr.bf16.mxu0 %v11349_v1  ;;  %v7686_v63 = vpack.c.bf16 %v7680_v59, %v7679_v34 }
0x1044   : > { %11278 = vrcp.f32 %v7665_v5 }
0x1046   : > { %10635 = vmatpush3.bf16.msra.mxu0 %v7982_v47  ;;  %v11275_v58 = vpop.eup %11274 }
0x1047   : > { %10585 = vmatmul.mubr.msk.bf16.gmra.mrb[152].mxu0 %vm7583_vm10, %v7686_v63  ;;  %10688 = vmatprep.subr.bf16.mxu0 %v11349_v1  ;;  %v7681_v41 = vmul.f32 %v11275_v58, %v13565_v45 }
0x1048   : > { %v11277_v26 = vpop.eup %11276  ;;  %10588 = vmatprep.mubr.msk.bf16.mxu0 %vm11350_vm0, %v11349_v1 }
0x1049   : > { %v7682_v21 = vmul.f32 %v11277_v26, %v13569_v11 }
0x104b   : > { %v7917_v36 = vpop.xlane.xlu0 %7916  ;;  %v7687_v33 = vpack.c.bf16 %v7682_v21, %v7681_v41 }
0x104c   : > { %11280 = vrcp.f32 %v7917_v36 }
0x104d   : > { %v7920_v38 = vpop.xlane.xlu1 %7919 }
0x104e   : > { %v11279_v53 = vpop.eup %11278  ;;  %11282 = vrcp.f32 %v7920_v38 }
0x104f   : > { %10589 = vmatmul.mubr.msk.bf16.gmra.mrb[156].mxu0 %vm7583_vm10, %v7687_v33  ;;  %v7683_v32 = vmul.f32 %v11279_v53, %v13575_v17 }
0x1050   : > { %10592 = vmatprep.mubr.msk.bf16.mxu0 %vm11350_vm0, %v11349_v1 }
0x1051   : > { %v7688_v35 = vpack.c.bf16 %v7683_v32, %v7683_v32 }
0x1053   : > { %v7923_v49 = vpop.xlane.xlu0 %7922 }
0x1054   : > { %11284 = vrcp.f32 %v7923_v49 }
0x1055   : > { %v7926_v44 = vpop.xlane.xlu1 %7925 }
0x1056   : > { %11286 = vrcp.f32 %v7926_v44  ;;  %v11281_v11 = vpop.eup %11280 }
0x1057   : > { %10593 = vmatmul.mubr.msk.bf16.gmra.mrb[160].mxu0 %vm7583_vm10, %v7688_v35  ;;  %v7951_v24 = vmul.f32 %v11281_v11, %v13581_v19 }
0x1058   : > { %v11283_v45 = vpop.eup %11282  ;;  %10636 = vmatprep.mubr.msk.bf16.mxu0 %vm11350_vm0, %v11349_v1 }
0x1059   : > { %v7952_v25 = vmul.f32 %v11283_v45, %v13585_v27 }
0x105b   : > { %v7929_v54 = vpop.xlane.xlu0 %7928  ;;  %v7960_v40 = vpack.c.bf16 %v7952_v25, %v7951_v24 }
0x105c   : > { %11288 = vrcp.f32 %v7929_v54 }
0x105d   : > { %v7932_v17 = vpop.xlane.xlu1 %7931 }
0x105e   : > { %11290 = vrcp.f32 %v7932_v17  ;;  %v11285_v37 = vpop.eup %11284 }
0x105f   : > { %10637 = vmatmul.mubr.msk.bf16.vlgmr.msra.gmra.mrb[164].mxu0 %vm7859_vm12, %v7960_v40  ;;  %v7953_v57 = vmul.f32 %v11285_v37, %v13591_v16 }
0x1060   : > { %v11287_v2 = vpop.eup %11286  ;;  %10640 = vmatprep.mubr.msk.bf16.mxu0 %vm11350_vm0, %v11349_v1 }
0x1061   : > { %v7954_v42 = vmul.f32 %v11287_v2, %v13595_v20 }
0x1063   : > { %v7935_v60 = vpop.xlane.xlu0 %7934  ;;  %v7961_v19 = vpack.c.bf16 %v7954_v42, %v7953_v57 }
0x1064   : > { %11292 = vrcp.f32 %v7935_v60 }
0x1065   : > { %v7938_v27 = vpop.xlane.xlu1 %7937 }
0x1066   : > { %11294 = vrcp.f32 %v7938_v27  ;;  %v11289_v6 = vpop.eup %11288 }
0x1067   : > { %10641 = vmatmul.mubr.msk.bf16.gmra.mrb[168].mxu0 %vm7859_vm12, %v7961_v19  ;;  %v7955_v46 = vmul.f32 %v11289_v6, %v13601_v50 }
0x1068   : > { %v11291_v9 = vpop.eup %11290  ;;  %10644 = vmatprep.mubr.msk.bf16.mxu0 %vm11350_vm0, %v11349_v1 }
0x1069   : > { %v7956_v3 = vmul.f32 %v11291_v9, %v13605_v13 }
0x106b   : > { %v7941_v14 = vpop.xlane.xlu0 %7940  ;;  %v7962_v20 = vpack.c.bf16 %v7956_v3, %v7955_v46 }
0x106c   : > { %11296 = vrcp.f32 %v7941_v14 }
0x106e   : > { %v11293_v16 = vpop.eup %11292 }
0x106f   : > { %10645 = vmatmul.mubr.msk.bf16.gmra.mrb[172].mxu0 %vm7859_vm12, %v7962_v20  ;;  %v7957_v22 = vmul.f32 %v11293_v16, %v13610_v0  ;;  %v11219_v0 = vld [vmem:[%s13875_s0 + $0x8] sm:$0xff]  }
0x1070   : > { %v11295_v56 = vpop.eup %11294  ;;  %10648 = vmatprep.mubr.msk.bf16.mxu0 %vm11350_vm0, %v11349_v1 }
0x1071   : > { %v7958_v8 = vmul.f32 %v11295_v56, %v13614_v15  ;;  %v11218_v15 = vld [vmem:[%s13875_s0] sm:$0xff]  }
0x1072   : > { %10657 = vmatpush3.bf16.msra.mxu1 %v11218_v15 }
0x1073   : > { %v7963_v13 = vpack.c.bf16 %v7958_v8, %v7957_v22  ;;  %10658 = vmatprep.subr.bf16.mxu1 %v11349_v1  ;;  %v8505_v22 = vld [vmem:[%s11567_s24] sm:$0x3] }
0x1076   : > { %v11297_v31 = vpop.eup %11296  ;;  %10659 = vmatpush3.bf16.msra.mxu1 %v11219_v0 }
0x1077   : > { %10649 = vmatmul.mubr.msk.bf16.gmra.mrb[176].mxu0 %vm7859_vm12, %v7963_v13  ;;  %v7959_v50 = vmul.f32 %v11297_v31, %v13618_v52  ;;  %10660 = vmatprep.subr.bf16.mxu1 %v11349_v1  ;;  %v11222_v52 = vld [vmem:[%s13875_s0 + $0x20] sm:$0xff]   ;;  %v8087_v13 = vpop.permute.xlu0 %8086 }
0x1078   : > { %10652 = vmatprep.mubr.msk.bf16.mxu0 %vm11350_vm0, %v11349_v1 }
0x1079   : > { %v7964_v12 = vpack.c.bf16 %v7959_v50, %v7959_v50 }
0x107a   : > { %10661 = vmatpush3.bf16.msra.mxu1 %v11220_v18 }
0x107b   : > { %10662 = vmatprep.subr.bf16.mxu1 %v11349_v1 }
0x107e   : > { %10663 = vmatpush3.bf16.msra.mxu1 %v11221_v61 }
0x107f   : > { %10653 = vmatmul.mubr.msk.bf16.gmra.mrb[180].mxu0 %vm7859_vm12, %v7964_v12  ;;  %10664 = vmatprep.subr.bf16.mxu1 %v11349_v1 }
0x1080   : > { %10692 = vmatprep.mubr.msk.bf16.mxu0 %vm11350_vm0, %v11349_v1 }
0x1082   : > { %10665 = vmatpush3.bf16.msra.mxu1 %v11222_v52 }
0x1083   : > { %10666 = vmatprep.subr.bf16.mxu1 %v11349_v1 }
0x1086   : > { %10667 = vmatpush3.bf16.msra.mxu1 %v11223_v30 }
0x1087   : > { %10712 = vmatprep.subr.bf16.mxu1 %v11349_v1 }
0x1108   : > { %v13697_v7 = vpop.f32.mrb[144].mxu0 }
0x1109   : > { %v10578_v39 = vpop.f32.mrb[145].mxu0 }
0x110a   : > { %v13699_v28 = vpop.f32.mrb[146].mxu0 }
0x110b   : > { %v8056_v10 = vpack.c.bf16 %v13699_v28, %v13697_v7  ;;  %v10579_v43 = vpop.f32.mrb[147].mxu0 }
0x1112   : > { %v13703_v4 = vpop.f32.mrb[148].mxu0 }
0x1113   : > { %v10582_v55 = vpop.f32.mrb[149].mxu0 }
0x1114   : > { %v13705_v23 = vpop.f32.mrb[150].mxu0 }
0x1115   : > { %v8057_v59 = vpack.c.bf16 %v13705_v23, %v13703_v4  ;;  %v10583_v5 = vpop.f32.mrb[151].mxu0 }
0x1116   : > { %v11224_v5 = vld [vmem:[%s13877_s1] sm:$0xff]  }
0x1117   : > { %10689 = vmatpush3.bf16.msra.mxu0 %v11224_v5 }
0x1118   : > { %10690 = vmatprep.subr.bf16.mxu0 %v11349_v1 }
0x111a   : > { %v13709_v34 = vpop.f32.mrb[152].mxu0 }
0x111b   : > { %v10586_v47 = vpop.f32.mrb[153].mxu0 }
0x111c   : > { %v13711_v63 = vpop.f32.mrb[154].mxu0 }
0x111d   : > { %v8058_v58 = vpack.c.bf16 %v13711_v63, %v13709_v34  ;;  %v10587_v26 = vpop.f32.mrb[155].mxu0  ;;  %v11225_v34 = vld [vmem:[%s13877_s1 + $0x8] sm:$0xff]  }
0x111e   : > { %10691 = vmatpush3.bf16.msra.mxu0 %v11225_v34 }
0x1122   : > { %v13715_v21 = vpop.f32.mrb[156].mxu0 }
0x1123   : > { %v10590_v36 = vpop.f32.mrb[157].mxu0 }
0x1124   : > { %v13717_v41 = vpop.f32.mrb[158].mxu0 }
0x1125   : > { %v8059_v38 = vpack.c.bf16 %v13717_v41, %v13715_v21  ;;  %v10591_v33 = vpop.f32.mrb[159].mxu0 }
0x112a   : > { %v13721_v53 = vpop.f32.mrb[160].mxu0 }
0x112b   : > { %v10594_v32 = vpop.f32.mrb[161].mxu0  ;;  %v8060_v4 = vpack.c.bf16 %v13721_v53, %v13721_v53 }
0x112c   : > { %v7777_v49 = vpop.f32.mrb[162].mxu0 }
0x112d   : > { %v10595_v44 = vpop.f32.mrb[163].mxu0 }
0x1132   : > { %v8018_v35 = vpop.f32.mrb[164].mxu0 }
0x1133   : > { %v10638_v11 = vpop.f32.mrb[165].mxu0 }
0x1134   : > { %v8021_v45 = vpop.f32.mrb[166].mxu0 }
0x1135   : > { %v8061_v25 = vpack.c.bf16 %v8021_v45, %v8018_v35  ;;  %v10639_v24 = vpop.f32.mrb[167].mxu0 }
0x1137   : > { %8071 = vrot.lane.b32.xlu1 %v8061_v25, %s13876_s2 }
0x113a   : > { %v8026_v54 = vpop.f32.mrb[168].mxu0 }
0x113b   : > { %v10642_v40 = vpop.f32.mrb[169].mxu0 }
0x113c   : > { %v8029_v17 = vpop.f32.mrb[170].mxu0 }
0x113d   : > { %v8062_v37 = vpack.c.bf16 %v8029_v17, %v8026_v54  ;;  %v10643_v2 = vpop.f32.mrb[171].mxu0 }
0x113f   : > { %8073 = vrot.lane.b32.xlu1 %v8062_v37, %s13876_s2 }
0x1142   : > { %v8034_v42 = vpop.f32.mrb[172].mxu0 }
0x1143   : > { %8088 = vrot.lane.b32.xlu1 %v13386_v62, %s13874_s15  ;;  %v10646_v60 = vpop.f32.mrb[173].mxu0  ;;  %v8512_v62 = vld [vmem:[%s11572_s19] sm:$0x3] }
0x1144   : > { %v8037_v57 = vpop.f32.mrb[174].mxu0 }
0x1145   : > { %v8063_v27 = vpack.c.bf16 %v8037_v57, %v8034_v42  ;;  %v10647_v19 = vpop.f32.mrb[175].mxu0 }
0x1147   : > { %8090 = vrot.lane.b32.xlu1 %v13399_v51, %s13874_s15  ;;  %8075 = vrot.lane.b32.xlu0 %v8063_v27, %s13876_s2 }
0x114a   : > { %v8042_v6 = vpop.f32.mrb[176].mxu0 }
0x114b   : > { %8092 = vrot.lane.b32.xlu1 %v13415_v29, %s13874_s15  ;;  %v10650_v9 = vpop.f32.mrb[177].mxu0 }
0x114c   : > { %v8045_v3 = vpop.f32.mrb[178].mxu0 }
0x114d   : > { %v8064_v14 = vpack.c.bf16 %v8045_v3, %v8042_v6  ;;  %v10651_v46 = vpop.f32.mrb[179].mxu0 }
0x114f   : > { %8094 = vrot.lane.b32.xlu1 %v13641_v48, %s13874_s15  ;;  %8077 = vrot.lane.b32.xlu0 %v8064_v14, %s13876_s2  ;;  %s13878_s15 = sld [smem:[#allocation23_spill]] }
0x1152   : > { %v8050_v20 = vpop.f32.mrb[180].mxu0 }
0x1153   : > { %v8065_v16 = vpack.c.bf16 %v8050_v20, %v8050_v20  ;;  %8515 = vperm.xlu1 %11030, %v8512_v62   ;;  %v10654_v51 = vpop.f32.mrb[181].mxu0 }
0x1154   : > { %v8053_v56 = vpop.f32.mrb[182].mxu0 }
0x1155   : > { %8079 = vrot.lane.b32.xlu0 %v8065_v16, %s13876_s2  ;;  %v10655_v8 = vpop.f32.mrb[183].mxu0  ;;  %s13879_s2 = sld [smem:[#allocation24_spill]]  ;;  %v9319_v47 = vld [vmem:[%s13878_s15] ss:$0 sm:$0xff]  ;;  %s13880_s15 = sld [smem:[#allocation26_spill]] }
0x1159   : > { %8508 = vperm.xlu0 %11029, %v8505_v22  }
0x11a9   : > { %v8072_v29 = vpop.permute.xlu1 %8071 }
0x11aa   : > { %v8098_v31 = vsel %vm2082_vm4, %v8056_v10, %v8072_v29 }
0x11ab   : > { %v8112_v50 = vsel %vm2097_vm5, %v8098_v31, %v8087_v13 }
0x11ac   : > { %10669 = vmatmul.mubr.msk.bf16.vlgmr.msra.gmra.mrb[148].mxu1 %vm1448_vm1, %v8112_v50 }
0x11ad   : > { %10672 = vmatprep.mubr.msk.bf16.mxu1 %vm11350_vm0, %v11349_v1 }
0x11b1   : > { %v8074_v48 = vpop.permute.xlu1 %8073 }
0x11b2   : > { %v8101_v12 = vsel %vm2082_vm4, %v8057_v59, %v8074_v48 }
0x11b5   : > { %v8089_v15 = vpop.permute.xlu1 %8088 }
0x11b6   : > { %v8114_v0 = vsel %vm2097_vm5, %v8101_v12, %v8089_v15 }
0x11b7   : > { %10673 = vmatmul.mubr.msk.bf16.gmra.mrb[152].mxu1 %vm1448_vm1, %v8114_v0 }
0x11b8   : > { %10676 = vmatprep.mubr.msk.bf16.mxu1 %vm11350_vm0, %v11349_v1 }
0x11b9   : > { %v8076_v18 = vpop.permute.xlu0 %8075  ;;  %v8091_v61 = vpop.permute.xlu1 %8090 }
0x11ba   : > { %v8104_v52 = vsel %vm2082_vm4, %v8058_v58, %v8076_v18  ;;  %v9320_v58 = vld [vmem:[%s13879_s2] ss:$0 sm:$0xff]  ;;  %s13881_s2 = sld [smem:[#allocation27_spill]] }
0x11bb   : > { %v8116_v30 = vsel %vm2097_vm5, %v8104_v52, %v8091_v61 }
0x11bd   : > { %v8093_v28 = vpop.permute.xlu1 %8092 }
0x11bf   : > { %10677 = vmatmul.mubr.msk.bf16.gmra.mrb[156].mxu1 %vm1448_vm1, %v8116_v30 }
0x11c0   : > { %10680 = vmatprep.mubr.msk.bf16.mxu1 %vm11350_vm0, %v11349_v1 }
0x11c1   : > { %v8078_v7 = vpop.permute.xlu0 %8077  ;;  %v8095_v23 = vpop.permute.xlu1 %8094 }
0x11c2   : > { %v8107_v39 = vsel %vm2082_vm4, %v8059_v38, %v8078_v7 }
0x11c3   : > { %v8118_v10 = vsel %vm2097_vm5, %v8107_v39, %v8093_v28  ;;  %v9328_v28 = vld [vmem:[%s13880_s15] ss:$0 sm:$0xff]  ;;  %s8661_s15 = sshll.u32 %s13883_s23, 1 }
0x11c7   : > { %10681 = vmatmul.mubr.msk.bf16.gmra.mrb[160].mxu1 %vm1448_vm1, %v8118_v10  ;;  %v8080_v43 = vpop.permute.xlu0 %8079 }
0x11c8   : > { %10684 = vmatprep.mubr.msk.bf16.mxu1 %vm11350_vm0, %v11349_v1  ;;  %v8110_v55 = vsel %vm2082_vm4, %v8060_v4, %v8080_v43  ;;  %v9329_v43 = vld [vmem:[%s13881_s2] ss:$0 sm:$0xff]  ;;  %s1352_s2 = scalar_lea.vmem %s11577_s25, %s8661_s15 }
0x11c9   : > { %v8120_v59 = vsel %vm2097_vm5, %v8110_v55, %v8095_v23 }
0x11cf   : > { %10685 = vmatmul.mubr.msk.bf16.gmra.mrb[164].mxu1 %vm1448_vm1, %v8120_v59 }
0x11d0   : > { %10722 = vmatprep.mubr.msk.bf16.mxu1 %vm11350_vm0, %v11349_v1 }
0x127f   : > { %v8213_v63 = vpop.f32.mrb[148].mxu1 }
0x1280   : > { %v8258_v26 = vmul.f32 %v9319_v47, %v8213_v63  ;;  %v10670_v21 = vpop.f32.mrb[149].mxu1 }
0x1281   : > { %v8216_v36 = vpop.f32.mrb[150].mxu1 }
0x1282   : > { %v8274_v41 = vadd.f32 %v9320_v58, %v8258_v26  ;;  %v8259_v38 = vmul.f32 %v9319_v47, %v8216_v36  ;;  %v10671_v33 = vpop.f32.mrb[151].mxu1 }
0x1284   : > { %v8275_v53 = vadd.f32 %v9320_v58, %v8259_v38  ;;  %v8283_v32 = vmax.f32 %v8274_v41, 0.0 }
0x1286   : > { %v8284_v49 = vmax.f32 %v8275_v53, 0.0 }
0x1288   : > { %v8292_v44 = vpack.c.bf16 %v8284_v49, %v8283_v32 }
0x128a   : > { %v8221_v35 = vpop.f32.mrb[152].mxu1  ;;  %10693 = vmatmul.mubr.msk.bf16.vlgmr.msra.gmra.mrb[184].mxu0 %vm2082_vm4, %v8292_v44 }
0x128b   : > { %v8260_v11 = vmul.f32 %v9319_v47, %v8221_v35  ;;  %v10674_v45 = vpop.f32.mrb[153].mxu1  ;;  %10696 = vmatprep.mubr.msk.bf16.mxu0 %vm11350_vm0, %v11349_v1 }
0x128c   : > { %v8224_v25 = vpop.f32.mrb[154].mxu1 }
0x128d   : > { %v8276_v24 = vadd.f32 %v9320_v58, %v8260_v11  ;;  %v8261_v54 = vmul.f32 %v9319_v47, %v8224_v25  ;;  %v10675_v40 = vpop.f32.mrb[155].mxu1 }
0x128f   : > { %v8277_v17 = vadd.f32 %v9320_v58, %v8261_v54  ;;  %v8285_v37 = vmax.f32 %v8276_v24, 0.0 }
0x1291   : > { %v8286_v2 = vmax.f32 %v8277_v17, 0.0 }
0x1292   : > { %v8229_v42 = vpop.f32.mrb[156].mxu1 }
0x1293   : > { %v8293_v60 = vpack.c.bf16 %v8286_v2, %v8285_v37  ;;  %v8262_v57 = vmul.f32 %v9319_v47, %v8229_v42  ;;  %v10678_v27 = vpop.f32.mrb[157].mxu1 }
0x1294   : > { %v8232_v19 = vpop.f32.mrb[158].mxu1 }
0x1295   : > { %v8278_v6 = vadd.f32 %v9320_v58, %v8262_v57  ;;  %v8263_v9 = vmul.f32 %v9319_v47, %v8232_v19  ;;  %v10679_v3 = vpop.f32.mrb[159].mxu1  ;;  %10697 = vmatmul.mubr.msk.bf16.gmra.mrb[188].mxu0 %vm2082_vm4, %v8293_v60 }
0x1296   : > { %10700 = vmatprep.mubr.msk.bf16.mxu0 %vm11350_vm0, %v11349_v1 }
0x1297   : > { %v8279_v14 = vadd.f32 %v9320_v58, %v8263_v9  ;;  %v8287_v46 = vmax.f32 %v8278_v6, 0.0 }
0x1299   : > { %v8288_v62 = vmax.f32 %v8279_v14, 0.0 }
0x129a   : > { %v8237_v20 = vpop.f32.mrb[160].mxu1 }
0x129b   : > { %v8294_v16 = vpack.c.bf16 %v8288_v62, %v8287_v46  ;;  %v8264_v51 = vmul.f32 %v9319_v47, %v8237_v20  ;;  %v10682_v56 = vpop.f32.mrb[161].mxu1 }
0x129c   : > { %v8240_v8 = vpop.f32.mrb[162].mxu1 }
0x129d   : > { %v8280_v22 = vadd.f32 %v9320_v58, %v8264_v51  ;;  %v8265_v29 = vmul.f32 %v9319_v47, %v8240_v8  ;;  %v10683_v13 = vpop.f32.mrb[163].mxu1  ;;  %10701 = vmatmul.mubr.msk.bf16.gmra.mrb[192].mxu0 %vm2082_vm4, %v8294_v16 }
0x129e   : > { %10704 = vmatprep.mubr.msk.bf16.mxu0 %vm11350_vm0, %v11349_v1 }
0x129f   : > { %v8281_v31 = vadd.f32 %v9320_v58, %v8265_v29  ;;  %v8289_v50 = vmax.f32 %v8280_v22, 0.0 }
0x12a1   : > { %v8290_v48 = vmax.f32 %v8281_v31, 0.0 }
0x12a2   : > { %v8245_v12 = vpop.f32.mrb[164].mxu1 }
0x12a3   : > { %v8295_v15 = vpack.c.bf16 %v8290_v48, %v8289_v50  ;;  %v8266_v0 = vmul.f32 %v9319_v47, %v8245_v12  ;;  %v10686_v18 = vpop.f32.mrb[165].mxu1 }
0x12a4   : > { %v8248_v61 = vpop.f32.mrb[166].mxu1 }
0x12a5   : > { %v8282_v52 = vadd.f32 %v9320_v58, %v8266_v0  ;;  %v10687_v30 = vpop.f32.mrb[167].mxu1  ;;  %10705 = vmatmul.mubr.msk.bf16.gmra.mrb[196].mxu0 %vm2082_vm4, %v8295_v15 }
0x12a6   : > { %10708 = vmatprep.mubr.msk.bf16.mxu0 %vm11350_vm0, %v11349_v1  ;;  %v8509_v30 = vpop.permute.xlu0 %8508 }
0x12a7   : > { %v8291_v7 = vmax.f32 %v8282_v52, 0.0  ;;  %v8441_v52 = vld [vmem:[%s11562_s30] sm:$0x1] }
0x12a9   : > { %v8296_v39 = vpack.c.bf16 %v8291_v7, %v8291_v7 }
0x12ad   : > { %10709 = vmatmul.mubr.msk.bf16.gmra.mrb[200].mxu0 %vm2082_vm4, %v8296_v39 }
0x135d   : > { %v8362_v10 = vpop.f32.mrb[184].mxu0 }
0x135e   : > { %v8407_v4 = vmul.f32 %v9328_v28, %v8362_v10  ;;  %v10694_v55 = vpop.f32.mrb[185].mxu0  ;;  %v8516_v10 = vpop.permute.xlu1 %8515 }
0x135f   : > { %v8365_v23 = vpop.f32.mrb[186].mxu0 }
0x1360   : > { %v8423_v59 = vadd.f32 %v9329_v43, %v8407_v4  ;;  %v8408_v5 = vmul.f32 %v9328_v28, %v8365_v23  ;;  %v10695_v34 = vpop.f32.mrb[187].mxu0 }
0x1362   : > { %v8424_v47 = vadd.f32 %v9329_v43, %v8408_v5  ;;  %v8432_v63 = vmax.f32 %v8423_v59, 0.0 }
0x1364   : > { %v8433_v58 = vmax.f32 %v8424_v47, 0.0 }
0x1366   : > { %v8442_v26 = vpack.c.bf16 %v8433_v58, %v8432_v63 }
0x1368   : > { %v8370_v21 = vpop.f32.mrb[188].mxu0  ;;  %v8451_v36 = vsel %vm2082_vm4, %v8442_v26, 0 }
0x1369   : > { %v8409_v41 = vmul.f32 %v9328_v28, %v8370_v21  ;;  %v10698_v38 = vpop.f32.mrb[189].mxu0  ;;  %10713 = vmatpush3.bf16.xpose.msra.mxu1 %v8451_v36 }
0x136a   : > { %v8373_v33 = vpop.f32.mrb[190].mxu0  ;;  %10714 = vmatprep.subr.bf16.mxu1 %v11349_v1 }
0x136b   : > { %v8425_v53 = vadd.f32 %v9329_v43, %v8409_v41  ;;  %v8410_v32 = vmul.f32 %v9328_v28, %v8373_v33  ;;  %v10699_v49 = vpop.f32.mrb[191].mxu0 }
0x136d   : > { %v8426_v44 = vadd.f32 %v9329_v43, %v8410_v32  ;;  %v8434_v35 = vmax.f32 %v8425_v53, 0.0 }
0x136f   : > { %v8435_v11 = vmax.f32 %v8426_v44, 0.0 }
0x1370   : > { %v8378_v45 = vpop.f32.mrb[192].mxu0 }
0x1371   : > { %v8443_v25 = vpack.c.bf16 %v8435_v11, %v8434_v35  ;;  %v8411_v24 = vmul.f32 %v9328_v28, %v8378_v45  ;;  %v10702_v54 = vpop.f32.mrb[193].mxu0 }
0x1372   : > { %v8381_v40 = vpop.f32.mrb[194].mxu0 }
0x1373   : > { %v8427_v17 = vadd.f32 %v9329_v43, %v8411_v24  ;;  %v8412_v37 = vmul.f32 %v9328_v28, %v8381_v40  ;;  %v10703_v2 = vpop.f32.mrb[195].mxu0  ;;  %v8454_v42 = vsel %vm2082_vm4, %v8443_v25, 0 }
0x1374   : > { %10715 = vmatpush3.bf16.xpose.msra.mxu1 %v8454_v42 }
0x1375   : > { %v8428_v60 = vadd.f32 %v9329_v43, %v8412_v37  ;;  %10716 = vmatprep.subr.bf16.mxu1 %v11349_v1  ;;  %v8436_v57 = vmax.f32 %v8427_v17, 0.0 }
0x1377   : > { %v8437_v27 = vmax.f32 %v8428_v60, 0.0 }
0x1378   : > { %v8386_v19 = vpop.f32.mrb[196].mxu0 }
0x1379   : > { %v8444_v6 = vpack.c.bf16 %v8437_v27, %v8436_v57  ;;  %v8413_v9 = vmul.f32 %v9328_v28, %v8386_v19  ;;  %v10706_v3 = vpop.f32.mrb[197].mxu0 }
0x137a   : > { %v8389_v14 = vpop.f32.mrb[198].mxu0 }
0x137b   : > { %v8429_v46 = vadd.f32 %v9329_v43, %v8413_v9  ;;  %v8414_v62 = vmul.f32 %v9328_v28, %v8389_v14  ;;  %v10707_v20 = vpop.f32.mrb[199].mxu0  ;;  %v8457_v16 = vsel %vm2082_vm4, %v8444_v6, 0 }
0x137c   : > { %10717 = vmatpush3.bf16.xpose.msra.mxu1 %v8457_v16 }
0x137d   : > { %v8430_v51 = vadd.f32 %v9329_v43, %v8414_v62  ;;  %10718 = vmatprep.subr.bf16.mxu1 %v11349_v1  ;;  %v8438_v56 = vmax.f32 %v8429_v46, 0.0 }
0x137f   : > { %v8439_v8 = vmax.f32 %v8430_v51, 0.0 }
0x1380   : > { %v8394_v22 = vpop.f32.mrb[200].mxu0 }
0x1381   : > { %v8445_v29 = vpack.c.bf16 %v8439_v8, %v8438_v56  ;;  %v8415_v13 = vmul.f32 %v9328_v28, %v8394_v22  ;;  %v10710_v31 = vpop.f32.mrb[201].mxu0 }
0x1382   : > { %v8397_v50 = vpop.f32.mrb[202].mxu0 }
0x1383   : > { %v8431_v48 = vadd.f32 %v9329_v43, %v8415_v13  ;;  %v10711_v12 = vpop.f32.mrb[203].mxu0  ;;  %v8460_v15 = vsel %vm2082_vm4, %v8445_v29, 0 }
0x1384   : > { %10719 = vmatpush3.bf16.xpose.msra.mxu1 %v8460_v15 }
0x1385   : > { %v8440_v0 = vmax.f32 %v8431_v48, 0.0  ;;  %10720 = vmatprep.subr.bf16.mxu1 %v11349_v1 }
0x1387   : > { %v8446_v18 = vpack.c.bf16 %v8440_v0, %v8440_v0 }
0x1389   : > { %v8463_v61 = vsel %vm2082_vm4, %v8446_v18, 0 }
0x138c   : > { %10721 = vmatpush3.bf16.xpose.msra.mxu1 %v8463_v61 }
0x1393   : > { %10723 = vmatmul.mubr.msk.bf16.vlgmr.msra.gmra.mrb[168].mxu1 %vm2082_vm4, %v8441_v52 }
0x1466   : > { %v8499_v7 = vpop.f32.mrb[168].mxu1 }
0x1467   : > { %v8511_v39 = vmul.f32 %v8509_v30, %v8499_v7  ;;  %v10724_v28 = vpop.f32.mrb[169].mxu1 }
0x1468   : > { %v8502_v43 = vpop.f32.mrb[170].mxu1 }
0x1469   : > { %v8518_v4 = vadd.f32 %v8516_v10, %v8511_v39  ;;  %v10725_v55 = vpop.f32.mrb[171].mxu1 }
0x146b   : > { %8519 = vst.msk [vmem:[%s1352_s2] sm:$0x3] %vm7884_vm13, %v8518_v4 }
0x146c PF: > { %s97_s22 = sadd.s32 1, %s11304_s22  }
0x146d   : > { %p94_p4 = scmp.ge.s32.totalorder %s97_s22, 4  }
0x146f   :  { %96 = sbr.rel (!%p94_p4) target bundleno = 83 (0x53), region = 303 }

</bundles_post_ra>
